<compile_context>
chip_gen: v7x
topology: tpu7x:2x2x1
jax: 0.10.0
libtpu: 0.0.40
codegen_flags: <defaults>
</compile_context>

<pallas_src>
import math

import jax
import jax.numpy as jnp
from jax.experimental import pallas as pl
from jax.experimental.pallas import tpu as pltpu


def _acos(x):
    # Abramowitz & Stegun 4.4.46: acos(a) ~ sqrt(1-a)*poly(a) on [0,1],
    # |error| <= ~2e-8.  Only abs/min/sqrt/mul/add/select -> always lowers.
    a = jnp.minimum(jnp.abs(x), 1.0)
    p = -0.0012624911
    p = p * a + 0.0066700901
    p = p * a - 0.0170881256
    p = p * a + 0.0308918810
    p = p * a - 0.0501743046
    p = p * a + 0.0889789874
    p = p * a - 0.2145988016
    p = p * a + 1.5707963050
    r = jnp.sqrt(1.0 - a) * p
    return jnp.where(x < 0, math.pi - r, r)


def _make_kernel(N, H, W, O1, K2, slack):
    HW = H * W
    NHW = N * HW

    def thomson_a2(inner):
        """Thomson 'a2' loss from the Gram matrix inner = filt.T @ filt."""
        F = inner.shape[0]
        rows = jax.lax.broadcasted_iota(jnp.int32, (F, F), 0)
        cols = jax.lax.broadcasted_iota(jnp.int32, (F, F), 1)
        # Column norms derived ONCE from the Gram diagonal (both orientations).
        diag = jnp.where(rows == cols, inner, 0.0)
        ncol = jnp.sqrt(jnp.sum(diag, axis=1, keepdims=True)) + 1e-4   # (F, 1)
        nrow = jnp.sqrt(jnp.sum(diag, axis=0, keepdims=True)) + 1e-4   # (1, F)
        g = inner / (ncol * nrow + 1e-6)
        ac = _acos(g) * (1.0 / math.pi) + 1e-4
        keep = (rows - cols) >= 2                 # == final - triu(final, -1)
        vals = jnp.where(keep, 1.0 / (ac * ac), 0.0)
        s = jnp.sum(vals, axis=1, keepdims=True)
        s = jnp.sum(s, axis=0, keepdims=True)     # (1, 1)
        cnt = F * (F - 1) / 2.0 + 1e-8
        return s / cnt

    def kernel(x_ref, w1_ref, b1_ref, w2_ref, b2_ref, w3_ref, b3_ref,
               f1_ref, f1t_ref, f2_ref, f2t_ref,
               y_ref, thom_ref,
               act1_ref, col2_ref):
        f32 = jnp.float32

        # ---- conv1: single (NHW, C1*K1*K1) @ (C1*K1*K1, O1) MXU matmul -------
        act1 = jnp.dot(x_ref[...], w1_ref[...], preferred_element_type=f32)
        act1_ref[pl.ds(0, NHW), :] = act1 + b1_ref[...]
        if slack > 0:
            # Zero the slack tail so conv2's shifted reads of (discarded)
            # out-of-range rows stay finite.
            act1_ref[pl.ds(NHW, slack), :] = jnp.zeros((slack, O1), f32)

        # ---- conv2: in-VMEM im2col, then ONE (NHW, K2*K2*O1)@(.., O2) matmul -
        for ki in range(K2):
            for kj in range(K2):
                idx = ki * K2 + kj
                sh = ki * W + kj
                col2_ref[:, pl.ds(idx * O1, O1)] = act1_ref[pl.ds(sh, NHW), :]
        acc2 = jnp.dot(col2_ref[...], w2_ref[...], preferred_element_type=f32)
        acc2 = acc2 + b2_ref[...]                                  # (NHW, O2)

        # ---- conv3 (1x1 output): masked per-batch MXU contraction over HW ----
        ones_row = jnp.ones((1, HW), f32)
        for n in range(N):
            prod = acc2[n * HW:(n + 1) * HW, :] * w3_ref[...]      # (HW, O2)
            pn = jnp.dot(ones_row, prod, preferred_element_type=f32)  # (1, O2)
            y_ref[pl.ds(n, 1), :] = (jnp.sum(pn, axis=1, keepdims=True)
                                     + b3_ref[...])                # (1, 1)

        # ---- Thomson 'a2' losses (conv3's term is exactly 0) -----------------
        inner1 = jnp.dot(f1t_ref[...], f1_ref[...], preferred_element_type=f32)
        inner2 = jnp.dot(f2t_ref[...], f2_ref[...], preferred_element_type=f32)
        thom_ref[...] = (thomson_a2(inner1) + thomson_a2(inner2)) / 3.0

    return kernel


def test_fully_connected(x, params):
    """Training-mode forward of TestFullyConnected: returns (y, thomson_loss)."""
    w1, b1 = params["conv1"]
    w2, b2 = params["conv2"]
    w3, b3 = params["conv3"]

    N, C1, H, W = x.shape
    O1, _, K1, _ = w1.shape
    O2, _, K2, _ = w2.shape
    O3, _, K3, _ = w3.shape
    # Invariant: valid convs with conv3 collapsing to a 1x1 output; the kernel's
    # edge/wrap/slack masking is only correct under exactly this chain.
    assert O3 == 1 and K3 == H - (K1 - 1) - (K2 - 1) == W - (K1 - 1) - (K2 - 1)
    HW = H * W
    NHW = N * HW
    slack = (((K2 - 1) * (W + 1)) + 7) // 8 * 8   # >= max conv2 row shift, 8-aligned
    f32 = jnp.float32

    # --- host-side layout prep (tiny, weight/input-sized XLA ops only) -------
    # conv1 im2col at full HxW resolution, column order (ki, kj, c); zero-padded
    # taps — invalid output rows are killed later by the conv3 mask.
    xh = x.transpose(0, 2, 3, 1).astype(f32)                        # (N,H,W,C1)
    xp = jnp.pad(xh, ((0, 0), (0, K1 - 1), (0, K1 - 1), (0, 0)))
    taps = [xp[:, ki:ki + H, kj:kj + W, :]
            for ki in range(K1) for kj in range(K1)]
    x_col = jnp.concatenate(taps, axis=-1).reshape(NHW, K1 * K1 * C1)

    w1m = jnp.transpose(w1, (2, 3, 1, 0)).reshape(K1 * K1 * C1, O1).astype(f32)
    w2m = jnp.transpose(w2, (2, 3, 1, 0)).reshape(K2 * K2 * O1, O2).astype(f32)
    # conv3 weight as a single zero-padded (HW, O2) mask (no batch tiling).
    w3m = jnp.transpose(w3[0], (1, 2, 0))                           # (K3,K3,O2)
    w3m = jnp.pad(w3m, ((0, H - K3), (0, W - K3), (0, 0)))
    w3m = w3m.reshape(HW, O2).astype(f32)
    b1r = b1.reshape(1, O1).astype(f32)
    b2r = b2.reshape(1, O2).astype(f32)
    b3r = b3.reshape(1, 1).astype(f32)
    # Thomson filters (== torch weight.view(-1, n_filt)); pre-transposed copies
    # keep the Gram matmul in the natural MXU orientation.
    f1 = w1.reshape(-1, O1).astype(f32)
    f2 = w2.reshape(-1, O2).astype(f32)

    y, thom = pl.pallas_call(
        _make_kernel(N, H, W, O1, K2, slack),
        out_shape=(jax.ShapeDtypeStruct((N, 1), f32),
                   jax.ShapeDtypeStruct((1, 1), f32)),
        scratch_shapes=[
            pltpu.VMEM((NHW + slack, O1), f32),        # act1 (+ zeroed slack)
            pltpu.VMEM((NHW, K2 * K2 * O1), f32),      # conv2 im2col
        ],
        # Scaling insurance only — current footprint is ~2 MiB.
        compiler_params=pltpu.CompilerParams(vmem_limit_bytes=32 * 1024 * 1024),
    )(x_col, w1m, b1r, w2m, b2r, w3m, b3r, f1, f1.T, f2, f2.T)

    return y.reshape(N, O3, 1, 1), thom[0, 0]


def init_conv_params(key, out_ch, in_ch, k):
    kw, kb = jax.random.split(key)
    w = jax.random.normal(kw, (out_ch, in_ch, k, k), dtype=jnp.float32)  # init.normal_
    bound = 1.0 / math.sqrt(in_ch * k * k)                               # default bias init
    b = jax.random.uniform(kb, (out_ch,), minval=-bound, maxval=bound,
                           dtype=jnp.float32)
    return w, b


if __name__ == "__main__":
    root = jax.random.PRNGKey(0)
    kx, k1, k2, k3 = jax.random.split(root, 4)
    x = jax.random.normal(kx, (2, 3, 16, 16), dtype=jnp.float32)
    params = {
        "conv1": init_conv_params(k1, 32, 3, 3),
        "conv2": init_conv_params(k2, 64, 32, 3),
        "conv3": init_conv_params(k3, 1, 64, 12),
    }
    fwd = jax.jit(test_fully_connected)
    y, thom = fwd(x, params)
    jax.block_until_ready((y, thom))
    assert y.shape == (2, 1, 1, 1) and thom.shape == ()
    assert bool(jnp.all(jnp.isfinite(y))) and bool(jnp.isfinite(thom))
    print("KERNEL_OK")
</pallas_src>

<mosaic_0001>
module attributes {stable_mosaic.version = 11 : i64} {
  func.func @kernel(%arg0: memref<512x27xf32, #tpu.memory_space<vmem>>, %arg1: memref<27x32xf32, #tpu.memory_space<vmem>>, %arg2: memref<1x32xf32, #tpu.memory_space<vmem>>, %arg3: memref<288x64xf32, #tpu.memory_space<vmem>>, %arg4: memref<1x64xf32, #tpu.memory_space<vmem>>, %arg5: memref<256x64xf32, #tpu.memory_space<vmem>>, %arg6: memref<1x1xf32, #tpu.memory_space<vmem>>, %arg7: memref<27x32xf32, #tpu.memory_space<vmem>>, %arg8: memref<32x27xf32, #tpu.memory_space<vmem>>, %arg9: memref<288x64xf32, #tpu.memory_space<vmem>>, %arg10: memref<64x288xf32, #tpu.memory_space<vmem>>, %arg11: memref<2x1xf32, #tpu.memory_space<vmem>>, %arg12: memref<1x1xf32, #tpu.memory_space<vmem>>, %arg13: memref<552x32xf32, #tpu.memory_space<vmem>>, %arg14: memref<512x288xf32, #tpu.memory_space<vmem>>) attributes {dimension_semantics = [], scalar_prefetch = 0 : i64, scratch_operands = 2 : i64, tpu.core_type = #tpu.core_type<tc>} {
    %c0 = arith.constant 0 : index
    %c0_0 = arith.constant 0 : index
    %0 = vector.load %arg0[%c0, %c0_0] : memref<512x27xf32, #tpu.memory_space<vmem>>, vector<512x27xf32>
    %c0_1 = arith.constant 0 : index
    %c0_2 = arith.constant 0 : index
    %1 = vector.load %arg1[%c0_1, %c0_2] : memref<27x32xf32, #tpu.memory_space<vmem>>, vector<27x32xf32>
    %cst = arith.constant dense<0.000000e+00> : vector<512x32xf32>
    %2 = tpu.matmul %0, %1, %cst {dimension_numbers = #tpu.dot_dimension_numbers<[1], [0], [0], [1], [0, 0, 1, 1], [], []>} : vector<512x27xf32>, vector<27x32xf32>, vector<512x32xf32> -> vector<512x32xf32>
    %c0_3 = arith.constant 0 : index
    %c0_4 = arith.constant 0 : index
    %3 = vector.load %arg2[%c0_3, %c0_4] : memref<1x32xf32, #tpu.memory_space<vmem>>, vector<1x32xf32>
    %4 = vector.broadcast %3 : vector<1x32xf32> to vector<512x32xf32>
    %5 = arith.addf %2, %4 : vector<512x32xf32>
    %c0_5 = arith.constant 0 : index
    %c0_6 = arith.constant 0 : index
    %6 = vector.load %arg13[%c0_5, %c0_6] : memref<552x32xf32, #tpu.memory_space<vmem>>, vector<512x32xf32>
    tpu.vector_store %arg13[%c0_5, %c0_6], %5 {strides = array<i32>} : memref<552x32xf32, #tpu.memory_space<vmem>>, vector<512x32xf32>,
    %cst_7 = arith.constant 0.000000e+00 : f32
    %7 = vector.broadcast %cst_7 : f32 to vector<40x32xf32>
    %c512 = arith.constant 512 : index
    %c0_8 = arith.constant 0 : index
    %8 = vector.load %arg13[%c512, %c0_8] : memref<552x32xf32, #tpu.memory_space<vmem>>, vector<40x32xf32>
    tpu.vector_store %arg13[%c512, %c0_8], %7 {strides = array<i32>} : memref<552x32xf32, #tpu.memory_space<vmem>>, vector<40x32xf32>,
    %c0_9 = arith.constant 0 : index
    %c0_10 = arith.constant 0 : index
    %9 = vector.load %arg13[%c0_9, %c0_10] : memref<552x32xf32, #tpu.memory_space<vmem>>, vector<512x32xf32>
    %c0_11 = arith.constant 0 : index
    %c0_12 = arith.constant 0 : index
    %10 = vector.load %arg14[%c0_11, %c0_12] : memref<512x288xf32, #tpu.memory_space<vmem>>, vector<512x32xf32>
    tpu.vector_store %arg14[%c0_11, %c0_12], %9 {strides = array<i32>} : memref<512x288xf32, #tpu.memory_space<vmem>>, vector<512x32xf32>,
    %c1 = arith.constant 1 : index
    %c0_13 = arith.constant 0 : index
    %11 = vector.load %arg13[%c1, %c0_13] : memref<552x32xf32, #tpu.memory_space<vmem>>, vector<512x32xf32>
    %c0_14 = arith.constant 0 : index
    %c32 = arith.constant 32 : index
    %12 = vector.load %arg14[%c0_14, %c32] : memref<512x288xf32, #tpu.memory_space<vmem>>, vector<512x32xf32>
    tpu.vector_store %arg14[%c0_14, %c32], %11 {strides = array<i32>} : memref<512x288xf32, #tpu.memory_space<vmem>>, vector<512x32xf32>,
    %c2 = arith.constant 2 : index
    %c0_15 = arith.constant 0 : index
    %13 = vector.load %arg13[%c2, %c0_15] : memref<552x32xf32, #tpu.memory_space<vmem>>, vector<512x32xf32>
    %c0_16 = arith.constant 0 : index
    %c64 = arith.constant 64 : index
    %14 = vector.load %arg14[%c0_16, %c64] : memref<512x288xf32, #tpu.memory_space<vmem>>, vector<512x32xf32>
    tpu.vector_store %arg14[%c0_16, %c64], %13 {strides = array<i32>} : memref<512x288xf32, #tpu.memory_space<vmem>>, vector<512x32xf32>,
    %c16 = arith.constant 16 : index
    %c0_17 = arith.constant 0 : index
    %15 = vector.load %arg13[%c16, %c0_17] : memref<552x32xf32, #tpu.memory_space<vmem>>, vector<512x32xf32>
    %c0_18 = arith.constant 0 : index
    %c96 = arith.constant 96 : index
    %16 = vector.load %arg14[%c0_18, %c96] : memref<512x288xf32, #tpu.memory_space<vmem>>, vector<512x32xf32>
    tpu.vector_store %arg14[%c0_18, %c96], %15 {strides = array<i32>} : memref<512x288xf32, #tpu.memory_space<vmem>>, vector<512x32xf32>,
    %c17 = arith.constant 17 : index
    %c0_19 = arith.constant 0 : index
    %17 = vector.load %arg13[%c17, %c0_19] : memref<552x32xf32, #tpu.memory_space<vmem>>, vector<512x32xf32>
    %c0_20 = arith.constant 0 : index
    %c128 = arith.constant 128 : index
    %18 = vector.load %arg14[%c0_20, %c128] : memref<512x288xf32, #tpu.memory_space<vmem>>, vector<512x32xf32>
    tpu.vector_store %arg14[%c0_20, %c128], %17 {strides = array<i32>} : memref<512x288xf32, #tpu.memory_space<vmem>>, vector<512x32xf32>,
    %c18 = arith.constant 18 : index
    %c0_21 = arith.constant 0 : index
    %19 = vector.load %arg13[%c18, %c0_21] : memref<552x32xf32, #tpu.memory_space<vmem>>, vector<512x32xf32>
    %c0_22 = arith.constant 0 : index
    %c160 = arith.constant 160 : index
    %20 = vector.load %arg14[%c0_22, %c160] : memref<512x288xf32, #tpu.memory_space<vmem>>, vector<512x32xf32>
    tpu.vector_store %arg14[%c0_22, %c160], %19 {strides = array<i32>} : memref<512x288xf32, #tpu.memory_space<vmem>>, vector<512x32xf32>,
    %c32_23 = arith.constant 32 : index
    %c0_24 = arith.constant 0 : index
    %21 = vector.load %arg13[%c32_23, %c0_24] : memref<552x32xf32, #tpu.memory_space<vmem>>, vector<512x32xf32>
    %c0_25 = arith.constant 0 : index
    %c192 = arith.constant 192 : index
    %22 = vector.load %arg14[%c0_25, %c192] : memref<512x288xf32, #tpu.memory_space<vmem>>, vector<512x32xf32>
    tpu.vector_store %arg14[%c0_25, %c192], %21 {strides = array<i32>} : memref<512x288xf32, #tpu.memory_space<vmem>>, vector<512x32xf32>,
    %c33 = arith.constant 33 : index
    %c0_26 = arith.constant 0 : index
    %23 = vector.load %arg13[%c33, %c0_26] : memref<552x32xf32, #tpu.memory_space<vmem>>, vector<512x32xf32>
    %c0_27 = arith.constant 0 : index
    %c224 = arith.constant 224 : index
    %24 = vector.load %arg14[%c0_27, %c224] : memref<512x288xf32, #tpu.memory_space<vmem>>, vector<512x32xf32>
    tpu.vector_store %arg14[%c0_27, %c224], %23 {strides = array<i32>} : memref<512x288xf32, #tpu.memory_space<vmem>>, vector<512x32xf32>,
    %c34 = arith.constant 34 : index
    %c0_28 = arith.constant 0 : index
    %25 = vector.load %arg13[%c34, %c0_28] : memref<552x32xf32, #tpu.memory_space<vmem>>, vector<512x32xf32>
    %c0_29 = arith.constant 0 : index
    %c256 = arith.constant 256 : index
    %26 = vector.load %arg14[%c0_29, %c256] : memref<512x288xf32, #tpu.memory_space<vmem>>, vector<512x32xf32>
    tpu.vector_store %arg14[%c0_29, %c256], %25 {strides = array<i32>} : memref<512x288xf32, #tpu.memory_space<vmem>>, vector<512x32xf32>,
    %c0_30 = arith.constant 0 : index
    %c0_31 = arith.constant 0 : index
    %27 = vector.load %arg14[%c0_30, %c0_31] : memref<512x288xf32, #tpu.memory_space<vmem>>, vector<512x288xf32>
    %c0_32 = arith.constant 0 : index
    %c0_33 = arith.constant 0 : index
    %28 = vector.load %arg3[%c0_32, %c0_33] : memref<288x64xf32, #tpu.memory_space<vmem>>, vector<288x64xf32>
    %cst_34 = arith.constant dense<0.000000e+00> : vector<512x64xf32>
    %29 = tpu.matmul %27, %28, %cst_34 {dimension_numbers = #tpu.dot_dimension_numbers<[1], [0], [0], [1], [0, 0, 1, 1], [], []>} : vector<512x288xf32>, vector<288x64xf32>, vector<512x64xf32> -> vector<512x64xf32>
    %c0_35 = arith.constant 0 : index
    %c0_36 = arith.constant 0 : index
    %30 = vector.load %arg4[%c0_35, %c0_36] : memref<1x64xf32, #tpu.memory_space<vmem>>, vector<1x64xf32>
    %31 = vector.broadcast %30 : vector<1x64xf32> to vector<512x64xf32>
    %32 = arith.addf %29, %31 : vector<512x64xf32>
    %cst_37 = arith.constant 1.000000e+00 : f32
    %33 = vector.broadcast %cst_37 : f32 to vector<1x256xf32>
    %34 = vector.extract_strided_slice %32 {offsets = [0, 0], sizes = [256, 64], strides = [1, 1]} : vector<512x64xf32> to vector<256x64xf32>
    %c0_38 = arith.constant 0 : index
    %c0_39 = arith.constant 0 : index
    %35 = vector.load %arg5[%c0_38, %c0_39] : memref<256x64xf32, #tpu.memory_space<vmem>>, vector<256x64xf32>
    %36 = arith.mulf %34, %35 : vector<256x64xf32>
    %cst_40 = arith.constant dense<0.000000e+00> : vector<1x64xf32>
    %37 = tpu.matmul %33, %36, %cst_40 {dimension_numbers = #tpu.dot_dimension_numbers<[1], [0], [0], [1], [0, 0, 1, 1], [], []>} : vector<1x256xf32>, vector<256x64xf32>, vector<1x64xf32> -> vector<1x64xf32>
    %cst_41 = arith.constant dense<0.000000e+00> : vector<1xf32>
    %38 = vector.multi_reduction <add>, %37, %cst_41 [1] : vector<1x64xf32> to vector<1xf32>
    %39 = vector.shape_cast %38 : vector<1xf32> to vector<1x1xf32>
    %c0_42 = arith.constant 0 : index
    %c0_43 = arith.constant 0 : index
    %40 = vector.load %arg6[%c0_42, %c0_43] : memref<1x1xf32, #tpu.memory_space<vmem>>, vector<1x1xf32>
    %41 = arith.addf %39, %40 : vector<1x1xf32>
    %c0_44 = arith.constant 0 : index
    %c0_45 = arith.constant 0 : index
    %42 = vector.load %arg11[%c0_44, %c0_45] : memref<2x1xf32, #tpu.memory_space<vmem>>, vector<1x1xf32>
    tpu.vector_store %arg11[%c0_44, %c0_45], %41 {strides = array<i32>} : memref<2x1xf32, #tpu.memory_space<vmem>>, vector<1x1xf32>,
    %43 = vector.extract_strided_slice %32 {offsets = [256, 0], sizes = [256, 64], strides = [1, 1]} : vector<512x64xf32> to vector<256x64xf32>
    %c0_46 = arith.constant 0 : index
    %c0_47 = arith.constant 0 : index
    %44 = vector.load %arg5[%c0_46, %c0_47] : memref<256x64xf32, #tpu.memory_space<vmem>>, vector<256x64xf32>
    %45 = arith.mulf %43, %44 : vector<256x64xf32>
    %cst_48 = arith.constant dense<0.000000e+00> : vector<1x64xf32>
    %46 = tpu.matmul %33, %45, %cst_48 {dimension_numbers = #tpu.dot_dimension_numbers<[1], [0], [0], [1], [0, 0, 1, 1], [], []>} : vector<1x256xf32>, vector<256x64xf32>, vector<1x64xf32> -> vector<1x64xf32>
    %cst_49 = arith.constant dense<0.000000e+00> : vector<1xf32>
    %47 = vector.multi_reduction <add>, %46, %cst_49 [1] : vector<1x64xf32> to vector<1xf32>
    %48 = vector.shape_cast %47 : vector<1xf32> to vector<1x1xf32>
    %c0_50 = arith.constant 0 : index
    %c0_51 = arith.constant 0 : index
    %49 = vector.load %arg6[%c0_50, %c0_51] : memref<1x1xf32, #tpu.memory_space<vmem>>, vector<1x1xf32>
    %50 = arith.addf %48, %49 : vector<1x1xf32>
    %c1_52 = arith.constant 1 : index
    %c0_53 = arith.constant 0 : index
    %51 = vector.load %arg11[%c1_52, %c0_53] : memref<2x1xf32, #tpu.memory_space<vmem>>, vector<1x1xf32>
    tpu.vector_store %arg11[%c1_52, %c0_53], %50 {strides = array<i32>} : memref<2x1xf32, #tpu.memory_space<vmem>>, vector<1x1xf32>,
    %c0_54 = arith.constant 0 : index
    %c0_55 = arith.constant 0 : index
    %52 = vector.load %arg8[%c0_54, %c0_55] : memref<32x27xf32, #tpu.memory_space<vmem>>, vector<32x27xf32>
    %c0_56 = arith.constant 0 : index
    %c0_57 = arith.constant 0 : index
    %53 = vector.load %arg7[%c0_56, %c0_57] : memref<27x32xf32, #tpu.memory_space<vmem>>, vector<27x32xf32>
    %cst_58 = arith.constant dense<0.000000e+00> : vector<32x32xf32>
    %54 = tpu.matmul %52, %53, %cst_58 {dimension_numbers = #tpu.dot_dimension_numbers<[1], [0], [0], [1], [0, 0, 1, 1], [], []>} : vector<32x27xf32>, vector<27x32xf32>, vector<32x32xf32> -> vector<32x32xf32>
    %c0_59 = arith.constant 0 : index
    %c0_60 = arith.constant 0 : index
    %55 = vector.load %arg10[%c0_59, %c0_60] : memref<64x288xf32, #tpu.memory_space<vmem>>, vector<64x288xf32>
    %c0_61 = arith.constant 0 : index
    %c0_62 = arith.constant 0 : index
    %56 = vector.load %arg9[%c0_61, %c0_62] : memref<288x64xf32, #tpu.memory_space<vmem>>, vector<288x64xf32>
    %cst_63 = arith.constant dense<0.000000e+00> : vector<64x64xf32>
    %57 = tpu.matmul %55, %56, %cst_63 {dimension_numbers = #tpu.dot_dimension_numbers<[1], [0], [0], [1], [0, 0, 1, 1], [], []>} : vector<64x288xf32>, vector<288x64xf32>, vector<64x64xf32> -> vector<64x64xf32>
    %58 = tpu.iota {dimensions = array<i32: 0>} : vector<32x32xi32>
    %59 = tpu.iota {dimensions = array<i32: 1>} : vector<32x32xi32>
    %60 = arith.cmpi eq, %58, %59 : vector<32x32xi32>
    %cst_64 = arith.constant 0.000000e+00 : f32
    %61 = vector.broadcast %cst_64 : f32 to vector<32x32xf32>
    %62 = arith.select %60, %54, %61 : vector<32x32xi1>, vector<32x32xf32>
    %cst_65 = arith.constant dense<0.000000e+00> : vector<32xf32>
    %63 = vector.multi_reduction <add>, %62, %cst_65 [1] : vector<32x32xf32> to vector<32xf32>
    %64 = vector.shape_cast %63 : vector<32xf32> to vector<32x1xf32>
    %65 = math.sqrt %64 : vector<32x1xf32>
    %cst_66 = arith.constant 9.99999974E-5 : f32
    %66 = vector.broadcast %cst_66 : f32 to vector<32x1xf32>
    %67 = arith.addf %65, %66 : vector<32x1xf32>
    %cst_67 = arith.constant dense<0.000000e+00> : vector<32xf32>
    %68 = vector.multi_reduction <add>, %62, %cst_67 [0] : vector<32x32xf32> to vector<32xf32>
    %69 = vector.shape_cast %68 : vector<32xf32> to vector<1x32xf32>
    %70 = math.sqrt %69 : vector<1x32xf32>
    %cst_68 = arith.constant 9.99999974E-5 : f32
    %71 = vector.broadcast %cst_68 : f32 to vector<1x32xf32>
    %72 = arith.addf %70, %71 : vector<1x32xf32>
    %73 = vector.broadcast %67 : vector<32x1xf32> to vector<32x32xf32>
    %74 = vector.broadcast %72 : vector<1x32xf32> to vector<32x32xf32>
    %75 = arith.mulf %73, %74 : vector<32x32xf32>
    %cst_69 = arith.constant 9.99999997E-7 : f32
    %76 = vector.broadcast %cst_69 : f32 to vector<32x32xf32>
    %77 = arith.addf %75, %76 : vector<32x32xf32>
    %78 = arith.divf %54, %77 : vector<32x32xf32>
    %79 = math.absf %78 : vector<32x32xf32>
    %cst_70 = arith.constant 1.000000e+00 : f32
    %80 = vector.broadcast %cst_70 : f32 to vector<32x32xf32>
    %81 = arith.minimumf %79, %80 : vector<32x32xf32>
    %cst_71 = arith.constant -0.0012624911 : f32
    %82 = vector.broadcast %cst_71 : f32 to vector<32x32xf32>
    %83 = arith.mulf %82, %81 : vector<32x32xf32>
    %cst_72 = arith.constant 6.670090e-03 : f32
    %84 = vector.broadcast %cst_72 : f32 to vector<32x32xf32>
    %85 = arith.addf %83, %84 : vector<32x32xf32>
    %86 = arith.mulf %85, %81 : vector<32x32xf32>
    %cst_73 = arith.constant 0.0170881264 : f32
    %87 = vector.broadcast %cst_73 : f32 to vector<32x32xf32>
    %88 = arith.subf %86, %87 : vector<32x32xf32>
    %89 = arith.mulf %88, %81 : vector<32x32xf32>
    %cst_74 = arith.constant 0.0308918804 : f32
    %90 = vector.broadcast %cst_74 : f32 to vector<32x32xf32>
    %91 = arith.addf %89, %90 : vector<32x32xf32>
    %92 = arith.mulf %91, %81 : vector<32x32xf32>
    %cst_75 = arith.constant 0.0501743034 : f32
    %93 = vector.broadcast %cst_75 : f32 to vector<32x32xf32>
    %94 = arith.subf %92, %93 : vector<32x32xf32>
    %95 = arith.mulf %94, %81 : vector<32x32xf32>
    %cst_76 = arith.constant 0.0889789909 : f32
    %96 = vector.broadcast %cst_76 : f32 to vector<32x32xf32>
    %97 = arith.addf %95, %96 : vector<32x32xf32>
    %98 = arith.mulf %97, %81 : vector<32x32xf32>
    %cst_77 = arith.constant 0.214598805 : f32
    %99 = vector.broadcast %cst_77 : f32 to vector<32x32xf32>
    %100 = arith.subf %98, %99 : vector<32x32xf32>
    %101 = arith.mulf %100, %81 : vector<32x32xf32>
    %cst_78 = arith.constant 1.57079625 : f32
    %102 = vector.broadcast %cst_78 : f32 to vector<32x32xf32>
    %103 = arith.addf %101, %102 : vector<32x32xf32>
    %cst_79 = arith.constant 1.000000e+00 : f32
    %104 = vector.broadcast %cst_79 : f32 to vector<32x32xf32>
    %105 = arith.subf %104, %81 : vector<32x32xf32>
    %106 = math.sqrt %105 : vector<32x32xf32>
    %107 = arith.mulf %106, %103 : vector<32x32xf32>
    %cst_80 = arith.constant 0.000000e+00 : f32
    %108 = vector.broadcast %cst_80 : f32 to vector<32x32xf32>
    %109 = arith.cmpf olt, %78, %108 : vector<32x32xf32>
    %cst_81 = arith.constant 3.14159274 : f32
    %110 = vector.broadcast %cst_81 : f32 to vector<32x32xf32>
    %111 = arith.subf %110, %107 : vector<32x32xf32>
    %112 = arith.select %109, %111, %107 : vector<32x32xi1>, vector<32x32xf32>
    %cst_82 = arith.constant 0.318309873 : f32
    %113 = vector.broadcast %cst_82 : f32 to vector<32x32xf32>
    %114 = arith.mulf %112, %113 : vector<32x32xf32>
    %cst_83 = arith.constant 9.99999974E-5 : f32
    %115 = vector.broadcast %cst_83 : f32 to vector<32x32xf32>
    %116 = arith.addf %114, %115 : vector<32x32xf32>
    %117 = arith.subi %58, %59 : vector<32x32xi32>
    %c2_i32 = arith.constant 2 : i32
    %118 = vector.broadcast %c2_i32 : i32 to vector<32x32xi32>
    %119 = arith.cmpi sge, %117, %118 : vector<32x32xi32>
    %120 = arith.mulf %116, %116 : vector<32x32xf32>
    %cst_84 = arith.constant 1.000000e+00 : f32
    %121 = vector.broadcast %cst_84 : f32 to vector<32x32xf32>
    %122 = arith.divf %121, %120 : vector<32x32xf32>
    %cst_85 = arith.constant 0.000000e+00 : f32
    %123 = vector.broadcast %cst_85 : f32 to vector<32x32xf32>
    %124 = arith.select %119, %122, %123 : vector<32x32xi1>, vector<32x32xf32>
    %cst_86 = arith.constant dense<0.000000e+00> : vector<32xf32>
    %125 = vector.multi_reduction <add>, %124, %cst_86 [1] : vector<32x32xf32> to vector<32xf32>
    %126 = vector.shape_cast %125 : vector<32xf32> to vector<32x1xf32>
    %cst_87 = arith.constant dense<0.000000e+00> : vector<1xf32>
    %127 = vector.multi_reduction <add>, %126, %cst_87 [0] : vector<32x1xf32> to vector<1xf32>
    %128 = vector.shape_cast %127 : vector<1xf32> to vector<1x1xf32>
    %cst_88 = arith.constant 4.960000e+02 : f32
    %129 = vector.broadcast %cst_88 : f32 to vector<1x1xf32>
    %130 = arith.divf %128, %129 : vector<1x1xf32>
    %131 = tpu.iota {dimensions = array<i32: 0>} : vector<64x64xi32>
    %132 = tpu.iota {dimensions = array<i32: 1>} : vector<64x64xi32>
    %133 = arith.cmpi eq, %131, %132 : vector<64x64xi32>
    %cst_89 = arith.constant 0.000000e+00 : f32
    %134 = vector.broadcast %cst_89 : f32 to vector<64x64xf32>
    %135 = arith.select %133, %57, %134 : vector<64x64xi1>, vector<64x64xf32>
    %cst_90 = arith.constant dense<0.000000e+00> : vector<64xf32>
    %136 = vector.multi_reduction <add>, %135, %cst_90 [1] : vector<64x64xf32> to vector<64xf32>
    %137 = vector.shape_cast %136 : vector<64xf32> to vector<64x1xf32>
    %138 = math.sqrt %137 : vector<64x1xf32>
    %cst_91 = arith.constant 9.99999974E-5 : f32
    %139 = vector.broadcast %cst_91 : f32 to vector<64x1xf32>
    %140 = arith.addf %138, %139 : vector<64x1xf32>
    %cst_92 = arith.constant dense<0.000000e+00> : vector<64xf32>
    %141 = vector.multi_reduction <add>, %135, %cst_92 [0] : vector<64x64xf32> to vector<64xf32>
    %142 = vector.shape_cast %141 : vector<64xf32> to vector<1x64xf32>
    %143 = math.sqrt %142 : vector<1x64xf32>
    %cst_93 = arith.constant 9.99999974E-5 : f32
    %144 = vector.broadcast %cst_93 : f32 to vector<1x64xf32>
    %145 = arith.addf %143, %144 : vector<1x64xf32>
    %146 = vector.broadcast %140 : vector<64x1xf32> to vector<64x64xf32>
    %147 = vector.broadcast %145 : vector<1x64xf32> to vector<64x64xf32>
    %148 = arith.mulf %146, %147 : vector<64x64xf32>
    %cst_94 = arith.constant 9.99999997E-7 : f32
    %149 = vector.broadcast %cst_94 : f32 to vector<64x64xf32>
    %150 = arith.addf %148, %149 : vector<64x64xf32>
    %151 = arith.divf %57, %150 : vector<64x64xf32>
    %152 = math.absf %151 : vector<64x64xf32>
    %cst_95 = arith.constant 1.000000e+00 : f32
    %153 = vector.broadcast %cst_95 : f32 to vector<64x64xf32>
    %154 = arith.minimumf %152, %153 : vector<64x64xf32>
    %cst_96 = arith.constant -0.0012624911 : f32
    %155 = vector.broadcast %cst_96 : f32 to vector<64x64xf32>
    %156 = arith.mulf %155, %154 : vector<64x64xf32>
    %cst_97 = arith.constant 6.670090e-03 : f32
    %157 = vector.broadcast %cst_97 : f32 to vector<64x64xf32>
    %158 = arith.addf %156, %157 : vector<64x64xf32>
    %159 = arith.mulf %158, %154 : vector<64x64xf32>
    %cst_98 = arith.constant 0.0170881264 : f32
    %160 = vector.broadcast %cst_98 : f32 to vector<64x64xf32>
    %161 = arith.subf %159, %160 : vector<64x64xf32>
    %162 = arith.mulf %161, %154 : vector<64x64xf32>
    %cst_99 = arith.constant 0.0308918804 : f32
    %163 = vector.broadcast %cst_99 : f32 to vector<64x64xf32>
    %164 = arith.addf %162, %163 : vector<64x64xf32>
    %165 = arith.mulf %164, %154 : vector<64x64xf32>
    %cst_100 = arith.constant 0.0501743034 : f32
    %166 = vector.broadcast %cst_100 : f32 to vector<64x64xf32>
    %167 = arith.subf %165, %166 : vector<64x64xf32>
    %168 = arith.mulf %167, %154 : vector<64x64xf32>
    %cst_101 = arith.constant 0.0889789909 : f32
    %169 = vector.broadcast %cst_101 : f32 to vector<64x64xf32>
    %170 = arith.addf %168, %169 : vector<64x64xf32>
    %171 = arith.mulf %170, %154 : vector<64x64xf32>
    %cst_102 = arith.constant 0.214598805 : f32
    %172 = vector.broadcast %cst_102 : f32 to vector<64x64xf32>
    %173 = arith.subf %171, %172 : vector<64x64xf32>
    %174 = arith.mulf %173, %154 : vector<64x64xf32>
    %cst_103 = arith.constant 1.57079625 : f32
    %175 = vector.broadcast %cst_103 : f32 to vector<64x64xf32>
    %176 = arith.addf %174, %175 : vector<64x64xf32>
    %cst_104 = arith.constant 1.000000e+00 : f32
    %177 = vector.broadcast %cst_104 : f32 to vector<64x64xf32>
    %178 = arith.subf %177, %154 : vector<64x64xf32>
    %179 = math.sqrt %178 : vector<64x64xf32>
    %180 = arith.mulf %179, %176 : vector<64x64xf32>
    %cst_105 = arith.constant 0.000000e+00 : f32
    %181 = vector.broadcast %cst_105 : f32 to vector<64x64xf32>
    %182 = arith.cmpf olt, %151, %181 : vector<64x64xf32>
    %cst_106 = arith.constant 3.14159274 : f32
    %183 = vector.broadcast %cst_106 : f32 to vector<64x64xf32>
    %184 = arith.subf %183, %180 : vector<64x64xf32>
    %185 = arith.select %182, %184, %180 : vector<64x64xi1>, vector<64x64xf32>
    %cst_107 = arith.constant 0.318309873 : f32
    %186 = vector.broadcast %cst_107 : f32 to vector<64x64xf32>
    %187 = arith.mulf %185, %186 : vector<64x64xf32>
    %cst_108 = arith.constant 9.99999974E-5 : f32
    %188 = vector.broadcast %cst_108 : f32 to vector<64x64xf32>
    %189 = arith.addf %187, %188 : vector<64x64xf32>
    %190 = arith.subi %131, %132 : vector<64x64xi32>
    %c2_i32_109 = arith.constant 2 : i32
    %191 = vector.broadcast %c2_i32_109 : i32 to vector<64x64xi32>
    %192 = arith.cmpi sge, %190, %191 : vector<64x64xi32>
    %193 = arith.mulf %189, %189 : vector<64x64xf32>
    %cst_110 = arith.constant 1.000000e+00 : f32
    %194 = vector.broadcast %cst_110 : f32 to vector<64x64xf32>
    %195 = arith.divf %194, %193 : vector<64x64xf32>
    %cst_111 = arith.constant 0.000000e+00 : f32
    %196 = vector.broadcast %cst_111 : f32 to vector<64x64xf32>
    %197 = arith.select %192, %195, %196 : vector<64x64xi1>, vector<64x64xf32>
    %cst_112 = arith.constant dense<0.000000e+00> : vector<64xf32>
    %198 = vector.multi_reduction <add>, %197, %cst_112 [1] : vector<64x64xf32> to vector<64xf32>
    %199 = vector.shape_cast %198 : vector<64xf32> to vector<64x1xf32>
    %cst_113 = arith.constant dense<0.000000e+00> : vector<1xf32>
    %200 = vector.multi_reduction <add>, %199, %cst_113 [0] : vector<64x1xf32> to vector<1xf32>
    %201 = vector.shape_cast %200 : vector<1xf32> to vector<1x1xf32>
    %cst_114 = arith.constant 2.016000e+03 : f32
    %202 = vector.broadcast %cst_114 : f32 to vector<1x1xf32>
    %203 = arith.divf %201, %202 : vector<1x1xf32>
    %204 = arith.addf %130, %203 : vector<1x1xf32>
    %cst_115 = arith.constant 3.000000e+00 : f32
    %205 = vector.broadcast %cst_115 : f32 to vector<1x1xf32>
    %206 = arith.divf %204, %205 : vector<1x1xf32>
    %c0_116 = arith.constant 0 : index
    %c0_117 = arith.constant 0 : index
    %207 = vector.load %arg12[%c0_116, %c0_117] : memref<1x1xf32, #tpu.memory_space<vmem>>, vector<1x1xf32>
    tpu.vector_store %arg12[%c0_116, %c0_117], %206 {strides = array<i32>} : memref<1x1xf32, #tpu.memory_space<vmem>>, vector<1x1xf32>,
    return
  }
}

</mosaic_0001>

<bundles_post_ra>
// kernel: test_fully_connected.1
= control target key start
LH: loop header
LB: loop body
LE: loop exit
PB: predicated region body
PF: predicated region fallthrough
CT: control target
= control target key end

     0   :  { %s11086_s0 = inlined_call_operand.vmem [shape: f32[512,27], index: 0, kind: input, shape index: {}]   ;;  %s11087_s1 = inlined_call_operand.vmem [shape: f32[27,32], index: 1, kind: input, shape index: {}]   ;;  %s11088_s2 = inlined_call_operand.vmem [shape: f32[1,32], index: 2, kind: input, shape index: {}]   ;;  %s11089_s3 = inlined_call_operand.vmem [shape: f32[288,64], index: 3, kind: input, shape index: {}]   ;;  %s11090_s4 = inlined_call_operand.vmem [shape: f32[1,64], index: 4, kind: input, shape index: {}]   ;;  %s11091_s5 = inlined_call_operand.vmem [shape: f32[256,64], index: 5, kind: input, shape index: {}]   ;;  %s11092_s6 = inlined_call_operand.<no memory space> [shape: f32[1,1], index: 6, kind: input, shape index: {}]   ;;  %s11093_s7 = inlined_call_operand.vmem [shape: f32[27,32], index: 7, kind: input, shape index: {}]   ;;  %s11094_s8 = inlined_call_operand.vmem [shape: f32[32,27], index: 8, kind: input, shape index: {}]   ;;  %s11095_s9 = inlined_call_operand.vmem [shape: f32[288,64], index: 9, kind: input, shape index: {}]   ;;  %s11096_s10 = inlined_call_operand.vmem [shape: f32[64,288], index: 10, kind: input, shape index: {}]   ;;  %s11097_s11 = inlined_call_operand.vmem [shape: f32[2,1], index: 11, kind: output, shape index: {0}]   ;;  %s11098_s12 = inlined_call_operand.hbm [shape: f32[1,1], index: 12, kind: output, shape index: {1}]  }
   0x1   :  { %v18_v0 = vstv %s11092_s6 }
   0x2   :  { %19 = vst [vmem:[#allocation4] sm:$0x1] %v18_v0 }
   0x3   :  { %v107_v1 = vld [vmem:[%s11087_s1] sm:$0xff]  ;;  %v108_v2 = vld [vmem:[%s11087_s1 + $0x8] sm:$0xff]  ;;  %v109_v3 = vld [vmem:[%s11087_s1 + $0x10] sm:$0xff]  ;;  %vm311_vm0 = vcmask 1042432   ;;  %vm118_vm1 = vcmask 220160   ;;  %vm7152_vm2 = vmmov 1  }
   0x4   :  { %v6804_v4 = vpack.c.bf16 %v108_v2, %v107_v1  ;;  %v110_v5 = vld [vmem:[%s11087_s1 + $0x18] sm:$0x7]  ;;  %v43_v6 = vld [vmem:[%s11086_s0] sm:$0xff]  ;;  %vm7243_vm3 = vmpackc.low %vm311_vm0, %vm7152_vm2  ;;  %v11110_v8 = vmov 0 }
   0x5   :  { %v6808_v7 = vpack.c.bf16 %v110_v5, %v109_v3  ;;  %v11111_v8 = vsel %vm7243_vm3, 4294967295, %v11110_v8  ;;  %6570 = vmatprep.mubr.msk.f32.mxu0 %vm118_vm1, %v43_v6  ;;  %v44_v9 = vld [vmem:[%s11086_s0 + $0x8] sm:$0xff]  ;;  %v45_v10 = vld [vmem:[%s11086_s0 + $0x10] sm:$0xff] }
   0x6   :  { %11112 = vst [vmem:[#allocation8_spill] sm:$0xff] %v11111_v8  ;;  %6805 = vmatprep.subr.bf16.mxu0 %v6804_v4 }
   0x7   :  { %6807 = vmatpush3.bf16.msra.mxu0 %v6804_v4 }
   0x8   :  { %6810 = vmatprep.subr.msk.bf16.mxu0 %vm7243_vm3, %v6808_v7 }
   0xb   :  { %6813 = vmatpush3.bf16.msk.msra.mxu0 %vm7243_vm3, %v6808_v7 }
   0xc   :  { %20 = vsyncpa [#allocation6], 0  ;;  %v46_v11 = vld [vmem:[%s11086_s0 + $0x18] sm:$0xff]  ;;  %v47_v12 = vld [vmem:[%s11086_s0 + $0x20] sm:$0xff]  ;;  %v7153_v46 = vmov 0.0|0.0   ;;  %vm700_vm4 = vcmask 261120  }
   0xd   :  { %v48_v13 = vld [vmem:[%s11086_s0 + $0x28] sm:$0xff]  ;;  %v49_v14 = vld [vmem:[%s11086_s0 + $0x30] sm:$0xff]  ;;  %v50_v15 = vld [vmem:[%s11086_s0 + $0x38] sm:$0xff]  ;;  %6984 = vmatprep.subr.bf16.mxu1 %v7153_v46  ;;  %6814 = vmatprep.subr.bf16.mxu0 %v7153_v46  ;;  %s7154_s21 = smov 96   ;;  %s7155_s22 = smov 32   ;;  %vm1218_vm5 = vcmask 523520  }
   0xe   :  { %6571 = vmatmul.mubr.msk.f32.vlgmr.msra.gmra.mrb[0].mxu0 %vm118_vm1, %v44_v9  ;;  %v51_v16 = vld [vmem:[%s11086_s0 + $0x40] sm:$0xff]  ;;  %v52_v17 = vld [vmem:[%s11086_s0 + $0x48] sm:$0xff]  ;;  %v53_v18 = vld [vmem:[%s11086_s0 + $0x50] sm:$0xff]  ;;  %s7156_s27 = smov 64   ;;  %vm1603_vm6 = vcmask 785920   ;;  %vm1988_vm7 = vcmask 1048320  }
   0xf   :  { %6573 = vmatprep.mubr.msk.f32.mxu0 %vm118_vm1, %v45_v10  ;;  %v54_v19 = vld [vmem:[%s11086_s0 + $0x58] sm:$0xff]  ;;  %v55_v20 = vld [vmem:[%s11086_s0 + $0x60] sm:$0xff]  ;;  %v56_v21 = vld [vmem:[%s11086_s0 + $0x68] sm:$0xff]  ;;  %vm5617_vm12 = vcmask 523264   ;;  %s7159_s25 = smov [#allocation5]  }
  0x10   :  { %v57_v22 = vld [vmem:[%s11086_s0 + $0x70] sm:$0xff]  ;;  %v58_v23 = vld [vmem:[%s11086_s0 + $0x78] sm:$0xff]  ;;  %v59_v24 = vld [vmem:[%s11086_s0 + $0x80] sm:$0xff]  ;;  %s6090_s26 = sshll.u32 %s7159_s25, 4  ;;  %s6091_s26 = int_to_ptr.vmem [resolvable:$true] %s6090_s26 }
  0x11   :  { %v60_v25 = vld [vmem:[%s11086_s0 + $0x88] sm:$0xff]  ;;  %v61_v26 = vld [vmem:[%s11086_s0 + $0x90] sm:$0xff]  ;;  %v62_v27 = vld [vmem:[%s11086_s0 + $0x98] sm:$0xff]  ;;  %s7128_s28 = scalar_lea.vmem %s6091_s26, 16  ;;  %p7133_p1 = scmp.lt.s32.totalorder %s6091_s26, %s6091_s26 }
  0x12   :  { %6574 = vmatmul.mubr.msk.f32.gmra.mrb[2].mxu0 %vm118_vm1, %v46_v11  ;;  %v63_v28 = vld [vmem:[%s11086_s0 + $0xa0] sm:$0xff]  ;;  %v64_v29 = vld [vmem:[%s11086_s0 + $0xa8] sm:$0xff]  ;;  %v65_v30 = vld [vmem:[%s11086_s0 + $0xb0] sm:$0xff]  ;;  %p7129_p0 = scmp.ne.s32.totalorder %s6091_s26, %s7128_s28 }
  0x13   :  { %6576 = vmatprep.mubr.msk.f32.mxu0 %vm118_vm1, %v47_v12  ;;  %v66_v31 = vld [vmem:[%s11086_s0 + $0xb8] sm:$0xff]  ;;  %v67_v32 = vld [vmem:[%s11086_s0 + $0xc0] sm:$0xff]  ;;  %v68_v33 = vld [vmem:[%s11086_s0 + $0xc8] sm:$0xff] }
  0x14   :  { %v69_v34 = vld [vmem:[%s11086_s0 + $0xd0] sm:$0xff]  ;;  %v70_v35 = vld [vmem:[%s11086_s0 + $0xd8] sm:$0xff]  ;;  %v71_v36 = vld [vmem:[%s11086_s0 + $0xe0] sm:$0xff] }
  0x15   :  { %v72_v37 = vld [vmem:[%s11086_s0 + $0xe8] sm:$0xff]  ;;  %v73_v38 = vld [vmem:[%s11086_s0 + $0xf0] sm:$0xff]  ;;  %v74_v39 = vld [vmem:[%s11086_s0 + $0xf8] sm:$0xff] }
  0x16   :  { %6577 = vmatmul.mubr.msk.f32.gmra.mrb[4].mxu0 %vm118_vm1, %v48_v13  ;;  %v75_v40 = vld [vmem:[%s11086_s0 + $0x100] sm:$0xff]  ;;  %v76_v41 = vld [vmem:[%s11086_s0 + $0x108] sm:$0xff]  ;;  %v77_v42 = vld [vmem:[%s11086_s0 + $0x110] sm:$0xff] }
  0x17   :  { %6579 = vmatprep.mubr.msk.f32.mxu0 %vm118_vm1, %v49_v14  ;;  %v78_v43 = vld [vmem:[%s11086_s0 + $0x118] sm:$0xff]  ;;  %v3653_v44 = vld [vmem:[%s11089_s3] sm:$0xff]  ;;  %v3654_v45 = vld [vmem:[%s11089_s3 + $0x8] sm:$0xff] }
  0x18   :  { %v6815_v47 = vpack.c.bf16 %v3654_v45, %v3653_v44  ;;  %v3655_v48 = vld [vmem:[%s11089_s3 + $0x10] sm:$0xff]  ;;  %v3656_v49 = vld [vmem:[%s11089_s3 + $0x18] sm:$0xff]  ;;  %v3657_v51 = vld [vmem:[%s11089_s3 + $0x20] sm:$0xff] }
  0x19   :  { %v6818_v50 = vpack.c.bf16 %v3656_v49, %v3655_v48  ;;  %v3658_v52 = vld [vmem:[%s11089_s3 + $0x28] sm:$0xff]  ;;  %v3659_v54 = vld [vmem:[%s11089_s3 + $0x30] sm:$0xff]  ;;  %v3660_v55 = vld [vmem:[%s11089_s3 + $0x38] sm:$0xff] }
  0x1a   :  { %6580 = vmatmul.mubr.msk.f32.gmra.mrb[6].mxu0 %vm118_vm1, %v50_v15  ;;  %7000 = vmatpush1.bf16.msra.mxu1 %v6815_v47  ;;  %v6821_v53 = vpack.c.bf16 %v3658_v52, %v3657_v51  ;;  %v6824_v56 = vpack.c.bf16 %v3660_v55, %v3659_v54  ;;  %v3661_v57 = vld [vmem:[%s11089_s3 + $0x40] sm:$0xff]  ;;  %v3662_v58 = vld [vmem:[%s11089_s3 + $0x48] sm:$0xff]  ;;  %v3663_v60 = vld [vmem:[%s11089_s3 + $0x50] sm:$0xff] }
  0x1b   :  { %6582 = vmatprep.mubr.msk.f32.mxu0 %vm118_vm1, %v51_v16  ;;  %6816 = vmatpush1.bf16.msra.mxu0 %v6815_v47  ;;  %v6827_v59 = vpack.c.bf16 %v3662_v58, %v3661_v57  ;;  %v3664_v61 = vld [vmem:[%s11089_s3 + $0x58] sm:$0xff]  ;;  %v79_v63 = vld [vmem:[%s11086_s0 + $0x120] sm:$0xff]  ;;  %v3666_v1 = vld [vmem:[%s11089_s3 + $0x68] sm:$0xff] }
  0x1c   :  { %6985 = vmatprep.subr.bf16.mxu1 %v7153_v46  ;;  %6817 = vmatprep.subr.bf16.mxu0 %v7153_v46  ;;  %v6830_v62 = vpack.c.bf16 %v3664_v61, %v3663_v60  ;;  %v3665_v0 = vld [vmem:[%s11089_s3 + $0x60] sm:$0xff]  ;;  %v80_v2 = vld [vmem:[%s11086_s0 + $0x128] sm:$0xff]  ;;  %v3667_v4 = vld [vmem:[%s11089_s3 + $0x70] sm:$0xff] }
  0x1d   :  { %v6833_v3 = vpack.c.bf16 %v3666_v1, %v3665_v0  ;;  %v3668_v5 = vld [vmem:[%s11089_s3 + $0x78] sm:$0xff]  ;;  %v7467_v7 = vld [vmem:[%s11088_s2] ss:$0 sm:$0xff]  ;;  %v3670_v10 = vld [vmem:[%s11089_s3 + $0x88] sm:$0xff] }
  0x1e   :  { %6583 = vmatmul.mubr.msk.f32.gmra.mrb[8].mxu0 %vm118_vm1, %v52_v17  ;;  %7001 = vmatpush1.bf16.msra.mxu1 %v6818_v50  ;;  %v6836_v6 = vpack.c.bf16 %v3668_v5, %v3667_v4  ;;  %v3669_v9 = vld [vmem:[%s11089_s3 + $0x80] sm:$0xff]  ;;  %v3671_v16 = vld [vmem:[%s11089_s3 + $0x90] sm:$0xff]  ;;  %v3672_v17 = vld [vmem:[%s11089_s3 + $0x98] sm:$0xff] }
  0x1f   :  { %6585 = vmatprep.mubr.msk.f32.mxu0 %vm118_vm1, %v53_v18  ;;  %6819 = vmatpush1.bf16.msra.mxu0 %v6818_v50  ;;  %v6839_v12 = vpack.c.bf16 %v3670_v10, %v3669_v9  ;;  %v3679_v55 = vld [vmem:[%s11089_s3 + $0xd0] sm:$0xff]  ;;  %v3680_v58 = vld [vmem:[%s11089_s3 + $0xd8] sm:$0xff]  ;;  %v3681_v5 = vld [vmem:[%s11089_s3 + $0xe0] sm:$0xff] }
  0x20   :  { %6986 = vmatprep.subr.bf16.mxu1 %v7153_v46  ;;  %6820 = vmatprep.subr.bf16.mxu0 %v7153_v46  ;;  %v3682_v10 = vld [vmem:[%s11089_s3 + $0xe8] sm:$0xff] }
  0x22   :  { %6586 = vmatmul.mubr.msk.f32.gmra.mrb[10].mxu0 %vm118_vm1, %v54_v19  ;;  %7002 = vmatpush1.bf16.msra.mxu1 %v6821_v53  ;;  %v6842_v19 = vpack.c.bf16 %v3672_v17, %v3671_v16 }
  0x23   :  { %6588 = vmatprep.mubr.msk.f32.mxu0 %vm118_vm1, %v55_v20  ;;  %6822 = vmatpush1.bf16.msra.mxu0 %v6821_v53 }
  0x24   :  { %6987 = vmatprep.subr.bf16.mxu1 %v7153_v46  ;;  %6823 = vmatprep.subr.bf16.mxu0 %v7153_v46 }
  0x26   :  { %6589 = vmatmul.mubr.msk.f32.gmra.mrb[12].mxu0 %vm118_vm1, %v56_v21  ;;  %7003 = vmatpush1.bf16.msra.mxu1 %v6824_v56 }
  0x27   :  { %6591 = vmatprep.mubr.msk.f32.mxu0 %vm118_vm1, %v57_v22  ;;  %6825 = vmatpush1.bf16.msra.mxu0 %v6824_v56 }
  0x28   :  { %6988 = vmatprep.subr.bf16.mxu1 %v7153_v46  ;;  %6826 = vmatprep.subr.bf16.mxu0 %v7153_v46 }
  0x2a   :  { %6592 = vmatmul.mubr.msk.f32.gmra.mrb[14].mxu0 %vm118_vm1, %v58_v23  ;;  %7004 = vmatpush1.bf16.msra.mxu1 %v6827_v59  ;;  %v3673_v23 = vld [vmem:[%s11089_s3 + $0xa0] sm:$0xff] }
  0x2b   :  { %6594 = vmatprep.mubr.msk.f32.mxu0 %vm118_vm1, %v59_v24  ;;  %6828 = vmatpush1.bf16.msra.mxu0 %v6827_v59  ;;  %v3674_v24 = vld [vmem:[%s11089_s3 + $0xa8] sm:$0xff] }
  0x2c   :  { %6989 = vmatprep.subr.bf16.mxu1 %v7153_v46  ;;  %6829 = vmatprep.subr.bf16.mxu0 %v7153_v46 }
  0x2e   :  { %6595 = vmatmul.mubr.msk.f32.gmra.mrb[16].mxu0 %vm118_vm1, %v60_v25  ;;  %7005 = vmatpush1.bf16.msra.mxu1 %v6830_v62 }
  0x2f   :  { %6597 = vmatprep.mubr.msk.f32.mxu0 %vm118_vm1, %v61_v26  ;;  %6831 = vmatpush1.bf16.msra.mxu0 %v6830_v62  ;;  %v6845_v26 = vpack.c.bf16 %v3674_v24, %v3673_v23  ;;  %v6854_v62 = vpack.c.bf16 %v3680_v58, %v3679_v55 }
  0x30   :  { %6990 = vmatprep.subr.bf16.mxu1 %v7153_v46  ;;  %6832 = vmatprep.subr.bf16.mxu0 %v7153_v46 }
  0x32   :  { %6598 = vmatmul.mubr.msk.f32.gmra.mrb[18].mxu0 %vm118_vm1, %v62_v27  ;;  %7006 = vmatpush1.bf16.msra.mxu1 %v6833_v3 }
  0x33   :  { %6600 = vmatprep.mubr.msk.f32.mxu0 %vm118_vm1, %v63_v28  ;;  %6834 = vmatpush1.bf16.msra.mxu0 %v6833_v3 }
  0x34   :  { %6991 = vmatprep.subr.bf16.mxu1 %v7153_v46  ;;  %6835 = vmatprep.subr.bf16.mxu0 %v7153_v46 }
  0x36   :  { %6601 = vmatmul.mubr.msk.f32.gmra.mrb[20].mxu0 %vm118_vm1, %v64_v29  ;;  %7007 = vmatpush1.bf16.msra.mxu1 %v6836_v6 }
  0x37   :  { %6603 = vmatprep.mubr.msk.f32.mxu0 %vm118_vm1, %v65_v30  ;;  %6837 = vmatpush1.bf16.msra.mxu0 %v6836_v6 }
  0x38   :  { %6992 = vmatprep.subr.bf16.mxu1 %v7153_v46  ;;  %6838 = vmatprep.subr.bf16.mxu0 %v7153_v46 }
  0x3a   :  { %6604 = vmatmul.mubr.msk.f32.gmra.mrb[22].mxu0 %vm118_vm1, %v66_v31  ;;  %7008 = vmatpush1.bf16.msra.mxu1 %v6839_v12  ;;  %v3675_v31 = vld [vmem:[%s11089_s3 + $0xb0] sm:$0xff] }
  0x3b   :  { %6606 = vmatprep.mubr.msk.f32.mxu0 %vm118_vm1, %v67_v32  ;;  %6840 = vmatpush1.bf16.msra.mxu0 %v6839_v12  ;;  %v3676_v32 = vld [vmem:[%s11089_s3 + $0xb8] sm:$0xff] }
  0x3c   :  { %6993 = vmatprep.subr.bf16.mxu1 %v7153_v46  ;;  %6841 = vmatprep.subr.bf16.mxu0 %v7153_v46 }
  0x3e   :  { %6607 = vmatmul.mubr.msk.f32.gmra.mrb[24].mxu0 %vm118_vm1, %v68_v33  ;;  %7009 = vmatpush1.bf16.msra.mxu1 %v6842_v19 }
  0x3f   :  { %6609 = vmatprep.mubr.msk.f32.mxu0 %vm118_vm1, %v69_v34  ;;  %6843 = vmatpush1.bf16.msra.mxu0 %v6842_v19  ;;  %v6848_v34 = vpack.c.bf16 %v3676_v32, %v3675_v31 }
  0x40   :  { %6994 = vmatprep.subr.bf16.mxu1 %v7153_v46  ;;  %6844 = vmatprep.subr.bf16.mxu0 %v7153_v46 }
  0x42   :  { %6610 = vmatmul.mubr.msk.f32.gmra.mrb[26].mxu0 %vm118_vm1, %v70_v35  ;;  %7010 = vmatpush1.bf16.msra.mxu1 %v6845_v26 }
  0x43   :  { %6612 = vmatprep.mubr.msk.f32.mxu0 %vm118_vm1, %v71_v36  ;;  %6846 = vmatpush1.bf16.msra.mxu0 %v6845_v26 }
  0x44   :  { %6995 = vmatprep.subr.bf16.mxu1 %v7153_v46  ;;  %6847 = vmatprep.subr.bf16.mxu0 %v7153_v46 }
  0x46   :  { %6613 = vmatmul.mubr.msk.f32.gmra.mrb[28].mxu0 %vm118_vm1, %v72_v37  ;;  %7011 = vmatpush1.bf16.msra.mxu1 %v6848_v34 }
  0x47   :  { %6615 = vmatprep.mubr.msk.f32.mxu0 %vm118_vm1, %v73_v38  ;;  %6849 = vmatpush1.bf16.msra.mxu0 %v6848_v34 }
  0x48   :  { %6996 = vmatprep.subr.bf16.mxu1 %v7153_v46  ;;  %6850 = vmatprep.subr.bf16.mxu0 %v7153_v46 }
  0x4a   :  { %6616 = vmatmul.mubr.msk.f32.gmra.mrb[30].mxu0 %vm118_vm1, %v74_v39 }
  0x4b   :  { %6618 = vmatprep.mubr.msk.f32.mxu0 %vm118_vm1, %v75_v40  ;;  %v3677_v40 = vld [vmem:[%s11089_s3 + $0xc0] sm:$0xff] }
  0x4e   :  { %6619 = vmatmul.mubr.msk.f32.gmra.mrb[32].mxu0 %vm118_vm1, %v76_v41  ;;  %v3678_v41 = vld [vmem:[%s11089_s3 + $0xc8] sm:$0xff] }
  0x4f   :  { %6621 = vmatprep.mubr.msk.f32.mxu0 %vm118_vm1, %v77_v42 }
  0x52   :  { %6622 = vmatmul.mubr.msk.f32.gmra.mrb[34].mxu0 %vm118_vm1, %v78_v43  ;;  %v6851_v43 = vpack.c.bf16 %v3678_v41, %v3677_v40 }
  0x53   :  { %6624 = vmatprep.mubr.msk.f32.mxu0 %vm118_vm1, %v79_v63 }
  0x54   :  { %7012 = vmatpush1.bf16.msra.mxu1 %v6851_v43  ;;  %6852 = vmatpush1.bf16.msra.mxu0 %v6851_v43 }
  0x55   :  { %6997 = vmatprep.subr.bf16.mxu1 %v7153_v46  ;;  %6853 = vmatprep.subr.bf16.mxu0 %v7153_v46 }
  0x56   :  { %6625 = vmatmul.mubr.msk.f32.gmra.mrb[36].mxu0 %vm118_vm1, %v80_v2 }
  0x58   :  { %7013 = vmatpush1.bf16.msra.mxu1 %v6854_v62  ;;  %6855 = vmatpush1.bf16.msra.mxu0 %v6854_v62 }
  0x59   :  { %6998 = vmatprep.subr.bf16.mxu1 %v7153_v46  ;;  %6856 = vmatprep.subr.bf16.mxu0 %v7153_v46 }
  0xe1   :  { %v6572_v11 = vpop.f32.mrb[0].mxu0 }
  0xe2   :  { %v387_v13 = vadd.f32 %v6572_v11, %v7467_v7  ;;  %v381_v14 = vpop.f32.mrb[1].mxu0 }
  0xe3   :  { %v382_v15 = vadd.f32 %v7467_v7, %v381_v14  ;;  %v6857_v14 = vpack.c.bf16 %v3682_v10, %v3681_v5 }
  0xe4   :  { %702 = vst.msk [vmem:[#allocation2 + $0x8] sm:$0xff] %vm700_vm4, %v387_v13 }
  0xe5   :  { %701 = vst.msk [vmem:[#allocation2] sm:$0xff] %vm700_vm4, %v382_v15  ;;  %v6575_v18 = vpop.f32.mrb[2].mxu0  ;;  %7014 = vmatpush1.bf16.msra.mxu1 %v6857_v14  ;;  %6858 = vmatpush1.bf16.msra.mxu0 %v6857_v14 }
  0xe6   :  { %v397_v20 = vadd.f32 %v6575_v18, %v7467_v7  ;;  %v391_v21 = vpop.f32.mrb[3].mxu0  ;;  %6999 = vmatprep.subr.bf16.mxu1 %v7153_v46  ;;  %6859 = vmatprep.subr.bf16.mxu0 %v7153_v46 }
  0xe7   :  { %v392_v22 = vadd.f32 %v7467_v7, %v391_v21 }
  0xe8   :  { %704 = vst.msk [vmem:[#allocation2 + $0x18] sm:$0xff] %vm700_vm4, %v397_v20 }
  0xe9   :  { %703 = vst.msk [vmem:[#allocation2 + $0x10] sm:$0xff] %vm700_vm4, %v392_v22  ;;  %v6578_v25 = vpop.f32.mrb[4].mxu0  ;;  %v3683_v22 = vld [vmem:[%s11089_s3 + $0xf0] sm:$0xff] }
  0xea   :  { %v407_v27 = vadd.f32 %v6578_v25, %v7467_v7  ;;  %v401_v28 = vpop.f32.mrb[5].mxu0  ;;  %v3684_v25 = vld [vmem:[%s11089_s3 + $0xf8] sm:$0xff] }
  0xeb   :  { %v402_v29 = vadd.f32 %v7467_v7, %v401_v28  ;;  %v771_v30 = vld [vmem:[#allocation2 + $0x8] sm:$0xff]  ;;  %v6860_v28 = vpack.c.bf16 %v3684_v25, %v3683_v22 }
  0xec   :  { %706 = vst.msk [vmem:[#allocation2 + $0x28] sm:$0xff] %vm700_vm4, %v407_v27  ;;  %835 = vst.msk [vmem:[#allocation3 + $0x18] sm:$0xff] %vm700_vm4, %v771_v30  ;;  %v770_v35 = vld [vmem:[#allocation2] sm:$0xff] }
  0xed   :  { %705 = vst.msk [vmem:[#allocation2 + $0x20] sm:$0xff] %vm700_vm4, %v402_v29  ;;  %v6581_v33 = vpop.f32.mrb[6].mxu0  ;;  %834 = vst.msk [vmem:[#allocation3] sm:$0xff] %vm700_vm4, %v770_v35  ;;  %7015 = vmatpush1.bf16.msra.mxu1 %v6860_v28  ;;  %6861 = vmatpush1.bf16.msra.mxu0 %v6860_v28 }
  0xee   :  { %v417_v36 = vadd.f32 %v6581_v33, %v7467_v7  ;;  %v411_v37 = vpop.f32.mrb[7].mxu0 }
  0xef   :  { %v412_v38 = vadd.f32 %v7467_v7, %v411_v37  ;;  %v773_v39 = vld [vmem:[#allocation2 + $0x18] sm:$0xff] }
  0xf0   :  { %708 = vst.msk [vmem:[#allocation2 + $0x38] sm:$0xff] %vm700_vm4, %v417_v36  ;;  %837 = vst.msk [vmem:[#allocation3 + $0x48] sm:$0xff] %vm700_vm4, %v773_v39  ;;  %v7529_v47 = vld [vmem:[#allocation2 + $0x11] sm:$0xff] }
  0xf1   :  { %707 = vst.msk [vmem:[#allocation2 + $0x30] sm:$0xff] %vm700_vm4, %v412_v38  ;;  %v6584_v42 = vpop.f32.mrb[8].mxu0  ;;  %v772_v48 = vld [vmem:[#allocation2 + $0x10] sm:$0xff]  ;;  %2117 = vst.msk [vmem:[#allocation3 + $0x8] sm:$0xff] %vm700_vm4, %v7529_v47 }
  0xf2   :  { %v427_v44 = vadd.f32 %v6584_v42, %v7467_v7  ;;  %v421_v45 = vpop.f32.mrb[9].mxu0  ;;  %836 = vst.msk [vmem:[#allocation3 + $0x30] sm:$0xff] %vm700_vm4, %v772_v48 }
  0xf3   :  { %v422_v49 = vadd.f32 %v7467_v7, %v421_v45  ;;  %v1671_v50 = vld [vmem:[#allocation2 + $0x28] sm:$0xff] }
  0xf4   :  { %v7535_v51 = vld [vmem:[#allocation2 + $0x22] sm:$0xff]  ;;  %710 = vst.msk [vmem:[#allocation2 + $0x48] sm:$0xff] %vm700_vm4, %v427_v44  ;;  %1802 = vrot.lane.b32.xlu1 %v1671_v50, %s7154_s21  ;;  %v901_v52 = vld [vmem:[#allocation2 + $0x19] sm:$0xff]  ;;  %839 = vst.msk [vmem:[#allocation3 + $0x78] sm:$0xff] %vm700_vm4, %v1671_v50 }
  0xf5   :  { %3397 = vst.msk [vmem:[#allocation3 + $0x10] sm:$0xff] %vm700_vm4, %v7535_v51  ;;  %709 = vst.msk [vmem:[#allocation2 + $0x40] sm:$0xff] %vm700_vm4, %v422_v49  ;;  %v6587_v53 = vpop.f32.mrb[10].mxu0  ;;  %1032 = vrot.lane.b32.xlu0 %v901_v52, %s7155_s22  ;;  %v774_v54 = vld [vmem:[#allocation2 + $0x20] sm:$0xff] }
  0xf6   :  { %v437_v56 = vadd.f32 %v6587_v53, %v7467_v7  ;;  %v431_v57 = vpop.f32.mrb[11].mxu0  ;;  %838 = vst.msk [vmem:[#allocation3 + $0x60] sm:$0xff] %vm700_vm4, %v774_v54  ;;  %v1286_v60 = vld [vmem:[#allocation2 + $0x1a] sm:$0xff] }
  0xf7   :  { %v432_v59 = vadd.f32 %v7467_v7, %v431_v57  ;;  %v7555_v61 = vld [vmem:[#allocation2 + $0x38] sm:$0xff]  ;;  %v902_v11 = vld [vmem:[#allocation2 + $0x21] sm:$0xff] }
  0xf8   :  { %v7557_v63 = vld [vmem:[#allocation2 + $0x2a] sm:$0xff]  ;;  %v7559_v0 = vld [vmem:[#allocation2 + $0x32] sm:$0xff]  ;;  %712 = vst.msk [vmem:[#allocation2 + $0x58] sm:$0xff] %vm700_vm4, %v437_v56  ;;  %1417 = vrot.lane.b32.xlu1 %v1286_v60, %s7156_s27  ;;  %841 = vst.msk [vmem:[#allocation3 + $0xa8] sm:$0xff] %vm700_vm4, %v7555_v61 }
  0xf9   :  { %v7563_v1 = vld [vmem:[#allocation2 + $0x30] sm:$0xff]  ;;  %3398 = vst.msk [vmem:[#allocation3 + $0x28] sm:$0xff] %vm700_vm4, %v7557_v63  ;;  %3399 = vst.msk [vmem:[#allocation3 + $0x40] sm:$0xff] %vm700_vm4, %v7559_v0  ;;  %2315 = vrot.lane.b32.xlu0 %v7557_v63, %s7155_s22  ;;  %v6590_v2 = vpop.f32.mrb[12].mxu0  ;;  %v2054_v15 = vld [vmem:[#allocation2 + $0x19] sm:$0xff] }
  0xfa   :  { %711 = vst.msk [vmem:[#allocation2 + $0x50] sm:$0xff] %vm700_vm4, %v432_v59  ;;  %v7574_v3 = vld [vmem:[#allocation2 + $0x29] sm:$0xff]  ;;  %v7576_v4 = vld [vmem:[#allocation2 + $0x31] sm:$0xff]  ;;  %840 = vst.msk [vmem:[#allocation3 + $0x90] sm:$0xff] %vm700_vm4, %v7563_v1  ;;  %v447_v6 = vadd.f32 %v6590_v2, %v7467_v7  ;;  %v441_v9 = vpop.f32.mrb[13].mxu0 }
  0xfb   :  { %2120 = vst.msk [vmem:[#allocation3 + $0x50] sm:$0xff] %vm700_vm4, %v7574_v3  ;;  %2121 = vst.msk [vmem:[#allocation3 + $0x68] sm:$0xff] %vm700_vm4, %v7576_v4  ;;  %v7592_v12 = vld [vmem:[#allocation2 + $0x48] sm:$0xff]  ;;  %v442_v13 = vadd.f32 %v7467_v7, %v441_v9  ;;  %v81_v56 = vld [vmem:[%s11086_s0 + $0x130] sm:$0xff] }
  0xfc   :  { %v7596_v16 = vld [vmem:[#allocation2 + $0x3a] sm:$0xff]  ;;  %v7598_v17 = vld [vmem:[#allocation2 + $0x42] sm:$0xff]  ;;  %1034 = vrot.lane.b32.xlu1 %v902_v11, %s7155_s22  ;;  %714 = vst.msk [vmem:[#allocation2 + $0x68] sm:$0xff] %vm700_vm4, %v447_v6  ;;  %843 = vst.msk [vmem:[#allocation3 + $0xd8] sm:$0xff] %vm700_vm4, %v7592_v12  ;;  %6627 = vmatprep.mubr.msk.f32.mxu0 %vm118_vm1, %v81_v56 }
  0xfd   :  { %v7601_v18 = vld [vmem:[#allocation2 + $0x39] sm:$0xff]  ;;  %2118 = vst.msk [vmem:[#allocation3 + $0x20] sm:$0xff] %vm700_vm4, %v2054_v15  ;;  %3400 = vst.msk [vmem:[#allocation3 + $0x58] sm:$0xff] %vm700_vm4, %v7596_v16  ;;  %2317 = vrot.lane.b32.xlu0 %v7559_v0, %s7155_s22  ;;  %v7615_v20 = vld [vmem:[#allocation2 + $0x41] sm:$0xff]  ;;  %v6593_v21 = vpop.f32.mrb[14].mxu0 }
  0xfe   :  { %3401 = vst.msk [vmem:[#allocation3 + $0x70] sm:$0xff] %vm700_vm4, %v7598_v17  ;;  %v7613_v19 = vld [vmem:[#allocation2 + $0x40] sm:$0xff]  ;;  %713 = vst.msk [vmem:[#allocation2 + $0x60] sm:$0xff] %vm700_vm4, %v442_v13  ;;  %v457_v23 = vadd.f32 %v6593_v21, %v7467_v7  ;;  %v451_v24 = vpop.f32.mrb[15].mxu0  ;;  %v82_v59 = vld [vmem:[%s11086_s0 + $0x138] sm:$0xff] }
  0xff   :  { %2122 = vst.msk [vmem:[#allocation3 + $0x80] sm:$0xff] %vm700_vm4, %v7601_v18  ;;  %2123 = vst.msk [vmem:[#allocation3 + $0x98] sm:$0xff] %vm700_vm4, %v7615_v20  ;;  %v2055_v26 = vld [vmem:[#allocation2 + $0x21] sm:$0xff]  ;;  %v452_v27 = vadd.f32 %v7467_v7, %v451_v24  ;;  %v781_v29 = vld [vmem:[#allocation2 + $0x58] sm:$0xff]  ;;  %6628 = vmatmul.mubr.msk.f32.gmra.mrb[38].mxu0 %vm118_vm1, %v82_v59 }
 0x100   :  { %842 = vst.msk [vmem:[#allocation3 + $0xc0] sm:$0xff] %vm700_vm4, %v7613_v19  ;;  %2119 = vst.msk [vmem:[#allocation3 + $0x38] sm:$0xff] %vm700_vm4, %v2055_v26  ;;  %1419 = vrot.lane.b32.xlu1 %v7535_v51, %s7156_s27 }
 0x101   :  { %v7635_v30 = vld [vmem:[#allocation2 + $0x4a] sm:$0xff]  ;;  %v7637_v31 = vld [vmem:[#allocation2 + $0x52] sm:$0xff]  ;;  %716 = vst.msk [vmem:[#allocation2 + $0x78] sm:$0xff] %vm700_vm4, %v457_v23  ;;  %845 = vst.msk [vmem:[#allocation3 + $0x108] sm:$0xff] %vm700_vm4, %v781_v29  ;;  %2703 = vrot.lane.b32.xlu0 %v7592_v12, %s7156_s27  ;;  %v6596_v34 = vpop.f32.mrb[16].mxu0 }
 0x102   :  { %v7641_v32 = vld [vmem:[#allocation2 + $0x49] sm:$0xff]  ;;  %3402 = vst.msk [vmem:[#allocation3 + $0x88] sm:$0xff] %vm700_vm4, %v7635_v30  ;;  %3403 = vst.msk [vmem:[#allocation3 + $0xa0] sm:$0xff] %vm700_vm4, %v7637_v31  ;;  %v7653_v33 = vld [vmem:[#allocation2 + $0x51] sm:$0xff]  ;;  %v467_v35 = vadd.f32 %v6596_v34, %v7467_v7  ;;  %v461_v36 = vpop.f32.mrb[17].mxu0 }
 0x103   :  { %v7651_v46 = vld [vmem:[#allocation2 + $0x50] sm:$0xff]  ;;  %715 = vst.msk [vmem:[#allocation2 + $0x70] sm:$0xff] %vm700_vm4, %v452_v27  ;;  %2124 = vst.msk [vmem:[#allocation3 + $0xb0] sm:$0xff] %vm700_vm4, %v7641_v32  ;;  %v462_v37 = vadd.f32 %v7467_v7, %v461_v36  ;;  %v783_v38 = vld [vmem:[#allocation2 + $0x68] sm:$0xff] }
 0x104   :  { %2125 = vst.msk [vmem:[#allocation3 + $0xc8] sm:$0xff] %vm700_vm4, %v7653_v33  ;;  %844 = vst.msk [vmem:[#allocation3 + $0xf0] sm:$0xff] %vm700_vm4, %v7651_v46  ;;  %2699 = vrot.lane.b32.xlu1 %v7555_v61, %s7156_s27  ;;  %v2572_v34 = vld [vmem:[#allocation2 + $0x58] sm:$0xff]  ;;  %v2574_v56 = vld [vmem:[#allocation2 + $0x68] sm:$0xff] }
 0x105   :  { %v7666_v39 = vld [vmem:[#allocation2 + $0x5a] sm:$0xff]  ;;  %v7668_v40 = vld [vmem:[#allocation2 + $0x62] sm:$0xff]  ;;  %718 = vst.msk [vmem:[#allocation2 + $0x88] sm:$0xff] %vm700_vm4, %v467_v35  ;;  %847 = vst.msk [vmem:[#allocation3 + $0x138] sm:$0xff] %vm700_vm4, %v783_v38  ;;  %3083 = vrot.lane.b32.xlu0 %v7601_v18, %s7154_s21  ;;  %v6599_v44 = vpop.f32.mrb[18].mxu0 }
 0x106   :  { %v7670_v41 = vld [vmem:[#allocation2 + $0x59] sm:$0xff]  ;;  %3404 = vst.msk [vmem:[#allocation3 + $0xb8] sm:$0xff] %vm700_vm4, %v7666_v39  ;;  %3405 = vst.msk [vmem:[#allocation3 + $0xd0] sm:$0xff] %vm700_vm4, %v7668_v40  ;;  %v7682_v43 = vld [vmem:[#allocation2 + $0x61] sm:$0xff]  ;;  %v477_v45 = vadd.f32 %v6599_v44, %v7467_v7  ;;  %v471_v48 = vpop.f32.mrb[19].mxu0 }
 0x107   :  { %v7680_v42 = vld [vmem:[#allocation2 + $0x60] sm:$0xff]  ;;  %717 = vst.msk [vmem:[#allocation2 + $0x80] sm:$0xff] %vm700_vm4, %v462_v37  ;;  %2126 = vst.msk [vmem:[#allocation3 + $0xe0] sm:$0xff] %vm700_vm4, %v7670_v41  ;;  %v472_v49 = vadd.f32 %v7467_v7, %v471_v48 }
 0x108   :  { %2127 = vst.msk [vmem:[#allocation3 + $0xf8] sm:$0xff] %vm700_vm4, %v7682_v43  ;;  %846 = vst.msk [vmem:[#allocation3 + $0x120] sm:$0xff] %vm700_vm4, %v7680_v42  ;;  %v785_v50 = vld [vmem:[#allocation2 + $0x78] sm:$0xff]  ;;  %1806 = vrot.lane.b32.xlu1 %v7555_v61, %s7154_s21 }
 0x109   :  { %720 = vst.msk [vmem:[#allocation2 + $0x98] sm:$0xff] %vm700_vm4, %v477_v45  ;;  %849 = vst.msk [vmem:[#allocation3 + $0x168] sm:$0xff] %vm700_vm4, %v785_v50  ;;  %2701 = vrot.lane.b32.xlu0 %v7613_v19, %s7156_s27  ;;  %v6602_v55 = vpop.f32.mrb[20].mxu0 }
 0x10a   :  { %v7695_v51 = vld [vmem:[#allocation2 + $0x6a] sm:$0xff]  ;;  %v7697_v52 = vld [vmem:[#allocation2 + $0x72] sm:$0xff]  ;;  %719 = vst.msk [vmem:[#allocation2 + $0x90] sm:$0xff] %vm700_vm4, %v472_v49  ;;  %v487_v57 = vadd.f32 %v6602_v55, %v7467_v7  ;;  %v481_v58 = vpop.f32.mrb[21].mxu0 }
 0x10b   :  { %v7699_v53 = vld [vmem:[#allocation2 + $0x69] sm:$0xff]  ;;  %3406 = vst.msk [vmem:[#allocation3 + $0xe8] sm:$0xff] %vm700_vm4, %v7695_v51  ;;  %3407 = vst.msk [vmem:[#allocation3 + $0x100] sm:$0xff] %vm700_vm4, %v7697_v52  ;;  %v7709_v54 = vld [vmem:[#allocation2 + $0x71] sm:$0xff]  ;;  %v482_v61 = vadd.f32 %v7467_v7, %v481_v58 }
 0x10c   :  { %2128 = vst.msk [vmem:[#allocation3 + $0x110] sm:$0xff] %vm700_vm4, %v7699_v53  ;;  %2129 = vst.msk [vmem:[#allocation3 + $0x128] sm:$0xff] %vm700_vm4, %v7709_v54  ;;  %v784_v60 = vld [vmem:[#allocation2 + $0x70] sm:$0xff]  ;;  %v787_v62 = vld [vmem:[#allocation2 + $0x88] sm:$0xff]  ;;  %1804 = vrot.lane.b32.xlu1 %v7563_v1, %s7154_s21 }
 0x10d   :  { %848 = vst.msk [vmem:[#allocation3 + $0x150] sm:$0xff] %vm700_vm4, %v784_v60  ;;  %722 = vst.msk [vmem:[#allocation2 + $0xa8] sm:$0xff] %vm700_vm4, %v487_v57  ;;  %3085 = vrot.lane.b32.xlu0 %v7615_v20, %s7154_s21  ;;  %v6605_v9 = vpop.f32.mrb[22].mxu0  ;;  %v85_v60 = vld [vmem:[%s11086_s0 + $0x150] sm:$0xff] }
 0x10e   :  { %v7729_v2 = vld [vmem:[#allocation2 + $0x7a] sm:$0xff]  ;;  %v7731_v5 = vld [vmem:[#allocation2 + $0x82] sm:$0xff]  ;;  %851 = vst.msk [vmem:[#allocation3 + $0x198] sm:$0xff] %vm700_vm4, %v787_v62  ;;  %721 = vst.msk [vmem:[#allocation2 + $0xa0] sm:$0xff] %vm700_vm4, %v482_v61  ;;  %v497_v11 = vadd.f32 %v6605_v9, %v7467_v7  ;;  %v491_v13 = vpop.f32.mrb[23].mxu0 }
 0x10f   :  { %v7733_v6 = vld [vmem:[#allocation2 + $0x79] sm:$0xff]  ;;  %3408 = vst.msk [vmem:[#allocation3 + $0x118] sm:$0xff] %vm700_vm4, %v7729_v2  ;;  %3409 = vst.msk [vmem:[#allocation3 + $0x130] sm:$0xff] %vm700_vm4, %v7731_v5  ;;  %v7743_v1 = vld [vmem:[#allocation2 + $0x81] sm:$0xff]  ;;  %v492_v14 = vadd.f32 %v7467_v7, %v491_v13 }
 0x110   :  { %2130 = vst.msk [vmem:[#allocation3 + $0x140] sm:$0xff] %vm700_vm4, %v7733_v6  ;;  %v786_v10 = vld [vmem:[#allocation2 + $0x80] sm:$0xff]  ;;  %2131 = vst.msk [vmem:[#allocation3 + $0x158] sm:$0xff] %vm700_vm4, %v7743_v1  ;;  %v789_v15 = vld [vmem:[#allocation2 + $0x98] sm:$0xff]  ;;  %1036 = vrot.lane.b32.xlu1 %v7574_v3, %s7155_s22 }
 0x111   :  { %850 = vst.msk [vmem:[#allocation3 + $0x180] sm:$0xff] %vm700_vm4, %v786_v10  ;;  %v7755_v21 = vld [vmem:[#allocation2 + $0x8a] sm:$0xff]  ;;  %v7757_v22 = vld [vmem:[#allocation2 + $0x92] sm:$0xff]  ;;  %724 = vst.msk [vmem:[#allocation2 + $0xb8] sm:$0xff] %vm700_vm4, %v497_v11  ;;  %2319 = vrot.lane.b32.xlu0 %v7596_v16, %s7155_s22 }
 0x112   :  { %v7759_v23 = vld [vmem:[#allocation2 + $0x89] sm:$0xff]  ;;  %853 = vst.msk [vmem:[#allocation3 + $0x1c8] sm:$0xff] %vm700_vm4, %v789_v15  ;;  %3410 = vst.msk [vmem:[#allocation3 + $0x148] sm:$0xff] %vm700_vm4, %v7755_v21  ;;  %v7771_v24 = vld [vmem:[#allocation2 + $0x91] sm:$0xff] }
 0x113   :  { %3411 = vst.msk [vmem:[#allocation3 + $0x160] sm:$0xff] %vm700_vm4, %v7757_v22  ;;  %v7769_v3 = vld [vmem:[#allocation2 + $0x90] sm:$0xff]  ;;  %723 = vst.msk [vmem:[#allocation2 + $0xb0] sm:$0xff] %vm700_vm4, %v492_v14  ;;  %v2576_v10 = vld [vmem:[#allocation2 + $0x78] sm:$0xff] }
 0x114   :  { %2132 = vst.msk [vmem:[#allocation3 + $0x170] sm:$0xff] %vm700_vm4, %v7759_v23  ;;  %2133 = vst.msk [vmem:[#allocation3 + $0x188] sm:$0xff] %vm700_vm4, %v7771_v24  ;;  %v791_v25 = vld [vmem:[#allocation2 + $0xa8] sm:$0xff]  ;;  %1421 = vrot.lane.b32.xlu1 %v7557_v63, %s7156_s27  ;;  %v2575_v15 = vld [vmem:[#allocation2 + $0x70] sm:$0xff] }
 0x115   :  { %852 = vst.msk [vmem:[#allocation3 + $0x1b0] sm:$0xff] %vm700_vm4, %v7769_v3  ;;  %v7782_v26 = vld [vmem:[#allocation2 + $0x9a] sm:$0xff]  ;;  %v7784_v27 = vld [vmem:[#allocation2 + $0xa2] sm:$0xff]  ;;  %855 = vst.msk [vmem:[#allocation3 + $0x1f8] sm:$0xff] %vm700_vm4, %v791_v25  ;;  %2321 = vrot.lane.b32.xlu0 %v7598_v17, %s7155_s22 }
 0x116   :  { %v7786_v28 = vld [vmem:[#allocation2 + $0x99] sm:$0xff]  ;;  %3412 = vst.msk [vmem:[#allocation3 + $0x178] sm:$0xff] %vm700_vm4, %v7782_v26  ;;  %3413 = vst.msk [vmem:[#allocation3 + $0x190] sm:$0xff] %vm700_vm4, %v7784_v27  ;;  %v7797_v63 = vld [vmem:[#allocation2 + $0xa1] sm:$0xff] }
 0x117   :  { %v7795_v29 = vld [vmem:[#allocation2 + $0xa0] sm:$0xff]  ;;  %2134 = vst.msk [vmem:[#allocation3 + $0x1a0] sm:$0xff] %vm700_vm4, %v7786_v28  ;;  %2135 = vst.msk [vmem:[#allocation3 + $0x1b8] sm:$0xff] %vm700_vm4, %v7797_v63 }
 0x118   :  { %854 = vst.msk [vmem:[#allocation3 + $0x1e0] sm:$0xff] %vm700_vm4, %v7795_v29  ;;  %1038 = vrot.lane.b32.xlu1 %v7576_v4, %s7155_s22  ;;  %v6608_v4 = vpop.f32.mrb[24].mxu0  ;;  %v793_v55 = vld [vmem:[#allocation2 + $0xb8] sm:$0xff]  ;;  %v87_v25 = vld [vmem:[%s11086_s0 + $0x160] sm:$0xff] }
 0x119   :  { %2707 = vrot.lane.b32.xlu0 %v2572_v34, %s7156_s27  ;;  %v507_v38 = vadd.f32 %v6608_v4, %v7467_v7  ;;  %v501_v44 = vpop.f32.mrb[25].mxu0  ;;  %857 = vst.msk [vmem:[#allocation3 + $0x228] sm:$0xff] %vm700_vm4, %v793_v55 }
 0x11a   :  { %v7807_v35 = vld [vmem:[#allocation2 + $0xaa] sm:$0xff]  ;;  %v7809_v36 = vld [vmem:[#allocation2 + $0xb2] sm:$0xff]  ;;  %v502_v45 = vadd.f32 %v7467_v7, %v501_v44  ;;  %v6611_v57 = vpop.f32.mrb[26].mxu0 }
 0x11b   :  { %v7811_v37 = vld [vmem:[#allocation2 + $0xa9] sm:$0xff]  ;;  %3414 = vst.msk [vmem:[#allocation3 + $0x1a8] sm:$0xff] %vm700_vm4, %v7807_v35  ;;  %3415 = vst.msk [vmem:[#allocation3 + $0x1c0] sm:$0xff] %vm700_vm4, %v7809_v36  ;;  %v7858_v49 = vld [vmem:[#allocation2 + $0xb1] sm:$0xff]  ;;  %v511_v58 = vpop.f32.mrb[27].mxu0 }
 0x11c   :  { %2136 = vst.msk [vmem:[#allocation3 + $0x1d0] sm:$0xff] %vm700_vm4, %v7811_v37  ;;  %1423 = vrot.lane.b32.xlu1 %v7559_v0, %s7156_s27  ;;  %726 = vst.msk [vmem:[#allocation2 + $0xc8] sm:$0xff] %vm700_vm4, %v507_v38  ;;  %v512_v59 = vadd.f32 %v7467_v7, %v511_v58  ;;  %v6614_v11 = vpop.f32.mrb[28].mxu0  ;;  %v7982_v44 = vld [vmem:[#allocation2 + $0x88] sm:$0xff] }
 0x11d   :  { %3087 = vrot.lane.b32.xlu0 %v7641_v32, %s7154_s21  ;;  %725 = vst.msk [vmem:[#allocation2 + $0xc0] sm:$0xff] %vm700_vm4, %v502_v45  ;;  %2137 = vst.msk [vmem:[#allocation3 + $0x1e8] sm:$0xff] %vm700_vm4, %v7858_v49  ;;  %v521_v13 = vpop.f32.mrb[29].mxu0 }
 0x11e   :  { %727 = vst.msk [vmem:[#allocation2 + $0xd0] sm:$0xff] %vm700_vm4, %v512_v59  ;;  %v522_v14 = vadd.f32 %v7467_v7, %v521_v13 }
 0x120   :  { %1810 = vrot.lane.b32.xlu1 %v7592_v12, %s7154_s21  ;;  %v83_v12 = vld [vmem:[%s11086_s0 + $0x140] sm:$0xff]  ;;  %729 = vst.msk [vmem:[#allocation2 + $0xe0] sm:$0xff] %vm700_vm4, %v522_v14 }
 0x121   :  { %2705 = vrot.lane.b32.xlu0 %v7651_v46, %s7156_s27  ;;  %6630 = vmatprep.mubr.msk.f32.mxu0 %vm118_vm1, %v83_v12 }
 0x123   :  { %v795_v9 = vld [vmem:[#allocation2 + $0xc8] sm:$0xff] }
 0x124   :  { %1808 = vrot.lane.b32.xlu1 %v7613_v19, %s7154_s21  ;;  %v7838_v0 = vld [vmem:[#allocation2 + $0xba] sm:$0xff]  ;;  %v7840_v48 = vld [vmem:[#allocation2 + $0xc2] sm:$0xff]  ;;  %v7855_v19 = vld [vmem:[#allocation2 + $0xb0] sm:$0xff]  ;;  %859 = vst.msk [vmem:[#allocation3 + $0x258] sm:$0xff] %vm700_vm4, %v795_v9 }
 0x125   :  { %3089 = vrot.lane.b32.xlu0 %v7653_v33, %s7154_s21  ;;  %3416 = vst.msk [vmem:[#allocation3 + $0x1d8] sm:$0xff] %vm700_vm4, %v7838_v0  ;;  %3417 = vst.msk [vmem:[#allocation3 + $0x1f0] sm:$0xff] %vm700_vm4, %v7840_v48  ;;  %v7860_v50 = vld [vmem:[#allocation2 + $0xb9] sm:$0xff]  ;;  %v7913_v61 = vld [vmem:[#allocation2 + $0xc1] sm:$0xff] }
 0x126   :  { %856 = vst.msk [vmem:[#allocation3 + $0x210] sm:$0xff] %vm700_vm4, %v7855_v19  ;;  %2138 = vst.msk [vmem:[#allocation3 + $0x200] sm:$0xff] %vm700_vm4, %v7860_v50  ;;  %v7915_v62 = vld [vmem:[#allocation2 + $0xc9] sm:$0xff] }
 0x127   :  { %2139 = vst.msk [vmem:[#allocation3 + $0x218] sm:$0xff] %vm700_vm4, %v7913_v61  ;;  %2140 = vst.msk [vmem:[#allocation3 + $0x230] sm:$0xff] %vm700_vm4, %v7915_v62  ;;  %v798_v13 = vld [vmem:[#allocation2 + $0xe0] sm:$0xff] }
 0x128   :  { %1040 = vrot.lane.b32.xlu1 %v7601_v18, %s7155_s22  ;;  %v84_v18 = vld [vmem:[%s11086_s0 + $0x148] sm:$0xff]  ;;  %862 = vst.msk [vmem:[#allocation3 + $0x2a0] sm:$0xff] %vm700_vm4, %v798_v13 }
 0x129   :  { %2323 = vrot.lane.b32.xlu0 %v7635_v30, %s7155_s22  ;;  %6631 = vmatmul.mubr.msk.f32.gmra.mrb[40].mxu0 %vm118_vm1, %v84_v18 }
 0x12a   :  { %6633 = vmatprep.mubr.msk.f32.mxu0 %vm118_vm1, %v85_v60 }
 0x12c   :  { %1425 = vrot.lane.b32.xlu1 %v7596_v16, %s7156_s27  ;;  %v517_v16 = vadd.f32 %v6611_v57, %v7467_v7 }
 0x12d   :  { %2325 = vrot.lane.b32.xlu0 %v7637_v31, %s7155_s22 }
 0x12e   :  { %728 = vst.msk [vmem:[#allocation2 + $0xd8] sm:$0xff] %vm700_vm4, %v517_v16 }
 0x130   :  { %1042 = vrot.lane.b32.xlu1 %v7615_v20, %s7155_s22 }
 0x131   :  { %2711 = vrot.lane.b32.xlu0 %v2574_v56, %s7156_s27 }
 0x134   :  { %1427 = vrot.lane.b32.xlu1 %v7598_v17, %s7156_s27  ;;  %v7893_v17 = vld [vmem:[#allocation2 + $0xca] sm:$0xff] }
 0x135   :  { %3091 = vrot.lane.b32.xlu0 %v7670_v41, %s7154_s21  ;;  %v7895_v20 = vld [vmem:[#allocation2 + $0xd2] sm:$0xff]  ;;  %3418 = vst.msk [vmem:[#allocation3 + $0x208] sm:$0xff] %vm700_vm4, %v7893_v17 }
 0x136   :  { %3419 = vst.msk [vmem:[#allocation3 + $0x220] sm:$0xff] %vm700_vm4, %v7895_v20  ;;  %v7969_v4 = vld [vmem:[#allocation2 + $0xd9] sm:$0xff] }
 0x137   :  { %2142 = vst.msk [vmem:[#allocation3 + $0x260] sm:$0xff] %vm700_vm4, %v7969_v4  ;;  %v797_v38 = vld [vmem:[#allocation2 + $0xd8] sm:$0xff] }
 0x138   :  { %1814 = vrot.lane.b32.xlu1 %v2572_v34, %s7154_s21  ;;  %v7967_v34 = vld [vmem:[#allocation2 + $0xd1] sm:$0xff]  ;;  %861 = vst.msk [vmem:[#allocation3 + $0x288] sm:$0xff] %vm700_vm4, %v797_v38 }
 0x139   :  { %2709 = vrot.lane.b32.xlu0 %v7680_v42, %s7156_s27  ;;  %2141 = vst.msk [vmem:[#allocation3 + $0x248] sm:$0xff] %vm700_vm4, %v7967_v34 }
 0x13c   :  { %1812 = vrot.lane.b32.xlu1 %v7651_v46, %s7154_s21  ;;  %v7910_v46 = vld [vmem:[#allocation2 + $0xc0] sm:$0xff] }
 0x13d   :  { %3093 = vrot.lane.b32.xlu0 %v7682_v43, %s7154_s21  ;;  %858 = vst.msk [vmem:[#allocation3 + $0x240] sm:$0xff] %vm700_vm4, %v7910_v46 }
 0x140   :  { %1044 = vrot.lane.b32.xlu1 %v7641_v32, %s7155_s22  ;;  %v86_v32 = vld [vmem:[%s11086_s0 + $0x158] sm:$0xff] }
 0x141   :  { %2327 = vrot.lane.b32.xlu0 %v7666_v39, %s7155_s22  ;;  %6634 = vmatmul.mubr.msk.f32.gmra.mrb[42].mxu0 %vm118_vm1, %v86_v32  ;;  %v89_v32 = vld [vmem:[%s11086_s0 + $0x170] sm:$0xff] }
 0x142   :  { %6636 = vmatprep.mubr.msk.f32.mxu0 %vm118_vm1, %v87_v25  ;;  %v8045_v25 = vld [vmem:[#allocation2 + $0x98] sm:$0xff] }
 0x144   :  { %1429 = vrot.lane.b32.xlu1 %v7635_v30, %s7156_s27  ;;  %v527_v30 = vadd.f32 %v6614_v11, %v7467_v7 }
 0x145   :  { %2329 = vrot.lane.b32.xlu0 %v7668_v40, %s7155_s22 }
 0x146   :  { %730 = vst.msk [vmem:[#allocation2 + $0xe8] sm:$0xff] %vm700_vm4, %v527_v30 }
 0x148   :  { %1046 = vrot.lane.b32.xlu1 %v7653_v33, %s7155_s22 }
 0x149   :  { %2715 = vrot.lane.b32.xlu0 %v2576_v10, %s7156_s27 }
 0x14c   :  { %1431 = vrot.lane.b32.xlu1 %v7637_v31, %s7156_s27  ;;  %v7947_v31 = vld [vmem:[#allocation2 + $0xda] sm:$0xff] }
 0x14d   :  { %3095 = vrot.lane.b32.xlu0 %v7699_v53, %s7154_s21  ;;  %v7949_v33 = vld [vmem:[#allocation2 + $0xe2] sm:$0xff]  ;;  %3420 = vst.msk [vmem:[#allocation3 + $0x238] sm:$0xff] %vm700_vm4, %v7947_v31 }
 0x14e   :  { %3421 = vst.msk [vmem:[#allocation3 + $0x250] sm:$0xff] %vm700_vm4, %v7949_v33  ;;  %v799_v14 = vld [vmem:[#allocation2 + $0xe8] sm:$0xff] }
 0x14f   :  { %863 = vst.msk [vmem:[#allocation3 + $0x2b8] sm:$0xff] %vm700_vm4, %v799_v14 }
 0x150   :  { %1818 = vrot.lane.b32.xlu1 %v2574_v56, %s7154_s21 }
 0x151   :  { %2713 = vrot.lane.b32.xlu0 %v2575_v15, %s7156_s27 }
 0x154   :  { %1816 = vrot.lane.b32.xlu1 %v7680_v42, %s7154_s21  ;;  %v7964_v42 = vld [vmem:[#allocation2 + $0xd0] sm:$0xff] }
 0x155   :  { %3097 = vrot.lane.b32.xlu0 %v7709_v54, %s7154_s21  ;;  %860 = vst.msk [vmem:[#allocation3 + $0x270] sm:$0xff] %vm700_vm4, %v7964_v42 }
 0x158   :  { %1048 = vrot.lane.b32.xlu1 %v7670_v41, %s7155_s22  ;;  %v88_v41 = vld [vmem:[%s11086_s0 + $0x168] sm:$0xff] }
 0x159   :  { %2331 = vrot.lane.b32.xlu0 %v7695_v51, %s7155_s22  ;;  %6637 = vmatmul.mubr.msk.f32.gmra.mrb[44].mxu0 %vm118_vm1, %v88_v41 }
 0x15a   :  { %6639 = vmatprep.mubr.msk.f32.mxu0 %vm118_vm1, %v89_v32 }
 0x15c   :  { %1433 = vrot.lane.b32.xlu1 %v7666_v39, %s7156_s27  ;;  %v6617_v39 = vpop.f32.mrb[30].mxu0 }
 0x15d   :  { %2333 = vrot.lane.b32.xlu0 %v7697_v52, %s7155_s22  ;;  %v537_v12 = vadd.f32 %v6617_v39, %v7467_v7  ;;  %v531_v18 = vpop.f32.mrb[31].mxu0 }
 0x15e   :  { %v532_v56 = vadd.f32 %v7467_v7, %v531_v18  ;;  %v6620_v39 = vpop.f32.mrb[32].mxu0 }
 0x15f   :  { %732 = vst.msk [vmem:[#allocation2 + $0xf8] sm:$0xff] %vm700_vm4, %v537_v12  ;;  %v547_v12 = vadd.f32 %v6620_v39, %v7467_v7  ;;  %v541_v18 = vpop.f32.mrb[33].mxu0 }
 0x160   :  { %1050 = vrot.lane.b32.xlu1 %v7682_v43, %s7155_s22  ;;  %v7996_v43 = vld [vmem:[#allocation2 + $0x80] sm:$0xff]  ;;  %731 = vst.msk [vmem:[#allocation2 + $0xf0] sm:$0xff] %vm700_vm4, %v532_v56  ;;  %v542_v56 = vadd.f32 %v7467_v7, %v541_v18 }
 0x161   :  { %2719 = vrot.lane.b32.xlu0 %v7982_v44, %s7156_s27  ;;  %734 = vst.msk [vmem:[#allocation2 + $0x108] sm:$0xff] %vm700_vm4, %v547_v12 }
 0x162   :  { %733 = vst.msk [vmem:[#allocation2 + $0x100] sm:$0xff] %vm700_vm4, %v542_v56 }
 0x164   :  { %1435 = vrot.lane.b32.xlu1 %v7668_v40, %s7156_s27 }
 0x165   :  { %3099 = vrot.lane.b32.xlu0 %v7733_v6, %s7154_s21 }
 0x166   :  { %v1803_v45 = vpop.permute.xlu1 %1802  ;;  %v801_v39 = vld [vmem:[#allocation2 + $0xf8] sm:$0xff] }
 0x167   :  { %v1033_v55 = vpop.permute.xlu0 %1032  ;;  %v8012_v59 = vld [vmem:[#allocation2 + $0xea] sm:$0xff]  ;;  %v8014_v60 = vld [vmem:[#allocation2 + $0xf2] sm:$0xff]  ;;  %865 = vst.msk [vmem:[#allocation3 + $0x2e8] sm:$0xff] %vm700_vm4, %v801_v39 }
 0x168   :  { %1222 = vst.msk [vmem:[#allocation3 + $0x48] sm:$0xff] %vm1218_vm5, %v1033_v55  ;;  %1822 = vrot.lane.b32.xlu1 %v2576_v10, %s7154_s21  ;;  %v8030_v10 = vld [vmem:[#allocation2 + $0xe1] sm:$0xff]  ;;  %v8032_v11 = vld [vmem:[#allocation2 + $0xe9] sm:$0xff] }
 0x169   :  { %2717 = vrot.lane.b32.xlu0 %v7996_v43, %s7156_s27  ;;  %3422 = vst.msk [vmem:[#allocation3 + $0x268] sm:$0xff] %vm700_vm4, %v8012_v59  ;;  %3423 = vst.msk [vmem:[#allocation3 + $0x280] sm:$0xff] %vm700_vm4, %v8014_v60  ;;  %v8082_v32 = vld [vmem:[#allocation2 + $0x102] sm:$0xff]  ;;  %v8099_v13 = vld [vmem:[#allocation2 + $0xf9] sm:$0xff] }
 0x16a   :  { %v1418_v40 = vpop.permute.xlu1 %1417  ;;  %2143 = vst.msk [vmem:[#allocation3 + $0x278] sm:$0xff] %vm700_vm4, %v8030_v10  ;;  %2144 = vst.msk [vmem:[#allocation3 + $0x290] sm:$0xff] %vm700_vm4, %v8032_v11  ;;  %v803_v39 = vld [vmem:[#allocation2 + $0x108] sm:$0xff] }
 0x16b   :  { %1607 = vst.msk [vmem:[#allocation3 + $0x48] sm:$0xff] %vm1603_vm6, %v1418_v40  ;;  %v2316_v57 = vpop.permute.xlu0 %2315 }
 0x16c   :  { %1992 = vst.msk [vmem:[#allocation3 + $0x48] sm:$0xff] %vm1988_vm7, %v1803_v45  ;;  %1820 = vrot.lane.b32.xlu1 %v2575_v15, %s7154_s21 }
 0x16d   :  { %2504 = vst.msk [vmem:[#allocation3 + $0x50] sm:$0xff] %vm1218_vm5, %v2316_v57  ;;  %3101 = vrot.lane.b32.xlu0 %v7743_v1, %s7154_s21 }
 0x16e   :  { %v1035_v16 = vpop.permute.xlu1 %1034  ;;  %3425 = vst.msk [vmem:[#allocation3 + $0x2b0] sm:$0xff] %vm700_vm4, %v8082_v32  ;;  %2146 = vst.msk [vmem:[#allocation3 + $0x2c0] sm:$0xff] %vm700_vm4, %v8099_v13 }
 0x16f   :  { %1223 = vst.msk [vmem:[#allocation3 + $0x60] sm:$0xff] %vm1218_vm5, %v1035_v16  ;;  %v2318_v58 = vpop.permute.xlu0 %2317 }
 0x170   :  { %2505 = vst.msk [vmem:[#allocation3 + $0x68] sm:$0xff] %vm1218_vm5, %v2318_v58  ;;  %1052 = vrot.lane.b32.xlu1 %v7699_v53, %s7155_s22  ;;  %v90_v53 = vld [vmem:[%s11086_s0 + $0x178] sm:$0xff] }
 0x171   :  { %2335 = vrot.lane.b32.xlu0 %v7729_v2, %s7155_s22  ;;  %6640 = vmatmul.mubr.msk.f32.gmra.mrb[46].mxu0 %vm118_vm1, %v90_v53  ;;  %v91_v53 = vld [vmem:[%s11086_s0 + $0x180] sm:$0xff]  ;;  %867 = vst.msk [vmem:[#allocation3 + $0x318] sm:$0xff] %vm700_vm4, %v803_v39 }
 0x172   :  { %v1420_v9 = vpop.permute.xlu1 %1419  ;;  %6642 = vmatprep.mubr.msk.f32.mxu0 %vm118_vm1, %v91_v53 }
 0x173   :  { %1608 = vst.msk [vmem:[#allocation3 + $0x60] sm:$0xff] %vm1603_vm6, %v1420_v9  ;;  %v2704_v30 = vpop.permute.xlu0 %2703 }
 0x174   :  { %1437 = vrot.lane.b32.xlu1 %v7695_v51, %s7156_s27 }
 0x175   :  { %2337 = vrot.lane.b32.xlu0 %v7731_v5, %s7155_s22 }
 0x176   :  { %v2700_v15 = vpop.permute.xlu1 %2699 }
 0x177   :  { %2888 = vst.msk [vmem:[#allocation3 + $0x50] sm:$0xff] %vm1603_vm6, %v2700_v15  ;;  %v3084_v41 = vpop.permute.xlu0 %3083  ;;  %v800_v15 = vld [vmem:[#allocation2 + $0xf0] sm:$0xff] }
 0x178   :  { %3272 = vst.msk [vmem:[#allocation3 + $0x50] sm:$0xff] %vm1988_vm7, %v3084_v41  ;;  %1054 = vrot.lane.b32.xlu1 %v7709_v54, %s7155_s22 }
 0x179   :  { %2723 = vrot.lane.b32.xlu0 %v8045_v25, %s7156_s27  ;;  %864 = vst.msk [vmem:[#allocation3 + $0x2d0] sm:$0xff] %vm700_vm4, %v800_v15 }
 0x17a   :  { %v1807_v51 = vpop.permute.xlu1 %1806 }
 0x17b   :  { %v2702_v38 = vpop.permute.xlu0 %2701 }
 0x17c   :  { %2889 = vst.msk [vmem:[#allocation3 + $0x68] sm:$0xff] %vm1603_vm6, %v2702_v38  ;;  %1439 = vrot.lane.b32.xlu1 %v7697_v52, %s7156_s27  ;;  %v3470_v52 = vld [vmem:[#allocation3 + $0x48] sm:$0xff] }
 0x17d   :  { %3103 = vrot.lane.b32.xlu0 %v7759_v23, %s7154_s21 }
 0x17e   :  { %v1805_v45 = vpop.permute.xlu1 %1804 }
 0x17f   :  { %1993 = vst.msk [vmem:[#allocation3 + $0x60] sm:$0xff] %vm1988_vm7, %v1805_v45  ;;  %v3086_v54 = vpop.permute.xlu0 %3085  ;;  %v3471_v55 = vld [vmem:[#allocation3 + $0x50] sm:$0xff]  ;;  %v6623_v45 = vpop.f32.mrb[34].mxu0 }
 0x180   :  { %3273 = vst.msk [vmem:[#allocation3 + $0x68] sm:$0xff] %vm1988_vm7, %v3086_v54  ;;  %1826 = vrot.lane.b32.xlu1 %v7982_v44, %s7154_s21  ;;  %3967 = vmatprep.mubr.f32.mxu1 %v3471_v55  ;;  %v551_v18 = vpop.f32.mrb[35].mxu0 }
 0x181   :  { %2721 = vrot.lane.b32.xlu0 %v7769_v3, %s7156_s27  ;;  %3968 = vmatmul.mubr.f32.vlgmr.msra.gmra.mrb[0].mxu1 %v3470_v52 }
 0x182   :  { %v1037_v40 = vpop.permute.xlu1 %1036 }
 0x183   :  { %1224 = vst.msk [vmem:[#allocation3 + $0x78] sm:$0xff] %vm1218_vm5, %v1037_v40  ;;  %v2320_v57 = vpop.permute.xlu0 %2319 }
 0x184   :  { %2506 = vst.msk [vmem:[#allocation3 + $0x80] sm:$0xff] %vm1218_vm5, %v2320_v57  ;;  %1824 = vrot.lane.b32.xlu1 %v7996_v43, %s7154_s21  ;;  %v8080_v43 = vld [vmem:[#allocation2 + $0xfa] sm:$0xff] }
 0x185   :  { %2890 = vst.msk [vmem:[#allocation3 + $0x80] sm:$0xff] %vm1603_vm6, %v2704_v30  ;;  %3105 = vrot.lane.b32.xlu0 %v7771_v24, %s7154_s21  ;;  %v8097_v30 = vld [vmem:[#allocation2 + $0xf1] sm:$0xff] }
 0x186   :  { %v1422_v7 = vpop.permute.xlu1 %1421  ;;  %v3473_v58 = vld [vmem:[#allocation3 + $0x60] sm:$0xff]  ;;  %3424 = vst.msk [vmem:[#allocation3 + $0x298] sm:$0xff] %vm700_vm4, %v8080_v43  ;;  %2145 = vst.msk [vmem:[#allocation3 + $0x2a8] sm:$0xff] %vm700_vm4, %v8097_v30 }
 0x187   :  { %1609 = vst.msk [vmem:[#allocation3 + $0x78] sm:$0xff] %vm1603_vm6, %v1422_v7  ;;  %v2322_v44 = vpop.permute.xlu0 %2321  ;;  %v3474_v16 = vld [vmem:[#allocation3 + $0x68] sm:$0xff] }
 0x188   :  { %1994 = vst.msk [vmem:[#allocation3 + $0x78] sm:$0xff] %vm1988_vm7, %v1807_v51  ;;  %1056 = vrot.lane.b32.xlu1 %v7733_v6, %s7155_s22  ;;  %3972 = vmatprep.mubr.f32.mxu1 %v3474_v16  ;;  %v92_v6 = vld [vmem:[%s11086_s0 + $0x188] sm:$0xff] }
 0x189   :  { %2507 = vst.msk [vmem:[#allocation3 + $0x98] sm:$0xff] %vm1218_vm5, %v2322_v44  ;;  %2339 = vrot.lane.b32.xlu0 %v7755_v21, %s7155_s22  ;;  %3973 = vmatmul.mubr.f32.gmra.mrb[2].mxu1 %v3473_v58  ;;  %v8112_v51 = vld [vmem:[#allocation2 + $0xa8] sm:$0xff] }
 0x18a   :  { %v1039_v9 = vpop.permute.xlu1 %1038  ;;  %6643 = vmatmul.mubr.msk.f32.gmra.mrb[48].mxu0 %vm118_vm1, %v92_v6  ;;  %v2083_v58 = vld [vmem:[#allocation2 + $0x101] sm:$0xff] }
 0x18b   :  { %1225 = vst.msk [vmem:[#allocation3 + $0x90] sm:$0xff] %vm1218_vm5, %v1039_v9  ;;  %v2708_v14 = vpop.permute.xlu0 %2707  ;;  %v93_v9 = vld [vmem:[%s11086_s0 + $0x190] sm:$0xff] }
 0x18c   :  { %1441 = vrot.lane.b32.xlu1 %v7729_v2, %s7156_s27  ;;  %v8124_v2 = vld [vmem:[%s11088_s2] ss:$0 sm:$0xff]  ;;  %2147 = vst.msk [vmem:[#allocation3 + $0x2d8] sm:$0xff] %vm700_vm4, %v2083_v58  ;;  %6645 = vmatprep.mubr.msk.f32.mxu0 %vm118_vm1, %v93_v9 }
 0x18d   :  { %2341 = vrot.lane.b32.xlu0 %v7757_v22, %s7155_s22  ;;  %v557_v12 = vadd.f32 %v8124_v2, %v6623_v45  ;;  %v552_v55 = vadd.f32 %v8124_v2, %v551_v18 }
 0x18e   :  { %v1424_v41 = vpop.permute.xlu1 %1423 }
 0x18f   :  { %1610 = vst.msk [vmem:[#allocation3 + $0x90] sm:$0xff] %vm1603_vm6, %v1424_v41  ;;  %v3088_v38 = vpop.permute.xlu0 %3087  ;;  %v3476_v57 = vld [vmem:[#allocation3 + $0x78] sm:$0xff] }
 0x190   :  { %3274 = vst.msk [vmem:[#allocation3 + $0x80] sm:$0xff] %vm1988_vm7, %v3088_v38  ;;  %1058 = vrot.lane.b32.xlu1 %v7743_v1, %s7155_s22  ;;  %v802_v38 = vld [vmem:[#allocation2 + $0x100] sm:$0xff] }
 0x191   :  { %2727 = vrot.lane.b32.xlu0 %v8112_v51, %s7156_s27  ;;  %736 = vst.msk [vmem:[#allocation2 + $0x118] sm:$0xff] %vm700_vm4, %v557_v12  ;;  %735 = vst.msk [vmem:[#allocation2 + $0x110] sm:$0xff] %vm700_vm4, %v552_v55  ;;  %v8178_v12 = vld [vmem:[#allocation2 + $0xb8] sm:$0xff]  ;;  %v6626_v55 = vpop.f32.mrb[36].mxu0 }
 0x192   :  { %v1811_v54 = vpop.permute.xlu1 %1810  ;;  %866 = vst.msk [vmem:[#allocation3 + $0x300] sm:$0xff] %vm700_vm4, %v802_v38 }
 0x193   :  { %v2706_v56 = vpop.permute.xlu0 %2705 }
 0x194   :  { %2891 = vst.msk [vmem:[#allocation3 + $0x98] sm:$0xff] %vm1603_vm6, %v2706_v56  ;;  %1443 = vrot.lane.b32.xlu1 %v7731_v5, %s7156_s27 }
 0x195   :  { %3107 = vrot.lane.b32.xlu0 %v7786_v28, %s7154_s21 }
 0x196   :  { %v1809_v1 = vpop.permute.xlu1 %1808 }
 0x197   :  { %1995 = vst.msk [vmem:[#allocation3 + $0x90] sm:$0xff] %vm1988_vm7, %v1809_v1  ;;  %v3090_v52 = vpop.permute.xlu0 %3089  ;;  %v3477_v40 = vld [vmem:[#allocation3 + $0x80] sm:$0xff]  ;;  %v567_v1 = vadd.f32 %v8124_v2, %v6626_v55 }
 0x198   :  { %3275 = vst.msk [vmem:[#allocation3 + $0x98] sm:$0xff] %vm1988_vm7, %v3090_v52  ;;  %1830 = vrot.lane.b32.xlu1 %v8045_v25, %s7154_s21  ;;  %3977 = vmatprep.mubr.f32.mxu1 %v3477_v40  ;;  %v8142_v44 = vld [vmem:[#allocation2 + $0x10a] sm:$0xff]  ;;  %v8144_v16 = vld [vmem:[#allocation2 + $0x112] sm:$0xff]  ;;  %v561_v52 = vpop.f32.mrb[37].mxu0 }
 0x199   :  { %2725 = vrot.lane.b32.xlu0 %v7795_v29, %s7156_s27  ;;  %3978 = vmatmul.mubr.f32.gmra.mrb[4].mxu1 %v3476_v57  ;;  %3426 = vst.msk [vmem:[#allocation3 + $0x2c8] sm:$0xff] %vm700_vm4, %v8142_v44  ;;  %3427 = vst.msk [vmem:[#allocation3 + $0x2e0] sm:$0xff] %vm700_vm4, %v8144_v16  ;;  %v2084_v41 = vld [vmem:[#allocation2 + $0x109] sm:$0xff]  ;;  %v562_v57 = vadd.f32 %v8124_v2, %v561_v52  ;;  %v2085_v39 = vld [vmem:[#allocation2 + $0x111] sm:$0xff] }
 0x19a   :  { %v1041_v5 = vpop.permute.xlu1 %1040  ;;  %2148 = vst.msk [vmem:[#allocation3 + $0x2f0] sm:$0xff] %vm700_vm4, %v2084_v41  ;;  %738 = vst.msk [vmem:[#allocation2 + $0x128] sm:$0xff] %vm700_vm4, %v567_v1  ;;  %v8238_v41 = vld [vmem:[#allocation2 + $0xc8] sm:$0xff] }
 0x19b   :  { %1226 = vst.msk [vmem:[#allocation3 + $0xa8] sm:$0xff] %vm1218_vm5, %v1041_v5  ;;  %v2324_v7 = vpop.permute.xlu0 %2323 }
 0x19c   :  { %2508 = vst.msk [vmem:[#allocation3 + $0xb0] sm:$0xff] %vm1218_vm5, %v2324_v7  ;;  %1828 = vrot.lane.b32.xlu1 %v7769_v3, %s7154_s21 }
 0x19d   :  { %2892 = vst.msk [vmem:[#allocation3 + $0xb0] sm:$0xff] %vm1603_vm6, %v2708_v14  ;;  %3109 = vrot.lane.b32.xlu0 %v7797_v63, %s7154_s21  ;;  %v94_v14 = vld [vmem:[%s11086_s0 + $0x198] sm:$0xff] }
 0x19e   :  { %v1426_v25 = vpop.permute.xlu1 %1425  ;;  %v3479_v3 = vld [vmem:[#allocation3 + $0x90] sm:$0xff]  ;;  %6646 = vmatmul.mubr.msk.f32.gmra.mrb[50].mxu0 %vm118_vm1, %v94_v14  ;;  %737 = vst.msk [vmem:[#allocation2 + $0x120] sm:$0xff] %vm700_vm4, %v562_v57  ;;  %2149 = vst.msk [vmem:[#allocation3 + $0x308] sm:$0xff] %vm700_vm4, %v2085_v39 }
 0x19f   :  { %1611 = vst.msk [vmem:[#allocation3 + $0xa8] sm:$0xff] %vm1603_vm6, %v1426_v25  ;;  %v2326_v53 = vpop.permute.xlu0 %2325  ;;  %v3480_v6 = vld [vmem:[#allocation3 + $0x98] sm:$0xff]  ;;  %v98_v57 = vld [vmem:[%s11086_s0 + $0x1b8] sm:$0xff] }
 0x1a0   :  { %1996 = vst.msk [vmem:[#allocation3 + $0xa8] sm:$0xff] %vm1988_vm7, %v1811_v54  ;;  %1060 = vrot.lane.b32.xlu1 %v7759_v23, %s7155_s22  ;;  %3982 = vmatprep.mubr.f32.mxu1 %v3480_v6 }
 0x1a1   :  { %2509 = vst.msk [vmem:[#allocation3 + $0xc8] sm:$0xff] %vm1218_vm5, %v2326_v53  ;;  %2343 = vrot.lane.b32.xlu0 %v7782_v26, %s7155_s22  ;;  %3983 = vmatmul.mubr.f32.gmra.mrb[6].mxu1 %v3479_v3  ;;  %v95_v3 = vld [vmem:[%s11086_s0 + $0x1a0] sm:$0xff] }
 0x1a2   :  { %v1043_v15 = vpop.permute.xlu1 %1042  ;;  %6648 = vmatprep.mubr.msk.f32.mxu0 %vm118_vm1, %v95_v3 }
 0x1a3   :  { %1227 = vst.msk [vmem:[#allocation3 + $0xc0] sm:$0xff] %vm1218_vm5, %v1043_v15  ;;  %v2712_v23 = vpop.permute.xlu0 %2711 }
 0x1a4   :  { %1445 = vrot.lane.b32.xlu1 %v7755_v21, %s7156_s27 }
 0x1a5   :  { %2345 = vrot.lane.b32.xlu0 %v7784_v27, %s7155_s22  ;;  %v8217_v6 = vld [vmem:[#allocation2 + $0x122] sm:$0xff] }
 0x1a6   :  { %v1428_v45 = vpop.permute.xlu1 %1427  ;;  %3429 = vst.msk [vmem:[#allocation3 + $0x310] sm:$0xff] %vm700_vm4, %v8217_v6 }
 0x1a7   :  { %1612 = vst.msk [vmem:[#allocation3 + $0xc0] sm:$0xff] %vm1603_vm6, %v1428_v45  ;;  %v3092_v18 = vpop.permute.xlu0 %3091  ;;  %v804_v45 = vld [vmem:[#allocation2 + $0x110] sm:$0xff] }
 0x1a8   :  { %3276 = vst.msk [vmem:[#allocation3 + $0xb0] sm:$0xff] %vm1988_vm7, %v3092_v18  ;;  %1062 = vrot.lane.b32.xlu1 %v7771_v24, %s7155_s22 }
 0x1a9   :  { %2731 = vrot.lane.b32.xlu0 %v8178_v12, %s7156_s27  ;;  %868 = vst.msk [vmem:[#allocation3 + $0x330] sm:$0xff] %vm700_vm4, %v804_v45  ;;  %v100_v45 = vld [vmem:[%s11086_s0 + $0x1c8] sm:$0xff] }
 0x1aa   :  { %v1815_v21 = vpop.permute.xlu1 %1814 }
 0x1ab   :  { %v2710_v54 = vpop.permute.xlu0 %2709 }
 0x1ac   :  { %2893 = vst.msk [vmem:[#allocation3 + $0xc8] sm:$0xff] %vm1603_vm6, %v2710_v54  ;;  %1447 = vrot.lane.b32.xlu1 %v7757_v22, %s7156_s27  ;;  %v3482_v22 = vld [vmem:[#allocation3 + $0xa8] sm:$0xff] }
 0x1ad   :  { %3111 = vrot.lane.b32.xlu0 %v7811_v37, %s7154_s21 }
 0x1ae   :  { %v1813_v56 = vpop.permute.xlu1 %1812 }
 0x1af   :  { %1997 = vst.msk [vmem:[#allocation3 + $0xc0] sm:$0xff] %vm1988_vm7, %v1813_v56  ;;  %v3094_v24 = vpop.permute.xlu0 %3093  ;;  %v3483_v40 = vld [vmem:[#allocation3 + $0xb0] sm:$0xff] }
 0x1b0   :  { %3277 = vst.msk [vmem:[#allocation3 + $0xc8] sm:$0xff] %vm1988_vm7, %v3094_v24  ;;  %1834 = vrot.lane.b32.xlu1 %v8112_v51, %s7154_s21  ;;  %3987 = vmatprep.mubr.f32.mxu1 %v3483_v40 }
 0x1b1   :  { %2729 = vrot.lane.b32.xlu0 %v7855_v19, %s7156_s27  ;;  %3988 = vmatmul.mubr.f32.gmra.mrb[8].mxu1 %v3482_v22 }
 0x1b2   :  { %v1045_v5 = vpop.permute.xlu1 %1044 }
 0x1b3   :  { %1228 = vst.msk [vmem:[#allocation3 + $0xd8] sm:$0xff] %vm1218_vm5, %v1045_v5  ;;  %v2328_v7 = vpop.permute.xlu0 %2327 }
 0x1b4   :  { %2510 = vst.msk [vmem:[#allocation3 + $0xe0] sm:$0xff] %vm1218_vm5, %v2328_v7  ;;  %1832 = vrot.lane.b32.xlu1 %v7795_v29, %s7154_s21  ;;  %v8215_v29 = vld [vmem:[#allocation2 + $0x11a] sm:$0xff] }
 0x1b5   :  { %2894 = vst.msk [vmem:[#allocation3 + $0xe0] sm:$0xff] %vm1603_vm6, %v2712_v23  ;;  %3113 = vrot.lane.b32.xlu0 %v7858_v49, %s7154_s21  ;;  %v8288_v7 = vld [vmem:[#allocation2 + $0xd8] sm:$0xff] }
 0x1b6   :  { %v1430_v51 = vpop.permute.xlu1 %1429  ;;  %v3485_v53 = vld [vmem:[#allocation3 + $0xc0] sm:$0xff]  ;;  %3428 = vst.msk [vmem:[#allocation3 + $0x2f8] sm:$0xff] %vm700_vm4, %v8215_v29 }
 0x1b7   :  { %1613 = vst.msk [vmem:[#allocation3 + $0xd8] sm:$0xff] %vm1603_vm6, %v1430_v51  ;;  %v2330_v25 = vpop.permute.xlu0 %2329  ;;  %v3486_v58 = vld [vmem:[#allocation3 + $0xc8] sm:$0xff] }
 0x1b8   :  { %1998 = vst.msk [vmem:[#allocation3 + $0xd8] sm:$0xff] %vm1988_vm7, %v1815_v21  ;;  %1064 = vrot.lane.b32.xlu1 %v7786_v28, %s7155_s22  ;;  %3992 = vmatprep.mubr.f32.mxu1 %v3486_v58  ;;  %v96_v28 = vld [vmem:[%s11086_s0 + $0x1a8] sm:$0xff]  ;;  %v805_v21 = vld [vmem:[#allocation2 + $0x118] sm:$0xff] }
 0x1b9   :  { %2511 = vst.msk [vmem:[#allocation3 + $0xf8] sm:$0xff] %vm1218_vm5, %v2330_v25  ;;  %2347 = vrot.lane.b32.xlu0 %v7807_v35, %s7155_s22  ;;  %3993 = vmatmul.mubr.f32.gmra.mrb[10].mxu1 %v3485_v53 }
 0x1ba   :  { %v1047_v9 = vpop.permute.xlu1 %1046  ;;  %6649 = vmatmul.mubr.msk.f32.gmra.mrb[52].mxu0 %vm118_vm1, %v96_v28  ;;  %869 = vst.msk [vmem:[#allocation3 + $0x348] sm:$0xff] %vm700_vm4, %v805_v21 }
 0x1bb   :  { %1229 = vst.msk [vmem:[#allocation3 + $0xf0] sm:$0xff] %vm1218_vm5, %v1047_v9  ;;  %v2716_v14 = vpop.permute.xlu0 %2715 }
 0x1bc   :  { %1449 = vrot.lane.b32.xlu1 %v7782_v26, %s7156_s27  ;;  %v2086_v26 = vld [vmem:[#allocation2 + $0x119] sm:$0xff] }
 0x1bd   :  { %2349 = vrot.lane.b32.xlu0 %v7809_v36, %s7155_s22  ;;  %2150 = vst.msk [vmem:[#allocation3 + $0x320] sm:$0xff] %vm700_vm4, %v2086_v26 }
 0x1be   :  { %v1432_v15 = vpop.permute.xlu1 %1431 }
 0x1bf   :  { %1614 = vst.msk [vmem:[#allocation3 + $0xf0] sm:$0xff] %vm1603_vm6, %v1432_v15  ;;  %v3096_v23 = vpop.permute.xlu0 %3095  ;;  %v3488_v56 = vld [vmem:[#allocation3 + $0xd8] sm:$0xff] }
 0x1c0   :  { %3278 = vst.msk [vmem:[#allocation3 + $0xe0] sm:$0xff] %vm1988_vm7, %v3096_v23  ;;  %1066 = vrot.lane.b32.xlu1 %v7797_v63, %s7155_s22 }
 0x1c1   :  { %2735 = vrot.lane.b32.xlu0 %v8238_v41, %s7156_s27 }
 0x1c2   :  { %v1819_v38 = vpop.permute.xlu1 %1818 }
 0x1c3   :  { %v2714_v18 = vpop.permute.xlu0 %2713 }
 0x1c4   :  { %2895 = vst.msk [vmem:[#allocation3 + $0xf8] sm:$0xff] %vm1603_vm6, %v2714_v18  ;;  %1451 = vrot.lane.b32.xlu1 %v7784_v27, %s7156_s27 }
 0x1c5   :  { %3115 = vrot.lane.b32.xlu0 %v7860_v50, %s7154_s21 }
 0x1c6   :  { %v1817_v63 = vpop.permute.xlu1 %1816 }
 0x1c7   :  { %1999 = vst.msk [vmem:[#allocation3 + $0xf0] sm:$0xff] %vm1988_vm7, %v1817_v63  ;;  %v3098_v54 = vpop.permute.xlu0 %3097  ;;  %v3489_v55 = vld [vmem:[#allocation3 + $0xe0] sm:$0xff] }
 0x1c8   :  { %3279 = vst.msk [vmem:[#allocation3 + $0xf8] sm:$0xff] %vm1988_vm7, %v3098_v54  ;;  %1838 = vrot.lane.b32.xlu1 %v8178_v12, %s7154_s21  ;;  %3997 = vmatprep.mubr.f32.mxu1 %v3489_v55  ;;  %v8342_v54 = vld [vmem:[#allocation2 + $0x121] sm:$0xff] }
 0x1c9   :  { %2733 = vrot.lane.b32.xlu0 %v7910_v46, %s7156_s27  ;;  %3998 = vmatmul.mubr.f32.gmra.mrb[12].mxu1 %v3488_v56  ;;  %2151 = vst.msk [vmem:[#allocation3 + $0x338] sm:$0xff] %vm700_vm4, %v8342_v54 }
 0x1ca   :  { %v1049_v27 = vpop.permute.xlu1 %1048 }
 0x1cb   :  { %1230 = vst.msk [vmem:[#allocation3 + $0x108] sm:$0xff] %vm1218_vm5, %v1049_v27  ;;  %v2332_v1 = vpop.permute.xlu0 %2331  ;;  %v8354_v27 = vld [vmem:[#allocation2 + $0xe8] sm:$0xff] }
 0x1cc   :  { %2512 = vst.msk [vmem:[#allocation3 + $0x110] sm:$0xff] %vm1218_vm5, %v2332_v1  ;;  %1836 = vrot.lane.b32.xlu1 %v7855_v19, %s7154_s21  ;;  %v97_v19 = vld [vmem:[%s11086_s0 + $0x1b0] sm:$0xff] }
 0x1cd   :  { %2896 = vst.msk [vmem:[#allocation3 + $0x110] sm:$0xff] %vm1603_vm6, %v2716_v14  ;;  %3117 = vrot.lane.b32.xlu0 %v7913_v61, %s7154_s21  ;;  %6651 = vmatprep.mubr.msk.f32.mxu0 %vm118_vm1, %v97_v19 }
 0x1ce   :  { %v1434_v12 = vpop.permute.xlu1 %1433  ;;  %v3491_v40 = vld [vmem:[#allocation3 + $0xf0] sm:$0xff]  ;;  %6652 = vmatmul.mubr.msk.f32.gmra.mrb[54].mxu0 %vm118_vm1, %v98_v57  ;;  %v2589_v57 = vld [vmem:[#allocation2 + $0xe0] sm:$0xff] }
 0x1cf   :  { %1615 = vst.msk [vmem:[#allocation3 + $0x108] sm:$0xff] %vm1603_vm6, %v1434_v12  ;;  %v2334_v52 = vpop.permute.xlu0 %2333  ;;  %v3492_v24 = vld [vmem:[#allocation3 + $0xf8] sm:$0xff] }
 0x1d0   :  { %2000 = vst.msk [vmem:[#allocation3 + $0x108] sm:$0xff] %vm1988_vm7, %v1819_v38  ;;  %1068 = vrot.lane.b32.xlu1 %v7811_v37, %s7155_s22  ;;  %4002 = vmatprep.mubr.f32.mxu1 %v3492_v24  ;;  %v806_v12 = vld [vmem:[#allocation2 + $0x120] sm:$0xff] }
 0x1d1   :  { %2513 = vst.msk [vmem:[#allocation3 + $0x128] sm:$0xff] %vm1218_vm5, %v2334_v52  ;;  %2351 = vrot.lane.b32.xlu0 %v7838_v0, %s7155_s22  ;;  %4003 = vmatmul.mubr.f32.gmra.mrb[14].mxu1 %v3491_v40  ;;  %v807_v52 = vld [vmem:[#allocation2 + $0x128] sm:$0xff] }
 0x1d2   :  { %v1051_v22 = vpop.permute.xlu1 %1050  ;;  %v6629_v53 = vpop.f32.mrb[38].mxu0  ;;  %870 = vst.msk [vmem:[#allocation3 + $0x360] sm:$0xff] %vm700_vm4, %v806_v12  ;;  %871 = vst.msk [vmem:[#allocation3 + $0x378] sm:$0xff] %vm700_vm4, %v807_v52 }
 0x1d3   :  { %1231 = vst.msk [vmem:[#allocation3 + $0x120] sm:$0xff] %vm1218_vm5, %v1051_v22  ;;  %v2720_v37 = vpop.permute.xlu0 %2719  ;;  %v571_v9 = vpop.f32.mrb[39].mxu0 }
 0x1d4   :  { %1453 = vrot.lane.b32.xlu1 %v7807_v35, %s7156_s27 }
 0x1d5   :  { %2353 = vrot.lane.b32.xlu0 %v7840_v48, %s7155_s22 }
 0x1d6   :  { %v1436_v5 = vpop.permute.xlu1 %1435 }
 0x1d7   :  { %1616 = vst.msk [vmem:[#allocation3 + $0x120] sm:$0xff] %vm1603_vm6, %v1436_v5  ;;  %v3100_v51 = vpop.permute.xlu0 %3099  ;;  %v3494_v14 = vld [vmem:[#allocation3 + $0x108] sm:$0xff] }
 0x1d8   :  { %3280 = vst.msk [vmem:[#allocation3 + $0x110] sm:$0xff] %vm1988_vm7, %v3100_v51  ;;  %1070 = vrot.lane.b32.xlu1 %v7858_v49, %s7155_s22  ;;  %v577_v49 = vadd.f32 %v8124_v2, %v6629_v53 }
 0x1d9   :  { %2739 = vrot.lane.b32.xlu0 %v8288_v7, %s7156_s27 }
 0x1da   :  { %v1823_v25 = vpop.permute.xlu1 %1822  ;;  %740 = vst.msk [vmem:[#allocation2 + $0x138] sm:$0xff] %vm700_vm4, %v577_v49 }
 0x1db   :  { %v2718_v58 = vpop.permute.xlu0 %2717 }
 0x1dc   :  { %2897 = vst.msk [vmem:[#allocation3 + $0x128] sm:$0xff] %vm1603_vm6, %v2718_v58  ;;  %1455 = vrot.lane.b32.xlu1 %v7809_v36, %s7156_s27  ;;  %v572_v36 = vadd.f32 %v8124_v2, %v571_v9 }
 0x1dd   :  { %3119 = vrot.lane.b32.xlu0 %v7915_v62, %s7154_s21 }
 0x1de   :  { %v1821_v35 = vpop.permute.xlu1 %1820  ;;  %739 = vst.msk [vmem:[#allocation2 + $0x130] sm:$0xff] %vm700_vm4, %v572_v36 }
 0x1df   :  { %2001 = vst.msk [vmem:[#allocation3 + $0x120] sm:$0xff] %vm1988_vm7, %v1821_v35  ;;  %v3102_v3 = vpop.permute.xlu0 %3101  ;;  %v3495_v28 = vld [vmem:[#allocation3 + $0x110] sm:$0xff] }
 0x1e0   :  { %3281 = vst.msk [vmem:[#allocation3 + $0x128] sm:$0xff] %vm1988_vm7, %v3102_v3  ;;  %1842 = vrot.lane.b32.xlu1 %v8238_v41, %s7154_s21  ;;  %4007 = vmatprep.mubr.f32.mxu1 %v3495_v28  ;;  %v102_v28 = vld [vmem:[%s11086_s0 + $0x1d8] sm:$0xff] }
 0x1e1   :  { %2737 = vrot.lane.b32.xlu0 %v7964_v42, %s7156_s27  ;;  %4008 = vmatmul.mubr.f32.gmra.mrb[16].mxu1 %v3494_v14  ;;  %v8405_v14 = vld [vmem:[#allocation2 + $0xf8] sm:$0xff] }
 0x1e2   :  { %v1053_v15 = vpop.permute.xlu1 %1052 }
 0x1e3   :  { %1232 = vst.msk [vmem:[#allocation3 + $0x138] sm:$0xff] %vm1218_vm5, %v1053_v15  ;;  %v2336_v23 = vpop.permute.xlu0 %2335 }
 0x1e4   :  { %2514 = vst.msk [vmem:[#allocation3 + $0x140] sm:$0xff] %vm1218_vm5, %v2336_v23  ;;  %1840 = vrot.lane.b32.xlu1 %v7910_v46, %s7154_s21  ;;  %v99_v46 = vld [vmem:[%s11086_s0 + $0x1c0] sm:$0xff] }
 0x1e5   :  { %2898 = vst.msk [vmem:[#allocation3 + $0x140] sm:$0xff] %vm1603_vm6, %v2720_v37  ;;  %3121 = vrot.lane.b32.xlu0 %v7967_v34, %s7154_s21  ;;  %v8331_v18 = vld [vmem:[#allocation2 + $0x12a] sm:$0xff]  ;;  %v8333_v21 = vld [vmem:[#allocation2 + $0x132] sm:$0xff]  ;;  %6654 = vmatprep.mubr.msk.f32.mxu0 %vm118_vm1, %v99_v46 }
 0x1e6   :  { %v1438_v41 = vpop.permute.xlu1 %1437  ;;  %v3497_v26 = vld [vmem:[#allocation3 + $0x120] sm:$0xff]  ;;  %3430 = vst.msk [vmem:[#allocation3 + $0x328] sm:$0xff] %vm700_vm4, %v8331_v18  ;;  %3431 = vst.msk [vmem:[#allocation3 + $0x340] sm:$0xff] %vm700_vm4, %v8333_v21  ;;  %6655 = vmatmul.mubr.msk.f32.gmra.mrb[56].mxu0 %vm118_vm1, %v100_v45  ;;  %v2591_v45 = vld [vmem:[#allocation2 + $0xf0] sm:$0xff] }
 0x1e7   :  { %1617 = vst.msk [vmem:[#allocation3 + $0x138] sm:$0xff] %vm1603_vm6, %v1438_v41  ;;  %v2338_v38 = vpop.permute.xlu0 %2337  ;;  %v3498_v39 = vld [vmem:[#allocation3 + $0x128] sm:$0xff] }
 0x1e8   :  { %2002 = vst.msk [vmem:[#allocation3 + $0x138] sm:$0xff] %vm1988_vm7, %v1823_v25  ;;  %1072 = vrot.lane.b32.xlu1 %v7860_v50, %s7155_s22  ;;  %4012 = vmatprep.mubr.f32.mxu1 %v3498_v39  ;;  %v8346_v55 = vld [vmem:[#allocation2 + $0x129] sm:$0xff]  ;;  %v8421_v41 = vld [vmem:[#allocation2 + $0x131] sm:$0xff] }
 0x1e9   :  { %2515 = vst.msk [vmem:[#allocation3 + $0x158] sm:$0xff] %vm1218_vm5, %v2338_v38  ;;  %2355 = vrot.lane.b32.xlu0 %v7893_v17, %s7155_s22  ;;  %4013 = vmatmul.mubr.f32.gmra.mrb[18].mxu1 %v3497_v26 }
 0x1ea   :  { %v1055_v63 = vpop.permute.xlu1 %1054  ;;  %2152 = vst.msk [vmem:[#allocation3 + $0x350] sm:$0xff] %vm700_vm4, %v8346_v55  ;;  %2153 = vst.msk [vmem:[#allocation3 + $0x368] sm:$0xff] %vm700_vm4, %v8421_v41 }
 0x1eb   :  { %1233 = vst.msk [vmem:[#allocation3 + $0x150] sm:$0xff] %vm1218_vm5, %v1055_v63  ;;  %v2724_v50 = vpop.permute.xlu0 %2723 }
 0x1ec   :  { %1457 = vrot.lane.b32.xlu1 %v7838_v0, %s7156_s27 }
 0x1ed   :  { %2357 = vrot.lane.b32.xlu0 %v7895_v20, %s7155_s22 }
 0x1ee   :  { %v1440_v56 = vpop.permute.xlu1 %1439 }
 0x1ef   :  { %1618 = vst.msk [vmem:[#allocation3 + $0x150] sm:$0xff] %vm1603_vm6, %v1440_v56  ;;  %v3104_v1 = vpop.permute.xlu0 %3103  ;;  %v3500_v22 = vld [vmem:[#allocation3 + $0x138] sm:$0xff] }
 0x1f0   :  { %3282 = vst.msk [vmem:[#allocation3 + $0x140] sm:$0xff] %vm1988_vm7, %v3104_v1  ;;  %1074 = vrot.lane.b32.xlu1 %v7913_v61, %s7155_s22 }
 0x1f1   :  { %2743 = vrot.lane.b32.xlu0 %v8354_v27, %s7156_s27 }
 0x1f2   :  { %v1827_v0 = vpop.permute.xlu1 %1826 }
 0x1f3   :  { %v2722_v24 = vpop.permute.xlu0 %2721 }
 0x1f4   :  { %2899 = vst.msk [vmem:[#allocation3 + $0x158] sm:$0xff] %vm1603_vm6, %v2722_v24  ;;  %1459 = vrot.lane.b32.xlu1 %v7840_v48, %s7156_s27 }
 0x1f5   :  { %3123 = vrot.lane.b32.xlu0 %v7969_v4, %s7154_s21 }
 0x1f6   :  { %v1825_v61 = vpop.permute.xlu1 %1824 }
 0x1f7   :  { %2003 = vst.msk [vmem:[#allocation3 + $0x150] sm:$0xff] %vm1988_vm7, %v1825_v61  ;;  %v3106_v40 = vpop.permute.xlu0 %3105  ;;  %v3501_v19 = vld [vmem:[#allocation3 + $0x140] sm:$0xff] }
 0x1f8   :  { %3283 = vst.msk [vmem:[#allocation3 + $0x158] sm:$0xff] %vm1988_vm7, %v3106_v40  ;;  %1846 = vrot.lane.b32.xlu1 %v8288_v7, %s7154_s21  ;;  %4017 = vmatprep.mubr.f32.mxu1 %v3501_v19 }
 0x1f9   :  { %2741 = vrot.lane.b32.xlu0 %v2589_v57, %s7156_s27  ;;  %4018 = vmatmul.mubr.f32.gmra.mrb[20].mxu1 %v3500_v22  ;;  %v104_v22 = vld [vmem:[%s11086_s0 + $0x1e8] sm:$0xff] }
 0x1fa   :  { %v1057_v48 = vpop.permute.xlu1 %1056 }
 0x1fb   :  { %1234 = vst.msk [vmem:[#allocation3 + $0x168] sm:$0xff] %vm1218_vm5, %v1057_v48  ;;  %v2340_v37 = vpop.permute.xlu0 %2339 }
 0x1fc   :  { %2516 = vst.msk [vmem:[#allocation3 + $0x170] sm:$0xff] %vm1218_vm5, %v2340_v37  ;;  %1844 = vrot.lane.b32.xlu1 %v7964_v42, %s7154_s21  ;;  %v6632_v5 = vpop.f32.mrb[40].mxu0  ;;  %v101_v42 = vld [vmem:[%s11086_s0 + $0x1d0] sm:$0xff] }
 0x1fd   :  { %2900 = vst.msk [vmem:[#allocation3 + $0x170] sm:$0xff] %vm1603_vm6, %v2724_v50  ;;  %3125 = vrot.lane.b32.xlu0 %v8030_v10, %s7154_s21  ;;  %v587_v51 = vadd.f32 %v8124_v2, %v6632_v5  ;;  %v581_v25 = vpop.f32.mrb[41].mxu0  ;;  %6657 = vmatprep.mubr.msk.f32.mxu0 %vm118_vm1, %v101_v42  ;;  %v809_v50 = vld [vmem:[#allocation2 + $0x138] sm:$0xff]  ;;  %v8495_v42 = vld [vmem:[#allocation2 + $0x101] sm:$0xff] }
 0x1fe   :  { %v1442_v7 = vpop.permute.xlu1 %1441  ;;  %v582_v53 = vadd.f32 %v8124_v2, %v581_v25  ;;  %v3503_v3 = vld [vmem:[#allocation3 + $0x150] sm:$0xff]  ;;  %6658 = vmatmul.mubr.msk.f32.gmra.mrb[58].mxu0 %vm118_vm1, %v102_v28  ;;  %873 = vst.msk [vmem:[#allocation3 + $0x3a8] sm:$0xff] %vm700_vm4, %v809_v50 }
 0x1ff   :  { %1619 = vst.msk [vmem:[#allocation3 + $0x168] sm:$0xff] %vm1603_vm6, %v1442_v7  ;;  %v2342_v58 = vpop.permute.xlu0 %2341  ;;  %v3504_v35 = vld [vmem:[#allocation3 + $0x158] sm:$0xff] }
 0x200   :  { %2004 = vst.msk [vmem:[#allocation3 + $0x168] sm:$0xff] %vm1988_vm7, %v1827_v0  ;;  %1076 = vrot.lane.b32.xlu1 %v7915_v62, %s7155_s22  ;;  %4022 = vmatprep.mubr.f32.mxu1 %v3504_v35 }
 0x201   :  { %2517 = vst.msk [vmem:[#allocation3 + $0x188] sm:$0xff] %vm1218_vm5, %v2342_v58  ;;  %2359 = vrot.lane.b32.xlu0 %v7947_v31, %s7155_s22  ;;  %4023 = vmatmul.mubr.f32.gmra.mrb[22].mxu1 %v3503_v3 }
 0x202   :  { %742 = vst.msk [vmem:[#allocation2 + $0x148] sm:$0xff] %vm700_vm4, %v587_v51  ;;  %741 = vst.msk [vmem:[#allocation2 + $0x140] sm:$0xff] %vm700_vm4, %v582_v53  ;;  %v1059_v49 = vpop.permute.xlu1 %1058 }
 0x203   :  { %1235 = vst.msk [vmem:[#allocation3 + $0x180] sm:$0xff] %vm1218_vm5, %v1059_v49  ;;  %v2728_v62 = vpop.permute.xlu0 %2727 }
 0x204   :  { %1461 = vrot.lane.b32.xlu1 %v7893_v17, %s7156_s27 }
 0x205   :  { %2361 = vrot.lane.b32.xlu0 %v7949_v33, %s7155_s22 }
 0x206   :  { %v1444_v9 = vpop.permute.xlu1 %1443 }
 0x207   :  { %1620 = vst.msk [vmem:[#allocation3 + $0x180] sm:$0xff] %vm1603_vm6, %v1444_v9  ;;  %v3108_v36 = vpop.permute.xlu0 %3107  ;;  %v3506_v63 = vld [vmem:[#allocation3 + $0x168] sm:$0xff] }
 0x208   :  { %3284 = vst.msk [vmem:[#allocation3 + $0x170] sm:$0xff] %vm1988_vm7, %v3108_v36  ;;  %1078 = vrot.lane.b32.xlu1 %v7967_v34, %s7155_s22 }
 0x209   :  { %v8411_v15 = vld [vmem:[#allocation2 + $0x13a] sm:$0xff]  ;;  %v8413_v23 = vld [vmem:[#allocation2 + $0x142] sm:$0xff]  ;;  %2747 = vrot.lane.b32.xlu0 %v8405_v14, %s7156_s27 }
 0x20a   :  { %3432 = vst.msk [vmem:[#allocation3 + $0x358] sm:$0xff] %vm700_vm4, %v8411_v15  ;;  %3433 = vst.msk [vmem:[#allocation3 + $0x370] sm:$0xff] %vm700_vm4, %v8413_v23  ;;  %v1831_v17 = vpop.permute.xlu1 %1830  ;;  %v8423_v39 = vld [vmem:[#allocation2 + $0x139] sm:$0xff]  ;;  %v811_v9 = vld [vmem:[#allocation2 + $0x148] sm:$0xff] }
 0x20b   :  { %v2726_v38 = vpop.permute.xlu0 %2725  ;;  %2154 = vst.msk [vmem:[#allocation3 + $0x380] sm:$0xff] %vm700_vm4, %v8423_v39  ;;  %v810_v49 = vld [vmem:[#allocation2 + $0x140] sm:$0xff]  ;;  %875 = vst.msk [vmem:[#allocation3 + $0x3d8] sm:$0xff] %vm700_vm4, %v811_v9 }
 0x20c   :  { %2901 = vst.msk [vmem:[#allocation3 + $0x188] sm:$0xff] %vm1603_vm6, %v2726_v38  ;;  %1463 = vrot.lane.b32.xlu1 %v7895_v20, %s7156_s27  ;;  %v808_v20 = vld [vmem:[#allocation2 + $0x130] sm:$0xff] }
 0x20d   :  { %3127 = vrot.lane.b32.xlu0 %v8032_v11, %s7154_s21  ;;  %872 = vst.msk [vmem:[#allocation3 + $0x390] sm:$0xff] %vm700_vm4, %v808_v20  ;;  %874 = vst.msk [vmem:[#allocation3 + $0x3c0] sm:$0xff] %vm700_vm4, %v810_v49 }
 0x20e   :  { %v1829_v34 = vpop.permute.xlu1 %1828 }
 0x20f   :  { %2005 = vst.msk [vmem:[#allocation3 + $0x180] sm:$0xff] %vm1988_vm7, %v1829_v34  ;;  %v3110_v26 = vpop.permute.xlu0 %3109  ;;  %v3507_v46 = vld [vmem:[#allocation3 + $0x170] sm:$0xff] }
 0x210   :  { %3285 = vst.msk [vmem:[#allocation3 + $0x188] sm:$0xff] %vm1988_vm7, %v3110_v26  ;;  %1848 = vrot.lane.b32.xlu1 %v2589_v57, %s7154_s21  ;;  %4027 = vmatprep.mubr.f32.mxu1 %v3507_v46 }
 0x211   :  { %2745 = vrot.lane.b32.xlu0 %v2591_v45, %s7156_s27  ;;  %4028 = vmatmul.mubr.f32.gmra.mrb[24].mxu1 %v3506_v63 }
 0x212   :  { %v1061_v56 = vpop.permute.xlu1 %1060 }
 0x213   :  { %1236 = vst.msk [vmem:[#allocation3 + $0x198] sm:$0xff] %vm1218_vm5, %v1061_v56  ;;  %v2344_v1 = vpop.permute.xlu0 %2343  ;;  %v8522_v56 = vld [vmem:[#allocation2 + $0x12] sm:$0xff] }
 0x214   :  { %2518 = vst.msk [vmem:[#allocation3 + $0x1a0] sm:$0xff] %vm1218_vm5, %v2344_v1  ;;  %1080 = vrot.lane.b32.xlu1 %v7969_v4, %s7155_s22  ;;  %v6635_v0 = vpop.f32.mrb[42].mxu0  ;;  %v103_v4 = vld [vmem:[%s11086_s0 + $0x1e0] sm:$0xff]  ;;  %v106_v1 = vld [vmem:[%s11086_s0 + $0x1f8] sm:$0xff] }
 0x215   :  { %2902 = vst.msk [vmem:[#allocation3 + $0x1a0] sm:$0xff] %vm1603_vm6, %v2728_v62  ;;  %3129 = vrot.lane.b32.xlu0 %v8097_v30, %s7154_s21  ;;  %v597_v52 = vadd.f32 %v8124_v2, %v6635_v0  ;;  %v591_v24 = vpop.f32.mrb[43].mxu0  ;;  %6660 = vmatprep.mubr.msk.f32.mxu0 %vm118_vm1, %v103_v4 }
 0x216   :  { %v1446_v12 = vpop.permute.xlu1 %1445  ;;  %v592_v19 = vadd.f32 %v8124_v2, %v591_v24  ;;  %v3509_v57 = vld [vmem:[#allocation3 + $0x180] sm:$0xff]  ;;  %6661 = vmatmul.mubr.msk.f32.gmra.mrb[60].mxu0 %vm118_vm1, %v104_v22 }
 0x217   :  { %1621 = vst.msk [vmem:[#allocation3 + $0x198] sm:$0xff] %vm1603_vm6, %v1446_v12  ;;  %v2346_v61 = vpop.permute.xlu0 %2345  ;;  %v3510_v40 = vld [vmem:[#allocation3 + $0x188] sm:$0xff] }
 0x218   :  { %2006 = vst.msk [vmem:[#allocation3 + $0x198] sm:$0xff] %vm1988_vm7, %v1831_v17  ;;  %1465 = vrot.lane.b32.xlu1 %v7947_v31, %s7156_s27  ;;  %4032 = vmatprep.mubr.f32.mxu1 %v3510_v40  ;;  %v8538_v40 = vld [vmem:[#allocation2 + $0x109] sm:$0xff] }
 0x219   :  { %2519 = vst.msk [vmem:[#allocation3 + $0x1b8] sm:$0xff] %vm1218_vm5, %v2346_v61  ;;  %2363 = vrot.lane.b32.xlu0 %v8012_v59, %s7155_s22  ;;  %4033 = vmatmul.mubr.f32.gmra.mrb[26].mxu1 %v3509_v57 }
 0x21a   :  { %744 = vst.msk [vmem:[#allocation2 + $0x158] sm:$0xff] %vm700_vm4, %v597_v52  ;;  %743 = vst.msk [vmem:[#allocation2 + $0x150] sm:$0xff] %vm700_vm4, %v592_v19  ;;  %v1063_v48 = vpop.permute.xlu1 %1062  ;;  %v898_v52 = vld [vmem:[#allocation2 + $0x1] sm:$0xff] }
 0x21b   :  { %1237 = vst.msk [vmem:[#allocation3 + $0x1b0] sm:$0xff] %vm1218_vm5, %v1063_v48  ;;  %v2732_v31 = vpop.permute.xlu0 %2731  ;;  %v8543_v19 = vld [vmem:[#allocation2 + $0x20] sm:$0xff] }
 0x21c   :  { %1850 = vrot.lane.b32.xlu1 %v8354_v27, %s7154_s21  ;;  %v1283_v48 = vld [vmem:[#allocation2 + $0x2] sm:$0xff] }
 0x21d   :  { %3131 = vrot.lane.b32.xlu0 %v8099_v13, %s7154_s21 }
 0x21e   :  { %v1448_v37 = vpop.permute.xlu1 %1447 }
 0x21f   :  { %1622 = vst.msk [vmem:[#allocation3 + $0x1b0] sm:$0xff] %vm1603_vm6, %v1448_v37  ;;  %v3112_v5 = vpop.permute.xlu0 %3111  ;;  %v3512_v3 = vld [vmem:[#allocation3 + $0x198] sm:$0xff] }
 0x220   :  { %3286 = vst.msk [vmem:[#allocation3 + $0x1a0] sm:$0xff] %vm1988_vm7, %v3112_v5  ;;  %1082 = vrot.lane.b32.xlu1 %v8030_v10, %s7155_s22  ;;  %v8488_v10 = vld [vmem:[#allocation2 + $0x100] sm:$0xff] }
 0x221   :  { %v8475_v7 = vld [vmem:[#allocation2 + $0x14a] sm:$0xff]  ;;  %v8477_v51 = vld [vmem:[#allocation2 + $0x152] sm:$0xff]  ;;  %2365 = vrot.lane.b32.xlu0 %v8014_v60, %s7155_s22 }
 0x222   :  { %3434 = vst.msk [vmem:[#allocation3 + $0x388] sm:$0xff] %vm700_vm4, %v8475_v7  ;;  %3435 = vst.msk [vmem:[#allocation3 + $0x3a0] sm:$0xff] %vm700_vm4, %v8477_v51  ;;  %v1835_v27 = vpop.permute.xlu1 %1834  ;;  %v2092_v28 = vld [vmem:[#allocation2 + $0x149] sm:$0xff] }
 0x223   :  { %v2730_v25 = vpop.permute.xlu0 %2729  ;;  %2156 = vst.msk [vmem:[#allocation3 + $0x3b0] sm:$0xff] %vm700_vm4, %v2092_v28 }
 0x224   :  { %2903 = vst.msk [vmem:[#allocation3 + $0x1b8] sm:$0xff] %vm1603_vm6, %v2730_v25  ;;  %1467 = vrot.lane.b32.xlu1 %v7949_v33, %s7156_s27  ;;  %v2091_v33 = vld [vmem:[#allocation2 + $0x141] sm:$0xff] }
 0x225   :  { %2749 = vrot.lane.b32.xlu0 %v8488_v10, %s7156_s27  ;;  %2155 = vst.msk [vmem:[#allocation3 + $0x398] sm:$0xff] %vm700_vm4, %v2091_v33  ;;  %v813_v33 = vld [vmem:[#allocation2 + $0x158] sm:$0xff] }
 0x226   :  { %v1833_v58 = vpop.permute.xlu1 %1832  ;;  %877 = vst.msk [vmem:[#allocation3 + $0x408] sm:$0xff] %vm700_vm4, %v813_v33 }
 0x227   :  { %2007 = vst.msk [vmem:[#allocation3 + $0x1b0] sm:$0xff] %vm1988_vm7, %v1833_v58  ;;  %v3114_v35 = vpop.permute.xlu0 %3113  ;;  %v3513_v53 = vld [vmem:[#allocation3 + $0x1a0] sm:$0xff] }
 0x228   :  { %3287 = vst.msk [vmem:[#allocation3 + $0x1b8] sm:$0xff] %vm1988_vm7, %v3114_v35  ;;  %1852 = vrot.lane.b32.xlu1 %v2591_v45, %s7154_s21  ;;  %4037 = vmatprep.mubr.f32.mxu1 %v3513_v53  ;;  %v8512_v45 = vld [vmem:[#allocation2 + $0x108] sm:$0xff]  ;;  %v812_v53 = vld [vmem:[#allocation2 + $0x150] sm:$0xff] }
 0x229   :  { %3133 = vrot.lane.b32.xlu0 %v8495_v42, %s7154_s21  ;;  %4038 = vmatmul.mubr.f32.gmra.mrb[28].mxu1 %v3512_v3  ;;  %v2949_v58 = vld [vmem:[#allocation2 + $0x21] sm:$0xff]  ;;  %876 = vst.msk [vmem:[#allocation3 + $0x3f0] sm:$0xff] %vm700_vm4, %v812_v53 }
 0x22a   :  { %v1065_v62 = vpop.permute.xlu1 %1064 }
 0x22b   :  { %1238 = vst.msk [vmem:[#allocation3 + $0x1c8] sm:$0xff] %vm1218_vm5, %v1065_v62  ;;  %v2348_v36 = vpop.permute.xlu0 %2347 }
 0x22c   :  { %2520 = vst.msk [vmem:[#allocation3 + $0x1d0] sm:$0xff] %vm1218_vm5, %v2348_v36  ;;  %1084 = vrot.lane.b32.xlu1 %v8032_v11, %s7155_s22  ;;  %v6638_v17 = vpop.f32.mrb[44].mxu0  ;;  %v105_v11 = vld [vmem:[%s11086_s0 + $0x1f0] sm:$0xff] }
 0x22d   :  { %2904 = vst.msk [vmem:[#allocation3 + $0x1d0] sm:$0xff] %vm1603_vm6, %v2732_v31  ;;  %2367 = vrot.lane.b32.xlu0 %v8080_v43, %s7155_s22  ;;  %v607_v34 = vadd.f32 %v8124_v2, %v6638_v17  ;;  %v601_v26 = vpop.f32.mrb[45].mxu0  ;;  %6663 = vmatprep.mubr.msk.f32.mxu0 %vm118_vm1, %v105_v11 }
 0x22e   :  { %v1450_v38 = vpop.permute.xlu1 %1449  ;;  %v602_v20 = vadd.f32 %v8124_v2, %v601_v26  ;;  %v3515_v50 = vld [vmem:[#allocation3 + $0x1b0] sm:$0xff]  ;;  %6664 = vmatmul.mubr.msk.f32.gmra.mrb[62].mxu0 %vm118_vm1, %v106_v1 }
 0x22f   :  { %1623 = vst.msk [vmem:[#allocation3 + $0x1c8] sm:$0xff] %vm1603_vm6, %v1450_v38  ;;  %v2350_v46 = vpop.permute.xlu0 %2349  ;;  %v3516_v63 = vld [vmem:[#allocation3 + $0x1b8] sm:$0xff]  ;;  %v8591_v1 = vld [vmem:[#allocation2 + $0x111] sm:$0xff] }
 0x230   :  { %2008 = vst.msk [vmem:[#allocation3 + $0x1c8] sm:$0xff] %vm1988_vm7, %v1835_v27  ;;  %2751 = vrot.lane.b32.xlu1 %v8512_v45, %s7156_s27  ;;  %4042 = vmatprep.mubr.f32.mxu1 %v3516_v63  ;;  %v1668_v27 = vld [vmem:[#allocation2 + $0x10] sm:$0xff] }
 0x231   :  { %2521 = vst.msk [vmem:[#allocation3 + $0x1e8] sm:$0xff] %vm1218_vm5, %v2350_v46  ;;  %4043 = vmatmul.mubr.f32.gmra.mrb[30].mxu1 %v3515_v50  ;;  %2309 = vrot.lane.b32.xlu0 %v8522_v56, %s7155_s22  ;;  %v2182_v46 = vld [vmem:[#allocation2 + $0x1a] sm:$0xff] }
 0x232   :  { %746 = vst.msk [vmem:[#allocation2 + $0x168] sm:$0xff] %vm700_vm4, %v607_v34  ;;  %745 = vst.msk [vmem:[#allocation2 + $0x160] sm:$0xff] %vm700_vm4, %v602_v20  ;;  %v1067_v0 = vpop.permute.xlu1 %1066  ;;  %v8576_v34 = vld [vmem:[#allocation2 + $0x110] sm:$0xff] }
 0x233   :  { %1239 = vst.msk [vmem:[#allocation3 + $0x1e0] sm:$0xff] %vm1218_vm5, %v1067_v0  ;;  %v2736_v12 = vpop.permute.xlu0 %2735  ;;  %v899_v20 = vld [vmem:[#allocation2 + $0x9] sm:$0xff] }
 0x234   :  { %1469 = vrot.lane.b32.xlu1 %v8012_v59, %s7156_s27  ;;  %v2566_v0 = vld [vmem:[#allocation2 + $0x28] sm:$0xff] }
 0x235   :  { %1026 = vrot.lane.b32.xlu0 %v898_v52, %s7155_s22 }
 0x236   :  { %v1452_v24 = vpop.permute.xlu1 %1451 }
 0x237   :  { %1624 = vst.msk [vmem:[#allocation3 + $0x1e0] sm:$0xff] %vm1603_vm6, %v1452_v24  ;;  %v3116_v61 = vpop.permute.xlu0 %3115  ;;  %v3518_v25 = vld [vmem:[#allocation3 + $0x1c8] sm:$0xff] }
 0x238   :  { %3288 = vst.msk [vmem:[#allocation3 + $0x1d0] sm:$0xff] %vm1988_vm7, %v3116_v61  ;;  %3135 = vrot.lane.b32.xlu1 %v8538_v40, %s7154_s21 }
 0x239   :  { %v8545_v4 = vld [vmem:[#allocation2 + $0x15a] sm:$0xff]  ;;  %v8547_v57 = vld [vmem:[#allocation2 + $0x162] sm:$0xff]  ;;  %2693 = vrot.lane.b32.xlu0 %v8543_v19, %s7156_s27 }
 0x23a   :  { %3436 = vst.msk [vmem:[#allocation3 + $0x3b8] sm:$0xff] %vm700_vm4, %v8545_v4  ;;  %3437 = vst.msk [vmem:[#allocation3 + $0x3d0] sm:$0xff] %vm700_vm4, %v8547_v57  ;;  %v1839_v59 = vpop.permute.xlu1 %1838  ;;  %v2094_v35 = vld [vmem:[#allocation2 + $0x159] sm:$0xff] }
 0x23b   :  { %v2734_v22 = vpop.permute.xlu0 %2733  ;;  %2158 = vst.msk [vmem:[#allocation3 + $0x3e0] sm:$0xff] %vm700_vm4, %v2094_v35  ;;  %v814_v35 = vld [vmem:[#allocation2 + $0x160] sm:$0xff] }
 0x23c   :  { %2905 = vst.msk [vmem:[#allocation3 + $0x1e8] sm:$0xff] %vm1603_vm6, %v2734_v22  ;;  %1854 = vrot.lane.b32.xlu1 %v8405_v14, %s7154_s21  ;;  %v2093_v14 = vld [vmem:[#allocation2 + $0x151] sm:$0xff] }
 0x23d   :  { %1411 = vrot.lane.b32.xlu0 %v1283_v48, %s7156_s27  ;;  %2157 = vst.msk [vmem:[#allocation3 + $0x3c8] sm:$0xff] %vm700_vm4, %v2093_v14  ;;  %878 = vst.msk [vmem:[#allocation3 + $0x420] sm:$0xff] %vm700_vm4, %v814_v35 }
 0x23e   :  { %v1837_v31 = vpop.permute.xlu1 %1836 }
 0x23f   :  { %2009 = vst.msk [vmem:[#allocation3 + $0x1e0] sm:$0xff] %vm1988_vm7, %v1837_v31  ;;  %v3118_v37 = vpop.permute.xlu0 %3117  ;;  %v3519_v5 = vld [vmem:[#allocation3 + $0x1d0] sm:$0xff] }
 0x240   :  { %3289 = vst.msk [vmem:[#allocation3 + $0x1e8] sm:$0xff] %vm1988_vm7, %v3118_v37  ;;  %4047 = vmatprep.mubr.f32.mxu1 %v3519_v5  ;;  %1796 = vrot.lane.b32.xlu1 %v1668_v27, %s7154_s21  ;;  %v1669_v5 = vld [vmem:[#allocation2 + $0x18] sm:$0xff] }
 0x241   :  { %4048 = vmatmul.mubr.f32.gmra.mrb[32].mxu1 %v3518_v25  ;;  %3077 = vrot.lane.b32.xlu0 %v2949_v58, %s7154_s21  ;;  %v2950_v25 = vld [vmem:[#allocation2 + $0x29] sm:$0xff]  ;;  %v2095_v58 = vld [vmem:[#allocation2 + $0x161] sm:$0xff] }
 0x242   :  { %v1069_v3 = vpop.permute.xlu1 %1068  ;;  %2159 = vst.msk [vmem:[#allocation3 + $0x3f8] sm:$0xff] %vm700_vm4, %v2095_v58 }
 0x243   :  { %1240 = vst.msk [vmem:[#allocation3 + $0x1f8] sm:$0xff] %vm1218_vm5, %v1069_v3  ;;  %v2352_v28 = vpop.permute.xlu0 %2351  ;;  %v815_v3 = vld [vmem:[#allocation2 + $0x168] sm:$0xff] }
 0x244   :  { %2522 = vst.msk [vmem:[#allocation3 + $0x200] sm:$0xff] %vm1218_vm5, %v2352_v28  ;;  %1086 = vrot.lane.b32.xlu1 %v8097_v30, %s7155_s22  ;;  %v6641_v49 = vpop.f32.mrb[46].mxu0 }
 0x245   :  { %2906 = vst.msk [vmem:[#allocation3 + $0x200] sm:$0xff] %vm1603_vm6, %v2736_v12  ;;  %2369 = vrot.lane.b32.xlu0 %v8082_v32, %s7155_s22  ;;  %v617_v9 = vadd.f32 %v8124_v2, %v6641_v49  ;;  %v611_v36 = vpop.f32.mrb[47].mxu0 }
 0x246   :  { %v1454_v62 = vpop.permute.xlu1 %1453  ;;  %v612_v26 = vadd.f32 %v8124_v2, %v611_v36  ;;  %v3521_v30 = vld [vmem:[#allocation3 + $0x1e0] sm:$0xff]  ;;  %879 = vst.msk [vmem:[#allocation3 + $0x438] sm:$0xff] %vm700_vm4, %v815_v3 }
 0x247   :  { %1625 = vst.msk [vmem:[#allocation3 + $0x1f8] sm:$0xff] %vm1603_vm6, %v1454_v62  ;;  %v2354_v17 = vpop.permute.xlu0 %2353  ;;  %v3522_v38 = vld [vmem:[#allocation3 + $0x1e8] sm:$0xff] }
 0x248   :  { %2010 = vst.msk [vmem:[#allocation3 + $0x1f8] sm:$0xff] %vm1988_vm7, %v1839_v59  ;;  %4052 = vmatprep.mubr.f32.mxu1 %v3522_v38  ;;  %2753 = vrot.lane.b32.xlu1 %v8576_v34, %s7156_s27  ;;  %v1284_v59 = vld [vmem:[#allocation2 + $0xa] sm:$0xff] }
 0x249   :  { %2523 = vst.msk [vmem:[#allocation3 + $0x218] sm:$0xff] %vm1218_vm5, %v2354_v17  ;;  %4053 = vmatmul.mubr.f32.gmra.mrb[34].mxu1 %v3521_v30  ;;  %2311 = vrot.lane.b32.xlu0 %v2182_v46, %s7155_s22  ;;  %v8629_v17 = vld [vmem:[#allocation2 + $0x118] sm:$0xff]  ;;  %v2183_v46 = vld [vmem:[#allocation2 + $0x22] sm:$0xff] }
 0x24a   :  { %748 = vst.msk [vmem:[#allocation2 + $0x178] sm:$0xff] %vm700_vm4, %v617_v9  ;;  %747 = vst.msk [vmem:[#allocation2 + $0x170] sm:$0xff] %vm700_vm4, %v612_v26  ;;  %v1071_v63 = vpop.permute.xlu1 %1070 }
 0x24b   :  { %1241 = vst.msk [vmem:[#allocation3 + $0x210] sm:$0xff] %vm1218_vm5, %v1071_v63  ;;  %v2740_v2 = vpop.permute.xlu0 %2739 }
 0x24c   :  { %1471 = vrot.lane.b32.xlu1 %v8014_v60, %s7156_s27 }
 0x24d   :  { %1028 = vrot.lane.b32.xlu0 %v899_v20, %s7155_s22 }
 0x24e   :  { %v1456_v11 = vpop.permute.xlu1 %1455 }
 0x24f   :  { %1626 = vst.msk [vmem:[#allocation3 + $0x210] sm:$0xff] %vm1603_vm6, %v1456_v11  ;;  %v3120_v50 = vpop.permute.xlu0 %3119  ;;  %v3524_v27 = vld [vmem:[#allocation3 + $0x1f8] sm:$0xff] }
 0x250   :  { %3290 = vst.msk [vmem:[#allocation3 + $0x200] sm:$0xff] %vm1988_vm7, %v3120_v50  ;;  %3137 = vrot.lane.b32.xlu1 %v8591_v1, %s7154_s21 }
 0x251   :  { %v8596_v12 = vld [vmem:[#allocation2 + $0x16a] sm:$0xff]  ;;  %v8598_v52 = vld [vmem:[#allocation2 + $0x172] sm:$0xff]  ;;  %2695 = vrot.lane.b32.xlu0 %v2566_v0, %s7156_s27 }
 0x252   :  { %3438 = vst.msk [vmem:[#allocation3 + $0x3e8] sm:$0xff] %vm700_vm4, %v8596_v12  ;;  %3439 = vst.msk [vmem:[#allocation3 + $0x400] sm:$0xff] %vm700_vm4, %v8598_v52  ;;  %v1843_v60 = vpop.permute.xlu1 %1842  ;;  %v2096_v14 = vld [vmem:[#allocation2 + $0x169] sm:$0xff]  ;;  %v8651_v0 = vld [vmem:[#allocation2 + $0x119] sm:$0xff] }
 0x253   :  { %v2738_v24 = vpop.permute.xlu0 %2737  ;;  %2160 = vst.msk [vmem:[#allocation3 + $0x410] sm:$0xff] %vm700_vm4, %v2096_v14  ;;  %v2951_v14 = vld [vmem:[#allocation2 + $0x31] sm:$0xff] }
 0x254   :  { %2907 = vst.msk [vmem:[#allocation3 + $0x218] sm:$0xff] %vm1603_vm6, %v2738_v24  ;;  %v8606_v61 = vpop.f32.mrb[0].mxu1  ;;  %1856 = vrot.lane.b32.xlu1 %v8488_v10, %s7154_s21  ;;  %v3685_v24 = vld [vmem:[%s11089_s3 + $0x100] sm:$0xff]  ;;  %v2097_v35 = vld [vmem:[#allocation2 + $0x171] sm:$0xff] }
 0x255   :  { %v3971_v22 = vpop.f32.mrb[1].mxu1  ;;  %1413 = vrot.lane.b32.xlu0 %v1284_v59, %s7156_s27  ;;  %2161 = vst.msk [vmem:[#allocation3 + $0x428] sm:$0xff] %vm700_vm4, %v2097_v35 }
 0x256   :  { %v1841_v48 = vpop.permute.xlu1 %1840 }
 0x257   :  { %2011 = vst.msk [vmem:[#allocation3 + $0x210] sm:$0xff] %vm1988_vm7, %v1841_v48  ;;  %v3122_v31 = vpop.permute.xlu0 %3121  ;;  %v3525_v37 = vld [vmem:[#allocation3 + $0x200] sm:$0xff] }
 0x258   :  { %3291 = vst.msk [vmem:[#allocation3 + $0x218] sm:$0xff] %vm1988_vm7, %v3122_v31  ;;  %4057 = vmatprep.mubr.f32.mxu1 %v3525_v37  ;;  %1798 = vrot.lane.b32.xlu1 %v1669_v5, %s7154_s21 }
 0x259   :  { %4058 = vmatmul.mubr.f32.gmra.mrb[36].mxu1 %v3524_v27  ;;  %3079 = vrot.lane.b32.xlu0 %v2950_v25, %s7154_s21 }
 0x25a   :  { %v1073_v10 = vpop.permute.xlu1 %1072 }
 0x25b   :  { %1242 = vst.msk [vmem:[#allocation3 + $0x228] sm:$0xff] %vm1218_vm5, %v1073_v10  ;;  %v2356_v53 = vpop.permute.xlu0 %2355 }
 0x25c   :  { %2524 = vst.msk [vmem:[#allocation3 + $0x230] sm:$0xff] %vm1218_vm5, %v2356_v53  ;;  %v8620_v33 = vpop.f32.mrb[2].mxu1  ;;  %1088 = vrot.lane.b32.xlu1 %v8099_v13, %s7155_s22  ;;  %v8634_v13 = vld [vmem:[%s11088_s2] ss:$0 sm:$0xff] }
 0x25d   :  { %2908 = vst.msk [vmem:[#allocation3 + $0x230] sm:$0xff] %vm1603_vm6, %v2740_v2  ;;  %v3976_v28 = vpop.f32.mrb[3].mxu1  ;;  %2371 = vrot.lane.b32.xlu0 %v8142_v44, %s7155_s22  ;;  %v6644_v62 = vpop.f32.mrb[48].mxu0 }
 0x25e   :  { %v1458_v49 = vpop.permute.xlu1 %1457  ;;  %v627_v38 = vadd.f32 %v8634_v13, %v6644_v62  ;;  %v621_v26 = vpop.f32.mrb[49].mxu0  ;;  %v3527_v30 = vld [vmem:[#allocation3 + $0x210] sm:$0xff] }
 0x25f   :  { %1627 = vst.msk [vmem:[#allocation3 + $0x228] sm:$0xff] %vm1603_vm6, %v1458_v49  ;;  %v2358_v9 = vpop.permute.xlu0 %2357  ;;  %v3528_v36 = vld [vmem:[#allocation3 + $0x218] sm:$0xff]  ;;  %v622_v63 = vadd.f32 %v8634_v13, %v621_v26  ;;  %v817_v28 = vld [vmem:[#allocation2 + $0x178] sm:$0xff] }
 0x260   :  { %2012 = vst.msk [vmem:[#allocation3 + $0x228] sm:$0xff] %vm1988_vm7, %v1843_v60  ;;  %4062 = vmatprep.mubr.f32.mxu1 %v3528_v36  ;;  %2755 = vrot.lane.b32.xlu1 %v8629_v17, %s7156_s27  ;;  %v2567_v60 = vld [vmem:[#allocation2 + $0x30] sm:$0xff] }
 0x261   :  { %2525 = vst.msk [vmem:[#allocation3 + $0x248] sm:$0xff] %vm1218_vm5, %v2358_v9  ;;  %4063 = vmatmul.mubr.f32.gmra.mrb[38].mxu1 %v3527_v30  ;;  %2313 = vrot.lane.b32.xlu0 %v2183_v46, %s7155_s22  ;;  %v8705_v46 = vld [vmem:[#allocation2 + $0x120] sm:$0xff] }
 0x262   :  { %750 = vst.msk [vmem:[#allocation2 + $0x188] sm:$0xff] %vm700_vm4, %v627_v38  ;;  %v1075_v2 = vpop.permute.xlu1 %1074  ;;  %749 = vst.msk [vmem:[#allocation2 + $0x180] sm:$0xff] %vm700_vm4, %v622_v63 }
 0x263   :  { %1243 = vst.msk [vmem:[#allocation3 + $0x240] sm:$0xff] %vm1218_vm5, %v1075_v2  ;;  %v2744_v20 = vpop.permute.xlu0 %2743 }
 0x264   :  { %1473 = vrot.lane.b32.xlu1 %v8080_v43, %s7156_s27  ;;  %881 = vst.msk [vmem:[#allocation3 + $0x468] sm:$0xff] %vm700_vm4, %v817_v28 }
 0x265   :  { %1030 = vrot.lane.b32.xlu0 %v7529_v47, %s7155_s22  ;;  %v3686_v47 = vld [vmem:[%s11089_s3 + $0x108] sm:$0xff] }
 0x266   :  { %v1460_v11 = vpop.permute.xlu1 %1459  ;;  %v8667_v22 = vpack.c.bf16 %v3686_v47, %v3685_v24  ;;  %v8737_v47 = vld [vmem:[#allocation2 + $0x128] sm:$0xff] }
 0x267   :  { %1628 = vst.msk [vmem:[#allocation3 + $0x240] sm:$0xff] %vm1603_vm6, %v1460_v11  ;;  %v3124_v50 = vpop.permute.xlu0 %3123  ;;  %v3530_v58 = vld [vmem:[#allocation3 + $0x228] sm:$0xff] }
 0x268   :  { %3292 = vst.msk [vmem:[#allocation3 + $0x230] sm:$0xff] %vm1988_vm7, %v3124_v50  ;;  %3139 = vrot.lane.b32.xlu1 %v8651_v0, %s7154_s21  ;;  %6863 = vmatprep.subr.bf16.mxu0 %v8667_v22 }
 0x269   :  { %2697 = vrot.lane.b32.xlu0 %v2567_v60, %s7156_s27  ;;  %v8663_v43 = vld [vmem:[#allocation2 + $0x17a] sm:$0xff]  ;;  %v8665_v59 = vld [vmem:[#allocation2 + $0x182] sm:$0xff] }
 0x26a   :  { %v1847_v48 = vpop.permute.xlu1 %1846  ;;  %3440 = vst.msk [vmem:[#allocation3 + $0x418] sm:$0xff] %vm700_vm4, %v8663_v43  ;;  %3441 = vst.msk [vmem:[#allocation3 + $0x430] sm:$0xff] %vm700_vm4, %v8665_v59  ;;  %v2098_v53 = vld [vmem:[#allocation2 + $0x179] sm:$0xff] }
 0x26b   :  { %v2742_v31 = vpop.permute.xlu0 %2741  ;;  %2162 = vst.msk [vmem:[#allocation3 + $0x440] sm:$0xff] %vm700_vm4, %v2098_v53 }
 0x26c   :  { %2909 = vst.msk [vmem:[#allocation3 + $0x248] sm:$0xff] %vm1603_vm6, %v2742_v31  ;;  %v8675_v37 = vpop.f32.mrb[4].mxu1  ;;  %1858 = vrot.lane.b32.xlu1 %v8512_v45, %s7154_s21 }
 0x26d   :  { %v3981_v5 = vpop.f32.mrb[5].mxu1  ;;  %1415 = vrot.lane.b32.xlu0 %v8522_v56, %s7156_s27  ;;  %v816_v56 = vld [vmem:[#allocation2 + $0x170] sm:$0xff] }
 0x26e   :  { %v1845_v27 = vpop.permute.xlu1 %1844  ;;  %880 = vst.msk [vmem:[#allocation3 + $0x450] sm:$0xff] %vm700_vm4, %v816_v56 }
 0x26f   :  { %2013 = vst.msk [vmem:[#allocation3 + $0x240] sm:$0xff] %vm1988_vm7, %v1845_v27  ;;  %v3126_v25 = vpop.permute.xlu0 %3125  ;;  %v3531_v10 = vld [vmem:[#allocation3 + $0x230] sm:$0xff] }
 0x270   :  { %3293 = vst.msk [vmem:[#allocation3 + $0x248] sm:$0xff] %vm1988_vm7, %v3126_v25  ;;  %4067 = vmatprep.mubr.f32.mxu1 %v3531_v10  ;;  %1800 = vrot.lane.b32.xlu1 %v8543_v19, %s7154_s21 }
 0x271   :  { %4068 = vmatmul.mubr.f32.gmra.mrb[40].mxu1 %v3530_v58  ;;  %3081 = vrot.lane.b32.xlu0 %v2951_v14, %s7154_s21  ;;  %v6647_v9 = vpop.f32.mrb[50].mxu0  ;;  %v2099_v58 = vld [vmem:[#allocation2 + $0x181] sm:$0xff] }
 0x272   :  { %v1077_v45 = vpop.permute.xlu1 %1076  ;;  %v637_v26 = vadd.f32 %v8634_v13, %v6647_v9  ;;  %v631_v30 = vpop.f32.mrb[51].mxu0  ;;  %v818_v14 = vld [vmem:[#allocation2 + $0x180] sm:$0xff]  ;;  %2163 = vst.msk [vmem:[#allocation3 + $0x458] sm:$0xff] %vm700_vm4, %v2099_v58 }
 0x273   :  { %1244 = vst.msk [vmem:[#allocation3 + $0x258] sm:$0xff] %vm1218_vm5, %v1077_v45  ;;  %v2360_v3 = vpop.permute.xlu0 %2359  ;;  %v632_v63 = vadd.f32 %v8634_v13, %v631_v30 }
 0x274   :  { %2526 = vst.msk [vmem:[#allocation3 + $0x260] sm:$0xff] %vm1218_vm5, %v2360_v3  ;;  %v8691_v19 = vpop.f32.mrb[6].mxu1  ;;  %1090 = vrot.lane.b32.xlu1 %v8495_v42, %s7155_s22 }
 0x275   :  { %2910 = vst.msk [vmem:[#allocation3 + $0x260] sm:$0xff] %vm1603_vm6, %v2744_v20  ;;  %v3986_v49 = vpop.f32.mrb[7].mxu1  ;;  %2373 = vrot.lane.b32.xlu0 %v8144_v16, %s7155_s22 }
 0x276   :  { %v1462_v62 = vpop.permute.xlu1 %1461  ;;  %v3533_v42 = vld [vmem:[#allocation3 + $0x240] sm:$0xff]  ;;  %752 = vst.msk [vmem:[#allocation2 + $0x198] sm:$0xff] %vm700_vm4, %v637_v26  ;;  %751 = vst.msk [vmem:[#allocation2 + $0x190] sm:$0xff] %vm700_vm4, %v632_v63 }
 0x277   :  { %1629 = vst.msk [vmem:[#allocation3 + $0x258] sm:$0xff] %vm1603_vm6, %v1462_v62  ;;  %v2362_v36 = vpop.permute.xlu0 %2361  ;;  %v3534_v38 = vld [vmem:[#allocation3 + $0x248] sm:$0xff] }
 0x278   :  { %2014 = vst.msk [vmem:[#allocation3 + $0x258] sm:$0xff] %vm1988_vm7, %v1847_v48  ;;  %4072 = vmatprep.mubr.f32.mxu1 %v3534_v38  ;;  %1475 = vrot.lane.b32.xlu1 %v8082_v32, %s7156_s27 }
 0x279   :  { %2527 = vst.msk [vmem:[#allocation3 + $0x278] sm:$0xff] %vm1218_vm5, %v2362_v36  ;;  %4073 = vmatmul.mubr.f32.gmra.mrb[42].mxu1 %v3533_v42  ;;  %2757 = vrot.lane.b32.xlu0 %v8705_v46, %s7156_s27  ;;  %v8768_v36 = vld [vmem:[#allocation2 + $0x130] sm:$0xff] }
 0x27a   :  { %v1079_v2 = vpop.permute.xlu1 %1078  ;;  %882 = vst.msk [vmem:[#allocation3 + $0x480] sm:$0xff] %vm700_vm4, %v818_v14 }
 0x27b   :  { %1245 = vst.msk [vmem:[#allocation3 + $0x270] sm:$0xff] %vm1218_vm5, %v1079_v2  ;;  %v2748_v20 = vpop.permute.xlu0 %2747 }
 0x27c   :  { %1860 = vrot.lane.b32.xlu1 %v8576_v34, %s7154_s21 }
 0x27d   :  { %3141 = vrot.lane.b32.xlu0 %v8342_v54, %s7154_s21  ;;  %v8723_v50 = vld [vmem:[#allocation2 + $0x18a] sm:$0xff]  ;;  %v8725_v60 = vld [vmem:[#allocation2 + $0x192] sm:$0xff] }
 0x27e   :  { %v1464_v32 = vpop.permute.xlu1 %1463  ;;  %3442 = vst.msk [vmem:[#allocation3 + $0x448] sm:$0xff] %vm700_vm4, %v8723_v50  ;;  %3443 = vst.msk [vmem:[#allocation3 + $0x460] sm:$0xff] %vm700_vm4, %v8725_v60 }
 0x27f   :  { %1630 = vst.msk [vmem:[#allocation3 + $0x270] sm:$0xff] %vm1603_vm6, %v1464_v32  ;;  %v3128_v11 = vpop.permute.xlu0 %3127  ;;  %v3536_v25 = vld [vmem:[#allocation3 + $0x258] sm:$0xff] }
 0x280   :  { %3294 = vst.msk [vmem:[#allocation3 + $0x260] sm:$0xff] %vm1988_vm7, %v3128_v11  ;;  %1092 = vrot.lane.b32.xlu1 %v8538_v40, %s7155_s22 }
 0x281   :  { %2375 = vrot.lane.b32.xlu0 %v8215_v29, %s7155_s22 }
 0x282   :  { %v1849_v34 = vpop.permute.xlu1 %1848 }
 0x283   :  { %2015 = vst.msk [vmem:[#allocation3 + $0x270] sm:$0xff] %vm1988_vm7, %v1849_v34  ;;  %v2746_v24 = vpop.permute.xlu0 %2745  ;;  %v8801_v34 = vld [vmem:[#allocation2 + $0x138] sm:$0xff] }
 0x284   :  { %2911 = vst.msk [vmem:[#allocation3 + $0x278] sm:$0xff] %vm1603_vm6, %v2746_v24  ;;  %v8733_v40 = vpop.f32.mrb[8].mxu1  ;;  %1477 = vrot.lane.b32.xlu1 %v8142_v44, %s7156_s27  ;;  %v8747_v44 = vld [vmem:[#allocation2 + $0x189] sm:$0xff] }
 0x285   :  { %v3991_v48 = vpop.f32.mrb[9].mxu1  ;;  %2759 = vrot.lane.b32.xlu0 %v8737_v47, %s7156_s27  ;;  %2164 = vst.msk [vmem:[#allocation3 + $0x470] sm:$0xff] %vm700_vm4, %v8747_v44 }
 0x286   :  { %v1081_v31 = vpop.permute.xlu1 %1080 }
 0x287   :  { %1246 = vst.msk [vmem:[#allocation3 + $0x288] sm:$0xff] %vm1218_vm5, %v1081_v31  ;;  %v3130_v5 = vpop.permute.xlu0 %3129  ;;  %v3537_v27 = vld [vmem:[#allocation3 + $0x260] sm:$0xff] }
 0x288   :  { %3295 = vst.msk [vmem:[#allocation3 + $0x278] sm:$0xff] %vm1988_vm7, %v3130_v5  ;;  %4077 = vmatprep.mubr.f32.mxu1 %v3537_v27  ;;  %1862 = vrot.lane.b32.xlu1 %v8629_v17, %s7154_s21  ;;  %v819_v17 = vld [vmem:[#allocation2 + $0x188] sm:$0xff]  ;;  %v8811_v5 = vld [vmem:[#allocation2 + $0x191] sm:$0xff] }
 0x289   :  { %4078 = vmatmul.mubr.f32.gmra.mrb[44].mxu1 %v3536_v25  ;;  %3143 = vrot.lane.b32.xlu0 %v8346_v55, %s7154_s21  ;;  %883 = vst.msk [vmem:[#allocation3 + $0x498] sm:$0xff] %vm700_vm4, %v819_v17  ;;  %2165 = vst.msk [vmem:[#allocation3 + $0x488] sm:$0xff] %vm700_vm4, %v8811_v5  ;;  %v820_v25 = vld [vmem:[#allocation2 + $0x190] sm:$0xff] }
 0x28a   :  { %v1466_v10 = vpop.permute.xlu1 %1465  ;;  %884 = vst.msk [vmem:[#allocation3 + $0x4b0] sm:$0xff] %vm700_vm4, %v820_v25 }
 0x28b   :  { %1631 = vst.msk [vmem:[#allocation3 + $0x288] sm:$0xff] %vm1603_vm6, %v1466_v10  ;;  %v2364_v45 = vpop.permute.xlu0 %2363  ;;  %v821_v10 = vld [vmem:[#allocation2 + $0x198] sm:$0xff] }
 0x28c   :  { %2528 = vst.msk [vmem:[#allocation3 + $0x290] sm:$0xff] %vm1218_vm5, %v2364_v45  ;;  %v8755_v35 = vpop.f32.mrb[10].mxu1  ;;  %1094 = vrot.lane.b32.xlu1 %v8591_v1, %s7155_s22  ;;  %v3539_v1 = vld [vmem:[#allocation3 + $0x270] sm:$0xff] }
 0x28d   :  { %2912 = vst.msk [vmem:[#allocation3 + $0x290] sm:$0xff] %vm1603_vm6, %v2748_v20  ;;  %v3996_v53 = vpop.f32.mrb[11].mxu1  ;;  %2377 = vrot.lane.b32.xlu0 %v8217_v6, %s7155_s22  ;;  %v6650_v3 = vpop.f32.mrb[52].mxu0 }
 0x28e   :  { %v1851_v56 = vpop.permute.xlu1 %1850  ;;  %v647_v62 = vadd.f32 %v8634_v13, %v6650_v3  ;;  %v641_v9 = vpop.f32.mrb[53].mxu0  ;;  %885 = vst.msk [vmem:[#allocation3 + $0x4c8] sm:$0xff] %vm700_vm4, %v821_v10 }
 0x28f   :  { %2016 = vst.msk [vmem:[#allocation3 + $0x288] sm:$0xff] %vm1988_vm7, %v1851_v56  ;;  %v3132_v28 = vpop.permute.xlu0 %3131  ;;  %v3540_v49 = vld [vmem:[#allocation3 + $0x278] sm:$0xff]  ;;  %v642_v38 = vadd.f32 %v8634_v13, %v641_v9 }
 0x290   :  { %3296 = vst.msk [vmem:[#allocation3 + $0x290] sm:$0xff] %vm1988_vm7, %v3132_v28  ;;  %4082 = vmatprep.mubr.f32.mxu1 %v3540_v49  ;;  %1479 = vrot.lane.b32.xlu1 %v8144_v16, %s7156_s27 }
 0x291   :  { %4083 = vmatmul.mubr.f32.gmra.mrb[46].mxu1 %v3539_v1  ;;  %2761 = vrot.lane.b32.xlu0 %v8768_v36, %s7156_s27  ;;  %754 = vst.msk [vmem:[#allocation2 + $0x1a8] sm:$0xff] %vm700_vm4, %v647_v62  ;;  %753 = vst.msk [vmem:[#allocation2 + $0x1a0] sm:$0xff] %vm700_vm4, %v642_v38 }
 0x292   :  { %v1083_v26 = vpop.permute.xlu1 %1082 }
 0x293   :  { %1247 = vst.msk [vmem:[#allocation3 + $0x2a0] sm:$0xff] %vm1218_vm5, %v1083_v26  ;;  %v2366_v30 = vpop.permute.xlu0 %2365 }
 0x294   :  { %2529 = vst.msk [vmem:[#allocation3 + $0x2a8] sm:$0xff] %vm1218_vm5, %v2366_v30  ;;  %1864 = vrot.lane.b32.xlu1 %v8705_v46, %s7154_s21 }
 0x295   :  { %3145 = vrot.lane.b32.xlu0 %v8421_v41, %s7154_s21 }
 0x296   :  { %v1468_v16 = vpop.permute.xlu1 %1467  ;;  %v3542_v2 = vld [vmem:[#allocation3 + $0x288] sm:$0xff] }
 0x297   :  { %1632 = vst.msk [vmem:[#allocation3 + $0x2a0] sm:$0xff] %vm1603_vm6, %v1468_v16  ;;  %v2750_v42 = vpop.permute.xlu0 %2749  ;;  %v3543_v63 = vld [vmem:[#allocation3 + $0x290] sm:$0xff] }
 0x298   :  { %2913 = vst.msk [vmem:[#allocation3 + $0x2a8] sm:$0xff] %vm1603_vm6, %v2750_v42  ;;  %4087 = vmatprep.mubr.f32.mxu1 %v3543_v63  ;;  %1096 = vrot.lane.b32.xlu1 %v8651_v0, %s7155_s22  ;;  %v8787_v46 = vld [vmem:[#allocation2 + $0x19a] sm:$0xff]  ;;  %v8789_v20 = vld [vmem:[#allocation2 + $0x1a2] sm:$0xff] }
 0x299   :  { %4088 = vmatmul.mubr.f32.gmra.mrb[48].mxu1 %v3542_v2  ;;  %2379 = vrot.lane.b32.xlu0 %v8331_v18, %s7155_s22  ;;  %3444 = vst.msk [vmem:[#allocation3 + $0x478] sm:$0xff] %vm700_vm4, %v8787_v46  ;;  %3445 = vst.msk [vmem:[#allocation3 + $0x490] sm:$0xff] %vm700_vm4, %v8789_v20  ;;  %v8869_v2 = vld [vmem:[#allocation2 + $0x148] sm:$0xff] }
 0x29a   :  { %v1853_v32 = vpop.permute.xlu1 %1852  ;;  %v8887_v25 = vld [vmem:[#allocation2 + $0x1a1] sm:$0xff] }
 0x29b   :  { %2017 = vst.msk [vmem:[#allocation3 + $0x2a0] sm:$0xff] %vm1988_vm7, %v1853_v32  ;;  %v3134_v11 = vpop.permute.xlu0 %3133 }
 0x29c   :  { %3297 = vst.msk [vmem:[#allocation3 + $0x2a8] sm:$0xff] %vm1988_vm7, %v3134_v11  ;;  %v8797_v0 = vpop.f32.mrb[12].mxu1  ;;  %1481 = vrot.lane.b32.xlu1 %v8215_v29, %s7156_s27  ;;  %v8813_v29 = vld [vmem:[#allocation2 + $0x199] sm:$0xff] }
 0x29d   :  { %v4001_v24 = vpop.f32.mrb[13].mxu1  ;;  %2763 = vrot.lane.b32.xlu0 %v8801_v34, %s7156_s27  ;;  %2166 = vst.msk [vmem:[#allocation3 + $0x4a0] sm:$0xff] %vm700_vm4, %v8813_v29  ;;  %2167 = vst.msk [vmem:[#allocation3 + $0x4b8] sm:$0xff] %vm700_vm4, %v8887_v25 }
 0x29e   :  { %v1085_v48 = vpop.permute.xlu1 %1084 }
 0x29f   :  { %1248 = vst.msk [vmem:[#allocation3 + $0x2b8] sm:$0xff] %vm1218_vm5, %v1085_v48  ;;  %v2368_v31 = vpop.permute.xlu0 %2367 }
 0x2a0   :  { %2530 = vst.msk [vmem:[#allocation3 + $0x2c0] sm:$0xff] %vm1218_vm5, %v2368_v31  ;;  %1866 = vrot.lane.b32.xlu1 %v8737_v47, %s7154_s21  ;;  %v8877_v31 = vld [vmem:[#allocation2 + $0x149] sm:$0xff] }
 0x2a1   :  { %3147 = vrot.lane.b32.xlu0 %v8423_v39, %s7154_s21  ;;  %v6653_v56 = vpop.f32.mrb[54].mxu0 }
 0x2a2   :  { %v2752_v27 = vpop.permute.xlu1 %2751  ;;  %v3545_v45 = vld [vmem:[#allocation3 + $0x2a0] sm:$0xff]  ;;  %v657_v28 = vadd.f32 %v8634_v13, %v6653_v56  ;;  %v651_v49 = vpop.f32.mrb[55].mxu0 }
 0x2a3   :  { %2914 = vst.msk [vmem:[#allocation3 + $0x2c0] sm:$0xff] %vm1603_vm6, %v2752_v27  ;;  %v2310_v58 = vpop.permute.xlu0 %2309  ;;  %v3546_v47 = vld [vmem:[#allocation3 + $0x2a8] sm:$0xff]  ;;  %v652_v62 = vadd.f32 %v8634_v13, %v651_v49  ;;  %v3688_v27 = vld [vmem:[%s11089_s3 + $0x118] sm:$0xff] }
 0x2a4   :  { %2501 = vst.msk [vmem:[#allocation3 + $0x8] sm:$0xff] %vm1218_vm5, %v2310_v58  ;;  %v8823_v14 = vpop.f32.mrb[14].mxu1  ;;  %4092 = vmatprep.mubr.f32.mxu1 %v3546_v47  ;;  %1098 = vrot.lane.b32.xlu1 %v8342_v54, %s7155_s22  ;;  %v8834_v54 = vld [vmem:[#allocation2 + $0x140] sm:$0xff]  ;;  %v823_v47 = vld [vmem:[#allocation2 + $0x1a8] sm:$0xff] }
 0x2a5   :  { %v4006_v17 = vpop.f32.mrb[15].mxu1  ;;  %4093 = vmatmul.mubr.f32.gmra.mrb[50].mxu1 %v3545_v45  ;;  %2381 = vrot.lane.b32.xlu0 %v8333_v21, %s7155_s22  ;;  %756 = vst.msk [vmem:[#allocation2 + $0x1b8] sm:$0xff] %vm700_vm4, %v657_v28  ;;  %755 = vst.msk [vmem:[#allocation2 + $0x1b0] sm:$0xff] %vm700_vm4, %v652_v62 }
 0x2a6   :  { %v1470_v53 = vpop.permute.xlu1 %1469  ;;  %887 = vst.msk [vmem:[#allocation3 + $0x4f8] sm:$0xff] %vm700_vm4, %v823_v47 }
 0x2a7   :  { %1633 = vst.msk [vmem:[#allocation3 + $0x2b8] sm:$0xff] %vm1603_vm6, %v1470_v53  ;;  %v1027_v3 = vpop.permute.xlu0 %1026 }
 0x2a8   :  { %1219 = vst.msk [vmem:[#allocation3] sm:$0xff] %vm1218_vm5, %v1027_v3  ;;  %1483 = vrot.lane.b32.xlu1 %v8217_v6, %s7156_s27  ;;  %v8845_v6 = vld [vmem:[#allocation2 + $0x141] sm:$0xff] }
 0x2a9   :  { %2765 = vrot.lane.b32.xlu0 %v8834_v54, %s7156_s27 }
 0x2aa   :  { %v3136_v9 = vpop.permute.xlu1 %3135 }
 0x2ab   :  { %3298 = vst.msk [vmem:[#allocation3 + $0x2c0] sm:$0xff] %vm1988_vm7, %v3136_v9  ;;  %v2694_v1 = vpop.permute.xlu0 %2693 }
 0x2ac   :  { %2885 = vst.msk [vmem:[#allocation3 + $0x8] sm:$0xff] %vm1603_vm6, %v2694_v1  ;;  %1868 = vrot.lane.b32.xlu1 %v8768_v36, %s7154_s21  ;;  %v8855_v30 = vld [vmem:[#allocation2 + $0x1aa] sm:$0xff]  ;;  %v8857_v36 = vld [vmem:[#allocation2 + $0x1b2] sm:$0xff] }
 0x2ad   :  { %3149 = vrot.lane.b32.xlu0 %v8845_v6, %s7154_s21  ;;  %3446 = vst.msk [vmem:[#allocation3 + $0x4a8] sm:$0xff] %vm700_vm4, %v8855_v30  ;;  %3447 = vst.msk [vmem:[#allocation3 + $0x4c0] sm:$0xff] %vm700_vm4, %v8857_v36  ;;  %v8889_v10 = vld [vmem:[#allocation2 + $0x1a9] sm:$0xff] }
 0x2ae   :  { %v1855_v38 = vpop.permute.xlu1 %1854  ;;  %2168 = vst.msk [vmem:[#allocation3 + $0x4d0] sm:$0xff] %vm700_vm4, %v8889_v10 }
 0x2af   :  { %2018 = vst.msk [vmem:[#allocation3 + $0x2b8] sm:$0xff] %vm1988_vm7, %v1855_v38  ;;  %v1412_v26 = vpop.permute.xlu0 %1411 }
 0x2b0   :  { %1604 = vst.msk [vmem:[#allocation3] sm:$0xff] %vm1603_vm6, %v1412_v26  ;;  %1100 = vrot.lane.b32.xlu1 %v8346_v55, %s7155_s22 }
 0x2b1   :  { %2383 = vrot.lane.b32.xlu0 %v8411_v15, %s7155_s22 }
 0x2b2   :  { %v1797_v16 = vpop.permute.xlu1 %1796  ;;  %v3549_v42 = vld [vmem:[#allocation3 + $0x2c0] sm:$0xff] }
 0x2b3   :  { %1989 = vst.msk [vmem:[#allocation3] sm:$0xff] %vm1988_vm7, %v1797_v16  ;;  %4097 = vmatprep.mubr.f32.mxu1 %v3549_v42  ;;  %v3078_v63 = vpop.permute.xlu0 %3077 }
 0x2b4   :  { %3269 = vst.msk [vmem:[#allocation3 + $0x8] sm:$0xff] %vm1988_vm7, %v3078_v63  ;;  %v8865_v55 = vpop.f32.mrb[16].mxu1  ;;  %1485 = vrot.lane.b32.xlu1 %v8331_v18, %s7156_s27  ;;  %v3687_v18 = vld [vmem:[%s11089_s3 + $0x110] sm:$0xff] }
 0x2b5   :  { %v4011_v32 = vpop.f32.mrb[17].mxu1  ;;  %2767 = vrot.lane.b32.xlu0 %v8869_v2, %s7156_s27  ;;  %v6866_v53 = vpack.c.bf16 %v3688_v27, %v3687_v18  ;;  %v8946_v18 = vld [vmem:[#allocation2 + $0x158] sm:$0xff] }
 0x2b6   :  { %v1087_v11 = vpop.permute.xlu1 %1086  ;;  %v3548_v24 = vld [vmem:[#allocation3 + $0x2b8] sm:$0xff] }
 0x2b7   :  { %1249 = vst.msk [vmem:[#allocation3 + $0x2d0] sm:$0xff] %vm1218_vm5, %v1087_v11  ;;  %4098 = vmatmul.mubr.f32.gmra.mrb[52].mxu1 %v3548_v24  ;;  %v2370_v48 = vpop.permute.xlu0 %2369 }
 0x2b8   :  { %2531 = vst.msk [vmem:[#allocation3 + $0x2d8] sm:$0xff] %vm1218_vm5, %v2370_v48  ;;  %1870 = vrot.lane.b32.xlu1 %v8801_v34, %s7154_s21  ;;  %v822_v34 = vld [vmem:[#allocation2 + $0x1a0] sm:$0xff] }
 0x2b9   :  { %3151 = vrot.lane.b32.xlu0 %v8877_v31, %s7154_s21  ;;  %886 = vst.msk [vmem:[#allocation3 + $0x4e0] sm:$0xff] %vm700_vm4, %v822_v34  ;;  %v6656_v62 = vpop.f32.mrb[56].mxu0 }
 0x2ba   :  { %v2754_v58 = vpop.permute.xlu1 %2753  ;;  %v3461_v3 = vld [vmem:[#allocation3] sm:$0xff]  ;;  %v667_v1 = vadd.f32 %v8634_v13, %v6656_v62  ;;  %v661_v38 = vpop.f32.mrb[57].mxu0 }
 0x2bb   :  { %2915 = vst.msk [vmem:[#allocation3 + $0x2d8] sm:$0xff] %vm1603_vm6, %v2754_v58  ;;  %v2312_v45 = vpop.permute.xlu0 %2311  ;;  %v3462_v17 = vld [vmem:[#allocation3 + $0x8] sm:$0xff]  ;;  %v662_v26 = vadd.f32 %v8634_v13, %v661_v38 }
 0x2bc   :  { %2502 = vst.msk [vmem:[#allocation3 + $0x20] sm:$0xff] %vm1218_vm5, %v2312_v45  ;;  %v8899_v56 = vpop.f32.mrb[18].mxu1  ;;  %1102 = vrot.lane.b32.xlu1 %v8421_v41, %s7155_s22  ;;  %3952 = vmatprep.mubr.f32.mxu0 %v3462_v17  ;;  %v8911_v41 = vld [vmem:[#allocation2 + $0x150] sm:$0xff]  ;;  %v8954_v45 = vld [vmem:[#allocation2 + $0x159] sm:$0xff] }
 0x2bd   :  { %v4016_v28 = vpop.f32.mrb[19].mxu1  ;;  %2385 = vrot.lane.b32.xlu0 %v8413_v23, %s7155_s22  ;;  %3953 = vmatmul.mubr.f32.vlgmr.msra.gmra.mrb[64].mxu0 %v3461_v3  ;;  %758 = vst.msk [vmem:[#allocation2 + $0x1c8] sm:$0xff] %vm700_vm4, %v667_v1  ;;  %757 = vst.msk [vmem:[#allocation2 + $0x1c0] sm:$0xff] %vm700_vm4, %v662_v26  ;;  %v824_v3 = vld [vmem:[#allocation2 + $0x1b0] sm:$0xff] }
 0x2be   :  { %v1472_v49 = vpop.permute.xlu1 %1471  ;;  %6865 = vmatpush3.bf16.msra.mxu0 %v8667_v22  ;;  %v825_v28 = vld [vmem:[#allocation2 + $0x1b8] sm:$0xff]  ;;  %888 = vst.msk [vmem:[#allocation3 + $0x510] sm:$0xff] %vm700_vm4, %v824_v3  ;;  %v9016_v3 = vld [vmem:[#allocation2 + $0x168] sm:$0xff] }
 0x2bf   :  { %1634 = vst.msk [vmem:[#allocation3 + $0x2d0] sm:$0xff] %vm1603_vm6, %v1472_v49  ;;  %v1029_v9 = vpop.permute.xlu0 %1028  ;;  %6867 = vmatprep.subr.bf16.mxu0 %v6866_v53 }
 0x2c0   :  { %1220 = vst.msk [vmem:[#allocation3 + $0x18] sm:$0xff] %vm1218_vm5, %v1029_v9  ;;  %1487 = vrot.lane.b32.xlu1 %v8333_v21, %s7156_s27  ;;  %v8922_v21 = vld [vmem:[#allocation2 + $0x151] sm:$0xff] }
 0x2c1   :  { %2769 = vrot.lane.b32.xlu0 %v8911_v41, %s7156_s27  ;;  %889 = vst.msk [vmem:[#allocation3 + $0x528] sm:$0xff] %vm700_vm4, %v825_v28 }
 0x2c2   :  { %v3138_v22 = vpop.permute.xlu1 %3137  ;;  %6869 = vmatpush3.bf16.msra.mxu0 %v6866_v53 }
 0x2c3   :  { %3299 = vst.msk [vmem:[#allocation3 + $0x2d8] sm:$0xff] %vm1988_vm7, %v3138_v22  ;;  %v2696_v16 = vpop.permute.xlu0 %2695 }
 0x2c4   :  { %2886 = vst.msk [vmem:[#allocation3 + $0x20] sm:$0xff] %vm1603_vm6, %v2696_v16  ;;  %1872 = vrot.lane.b32.xlu1 %v8834_v54, %s7154_s21  ;;  %v8932_v32 = vld [vmem:[#allocation2 + $0x1ba] sm:$0xff]  ;;  %v8934_v54 = vld [vmem:[#allocation2 + $0x1c2] sm:$0xff] }
 0x2c5   :  { %3153 = vrot.lane.b32.xlu0 %v8922_v21, %s7154_s21  ;;  %3448 = vst.msk [vmem:[#allocation3 + $0x4d8] sm:$0xff] %vm700_vm4, %v8932_v32  ;;  %3449 = vst.msk [vmem:[#allocation3 + $0x4f0] sm:$0xff] %vm700_vm4, %v8934_v54  ;;  %v8960_v17 = vld [vmem:[#allocation2 + $0x1b9] sm:$0xff] }
 0x2c6   :  { %v1857_v42 = vpop.permute.xlu1 %1856  ;;  %2170 = vst.msk [vmem:[#allocation3 + $0x500] sm:$0xff] %vm700_vm4, %v8960_v17 }
 0x2c7   :  { %2019 = vst.msk [vmem:[#allocation3 + $0x2d0] sm:$0xff] %vm1988_vm7, %v1857_v42  ;;  %v1414_v63 = vpop.permute.xlu0 %1413 }
 0x2c8   :  { %1605 = vst.msk [vmem:[#allocation3 + $0x18] sm:$0xff] %vm1603_vm6, %v1414_v63  ;;  %1104 = vrot.lane.b32.xlu1 %v8423_v39, %s7155_s22 }
 0x2c9   :  { %2387 = vrot.lane.b32.xlu0 %v8475_v7, %s7155_s22 }
 0x2ca   :  { %v1799_v11 = vpop.permute.xlu1 %1798  ;;  %v3552_v24 = vld [vmem:[#allocation3 + $0x2d8] sm:$0xff] }
 0x2cb   :  { %1990 = vst.msk [vmem:[#allocation3 + $0x18] sm:$0xff] %vm1988_vm7, %v1799_v11  ;;  %4102 = vmatprep.mubr.f32.mxu1 %v3552_v24  ;;  %v3080_v48 = vpop.permute.xlu0 %3079 }
 0x2cc   :  { %3270 = vst.msk [vmem:[#allocation3 + $0x20] sm:$0xff] %vm1988_vm7, %v3080_v48  ;;  %v8942_v39 = vpop.f32.mrb[20].mxu1  ;;  %1489 = vrot.lane.b32.xlu1 %v8411_v15, %s7156_s27  ;;  %v8958_v15 = vld [vmem:[#allocation2 + $0x1b1] sm:$0xff] }
 0x2cd   :  { %v4021_v27 = vpop.f32.mrb[21].mxu1  ;;  %2771 = vrot.lane.b32.xlu0 %v8946_v18, %s7156_s27  ;;  %2169 = vst.msk [vmem:[#allocation3 + $0x4e8] sm:$0xff] %vm700_vm4, %v8958_v15 }
 0x2ce   :  { %v1089_v58 = vpop.permute.xlu1 %1088  ;;  %v3551_v34 = vld [vmem:[#allocation3 + $0x2d0] sm:$0xff] }
 0x2cf   :  { %1250 = vst.msk [vmem:[#allocation3 + $0x2e8] sm:$0xff] %vm1218_vm5, %v1089_v58  ;;  %4103 = vmatmul.mubr.f32.gmra.mrb[54].mxu1 %v3551_v34  ;;  %v2372_v47 = vpop.permute.xlu0 %2371 }
 0x2d0   :  { %2532 = vst.msk [vmem:[#allocation3 + $0x2f0] sm:$0xff] %vm1218_vm5, %v2372_v47  ;;  %1874 = vrot.lane.b32.xlu1 %v8869_v2, %s7154_s21 }
 0x2d1   :  { %3155 = vrot.lane.b32.xlu0 %v8954_v45, %s7154_s21  ;;  %v6659_v26 = vpop.f32.mrb[58].mxu0 }
 0x2d2   :  { %v2756_v53 = vpop.permute.xlu1 %2755  ;;  %v3464_v9 = vld [vmem:[#allocation3 + $0x18] sm:$0xff]  ;;  %v677_v16 = vadd.f32 %v8634_v13, %v6659_v26  ;;  %v671_v42 = vpop.f32.mrb[59].mxu0 }
 0x2d3   :  { %2916 = vst.msk [vmem:[#allocation3 + $0x2f0] sm:$0xff] %vm1603_vm6, %v2756_v53  ;;  %v2314_v2 = vpop.permute.xlu0 %2313  ;;  %v3465_v49 = vld [vmem:[#allocation3 + $0x20] sm:$0xff]  ;;  %v672_v63 = vadd.f32 %v8634_v13, %v671_v42  ;;  %v826_v42 = vld [vmem:[#allocation2 + $0x1c0] sm:$0xff] }
 0x2d4   :  { %2503 = vst.msk [vmem:[#allocation3 + $0x38] sm:$0xff] %vm1218_vm5, %v2314_v2  ;;  %v8970_v62 = vpop.f32.mrb[22].mxu1  ;;  %1106 = vrot.lane.b32.xlu1 %v8845_v6, %s7155_s22  ;;  %3957 = vmatprep.mubr.f32.mxu0 %v3465_v49  ;;  %v8981_v6 = vld [vmem:[#allocation2 + $0x160] sm:$0xff] }
 0x2d5   :  { %v4026_v1 = vpop.f32.mrb[23].mxu1  ;;  %2389 = vrot.lane.b32.xlu0 %v8477_v51, %s7155_s22  ;;  %3958 = vmatmul.mubr.f32.gmra.mrb[66].mxu0 %v3464_v9  ;;  %760 = vst.msk [vmem:[#allocation2 + $0x1d8] sm:$0xff] %vm700_vm4, %v677_v16  ;;  %759 = vst.msk [vmem:[#allocation2 + $0x1d0] sm:$0xff] %vm700_vm4, %v672_v63 }
 0x2d6   :  { %v1474_v38 = vpop.permute.xlu1 %1473  ;;  %v9024_v1 = vld [vmem:[#allocation2 + $0x169] sm:$0xff]  ;;  %890 = vst.msk [vmem:[#allocation3 + $0x540] sm:$0xff] %vm700_vm4, %v826_v42 }
 0x2d7   :  { %1635 = vst.msk [vmem:[#allocation3 + $0x2e8] sm:$0xff] %vm1603_vm6, %v1474_v38  ;;  %v1031_v22 = vpop.permute.xlu0 %1030 }
 0x2d8   :  { %1221 = vst.msk [vmem:[#allocation3 + $0x30] sm:$0xff] %vm1218_vm5, %v1031_v22  ;;  %1491 = vrot.lane.b32.xlu1 %v8413_v23, %s7156_s27  ;;  %v8992_v23 = vld [vmem:[#allocation2 + $0x161] sm:$0xff] }
 0x2d9   :  { %2773 = vrot.lane.b32.xlu0 %v8981_v6, %s7156_s27 }
 0x2da   :  { %v3140_v11 = vpop.permute.xlu1 %3139 }
 0x2db   :  { %3300 = vst.msk [vmem:[#allocation3 + $0x2f0] sm:$0xff] %vm1988_vm7, %v3140_v11  ;;  %v2698_v24 = vpop.permute.xlu0 %2697 }
 0x2dc   :  { %2887 = vst.msk [vmem:[#allocation3 + $0x38] sm:$0xff] %vm1603_vm6, %v2698_v24  ;;  %1876 = vrot.lane.b32.xlu1 %v8911_v41, %s7154_s21  ;;  %v9002_v58 = vld [vmem:[#allocation2 + $0x1ca] sm:$0xff]  ;;  %v9004_v41 = vld [vmem:[#allocation2 + $0x1d2] sm:$0xff] }
 0x2dd   :  { %3157 = vrot.lane.b32.xlu0 %v8992_v23, %s7154_s21  ;;  %3450 = vst.msk [vmem:[#allocation3 + $0x508] sm:$0xff] %vm700_vm4, %v9002_v58  ;;  %3451 = vst.msk [vmem:[#allocation3 + $0x520] sm:$0xff] %vm700_vm4, %v9004_v41  ;;  %v2108_v26 = vld [vmem:[#allocation2 + $0x1c9] sm:$0xff] }
 0x2de   :  { %v1859_v48 = vpop.permute.xlu1 %1858  ;;  %2172 = vst.msk [vmem:[#allocation3 + $0x530] sm:$0xff] %vm700_vm4, %v2108_v26  ;;  %v3472_v26 = vld [vmem:[#allocation3 + $0x58] sm:$0xff] }
 0x2df   :  { %2020 = vst.msk [vmem:[#allocation3 + $0x2e8] sm:$0xff] %vm1988_vm7, %v1859_v48  ;;  %v1416_v27 = vpop.permute.xlu0 %1415  ;;  %v3463_v48 = vld [vmem:[#allocation3 + $0x10] sm:$0xff] }
 0x2e0   :  { %1606 = vst.msk [vmem:[#allocation3 + $0x30] sm:$0xff] %vm1603_vm6, %v1416_v27  ;;  %1108 = vrot.lane.b32.xlu1 %v8877_v31, %s7155_s22 }
 0x2e1   :  { %2391 = vrot.lane.b32.xlu0 %v8545_v4, %s7155_s22 }
 0x2e2   :  { %v1801_v34 = vpop.permute.xlu1 %1800  ;;  %v3555_v47 = vld [vmem:[#allocation3 + $0x2f0] sm:$0xff] }
 0x2e3   :  { %1991 = vst.msk [vmem:[#allocation3 + $0x30] sm:$0xff] %vm1988_vm7, %v1801_v34  ;;  %4107 = vmatprep.mubr.f32.mxu1 %v3555_v47  ;;  %v3082_v53 = vpop.permute.xlu0 %3081 }
 0x2e4   :  { %3271 = vst.msk [vmem:[#allocation3 + $0x38] sm:$0xff] %vm1988_vm7, %v3082_v53  ;;  %v9012_v31 = vpop.f32.mrb[24].mxu1  ;;  %1493 = vrot.lane.b32.xlu1 %v8475_v7, %s7156_s27  ;;  %v9028_v7 = vld [vmem:[#allocation2 + $0x1c1] sm:$0xff] }
 0x2e5   :  { %v4031_v28 = vpop.f32.mrb[25].mxu1  ;;  %2775 = vrot.lane.b32.xlu0 %v9016_v3, %s7156_s27  ;;  %2171 = vst.msk [vmem:[#allocation3 + $0x518] sm:$0xff] %vm700_vm4, %v9028_v7 }
 0x2e6   :  { %v1091_v2 = vpop.permute.xlu1 %1090  ;;  %v3554_v49 = vld [vmem:[#allocation3 + $0x2e8] sm:$0xff] }
 0x2e7   :  { %1251 = vst.msk [vmem:[#allocation3 + $0x300] sm:$0xff] %vm1218_vm5, %v1091_v2  ;;  %4108 = vmatmul.mubr.f32.gmra.mrb[56].mxu1 %v3554_v49  ;;  %v2374_v9 = vpop.permute.xlu0 %2373  ;;  %v9049_v28 = vld [vmem:[#allocation2 + $0x170] sm:$0xff] }
 0x2e8   :  { %2533 = vst.msk [vmem:[#allocation3 + $0x308] sm:$0xff] %vm1218_vm5, %v2374_v9  ;;  %1878 = vrot.lane.b32.xlu1 %v8946_v18, %s7154_s21  ;;  %v827_v18 = vld [vmem:[#allocation2 + $0x1c8] sm:$0xff]  ;;  %v3466_v2 = vld [vmem:[#allocation3 + $0x28] sm:$0xff] }
 0x2e9   :  { %3159 = vrot.lane.b32.xlu0 %v9024_v1, %s7154_s21  ;;  %891 = vst.msk [vmem:[#allocation3 + $0x558] sm:$0xff] %vm700_vm4, %v827_v18  ;;  %v6662_v34 = vpop.f32.mrb[60].mxu0  ;;  %v3469_v9 = vld [vmem:[#allocation3 + $0x40] sm:$0xff] }
 0x2ea   :  { %v1476_v38 = vpop.permute.xlu1 %1475  ;;  %v3467_v11 = vld [vmem:[#allocation3 + $0x30] sm:$0xff]  ;;  %v681_v53 = vpop.f32.mrb[61].mxu0 }
 0x2eb   :  { %1636 = vst.msk [vmem:[#allocation3 + $0x300] sm:$0xff] %vm1603_vm6, %v1476_v38  ;;  %v2758_v22 = vpop.permute.xlu0 %2757  ;;  %v3468_v16 = vld [vmem:[#allocation3 + $0x38] sm:$0xff]  ;;  %v682_v49 = vadd.f32 %v8634_v13, %v681_v53 }
 0x2ec   :  { %2917 = vst.msk [vmem:[#allocation3 + $0x308] sm:$0xff] %vm1603_vm6, %v2758_v22  ;;  %v9035_v63 = vpop.f32.mrb[26].mxu1  ;;  %1110 = vrot.lane.b32.xlu1 %v8922_v21, %s7155_s22  ;;  %3962 = vmatprep.mubr.f32.mxu0 %v3468_v16  ;;  %v687_v21 = vadd.f32 %v8634_v13, %v6662_v34  ;;  %v9062_v13 = vld [vmem:[#allocation2 + $0x171] sm:$0xff]  ;;  %v3481_v34 = vld [vmem:[#allocation3 + $0xa0] sm:$0xff] }
 0x2ed   :  { %v4036_v24 = vpop.f32.mrb[27].mxu1  ;;  %2393 = vrot.lane.b32.xlu0 %v8547_v57, %s7155_s22  ;;  %3963 = vmatmul.mubr.f32.gmra.mrb[68].mxu0 %v3467_v11  ;;  %761 = vst.msk [vmem:[#allocation2 + $0x1e0] sm:$0xff] %vm700_vm4, %v682_v49  ;;  %v3475_v22 = vld [vmem:[#allocation3 + $0x70] sm:$0xff]  ;;  %v3478_v11 = vld [vmem:[#allocation3 + $0x88] sm:$0xff] }
 0x2ee   :  { %v1861_v27 = vpop.permute.xlu1 %1860  ;;  %6674 = vmatprep.mubr.msk.f32.mxu0 %vm700_vm4, %v3463_v48  ;;  %762 = vst.msk [vmem:[#allocation2 + $0x1e8] sm:$0xff] %vm700_vm4, %v687_v21  ;;  %v9090_v21 = vld [vmem:[#allocation2 + $0x178] sm:$0xff] }
 0x2ef   :  { %2021 = vst.msk [vmem:[#allocation3 + $0x300] sm:$0xff] %vm1988_vm7, %v1861_v27  ;;  %v3142_v47 = vpop.permute.xlu0 %3141 }
 0x2f0   :  { %3301 = vst.msk [vmem:[#allocation3 + $0x308] sm:$0xff] %vm1988_vm7, %v3142_v47  ;;  %1495 = vrot.lane.b32.xlu1 %v8477_v51, %s7156_s27 }
 0x2f1   :  { %2777 = vrot.lane.b32.xlu0 %v9049_v28, %s7156_s27  ;;  %6675 = vmatmul.mubr.msk.f32.vlgmr.msra.gmra.mrb[70].mxu0 %vm700_vm4, %v3466_v2  ;;  %v3484_v2 = vld [vmem:[#allocation3 + $0xb8] sm:$0xff] }
 0x2f2   :  { %v1093_v38 = vpop.permute.xlu1 %1092  ;;  %6677 = vmatprep.mubr.msk.f32.mxu0 %vm700_vm4, %v3469_v9  ;;  %v3487_v9 = vld [vmem:[#allocation3 + $0xd0] sm:$0xff] }
 0x2f3   :  { %1252 = vst.msk [vmem:[#allocation3 + $0x318] sm:$0xff] %vm1218_vm5, %v1093_v38  ;;  %v2376_v51 = vpop.permute.xlu0 %2375 }
 0x2f4   :  { %2534 = vst.msk [vmem:[#allocation3 + $0x320] sm:$0xff] %vm1218_vm5, %v2376_v51  ;;  %1880 = vrot.lane.b32.xlu1 %v8981_v6, %s7154_s21  ;;  %v9074_v24 = vld [vmem:[#allocation2 + $0x1da] sm:$0xff]  ;;  %v3490_v51 = vld [vmem:[#allocation3 + $0xe8] sm:$0xff] }
 0x2f5   :  { %3161 = vrot.lane.b32.xlu0 %v9062_v13, %s7154_s21  ;;  %6678 = vmatmul.mubr.msk.f32.gmra.mrb[72].mxu0 %vm700_vm4, %v3472_v26  ;;  %v9076_v48 = vld [vmem:[#allocation2 + $0x1e2] sm:$0xff]  ;;  %3452 = vst.msk [vmem:[#allocation3 + $0x538] sm:$0xff] %vm700_vm4, %v9074_v24 }
 0x2f6   :  { %v1478_v16 = vpop.permute.xlu1 %1477  ;;  %6680 = vmatprep.mubr.msk.f32.mxu0 %vm700_vm4, %v3475_v22  ;;  %v3557_v6 = vld [vmem:[#allocation3 + $0x300] sm:$0xff]  ;;  %3453 = vst.msk [vmem:[#allocation3 + $0x550] sm:$0xff] %vm700_vm4, %v9076_v48 }
 0x2f7   :  { %1637 = vst.msk [vmem:[#allocation3 + $0x318] sm:$0xff] %vm1603_vm6, %v1478_v16  ;;  %v2760_v42 = vpop.permute.xlu0 %2759  ;;  %v3558_v18 = vld [vmem:[#allocation3 + $0x308] sm:$0xff]  ;;  %v3493_v22 = vld [vmem:[#allocation3 + $0x100] sm:$0xff] }
 0x2f8   :  { %2918 = vst.msk [vmem:[#allocation3 + $0x320] sm:$0xff] %vm1603_vm6, %v2760_v42  ;;  %1112 = vrot.lane.b32.xlu1 %v8954_v45, %s7155_s22  ;;  %4112 = vmatprep.mubr.f32.mxu1 %v3558_v18  ;;  %v2109_v16 = vld [vmem:[#allocation2 + $0x1d1] sm:$0xff] }
 0x2f9   :  { %2395 = vrot.lane.b32.xlu0 %v8596_v12, %s7155_s22  ;;  %4113 = vmatmul.mubr.f32.gmra.mrb[58].mxu1 %v3557_v6  ;;  %2173 = vst.msk [vmem:[#allocation3 + $0x548] sm:$0xff] %vm700_vm4, %v2109_v16  ;;  %v828_v6 = vld [vmem:[#allocation2 + $0x1d0] sm:$0xff]  ;;  %v9132_v16 = vld [vmem:[#allocation2 + $0x180] sm:$0xff] }
 0x2fa   :  { %6681 = vmatmul.mubr.msk.f32.gmra.mrb[74].mxu0 %vm700_vm4, %v3478_v11  ;;  %v1863_v27 = vpop.permute.xlu1 %1862  ;;  %892 = vst.msk [vmem:[#allocation3 + $0x570] sm:$0xff] %vm700_vm4, %v828_v6  ;;  %v3505_v6 = vld [vmem:[#allocation3 + $0x160] sm:$0xff] }
 0x2fb   :  { %2022 = vst.msk [vmem:[#allocation3 + $0x318] sm:$0xff] %vm1988_vm7, %v1863_v27  ;;  %6683 = vmatprep.mubr.msk.f32.mxu0 %vm700_vm4, %v3481_v34  ;;  %v3144_v45 = vpop.permute.xlu0 %3143  ;;  %v7157_v34 = vmov 0.0  }
 0x2fc   :  { %3302 = vst.msk [vmem:[#allocation3 + $0x320] sm:$0xff] %vm1988_vm7, %v3144_v45  ;;  %v9086_v47 = vpop.f32.mrb[28].mxu1  ;;  %1497 = vrot.lane.b32.xlu1 %v8545_v4, %s7156_s27  ;;  %v9100_v4 = vld [vmem:[#allocation2 + $0x179] sm:$0xff] }
 0x2fd   :  { %v4041_v53 = vpop.f32.mrb[29].mxu1  ;;  %2779 = vrot.lane.b32.xlu0 %v9090_v21, %s7156_s27  ;;  %765 = vst.msk [vmem:[#allocation2 + $0x200] sm:$0xff] %vm700_vm4, %v7157_v34  ;;  %766 = vst.msk [vmem:[#allocation2 + $0x208] sm:$0xff] %vm700_vm4, %v7157_v34  ;;  %v829_v45 = vld [vmem:[#allocation2 + $0x1d8] sm:$0xff] }
 0x2fe   :  { %6684 = vmatmul.mubr.msk.f32.gmra.mrb[76].mxu0 %vm700_vm4, %v3484_v2  ;;  %v1095_v49 = vpop.permute.xlu1 %1094  ;;  %767 = vst.msk [vmem:[#allocation2 + $0x210] sm:$0xff] %vm700_vm4, %v7157_v34  ;;  %768 = vst.msk [vmem:[#allocation2 + $0x218] sm:$0xff] %vm700_vm4, %v7157_v34 }
 0x2ff   :  { %1253 = vst.msk [vmem:[#allocation3 + $0x330] sm:$0xff] %vm1218_vm5, %v1095_v49  ;;  %6686 = vmatprep.mubr.msk.f32.mxu0 %vm700_vm4, %v3487_v9  ;;  %v2378_v38 = vpop.permute.xlu0 %2377  ;;  %v3499_v49 = vld [vmem:[#allocation3 + $0x130] sm:$0xff] }
 0x300   :  { %2535 = vst.msk [vmem:[#allocation3 + $0x338] sm:$0xff] %vm1218_vm5, %v2378_v38  ;;  %1882 = vrot.lane.b32.xlu1 %v9016_v3, %s7154_s21  ;;  %v2110_v3 = vld [vmem:[#allocation2 + $0x1d9] sm:$0xff] }
 0x301   :  { %3163 = vrot.lane.b32.xlu0 %v9100_v4, %s7154_s21  ;;  %769 = vst.msk [vmem:[#allocation2 + $0x220] sm:$0xff] %vm700_vm4, %v7157_v34  ;;  %2174 = vst.msk [vmem:[#allocation3 + $0x560] sm:$0xff] %vm700_vm4, %v2110_v3  ;;  %v6665_v9 = vpop.f32.mrb[62].mxu0  ;;  %v3508_v34 = vld [vmem:[#allocation3 + $0x178] sm:$0xff] }
 0x302   :  { %6687 = vmatmul.mubr.msk.f32.gmra.mrb[78].mxu0 %vm700_vm4, %v3490_v51  ;;  %v1480_v26 = vpop.permute.xlu1 %1479  ;;  %v3560_v27 = vld [vmem:[#allocation3 + $0x318] sm:$0xff]  ;;  %893 = vst.msk [vmem:[#allocation3 + $0x588] sm:$0xff] %vm700_vm4, %v829_v45 }
 0x303   :  { %1638 = vst.msk [vmem:[#allocation3 + $0x330] sm:$0xff] %vm1603_vm6, %v1480_v26  ;;  %6689 = vmatprep.mubr.msk.f32.mxu0 %vm700_vm4, %v3493_v22  ;;  %v2762_v42 = vpop.permute.xlu0 %2761  ;;  %v3561_v18 = vld [vmem:[#allocation3 + $0x320] sm:$0xff]  ;;  %v7126_v51 = vld [vmem:[%s11088_s2] ss:$0 sm:$0xff]  ;;  %v691_v22 = vpop.f32.mrb[63].mxu0 }
 0x304   :  { %2919 = vst.msk [vmem:[#allocation3 + $0x338] sm:$0xff] %vm1603_vm6, %v2762_v42  ;;  %v9109_v11 = vpop.f32.mrb[30].mxu1  ;;  %1114 = vrot.lane.b32.xlu1 %v8992_v23, %s7155_s22  ;;  %4117 = vmatprep.mubr.f32.mxu1 %v3561_v18  ;;  %v3496_v23 = vld [vmem:[#allocation3 + $0x118] sm:$0xff]  ;;  %v697_v26 = vadd.f32 %v7126_v51, %v6665_v9  ;;  %v692_v42 = vadd.f32 %v7126_v51, %v691_v22  ;;  %v3502_v18 = vld [vmem:[#allocation3 + $0x148] sm:$0xff] }
 0x305   :  { %v4046_v53 = vpop.f32.mrb[31].mxu1  ;;  %2397 = vrot.lane.b32.xlu0 %v8598_v52, %s7155_s22  ;;  %4118 = vmatmul.mubr.f32.gmra.mrb[60].mxu1 %v3560_v27  ;;  %v9144_v27 = vld [vmem:[#allocation2 + $0x181] sm:$0xff]  ;;  %v3514_v9 = vld [vmem:[#allocation3 + $0x1a8] sm:$0xff] }
 0x306   :  { %6690 = vmatmul.mubr.msk.f32.gmra.mrb[80].mxu0 %vm700_vm4, %v3496_v23  ;;  %v1865_v2 = vpop.permute.xlu1 %1864  ;;  %764 = vst.msk [vmem:[#allocation2 + $0x1f8] sm:$0xff] %vm700_vm4, %v697_v26  ;;  %763 = vst.msk [vmem:[#allocation2 + $0x1f0] sm:$0xff] %vm700_vm4, %v692_v42  ;;  %v3511_v53 = vld [vmem:[#allocation3 + $0x190] sm:$0xff] }
 0x307   :  { %2023 = vst.msk [vmem:[#allocation3 + $0x330] sm:$0xff] %vm1988_vm7, %v1865_v2  ;;  %6692 = vmatprep.mubr.msk.f32.mxu0 %vm700_vm4, %v3499_v49  ;;  %v3146_v38 = vpop.permute.xlu0 %3145 }
 0x308   :  { %3303 = vst.msk [vmem:[#allocation3 + $0x338] sm:$0xff] %vm1988_vm7, %v3146_v38  ;;  %1499 = vrot.lane.b32.xlu1 %v8547_v57, %s7156_s27 }
 0x309   :  { %2781 = vrot.lane.b32.xlu0 %v9132_v16, %s7156_s27 }
 0x30a   :  { %6693 = vmatmul.mubr.msk.f32.gmra.mrb[82].mxu0 %vm700_vm4, %v3502_v18  ;;  %v1097_v3 = vpop.permute.xlu1 %1096  ;;  %v9176_v18 = vld [vmem:[#allocation2 + $0x188] sm:$0xff] }
 0x30b   :  { %1254 = vst.msk [vmem:[#allocation3 + $0x348] sm:$0xff] %vm1218_vm5, %v1097_v3  ;;  %6695 = vmatprep.mubr.msk.f32.mxu0 %vm700_vm4, %v3505_v6  ;;  %v2380_v57 = vpop.permute.xlu0 %2379  ;;  %v3520_v6 = vld [vmem:[#allocation3 + $0x1d8] sm:$0xff] }
 0x30c   :  { %2536 = vst.msk [vmem:[#allocation3 + $0x350] sm:$0xff] %vm1218_vm5, %v2380_v57  ;;  %1884 = vrot.lane.b32.xlu1 %v9049_v28, %s7154_s21 }
 0x30d   :  { %3165 = vrot.lane.b32.xlu0 %v9144_v27, %s7154_s21  ;;  %v9154_v49 = vld [vmem:[#allocation2 + $0x1fa] sm:$0xff]  ;;  %v9160_v38 = vld [vmem:[#allocation2 + $0x1ea] sm:$0xff]  ;;  %v9162_v51 = vld [vmem:[#allocation2 + $0x1f2] sm:$0xff] }
 0x30e   :  { %6696 = vmatmul.mubr.msk.f32.gmra.mrb[84].mxu0 %vm700_vm4, %v3508_v34  ;;  %v1482_v45 = vpop.permute.xlu1 %1481  ;;  %v3563_v28 = vld [vmem:[#allocation3 + $0x330] sm:$0xff]  ;;  %3456 = vst.msk [vmem:[#allocation3 + $0x598] sm:$0xff] %vm700_vm4, %v9154_v49  ;;  %3454 = vst.msk [vmem:[#allocation3 + $0x568] sm:$0xff] %vm700_vm4, %v9160_v38 }
 0x30f   :  { %1639 = vst.msk [vmem:[#allocation3 + $0x348] sm:$0xff] %vm1603_vm6, %v1482_v45  ;;  %6698 = vmatprep.mubr.msk.f32.mxu0 %vm700_vm4, %v3511_v53  ;;  %v2764_v23 = vpop.permute.xlu0 %2763  ;;  %v3564_v2 = vld [vmem:[#allocation3 + $0x338] sm:$0xff]  ;;  %v3523_v34 = vld [vmem:[#allocation3 + $0x1f0] sm:$0xff] }
 0x310   :  { %2920 = vst.msk [vmem:[#allocation3 + $0x350] sm:$0xff] %vm1603_vm6, %v2764_v23  ;;  %1116 = vrot.lane.b32.xlu1 %v9024_v1, %s7155_s22  ;;  %4122 = vmatprep.mubr.f32.mxu1 %v3564_v2  ;;  %v3517_v1 = vld [vmem:[#allocation3 + $0x1c0] sm:$0xff] }
 0x311   :  { %2399 = vrot.lane.b32.xlu0 %v8663_v43, %s7155_s22  ;;  %4123 = vmatmul.mubr.f32.gmra.mrb[62].mxu1 %v3563_v28  ;;  %3455 = vst.msk [vmem:[#allocation3 + $0x580] sm:$0xff] %vm700_vm4, %v9162_v51  ;;  %v3529_v23 = vld [vmem:[#allocation3 + $0x220] sm:$0xff] }
 0x312   :  { %6699 = vmatmul.mubr.msk.f32.gmra.mrb[86].mxu0 %vm700_vm4, %v3514_v9  ;;  %v1867_v26 = vpop.permute.xlu1 %1866  ;;  %v2111_v2 = vld [vmem:[#allocation2 + $0x1e1] sm:$0xff] }
 0x313   :  { %2024 = vst.msk [vmem:[#allocation3 + $0x348] sm:$0xff] %vm1988_vm7, %v1867_v26  ;;  %6701 = vmatprep.mubr.msk.f32.mxu0 %vm700_vm4, %v3517_v1  ;;  %v3148_v22 = vpop.permute.xlu0 %3147  ;;  %v2112_v26 = vld [vmem:[#allocation2 + $0x1e9] sm:$0xff]  ;;  %v830_v1 = vld [vmem:[#allocation2 + $0x1e0] sm:$0xff] }
 0x314   :  { %3304 = vst.msk [vmem:[#allocation3 + $0x350] sm:$0xff] %vm1988_vm7, %v3148_v22  ;;  %v9172_v42 = vpop.f32.mrb[32].mxu1  ;;  %1501 = vrot.lane.b32.xlu1 %v8596_v12, %s7156_s27  ;;  %v3526_v12 = vld [vmem:[#allocation3 + $0x208] sm:$0xff] }
 0x315   :  { %v4051_v3 = vpop.f32.mrb[33].mxu1  ;;  %2783 = vrot.lane.b32.xlu0 %v9176_v18, %s7156_s27  ;;  %2175 = vst.msk [vmem:[#allocation3 + $0x578] sm:$0xff] %vm700_vm4, %v2111_v2  ;;  %2176 = vst.msk [vmem:[#allocation3 + $0x590] sm:$0xff] %vm700_vm4, %v2112_v26  ;;  %v3541_v2 = vld [vmem:[#allocation3 + $0x280] sm:$0xff]  ;;  %v3547_v26 = vld [vmem:[#allocation3 + $0x2b0] sm:$0xff] }
 0x316   :  { %6702 = vmatmul.mubr.msk.f32.gmra.mrb[88].mxu0 %vm700_vm4, %v3520_v6  ;;  %v1099_v57 = vpop.permute.xlu1 %1098  ;;  %894 = vst.msk [vmem:[#allocation3 + $0x5a0] sm:$0xff] %vm700_vm4, %v830_v1  ;;  %v831_v3 = vld [vmem:[#allocation2 + $0x1e8] sm:$0xff] }
 0x317   :  { %1255 = vst.msk [vmem:[#allocation3 + $0x360] sm:$0xff] %vm1218_vm5, %v1099_v57  ;;  %6704 = vmatprep.mubr.msk.f32.mxu0 %vm700_vm4, %v3523_v34  ;;  %v2382_v45 = vpop.permute.xlu0 %2381  ;;  %v3532_v57 = vld [vmem:[#allocation3 + $0x238] sm:$0xff] }
 0x318   :  { %2537 = vst.msk [vmem:[#allocation3 + $0x368] sm:$0xff] %vm1218_vm5, %v2382_v45  ;;  %1886 = vrot.lane.b32.xlu1 %v9090_v21, %s7154_s21  ;;  %v3535_v45 = vld [vmem:[#allocation3 + $0x250] sm:$0xff] }
 0x319   :  { %3167 = vrot.lane.b32.xlu0 %v8747_v44, %s7154_s21  ;;  %895 = vst.msk [vmem:[#allocation3 + $0x5b8] sm:$0xff] %vm700_vm4, %v831_v3  ;;  %v3550_v3 = vld [vmem:[#allocation3 + $0x2c8] sm:$0xff] }
 0x31a   :  { %6705 = vmatmul.mubr.msk.f32.gmra.mrb[90].mxu0 %vm700_vm4, %v3526_v12  ;;  %v1484_v53 = vpop.permute.xlu1 %1483  ;;  %v3566_v22 = vld [vmem:[#allocation3 + $0x348] sm:$0xff] }
 0x31b   :  { %1640 = vst.msk [vmem:[#allocation3 + $0x360] sm:$0xff] %vm1603_vm6, %v1484_v53  ;;  %6707 = vmatprep.mubr.msk.f32.mxu0 %vm700_vm4, %v3529_v23  ;;  %v2766_v28 = vpop.permute.xlu0 %2765  ;;  %v3567_v9 = vld [vmem:[#allocation3 + $0x350] sm:$0xff]  ;;  %v9208_v12 = vld [vmem:[#allocation2 + $0x190] sm:$0xff] }
 0x31c   :  { %2921 = vst.msk [vmem:[#allocation3 + $0x368] sm:$0xff] %vm1603_vm6, %v2766_v28  ;;  %v9193_v21 = vpop.f32.mrb[34].mxu1  ;;  %1118 = vrot.lane.b32.xlu1 %v9062_v13, %s7155_s22  ;;  %4127 = vmatprep.mubr.f32.mxu1 %v3567_v9  ;;  %v3538_v53 = vld [vmem:[#allocation3 + $0x268] sm:$0xff] }
 0x31d   :  { %v4056_v6 = vpop.f32.mrb[35].mxu1  ;;  %2401 = vrot.lane.b32.xlu0 %v8665_v59, %s7155_s22  ;;  %4128 = vmatmul.mubr.f32.gmra.mrb[64].mxu1 %v3566_v22 }
 0x31e   :  { %6708 = vmatmul.mubr.msk.f32.gmra.mrb[92].mxu0 %vm700_vm4, %v3532_v57  ;;  %v1869_v34 = vpop.permute.xlu1 %1868  ;;  %v3553_v57 = vld [vmem:[#allocation3 + $0x2e0] sm:$0xff] }
 0x31f   :  { %2025 = vst.msk [vmem:[#allocation3 + $0x360] sm:$0xff] %vm1988_vm7, %v1869_v34  ;;  %6710 = vmatprep.mubr.msk.f32.mxu0 %vm700_vm4, %v3535_v45  ;;  %v3150_v13 = vpop.permute.xlu0 %3149 }
 0x320   :  { %3305 = vst.msk [vmem:[#allocation3 + $0x368] sm:$0xff] %vm1988_vm7, %v3150_v13  ;;  %1503 = vrot.lane.b32.xlu1 %v8598_v52, %s7156_s27  ;;  %v3544_v52 = vld [vmem:[#allocation3 + $0x298] sm:$0xff] }
 0x321   :  { %2785 = vrot.lane.b32.xlu0 %v9208_v12, %s7156_s27 }
 0x322   :  { %6711 = vmatmul.mubr.msk.f32.gmra.mrb[94].mxu0 %vm700_vm4, %v3538_v53  ;;  %v1101_v23 = vpop.permute.xlu1 %1100  ;;  %v3556_v53 = vld [vmem:[#allocation3 + $0x2f8] sm:$0xff] }
 0x323   :  { %1256 = vst.msk [vmem:[#allocation3 + $0x378] sm:$0xff] %vm1218_vm5, %v1101_v23  ;;  %6713 = vmatprep.mubr.msk.f32.mxu0 %vm700_vm4, %v3541_v2  ;;  %v2384_v28 = vpop.permute.xlu0 %2383  ;;  %v3559_v2 = vld [vmem:[#allocation3 + $0x310] sm:$0xff] }
 0x324   :  { %2538 = vst.msk [vmem:[#allocation3 + $0x380] sm:$0xff] %vm1218_vm5, %v2384_v28  ;;  %1888 = vrot.lane.b32.xlu1 %v9132_v16, %s7154_s21 }
 0x325   :  { %3169 = vrot.lane.b32.xlu0 %v8811_v5, %s7154_s21 }
 0x326   :  { %6714 = vmatmul.mubr.msk.f32.gmra.mrb[96].mxu0 %vm700_vm4, %v3544_v52  ;;  %v1486_v9 = vpop.permute.xlu1 %1485  ;;  %v3569_v16 = vld [vmem:[#allocation3 + $0x360] sm:$0xff] }
 0x327   :  { %1641 = vst.msk [vmem:[#allocation3 + $0x378] sm:$0xff] %vm1603_vm6, %v1486_v9  ;;  %6716 = vmatprep.mubr.msk.f32.mxu0 %vm700_vm4, %v3547_v26  ;;  %v2768_v1 = vpop.permute.xlu0 %2767  ;;  %v3570_v22 = vld [vmem:[#allocation3 + $0x368] sm:$0xff]  ;;  %v3565_v9 = vld [vmem:[#allocation3 + $0x340] sm:$0xff] }
 0x328   :  { %2922 = vst.msk [vmem:[#allocation3 + $0x380] sm:$0xff] %vm1603_vm6, %v2768_v1  ;;  %1120 = vrot.lane.b32.xlu1 %v9100_v4, %s7155_s22  ;;  %4132 = vmatprep.mubr.f32.mxu1 %v3570_v22  ;;  %v9236_v4 = vld [vmem:[#allocation2 + $0x198] sm:$0xff] }
 0x329   :  { %2403 = vrot.lane.b32.xlu0 %v8723_v50, %s7155_s22  ;;  %4133 = vmatmul.mubr.f32.gmra.mrb[66].mxu1 %v3569_v16  ;;  %v2113_v26 = vld [vmem:[#allocation2 + $0x1f1] sm:$0xff]  ;;  %v2114_v1 = vld [vmem:[#allocation2 + $0x1f9] sm:$0xff] }
 0x32a   :  { %6717 = vmatmul.mubr.msk.f32.gmra.mrb[98].mxu0 %vm700_vm4, %v3550_v3  ;;  %v1871_v6 = vpop.permute.xlu1 %1870  ;;  %2177 = vst.msk [vmem:[#allocation3 + $0x5a8] sm:$0xff] %vm700_vm4, %v2113_v26  ;;  %2178 = vst.msk [vmem:[#allocation3 + $0x5c0] sm:$0xff] %vm700_vm4, %v2114_v1  ;;  %v833_v3 = vld [vmem:[#allocation2 + $0x1f8] sm:$0xff] }
 0x32b   :  { %2026 = vst.msk [vmem:[#allocation3 + $0x378] sm:$0xff] %vm1988_vm7, %v1871_v6  ;;  %6719 = vmatprep.mubr.msk.f32.mxu0 %vm700_vm4, %v3553_v57  ;;  %v3152_v34 = vpop.permute.xlu0 %3151  ;;  %v3583_v1 = vld [vmem:[#allocation3 + $0x3d0] sm:$0xff] }
 0x32c   :  { %3306 = vst.msk [vmem:[#allocation3 + $0x380] sm:$0xff] %vm1988_vm7, %v3152_v34  ;;  %v9232_v45 = vpop.f32.mrb[36].mxu1  ;;  %1505 = vrot.lane.b32.xlu1 %v8663_v43, %s7156_s27  ;;  %v3562_v43 = vld [vmem:[#allocation3 + $0x328] sm:$0xff] }
 0x32d   :  { %v4061_v13 = vpop.f32.mrb[37].mxu1  ;;  %2787 = vrot.lane.b32.xlu0 %v9236_v4, %s7156_s27  ;;  %897 = vst.msk [vmem:[#allocation3 + $0x5e8] sm:$0xff] %vm700_vm4, %v833_v3 }
 0x32e   :  { %6720 = vmatmul.mubr.msk.f32.gmra.mrb[100].mxu0 %vm700_vm4, %v3556_v53  ;;  %v1103_v23 = vpop.permute.xlu1 %1102  ;;  %v3568_v13 = vld [vmem:[#allocation3 + $0x358] sm:$0xff] }
 0x32f   :  { %1257 = vst.msk [vmem:[#allocation3 + $0x390] sm:$0xff] %vm1218_vm5, %v1103_v23  ;;  %6722 = vmatprep.mubr.msk.f32.mxu0 %vm700_vm4, %v3559_v2  ;;  %v2386_v28 = vpop.permute.xlu0 %2385  ;;  %v3571_v23 = vld [vmem:[#allocation3 + $0x370] sm:$0xff]  ;;  %v9268_v2 = vld [vmem:[#allocation2 + $0x1a0] sm:$0xff] }
 0x330   :  { %2539 = vst.msk [vmem:[#allocation3 + $0x398] sm:$0xff] %vm1218_vm5, %v2386_v28  ;;  %1890 = vrot.lane.b32.xlu1 %v9176_v18, %s7154_s21  ;;  %v832_v18 = vld [vmem:[#allocation2 + $0x1f0] sm:$0xff] }
 0x331   :  { %3171 = vrot.lane.b32.xlu0 %v8813_v29, %s7154_s21  ;;  %896 = vst.msk [vmem:[#allocation3 + $0x5d0] sm:$0xff] %vm700_vm4, %v832_v18  ;;  %v3574_v28 = vld [vmem:[#allocation3 + $0x388] sm:$0xff] }
 0x332   :  { %6723 = vmatmul.mubr.msk.f32.gmra.mrb[102].mxu0 %vm700_vm4, %v3562_v43  ;;  %v1488_v52 = vpop.permute.xlu1 %1487  ;;  %v3572_v57 = vld [vmem:[#allocation3 + $0x378] sm:$0xff]  ;;  %v3586_v18 = vld [vmem:[#allocation3 + $0x3e8] sm:$0xff] }
 0x333   :  { %1642 = vst.msk [vmem:[#allocation3 + $0x390] sm:$0xff] %vm1603_vm6, %v1488_v52  ;;  %6725 = vmatprep.mubr.msk.f32.mxu0 %vm700_vm4, %v3565_v9  ;;  %v2770_v22 = vpop.permute.xlu0 %2769  ;;  %v3573_v16 = vld [vmem:[#allocation3 + $0x380] sm:$0xff] }
 0x334   :  { %2923 = vst.msk [vmem:[#allocation3 + $0x398] sm:$0xff] %vm1603_vm6, %v2770_v22  ;;  %v9254_v6 = vpop.f32.mrb[38].mxu1  ;;  %1122 = vrot.lane.b32.xlu1 %v9144_v27, %s7155_s22  ;;  %4137 = vmatprep.mubr.f32.mxu1 %v3573_v16  ;;  %v3577_v52 = vld [vmem:[#allocation3 + $0x3a0] sm:$0xff] }
 0x335   :  { %v4066_v34 = vpop.f32.mrb[39].mxu1  ;;  %2405 = vrot.lane.b32.xlu0 %v8725_v60, %s7155_s22  ;;  %4138 = vmatmul.mubr.f32.gmra.mrb[68].mxu1 %v3572_v57  ;;  %v3589_v57 = vld [vmem:[#allocation3 + $0x400] sm:$0xff] }
 0x336   :  { %6726 = vmatmul.mubr.msk.f32.gmra.mrb[104].mxu0 %vm700_vm4, %v3568_v13  ;;  %v1873_v53 = vpop.permute.xlu1 %1872 }
 0x337   :  { %2027 = vst.msk [vmem:[#allocation3 + $0x390] sm:$0xff] %vm1988_vm7, %v1873_v53  ;;  %6728 = vmatprep.mubr.msk.f32.mxu0 %vm700_vm4, %v3571_v23  ;;  %v3154_v27 = vpop.permute.xlu0 %3153  ;;  %v3592_v23 = vld [vmem:[#allocation3 + $0x418] sm:$0xff] }
 0x338   :  { %3307 = vst.msk [vmem:[#allocation3 + $0x398] sm:$0xff] %vm1988_vm7, %v3154_v27  ;;  %1507 = vrot.lane.b32.xlu1 %v8665_v59, %s7156_s27  ;;  %v3580_v59 = vld [vmem:[#allocation3 + $0x3b8] sm:$0xff] }
 0x339   :  { %2789 = vrot.lane.b32.xlu0 %v9268_v2, %s7156_s27 }
 0x33a   :  { %6729 = vmatmul.mubr.msk.f32.gmra.mrb[106].mxu0 %vm700_vm4, %v3574_v28  ;;  %v1105_v43 = vpop.permute.xlu1 %1104  ;;  %v3595_v28 = vld [vmem:[#allocation3 + $0x430] sm:$0xff] }
 0x33b   :  { %1258 = vst.msk [vmem:[#allocation3 + $0x3a8] sm:$0xff] %vm1218_vm5, %v1105_v43  ;;  %6731 = vmatprep.mubr.msk.f32.mxu0 %vm700_vm4, %v3577_v52  ;;  %v2388_v9 = vpop.permute.xlu0 %2387 }
 0x33c   :  { %2540 = vst.msk [vmem:[#allocation3 + $0x3b0] sm:$0xff] %vm1218_vm5, %v2388_v9  ;;  %1892 = vrot.lane.b32.xlu1 %v9208_v12, %s7154_s21  ;;  %v3601_v9 = vld [vmem:[#allocation3 + $0x460] sm:$0xff] }
 0x33d   :  { %3173 = vrot.lane.b32.xlu0 %v8887_v25, %s7154_s21 }
 0x33e   :  { %6732 = vmatmul.mubr.msk.f32.gmra.mrb[108].mxu0 %vm700_vm4, %v3580_v59  ;;  %v1490_v26 = vpop.permute.xlu1 %1489  ;;  %v3575_v12 = vld [vmem:[#allocation3 + $0x390] sm:$0xff] }
 0x33f   :  { %1643 = vst.msk [vmem:[#allocation3 + $0x3a8] sm:$0xff] %vm1603_vm6, %v1490_v26  ;;  %6734 = vmatprep.mubr.msk.f32.mxu0 %vm700_vm4, %v3583_v1  ;;  %v2772_v22 = vpop.permute.xlu0 %2771  ;;  %v3576_v16 = vld [vmem:[#allocation3 + $0x398] sm:$0xff] }
 0x340   :  { %2924 = vst.msk [vmem:[#allocation3 + $0x3b0] sm:$0xff] %vm1603_vm6, %v2772_v22  ;;  %1124 = vrot.lane.b32.xlu1 %v8747_v44, %s7155_s22  ;;  %4142 = vmatprep.mubr.f32.mxu1 %v3576_v16  ;;  %v9296_v44 = vld [vmem:[#allocation2 + $0x1a8] sm:$0xff]  ;;  %v3604_v16 = vld [vmem:[#allocation3 + $0x478] sm:$0xff] }
 0x341   :  { %2407 = vrot.lane.b32.xlu0 %v8787_v46, %s7155_s22  ;;  %4143 = vmatmul.mubr.f32.gmra.mrb[70].mxu1 %v3575_v12 }
 0x342   :  { %6735 = vmatmul.mubr.msk.f32.gmra.mrb[110].mxu0 %vm700_vm4, %v3586_v18  ;;  %v1875_v3 = vpop.permute.xlu1 %1874  ;;  %v3607_v18 = vld [vmem:[#allocation3 + $0x490] sm:$0xff] }
 0x343   :  { %2028 = vst.msk [vmem:[#allocation3 + $0x3a8] sm:$0xff] %vm1988_vm7, %v1875_v3  ;;  %6737 = vmatprep.mubr.msk.f32.mxu0 %vm700_vm4, %v3589_v57  ;;  %v3156_v34 = vpop.permute.xlu0 %3155  ;;  %v9326_v57 = vld [vmem:[#allocation2 + $0x201] sm:$0xff] }
 0x344   :  { %3308 = vst.msk [vmem:[#allocation3 + $0x3b0] sm:$0xff] %vm1988_vm7, %v3156_v34  ;;  %v9292_v13 = vpop.f32.mrb[40].mxu1  ;;  %1509 = vrot.lane.b32.xlu1 %v8723_v50, %s7156_s27  ;;  %v3598_v50 = vld [vmem:[#allocation3 + $0x448] sm:$0xff] }
 0x345   :  { %v4071_v53 = vpop.f32.mrb[41].mxu1  ;;  %2791 = vrot.lane.b32.xlu0 %v9296_v44, %s7156_s27  ;;  %v3610_v34 = vld [vmem:[#allocation3 + $0x4a8] sm:$0xff]  ;;  %2179 = vst.msk [vmem:[#allocation3 + $0x5d8] sm:$0xff] %vm700_vm4, %v9326_v57 }
 0x346   :  { %6738 = vmatmul.mubr.msk.f32.gmra.mrb[112].mxu0 %vm700_vm4, %v3592_v23  ;;  %v1107_v27 = vpop.permute.xlu1 %1106  ;;  %v3613_v23 = vld [vmem:[#allocation3 + $0x4c0] sm:$0xff] }
 0x347   :  { %1259 = vst.msk [vmem:[#allocation3 + $0x3c0] sm:$0xff] %vm1218_vm5, %v1107_v27  ;;  %6740 = vmatprep.mubr.msk.f32.mxu0 %vm700_vm4, %v3595_v28  ;;  %v2390_v43 = vpop.permute.xlu0 %2389  ;;  %v3619_v27 = vld [vmem:[#allocation3 + $0x4f0] sm:$0xff]  ;;  %v3616_v28 = vld [vmem:[#allocation3 + $0x4d8] sm:$0xff] }
 0x348   :  { %2541 = vst.msk [vmem:[#allocation3 + $0x3c8] sm:$0xff] %vm1218_vm5, %v2390_v43  ;;  %1894 = vrot.lane.b32.xlu1 %v9236_v4, %s7154_s21 }
 0x349   :  { %3175 = vrot.lane.b32.xlu0 %v8889_v10, %s7154_s21 }
 0x34a   :  { %6741 = vmatmul.mubr.msk.f32.gmra.mrb[114].mxu0 %vm700_vm4, %v3598_v50  ;;  %v1492_v52 = vpop.permute.xlu1 %1491  ;;  %v3578_v4 = vld [vmem:[#allocation3 + $0x3a8] sm:$0xff] }
 0x34b   :  { %1644 = vst.msk [vmem:[#allocation3 + $0x3c0] sm:$0xff] %vm1603_vm6, %v1492_v52  ;;  %6743 = vmatprep.mubr.msk.f32.mxu0 %vm700_vm4, %v3601_v9  ;;  %v2774_v59 = vpop.permute.xlu0 %2773  ;;  %v3579_v26 = vld [vmem:[#allocation3 + $0x3b0] sm:$0xff]  ;;  %v3622_v9 = vld [vmem:[#allocation3 + $0x508] sm:$0xff] }
 0x34c   :  { %2925 = vst.msk [vmem:[#allocation3 + $0x3c8] sm:$0xff] %vm1603_vm6, %v2774_v59  ;;  %v9312_v1 = vpop.f32.mrb[42].mxu1  ;;  %1126 = vrot.lane.b32.xlu1 %v8811_v5, %s7155_s22  ;;  %4147 = vmatprep.mubr.f32.mxu1 %v3579_v26  ;;  %v9324_v5 = vld [vmem:[#allocation2 + $0x1b0] sm:$0xff]  ;;  %v3625_v59 = vld [vmem:[#allocation3 + $0x520] sm:$0xff] }
 0x34d   :  { %v4076_v22 = vpop.f32.mrb[43].mxu1  ;;  %2409 = vrot.lane.b32.xlu0 %v8789_v20, %s7155_s22  ;;  %4148 = vmatmul.mubr.f32.gmra.mrb[72].mxu1 %v3578_v4 }
 0x34e   :  { %6744 = vmatmul.mubr.msk.f32.gmra.mrb[116].mxu0 %vm700_vm4, %v3604_v16  ;;  %v1877_v12 = vpop.permute.xlu1 %1876  ;;  %v3628_v22 = vld [vmem:[#allocation3 + $0x538] sm:$0xff] }
 0x34f   :  { %2029 = vst.msk [vmem:[#allocation3 + $0x3c0] sm:$0xff] %vm1988_vm7, %v1877_v12  ;;  %6746 = vmatprep.mubr.msk.f32.mxu0 %vm700_vm4, %v3607_v18  ;;  %v3158_v3 = vpop.permute.xlu0 %3157  ;;  %v3631_v12 = vld [vmem:[#allocation3 + $0x550] sm:$0xff]  ;;  %v9358_v18 = vld [vmem:[#allocation2 + $0x209] sm:$0xff] }
 0x350   :  { %3309 = vst.msk [vmem:[#allocation3 + $0x3c8] sm:$0xff] %vm1988_vm7, %v3158_v3  ;;  %1511 = vrot.lane.b32.xlu1 %v8725_v60, %s7156_s27 }
 0x351   :  { %2793 = vrot.lane.b32.xlu0 %v9324_v5, %s7156_s27  ;;  %2180 = vst.msk [vmem:[#allocation3 + $0x5f0] sm:$0xff] %vm700_vm4, %v9358_v18 }
 0x352   :  { %6747 = vmatmul.mubr.msk.f32.gmra.mrb[118].mxu0 %vm700_vm4, %v3610_v34  ;;  %v1109_v53 = vpop.permute.xlu1 %1108 }
 0x353   :  { %1260 = vst.msk [vmem:[#allocation3 + $0x3d8] sm:$0xff] %vm1218_vm5, %v1109_v53  ;;  %6749 = vmatprep.mubr.msk.f32.mxu0 %vm700_vm4, %v3613_v23  ;;  %v2392_v60 = vpop.permute.xlu0 %2391  ;;  %v3637_v23 = vld [vmem:[#allocation3 + $0x580] sm:$0xff] }
 0x354   :  { %2542 = vst.msk [vmem:[#allocation3 + $0x3e0] sm:$0xff] %vm1218_vm5, %v2392_v60  ;;  %1896 = vrot.lane.b32.xlu1 %v9268_v2, %s7154_s21  ;;  %v9370_v60 = vld [vmem:[#allocation2 + $0x202] sm:$0xff] }
 0x355   :  { %3177 = vrot.lane.b32.xlu0 %v8958_v15, %s7154_s21  ;;  %3457 = vst.msk [vmem:[#allocation3 + $0x5b0] sm:$0xff] %vm700_vm4, %v9370_v60 }
 0x356   :  { %6750 = vmatmul.mubr.msk.f32.gmra.mrb[120].mxu0 %vm700_vm4, %v3616_v28  ;;  %v1494_v43 = vpop.permute.xlu1 %1493  ;;  %v3581_v2 = vld [vmem:[#allocation3 + $0x3c0] sm:$0xff] }
 0x357   :  { %1645 = vst.msk [vmem:[#allocation3 + $0x3d8] sm:$0xff] %vm1603_vm6, %v1494_v43  ;;  %v2776_v50 = vpop.permute.xlu0 %2775  ;;  %v3582_v52 = vld [vmem:[#allocation3 + $0x3c8] sm:$0xff]  ;;  %6752 = vmatprep.mubr.msk.f32.mxu0 %vm700_vm4, %v3619_v27 }
 0x358   :  { %2926 = vst.msk [vmem:[#allocation3 + $0x3e0] sm:$0xff] %vm1603_vm6, %v2776_v50  ;;  %1128 = vrot.lane.b32.xlu1 %v8813_v29, %s7155_s22  ;;  %4152 = vmatprep.mubr.f32.mxu1 %v3582_v52  ;;  %v9356_v29 = vld [vmem:[#allocation2 + $0x1b8] sm:$0xff]  ;;  %v3640_v50 = vld [vmem:[#allocation3 + $0x598] sm:$0xff] }
 0x359   :  { %2411 = vrot.lane.b32.xlu0 %v8855_v30, %s7155_s22  ;;  %4153 = vmatmul.mubr.f32.gmra.mrb[74].mxu1 %v3581_v2 }
 0x35a   :  { %v1879_v26 = vpop.permute.xlu1 %1878  ;;  %6753 = vmatmul.mubr.msk.f32.gmra.mrb[122].mxu0 %vm700_vm4, %v3622_v9 }
 0x35b   :  { %2030 = vst.msk [vmem:[#allocation3 + $0x3d8] sm:$0xff] %vm1988_vm7, %v1879_v26  ;;  %v3160_v4 = vpop.permute.xlu0 %3159  ;;  %6755 = vmatprep.mubr.msk.f32.mxu0 %vm700_vm4, %v3625_v59  ;;  %v2617_v26 = vld [vmem:[#allocation2 + $0x1c0] sm:$0xff] }
 0x35c   :  { %3310 = vst.msk [vmem:[#allocation3 + $0x3e0] sm:$0xff] %vm1988_vm7, %v3160_v4  ;;  %v9352_v16 = vpop.f32.mrb[44].mxu1  ;;  %1513 = vrot.lane.b32.xlu1 %v8787_v46, %s7156_s27  ;;  %v3634_v46 = vld [vmem:[#allocation3 + $0x568] sm:$0xff] }
 0x35d   :  { %v4081_v3 = vpop.f32.mrb[45].mxu1  ;;  %2795 = vrot.lane.b32.xlu0 %v9356_v29, %s7156_s27 }
 0x35e   :  { %v1111_v34 = vpop.permute.xlu1 %1110  ;;  %6756 = vmatmul.mubr.msk.f32.gmra.mrb[124].mxu0 %vm700_vm4, %v3628_v22 }
 0x35f   :  { %1261 = vst.msk [vmem:[#allocation3 + $0x3f0] sm:$0xff] %vm1218_vm5, %v1111_v34  ;;  %v2394_v53 = vpop.permute.xlu0 %2393  ;;  %6758 = vmatprep.mubr.msk.f32.mxu0 %vm700_vm4, %v3631_v12  ;;  %v9398_v12 = vld [vmem:[#allocation2 + $0x20a] sm:$0xff] }
 0x360   :  { %2543 = vst.msk [vmem:[#allocation3 + $0x3f8] sm:$0xff] %vm1218_vm5, %v2394_v53  ;;  %1898 = vrot.lane.b32.xlu1 %v9296_v44, %s7154_s21 }
 0x361   :  { %3179 = vrot.lane.b32.xlu0 %v8960_v17, %s7154_s21  ;;  %3458 = vst.msk [vmem:[#allocation3 + $0x5c8] sm:$0xff] %vm700_vm4, %v9398_v12 }
 0x362   :  { %v1496_v27 = vpop.permute.xlu1 %1495  ;;  %6759 = vmatmul.mubr.msk.f32.gmra.mrb[126].mxu0 %vm700_vm4, %v3634_v46  ;;  %v3584_v52 = vld [vmem:[#allocation3 + $0x3d8] sm:$0xff] }
 0x363   :  { %1646 = vst.msk [vmem:[#allocation3 + $0x3f0] sm:$0xff] %vm1603_vm6, %v1496_v27  ;;  %v2778_v28 = vpop.permute.xlu0 %2777  ;;  %v3585_v43 = vld [vmem:[#allocation3 + $0x3e0] sm:$0xff]  ;;  %6761 = vmatprep.mubr.msk.f32.mxu0 %vm700_vm4, %v3637_v23 }
 0x364   :  { %2927 = vst.msk [vmem:[#allocation3 + $0x3f8] sm:$0xff] %vm1603_vm6, %v2778_v28  ;;  %v9380_v44 = vpop.f32.mrb[46].mxu1  ;;  %1130 = vrot.lane.b32.xlu1 %v8887_v25, %s7155_s22  ;;  %4157 = vmatprep.mubr.f32.mxu1 %v3585_v43  ;;  %v2618_v27 = vld [vmem:[#allocation2 + $0x1c8] sm:$0xff] }
 0x365   :  { %v4086_v9 = vpop.f32.mrb[47].mxu1  ;;  %2413 = vrot.lane.b32.xlu0 %v8857_v36, %s7155_s22  ;;  %4158 = vmatmul.mubr.f32.gmra.mrb[76].mxu1 %v3584_v52 }
 0x366   :  { %v1881_v2 = vpop.permute.xlu1 %1880  ;;  %6762 = vmatmul.mubr.msk.f32.gmra.mrb[128].mxu0 %vm700_vm4, %v3640_v50  ;;  %v9421_v50 = vld [vmem:[#allocation2 + $0x1c9] sm:$0xff] }
 0x367   :  { %2031 = vst.msk [vmem:[#allocation3 + $0x3f0] sm:$0xff] %vm1988_vm7, %v1881_v2  ;;  %v3162_v59 = vpop.permute.xlu0 %3161 }
 0x368   :  { %3311 = vst.msk [vmem:[#allocation3 + $0x3f8] sm:$0xff] %vm1988_vm7, %v3162_v59  ;;  %1515 = vrot.lane.b32.xlu1 %v8789_v20, %s7156_s27 }
 0x369   :  { %2797 = vrot.lane.b32.xlu0 %v2617_v26, %s7156_s27 }
 0x36a   :  { %v1113_v25 = vpop.permute.xlu1 %1112 }
 0x36b   :  { %1262 = vst.msk [vmem:[#allocation3 + $0x408] sm:$0xff] %vm1218_vm5, %v1113_v25  ;;  %v2396_v4 = vpop.permute.xlu0 %2395 }
 0x36c   :  { %2544 = vst.msk [vmem:[#allocation3 + $0x410] sm:$0xff] %vm1218_vm5, %v2396_v4  ;;  %v9394_v22 = vpop.f32.mrb[48].mxu1  ;;  %1900 = vrot.lane.b32.xlu1 %v9324_v5, %s7154_s21  ;;  %v2619_v4 = vld [vmem:[#allocation2 + $0x1d0] sm:$0xff] }
 0x36d   :  { %v4091_v3 = vpop.f32.mrb[49].mxu1  ;;  %3181 = vrot.lane.b32.xlu0 %v9028_v7, %s7154_s21 }
 0x36e   :  { %v1498_v20 = vpop.permute.xlu1 %1497  ;;  %v3587_v5 = vld [vmem:[#allocation3 + $0x3f0] sm:$0xff] }
 0x36f   :  { %1647 = vst.msk [vmem:[#allocation3 + $0x408] sm:$0xff] %vm1603_vm6, %v1498_v20  ;;  %v2780_v34 = vpop.permute.xlu0 %2779  ;;  %v3588_v53 = vld [vmem:[#allocation3 + $0x3f8] sm:$0xff]  ;;  %v9439_v20 = vld [vmem:[#allocation2 + $0x1d1] sm:$0xff] }
 0x370   :  { %2928 = vst.msk [vmem:[#allocation3 + $0x410] sm:$0xff] %vm1603_vm6, %v2780_v34  ;;  %1132 = vrot.lane.b32.xlu1 %v8889_v10, %s7155_s22  ;;  %4162 = vmatprep.mubr.f32.mxu1 %v3588_v53 }
 0x371   :  { %2415 = vrot.lane.b32.xlu0 %v8932_v32, %s7155_s22  ;;  %4163 = vmatmul.mubr.f32.gmra.mrb[78].mxu1 %v3587_v5 }
 0x372   :  { %v1883_v46 = vpop.permute.xlu1 %1882 }
 0x373   :  { %2032 = vst.msk [vmem:[#allocation3 + $0x408] sm:$0xff] %vm1988_vm7, %v1883_v46  ;;  %v3164_v23 = vpop.permute.xlu0 %3163 }
 0x374   :  { %3312 = vst.msk [vmem:[#allocation3 + $0x410] sm:$0xff] %vm1988_vm7, %v3164_v23  ;;  %1517 = vrot.lane.b32.xlu1 %v8855_v30, %s7156_s27 }
 0x375   :  { %2799 = vrot.lane.b32.xlu0 %v2618_v27, %s7156_s27 }
 0x376   :  { %v1115_v28 = vpop.permute.xlu1 %1114 }
 0x377   :  { %1263 = vst.msk [vmem:[#allocation3 + $0x420] sm:$0xff] %vm1218_vm5, %v1115_v28  ;;  %v2398_v10 = vpop.permute.xlu0 %2397 }
 0x378   :  { %2545 = vst.msk [vmem:[#allocation3 + $0x428] sm:$0xff] %vm1218_vm5, %v2398_v10  ;;  %v9417_v43 = vpop.f32.mrb[50].mxu1  ;;  %1902 = vrot.lane.b32.xlu1 %v9356_v29, %s7154_s21  ;;  %v2620_v10 = vld [vmem:[#allocation2 + $0x1d8] sm:$0xff] }
 0x379   :  { %v4096_v52 = vpop.f32.mrb[51].mxu1  ;;  %3183 = vrot.lane.b32.xlu0 %v9421_v50, %s7154_s21 }
 0x37a   :  { %v1500_v30 = vpop.permute.xlu1 %1499  ;;  %v3590_v59 = vld [vmem:[#allocation3 + $0x408] sm:$0xff] }
 0x37b   :  { %1648 = vst.msk [vmem:[#allocation3 + $0x420] sm:$0xff] %vm1603_vm6, %v1500_v30  ;;  %v2782_v9 = vpop.permute.xlu0 %2781  ;;  %v3591_v2 = vld [vmem:[#allocation3 + $0x410] sm:$0xff] }
 0x37c   :  { %2929 = vst.msk [vmem:[#allocation3 + $0x428] sm:$0xff] %vm1603_vm6, %v2782_v9  ;;  %1134 = vrot.lane.b32.xlu1 %v8958_v15, %s7155_s22  ;;  %4167 = vmatprep.mubr.f32.mxu1 %v3591_v2  ;;  %v9461_v9 = vld [vmem:[#allocation2 + $0x1d9] sm:$0xff] }
 0x37d   :  { %2417 = vrot.lane.b32.xlu0 %v8934_v54, %s7155_s22  ;;  %4168 = vmatmul.mubr.f32.gmra.mrb[80].mxu1 %v3590_v59 }
 0x37e   :  { %v1885_v29 = vpop.permute.xlu1 %1884 }
 0x37f   :  { %2033 = vst.msk [vmem:[#allocation3 + $0x420] sm:$0xff] %vm1988_vm7, %v1885_v29  ;;  %v3166_v25 = vpop.permute.xlu0 %3165 }
 0x380   :  { %3313 = vst.msk [vmem:[#allocation3 + $0x428] sm:$0xff] %vm1988_vm7, %v3166_v25  ;;  %1519 = vrot.lane.b32.xlu1 %v8857_v36, %s7156_s27 }
 0x381   :  { %2801 = vrot.lane.b32.xlu0 %v2619_v4, %s7156_s27 }
 0x382   :  { %v1117_v3 = vpop.permute.xlu1 %1116 }
 0x383   :  { %1264 = vst.msk [vmem:[#allocation3 + $0x438] sm:$0xff] %vm1218_vm5, %v1117_v3  ;;  %v2400_v15 = vpop.permute.xlu0 %2399 }
 0x384   :  { %2546 = vst.msk [vmem:[#allocation3 + $0x440] sm:$0xff] %vm1218_vm5, %v2400_v15  ;;  %1904 = vrot.lane.b32.xlu1 %v2617_v26, %s7154_s21  ;;  %v2621_v15 = vld [vmem:[#allocation2 + $0x1e0] sm:$0xff] }
 0x385   :  { %3185 = vrot.lane.b32.xlu0 %v9439_v20, %s7154_s21 }
 0x386   :  { %v1502_v34 = vpop.permute.xlu1 %1501  ;;  %v3593_v5 = vld [vmem:[#allocation3 + $0x420] sm:$0xff] }
 0x387   :  { %1649 = vst.msk [vmem:[#allocation3 + $0x438] sm:$0xff] %vm1603_vm6, %v1502_v34  ;;  %v2784_v36 = vpop.permute.xlu0 %2783  ;;  %v3594_v53 = vld [vmem:[#allocation3 + $0x428] sm:$0xff] }
 0x388   :  { %2930 = vst.msk [vmem:[#allocation3 + $0x440] sm:$0xff] %vm1603_vm6, %v2784_v36  ;;  %1136 = vrot.lane.b32.xlu1 %v8960_v17, %s7155_s22  ;;  %4172 = vmatprep.mubr.f32.mxu1 %v3594_v53  ;;  %v9479_v36 = vld [vmem:[#allocation2 + $0x1e1] sm:$0xff] }
 0x389   :  { %2419 = vrot.lane.b32.xlu0 %v9002_v58, %s7155_s22  ;;  %4173 = vmatmul.mubr.f32.gmra.mrb[82].mxu1 %v3593_v5 }
 0x38a   :  { %v9449_v26 = vpop.f32.mrb[52].mxu1  ;;  %v1887_v46 = vpop.permute.xlu1 %1886 }
 0x38b   :  { %2034 = vst.msk [vmem:[#allocation3 + $0x438] sm:$0xff] %vm1988_vm7, %v1887_v46  ;;  %v4101_v23 = vpop.f32.mrb[53].mxu1  ;;  %v3168_v28 = vpop.permute.xlu0 %3167 }
 0x38c   :  { %3314 = vst.msk [vmem:[#allocation3 + $0x440] sm:$0xff] %vm1988_vm7, %v3168_v28  ;;  %1521 = vrot.lane.b32.xlu1 %v8932_v32, %s7156_s27 }
 0x38d   :  { %2803 = vrot.lane.b32.xlu0 %v2620_v10, %s7156_s27 }
 0x38e   :  { %v1119_v17 = vpop.permute.xlu1 %1118 }
 0x38f   :  { %1265 = vst.msk [vmem:[#allocation3 + $0x450] sm:$0xff] %vm1218_vm5, %v1119_v17  ;;  %v2402_v52 = vpop.permute.xlu0 %2401 }
 0x390   :  { %2547 = vst.msk [vmem:[#allocation3 + $0x458] sm:$0xff] %vm1218_vm5, %v2402_v52  ;;  %1906 = vrot.lane.b32.xlu1 %v2618_v27, %s7154_s21  ;;  %v9459_v30 = vpop.f32.mrb[64].mxu0  ;;  %v2622_v52 = vld [vmem:[#allocation2 + $0x1e8] sm:$0xff] }
 0x391   :  { %3187 = vrot.lane.b32.xlu0 %v9461_v9, %s7154_s21  ;;  %v3956_v2 = vpop.f32.mrb[65].mxu0 }
 0x392   :  { %v1504_v32 = vpop.permute.xlu1 %1503  ;;  %v3596_v27 = vld [vmem:[#allocation3 + $0x438] sm:$0xff] }
 0x393   :  { %1650 = vst.msk [vmem:[#allocation3 + $0x450] sm:$0xff] %vm1603_vm6, %v1504_v32  ;;  %v2786_v59 = vpop.permute.xlu0 %2785  ;;  %v3597_v29 = vld [vmem:[#allocation3 + $0x440] sm:$0xff] }
 0x394   :  { %2931 = vst.msk [vmem:[#allocation3 + $0x458] sm:$0xff] %vm1603_vm6, %v2786_v59  ;;  %1138 = vrot.lane.b32.xlu1 %v9028_v7, %s7155_s22  ;;  %4177 = vmatprep.mubr.f32.mxu1 %v3597_v29  ;;  %v9499_v59 = vld [vmem:[#allocation2 + $0x1e9] sm:$0xff] }
 0x395   :  { %2421 = vrot.lane.b32.xlu0 %v9004_v41, %s7155_s22  ;;  %4178 = vmatmul.mubr.f32.gmra.mrb[84].mxu1 %v3596_v27 }
 0x396   :  { %v1889_v25 = vpop.permute.xlu1 %1888 }
 0x397   :  { %2035 = vst.msk [vmem:[#allocation3 + $0x450] sm:$0xff] %vm1988_vm7, %v1889_v25  ;;  %v3170_v3 = vpop.permute.xlu0 %3169 }
 0x398   :  { %3315 = vst.msk [vmem:[#allocation3 + $0x458] sm:$0xff] %vm1988_vm7, %v3170_v3  ;;  %1523 = vrot.lane.b32.xlu1 %v8934_v54, %s7156_s27 }
 0x399   :  { %2805 = vrot.lane.b32.xlu0 %v2621_v15, %s7156_s27 }
 0x39a   :  { %v1121_v34 = vpop.permute.xlu1 %1120 }
 0x39b   :  { %1266 = vst.msk [vmem:[#allocation3 + $0x468] sm:$0xff] %vm1218_vm5, %v1121_v34  ;;  %v2404_v7 = vpop.permute.xlu0 %2403 }
 0x39c   :  { %2548 = vst.msk [vmem:[#allocation3 + $0x470] sm:$0xff] %vm1218_vm5, %v2404_v7  ;;  %1908 = vrot.lane.b32.xlu1 %v2619_v4, %s7154_s21  ;;  %v9513_v7 = vld [vmem:[#allocation2 + $0x1f0] sm:$0xff] }
 0x39d   :  { %3189 = vrot.lane.b32.xlu0 %v9479_v36, %s7154_s21 }
 0x39e   :  { %v1506_v53 = vpop.permute.xlu1 %1505  ;;  %v3599_v46 = vld [vmem:[#allocation3 + $0x450] sm:$0xff] }
 0x39f   :  { %1651 = vst.msk [vmem:[#allocation3 + $0x468] sm:$0xff] %vm1603_vm6, %v1506_v53  ;;  %v2788_v54 = vpop.permute.xlu0 %2787  ;;  %v3600_v5 = vld [vmem:[#allocation3 + $0x458] sm:$0xff] }
 0x3a0   :  { %2932 = vst.msk [vmem:[#allocation3 + $0x470] sm:$0xff] %vm1603_vm6, %v2788_v54  ;;  %1140 = vrot.lane.b32.xlu1 %v9421_v50, %s7155_s22  ;;  %4182 = vmatprep.mubr.f32.mxu1 %v3600_v5  ;;  %v9520_v54 = vld [vmem:[#allocation2 + $0x1f1] sm:$0xff] }
 0x3a1   :  { %2423 = vrot.lane.b32.xlu0 %v9074_v24, %s7155_s22  ;;  %4183 = vmatmul.mubr.f32.gmra.mrb[86].mxu1 %v3599_v46 }
 0x3a2   :  { %v1891_v4 = vpop.permute.xlu1 %1890  ;;  %v9489_v23 = vpop.f32.mrb[54].mxu1 }
 0x3a3   :  { %2036 = vst.msk [vmem:[#allocation3 + $0x468] sm:$0xff] %vm1988_vm7, %v1891_v4  ;;  %v4106_v28 = vpop.f32.mrb[55].mxu1  ;;  %v3172_v17 = vpop.permute.xlu0 %3171 }
 0x3a4   :  { %3316 = vst.msk [vmem:[#allocation3 + $0x470] sm:$0xff] %vm1988_vm7, %v3172_v17  ;;  %1525 = vrot.lane.b32.xlu1 %v9002_v58, %s7156_s27 }
 0x3a5   :  { %2807 = vrot.lane.b32.xlu0 %v2622_v52, %s7156_s27 }
 0x3a6   :  { %v1123_v50 = vpop.permute.xlu1 %1122 }
 0x3a7   :  { %1267 = vst.msk [vmem:[#allocation3 + $0x480] sm:$0xff] %vm1218_vm5, %v1123_v50  ;;  %v2406_v2 = vpop.permute.xlu0 %2405 }
 0x3a8   :  { %2549 = vst.msk [vmem:[#allocation3 + $0x488] sm:$0xff] %vm1218_vm5, %v2406_v2  ;;  %1910 = vrot.lane.b32.xlu1 %v2620_v10, %s7154_s21  ;;  %v3959_v32 = vpop.f32.mrb[66].mxu0  ;;  %v9536_v2 = vld [vmem:[#allocation2 + $0x1f8] sm:$0xff] }
 0x3a9   :  { %3191 = vrot.lane.b32.xlu0 %v9499_v59, %s7154_s21  ;;  %v3961_v29 = vpop.f32.mrb[67].mxu0 }
 0x3aa   :  { %v1508_v27 = vpop.permute.xlu1 %1507  ;;  %v3602_v3 = vld [vmem:[#allocation3 + $0x468] sm:$0xff] }
 0x3ab   :  { %1652 = vst.msk [vmem:[#allocation3 + $0x480] sm:$0xff] %vm1603_vm6, %v1508_v27  ;;  %v2790_v58 = vpop.permute.xlu0 %2789  ;;  %v3603_v25 = vld [vmem:[#allocation3 + $0x470] sm:$0xff] }
 0x3ac   :  { %2933 = vst.msk [vmem:[#allocation3 + $0x488] sm:$0xff] %vm1603_vm6, %v2790_v58  ;;  %1142 = vrot.lane.b32.xlu1 %v9439_v20, %s7155_s22  ;;  %4187 = vmatprep.mubr.f32.mxu1 %v3603_v25  ;;  %v9543_v58 = vld [vmem:[#allocation2 + $0x1f9] sm:$0xff] }
 0x3ad   :  { %2425 = vrot.lane.b32.xlu0 %v9076_v48, %s7155_s22  ;;  %4188 = vmatmul.mubr.f32.gmra.mrb[88].mxu1 %v3602_v3  ;;  %v9550_v25 = vld [vmem:[%s11090_s4] ss:$0 sm:$0xff] }
 0x3ae   :  { %v1893_v10 = vpop.permute.xlu1 %1892 }
 0x3af   :  { %2037 = vst.msk [vmem:[#allocation3 + $0x480] sm:$0xff] %vm1988_vm7, %v1893_v10  ;;  %v3174_v34 = vpop.permute.xlu0 %3173  ;;  %v3960_v10 = vadd.f32 %v9550_v25, %v3959_v32 }
 0x3b0   :  { %3317 = vst.msk [vmem:[#allocation3 + $0x488] sm:$0xff] %vm1988_vm7, %v3174_v34  ;;  %1527 = vrot.lane.b32.xlu1 %v9004_v41, %s7156_s27 }
 0x3b1   :  { %2809 = vrot.lane.b32.xlu0 %v9513_v7, %s7156_s27 }
 0x3b2   :  { %v1125_v20 = vpop.permute.xlu1 %1124 }
 0x3b3   :  { %1268 = vst.msk [vmem:[#allocation3 + $0x498] sm:$0xff] %vm1218_vm5, %v1125_v20  ;;  %v2408_v53 = vpop.permute.xlu0 %2407 }
 0x3b4   :  { %2550 = vst.msk [vmem:[#allocation3 + $0x4a0] sm:$0xff] %vm1218_vm5, %v2408_v53  ;;  %1912 = vrot.lane.b32.xlu1 %v2621_v15, %s7154_s21 }
 0x3b5   :  { %3193 = vrot.lane.b32.xlu0 %v9520_v54, %s7154_s21 }
 0x3b6   :  { %v1510_v5 = vpop.permute.xlu1 %1509  ;;  %v3605_v4 = vld [vmem:[#allocation3 + $0x480] sm:$0xff] }
 0x3b7   :  { %1653 = vst.msk [vmem:[#allocation3 + $0x498] sm:$0xff] %vm1603_vm6, %v1510_v5  ;;  %v2792_v41 = vpop.permute.xlu0 %2791  ;;  %v3606_v46 = vld [vmem:[#allocation3 + $0x488] sm:$0xff]  ;;  %v9562_v5 = vld [vmem:[%s11091_s5 + $0x8] sm:$0xff] }
 0x3b8   :  { %2934 = vst.msk [vmem:[#allocation3 + $0x4a0] sm:$0xff] %vm1603_vm6, %v2792_v41  ;;  %1144 = vrot.lane.b32.xlu1 %v9461_v9, %s7155_s22  ;;  %4192 = vmatprep.mubr.f32.mxu1 %v3606_v46 }
 0x3b9   :  { %2427 = vrot.lane.b32.xlu0 %v9160_v38, %s7155_s22  ;;  %4193 = vmatmul.mubr.f32.gmra.mrb[90].mxu1 %v3605_v4 }
 0x3ba   :  { %v1895_v15 = vpop.permute.xlu1 %1894  ;;  %v9530_v28 = vpop.f32.mrb[56].mxu1 }
 0x3bb   :  { %2038 = vst.msk [vmem:[#allocation3 + $0x498] sm:$0xff] %vm1988_vm7, %v1895_v15  ;;  %v4111_v17 = vpop.f32.mrb[57].mxu1  ;;  %v3176_v50 = vpop.permute.xlu0 %3175  ;;  %v9571_v15 = vld [vmem:[#allocation2 + $0x200] sm:$0xff] }
 0x3bc   :  { %3318 = vst.msk [vmem:[#allocation3 + $0x4a0] sm:$0xff] %vm1988_vm7, %v3176_v50  ;;  %1529 = vrot.lane.b32.xlu1 %v9074_v24, %s7156_s27  ;;  %v3970_v17 = vadd.f32 %v9550_v25, %v8606_v61  ;;  %v9589_v61 = vld [vmem:[%s11091_s5 + $0x18] sm:$0xff] }
 0x3bd   :  { %2811 = vrot.lane.b32.xlu0 %v9536_v2, %s7156_s27 }
 0x3be   :  { %v1127_v9 = vpop.permute.xlu1 %1126 }
 0x3bf   :  { %1269 = vst.msk [vmem:[#allocation3 + $0x4b0] sm:$0xff] %vm1218_vm5, %v1127_v9  ;;  %v2410_v29 = vpop.permute.xlu0 %2409 }
 0x3c0   :  { %2551 = vst.msk [vmem:[#allocation3 + $0x4b8] sm:$0xff] %vm1218_vm5, %v2410_v29  ;;  %1914 = vrot.lane.b32.xlu1 %v2622_v52, %s7154_s21  ;;  %v3964_v27 = vpop.f32.mrb[68].mxu0  ;;  %v3955_v52 = vadd.f32 %v9550_v25, %v9459_v30  ;;  %v9569_v30 = vld [vmem:[%s11091_s5] sm:$0xff] }
 0x3c1   :  { %3195 = vrot.lane.b32.xlu0 %v9543_v58, %s7154_s21  ;;  %v3966_v24 = vpop.f32.mrb[69].mxu0  ;;  %v3965_v29 = vadd.f32 %v9550_v25, %v3964_v27  ;;  %v9596_v27 = vld [vmem:[%s11091_s5 + $0x10] sm:$0xff] }
 0x3c2   :  { %v1512_v3 = vpop.permute.xlu1 %1511  ;;  %v3608_v32 = vld [vmem:[#allocation3 + $0x498] sm:$0xff] }
 0x3c3   :  { %1654 = vst.msk [vmem:[#allocation3 + $0x4b0] sm:$0xff] %vm1603_vm6, %v1512_v3  ;;  %v2794_v34 = vpop.permute.xlu0 %2793  ;;  %v3609_v20 = vld [vmem:[#allocation3 + $0x4a0] sm:$0xff] }
 0x3c4   :  { %2935 = vst.msk [vmem:[#allocation3 + $0x4b8] sm:$0xff] %vm1603_vm6, %v2794_v34  ;;  %1146 = vrot.lane.b32.xlu1 %v9479_v36, %s7155_s22  ;;  %4197 = vmatprep.mubr.f32.mxu1 %v3609_v20  ;;  %v6676_v53 = vpop.f32.mrb[70].mxu0  ;;  %v3643_v20 = vld [vmem:[#allocation3 + $0x5b0] sm:$0xff] }
 0x3c5   :  { %v4345_v41 = vadd.f32 %v6676_v53, %v3960_v10  ;;  %2429 = vrot.lane.b32.xlu0 %v9162_v51, %s7155_s22  ;;  %4198 = vmatmul.mubr.f32.gmra.mrb[92].mxu1 %v3608_v32  ;;  %v4339_v46 = vpop.f32.mrb[71].mxu0 }
 0x3c6   :  { %v4340_v36 = vadd.f32 %v4339_v46, %v3955_v52  ;;  %v1897_v4 = vpop.permute.xlu1 %1896  ;;  %6764 = vmatprep.mubr.msk.f32.mxu0 %vm700_vm4, %v3643_v20  ;;  %v3646_v46 = vld [vmem:[#allocation3 + $0x5c8] sm:$0xff]  ;;  %v9630_v20 = vld [vmem:[%s11091_s5 + $0x20] sm:$0xff] }
 0x3c7   :  { %v9576_v50 = vmul.f32 %v9562_v5, %v4345_v41  ;;  %2039 = vst.msk [vmem:[#allocation3 + $0x4b0] sm:$0xff] %vm1988_vm7, %v1897_v4  ;;  %v3178_v9 = vpop.permute.xlu0 %3177  ;;  %6765 = vmatmul.mubr.msk.f32.gmra.mrb[130].mxu0 %vm700_vm4, %v3646_v46  ;;  %v3990_v46 = vadd.f32 %v9550_v25, %v8733_v40  ;;  %v9649_v40 = vld [vmem:[%s11091_s5 + $0x38] sm:$0xff] }
 0x3c8   :  { %v9581_v24 = vmul.f32 %v9569_v30, %v4340_v36  ;;  %3319 = vst.msk [vmem:[#allocation3 + $0x4b8] sm:$0xff] %vm1988_vm7, %v3178_v9  ;;  %1531 = vrot.lane.b32.xlu1 %v9076_v48, %s7156_s27  ;;  %v6679_v3 = vpop.f32.mrb[72].mxu0  ;;  %v3980_v36 = vadd.f32 %v9550_v25, %v8675_v37  ;;  %v3975_v9 = vadd.f32 %v9550_v25, %v8620_v33  ;;  %v9621_v37 = vld [vmem:[%s11091_s5 + $0x28] sm:$0xff]  ;;  %11113 = vst [vmem:[#allocation9_spill] sm:$0xff] %v9649_v40 }
 0x3c9   :  { %v4355_v10 = vadd.f32 %v6679_v3, %v3970_v17  ;;  %2813 = vrot.lane.b32.xlu0 %v9571_v15, %s7156_s27  ;;  %v4349_v34 = vpop.f32.mrb[73].mxu0 }
 0x3ca   :  { %v4350_v52 = vadd.f32 %v4349_v34, %v3965_v29  ;;  %v1129_v53 = vpop.permute.xlu1 %1128 }
 0x3cb   :  { %v9602_v32 = vmul.f32 %v9589_v61, %v4355_v10  ;;  %1270 = vst.msk [vmem:[#allocation3 + $0x4c8] sm:$0xff] %vm1218_vm5, %v1129_v53  ;;  %v2412_v41 = vpop.permute.xlu0 %2411 }
 0x3cc   :  { %v9608_v4 = vmul.f32 %v9596_v27, %v4350_v52  ;;  %2552 = vst.msk [vmem:[#allocation3 + $0x4d0] sm:$0xff] %vm1218_vm5, %v2412_v41  ;;  %1916 = vrot.lane.b32.xlu1 %v9513_v7, %s7154_s21  ;;  %v9613_v17 = vpop.f32.mrb[58].mxu1  ;;  %v4010_v7 = vadd.f32 %v9550_v25, %v8865_v55  ;;  %v9709_v55 = vld [vmem:[%s11091_s5 + $0x58] sm:$0xff] }
 0x3cd   :  { %v6682_v29 = vpop.f32.mrb[74].mxu0  ;;  %v4116_v3 = vpop.f32.mrb[59].mxu1  ;;  %3197 = vrot.lane.b32.xlu0 %v9326_v57, %s7154_s21  ;;  %11117 = vst [vmem:[#allocation13_spill] sm:$0xff] %v9709_v55 }
 0x3ce   :  { %v4365_v10 = vadd.f32 %v6682_v29, %v3980_v36  ;;  %v4359_v34 = vpop.f32.mrb[75].mxu0  ;;  %v1514_v33 = vpop.permute.xlu1 %1513  ;;  %v3611_v36 = vld [vmem:[#allocation3 + $0x4b0] sm:$0xff] }
 0x3cf   :  { %v4360_v52 = vadd.f32 %v4359_v34, %v3975_v9  ;;  %1655 = vst.msk [vmem:[#allocation3 + $0x4c8] sm:$0xff] %vm1603_vm6, %v1514_v33  ;;  %v2796_v53 = vpop.permute.xlu0 %2795  ;;  %v3612_v41 = vld [vmem:[#allocation3 + $0x4b8] sm:$0xff]  ;;  %v3985_v9 = vadd.f32 %v9550_v25, %v8691_v19  ;;  %v9656_v34 = vld [vmem:[%s11091_s5 + $0x30] sm:$0xff]  ;;  %v9658_v33 = vld [vmem:[#allocation2 + $0x208] sm:$0xff] }
 0x3d0   :  { %v9636_v57 = vmul.f32 %v9621_v37, %v4365_v10  ;;  %2936 = vst.msk [vmem:[#allocation3 + $0x4d0] sm:$0xff] %vm1603_vm6, %v2796_v53  ;;  %1148 = vrot.lane.b32.xlu1 %v9499_v59, %s7155_s22  ;;  %4202 = vmatprep.mubr.f32.mxu1 %v3612_v41  ;;  %11114 = vst [vmem:[#allocation10_spill] sm:$0xff] %v9656_v34 }
 0x3d1   :  { %v9644_v29 = vmul.f32 %v9630_v20, %v4360_v52  ;;  %v6685_v3 = vpop.f32.mrb[76].mxu0  ;;  %2431 = vrot.lane.b32.xlu0 %v9154_v49, %s7155_s22  ;;  %4203 = vmatmul.mubr.f32.gmra.mrb[94].mxu1 %v3611_v36  ;;  %v4000_v36 = vadd.f32 %v9550_v25, %v8797_v0 }
 0x3d2   :  { %v4375_v10 = vadd.f32 %v6685_v3, %v3990_v46  ;;  %v4369_v59 = vpop.f32.mrb[77].mxu0  ;;  %v1899_v19 = vpop.permute.xlu1 %1898  ;;  %v3995_v3 = vadd.f32 %v9550_v25, %v8755_v35 }
 0x3d3   :  { %v4370_v53 = vadd.f32 %v4369_v59, %v3985_v9  ;;  %2040 = vst.msk [vmem:[#allocation3 + $0x4c8] sm:$0xff] %vm1988_vm7, %v1899_v19  ;;  %v3180_v41 = vpop.permute.xlu0 %3179  ;;  %v9679_v59 = vld [vmem:[%s11091_s5 + $0x48] sm:$0xff] }
 0x3d4   :  { %v9666_v46 = vmul.f32 %v9649_v40, %v4375_v10  ;;  %3320 = vst.msk [vmem:[#allocation3 + $0x4d0] sm:$0xff] %vm1988_vm7, %v3180_v41  ;;  %1533 = vrot.lane.b32.xlu1 %v9160_v38, %s7156_s27  ;;  %11115 = vst [vmem:[#allocation11_spill] sm:$0xff] %v9679_v59  ;;  %v9686_v38 = vld [vmem:[%s11091_s5 + $0x40] sm:$0xff] }
 0x3d5   :  { %v9674_v52 = vmul.f32 %v9656_v34, %v4370_v53  ;;  %v6688_v9 = vpop.f32.mrb[78].mxu0  ;;  %2815 = vrot.lane.b32.xlu0 %v9658_v33, %s7156_s27  ;;  %11116 = vst [vmem:[#allocation12_spill] sm:$0xff] %v9686_v38 }
 0x3d6   :  { %v4385_v0 = vadd.f32 %v6688_v9, %v4000_v36  ;;  %v4379_v10 = vpop.f32.mrb[79].mxu0  ;;  %v1131_v35 = vpop.permute.xlu1 %1130  ;;  %v4005_v9 = vadd.f32 %v9550_v25, %v8823_v14 }
 0x3d7   :  { %v4380_v53 = vadd.f32 %v4379_v10, %v3995_v3  ;;  %1271 = vst.msk [vmem:[#allocation3 + $0x4e0] sm:$0xff] %vm1218_vm5, %v1131_v35  ;;  %v2414_v41 = vpop.permute.xlu0 %2413 }
 0x3d8   :  { %v9694_v48 = vmul.f32 %v9679_v59, %v4385_v0  ;;  %2553 = vst.msk [vmem:[#allocation3 + $0x4e8] sm:$0xff] %vm1218_vm5, %v2414_v41  ;;  %1918 = vrot.lane.b32.xlu1 %v9536_v2, %s7154_s21  ;;  %v9699_v36 = vpop.f32.mrb[60].mxu1  ;;  %v9716_v41 = vld [vmem:[%s11091_s5 + $0x50] sm:$0xff] }
 0x3d9   :  { %v9704_v3 = vmul.f32 %v9686_v38, %v4380_v53  ;;  %v6691_v10 = vpop.f32.mrb[80].mxu0  ;;  %v4121_v0 = vpop.f32.mrb[61].mxu1  ;;  %3199 = vrot.lane.b32.xlu0 %v9358_v18, %s7154_s21  ;;  %11118 = vst [vmem:[#allocation14_spill] sm:$0xff] %v9716_v41 }
 0x3da   :  { %v4395_v35 = vadd.f32 %v6691_v10, %v4010_v7  ;;  %v4389_v2 = vpop.f32.mrb[81].mxu0  ;;  %v1516_v14 = vpop.permute.xlu1 %1515  ;;  %v4020_v0 = vadd.f32 %v9550_v25, %v8942_v39  ;;  %v3614_v7 = vld [vmem:[#allocation3 + $0x4c8] sm:$0xff]  ;;  %v9737_v39 = vld [vmem:[%s11091_s5 + $0x68] sm:$0xff] }
 0x3db   :  { %v4390_v19 = vadd.f32 %v4389_v2, %v4005_v9  ;;  %1656 = vst.msk [vmem:[#allocation3 + $0x4e0] sm:$0xff] %vm1603_vm6, %v1516_v14  ;;  %v2798_v8 = vpop.permute.xlu0 %2797  ;;  %v3615_v59 = vld [vmem:[#allocation3 + $0x4d0] sm:$0xff]  ;;  %v4015_v9 = vadd.f32 %v9550_v25, %v8899_v56  ;;  %11119 = vst [vmem:[#allocation15_spill] sm:$0xff] %v9737_v39 }
 0x3dc   :  { %v9724_v18 = vmul.f32 %v9709_v55, %v4395_v35  ;;  %2937 = vst.msk [vmem:[#allocation3 + $0x4e8] sm:$0xff] %vm1603_vm6, %v2798_v8  ;;  %1150 = vrot.lane.b32.xlu1 %v9520_v54, %s7155_s22  ;;  %4207 = vmatprep.mubr.f32.mxu1 %v3615_v59  ;;  %v9744_v59 = vld [vmem:[%s11091_s5 + $0x60] sm:$0xff] }
 0x3dd   :  { %v9732_v10 = vmul.f32 %v9716_v41, %v4390_v19  ;;  %v6694_v2 = vpop.f32.mrb[82].mxu0  ;;  %2433 = vrot.lane.b32.xlu0 %v9370_v60, %s7155_s22  ;;  %4208 = vmatmul.mubr.f32.gmra.mrb[96].mxu1 %v3614_v7  ;;  %11120 = vst [vmem:[#allocation16_spill] sm:$0xff] %v9744_v59  ;;  %v2627_v19 = vld [vmem:[#allocation2 + $0x210] sm:$0xff]  ;;  %v4030_v60 = vadd.f32 %v9550_v25, %v9012_v31  ;;  %v9760_v7 = vld [vmem:[%s11091_s5 + $0x78] sm:$0xff] }
 0x3de   :  { %v4405_v8 = vadd.f32 %v6694_v2, %v4020_v0  ;;  %v4399_v54 = vpop.f32.mrb[83].mxu0  ;;  %v1901_v56 = vpop.permute.xlu1 %1900  ;;  %v3011_v2 = vld [vmem:[#allocation2 + $0x211] sm:$0xff]  ;;  %v4025_v31 = vadd.f32 %v9550_v25, %v8970_v62  ;;  %v3396_v55 = vld [vmem:[#allocation2 + $0x21a] sm:$0xff] }
 0x3df   :  { %v4400_v14 = vadd.f32 %v4399_v54, %v4015_v9  ;;  %2041 = vst.msk [vmem:[#allocation3 + $0x4e0] sm:$0xff] %vm1988_vm7, %v1901_v56  ;;  %v3182_v53 = vpop.permute.xlu0 %3181  ;;  %v9765_v9 = vld [vmem:[%s11091_s5 + $0x70] sm:$0xff]  ;;  %v5089_v54 = vld [vmem:[%s11095_s9 + $0x88] sm:$0xff]  ;;  %v5072_v56 = vld [vmem:[%s11095_s9] sm:$0xff] }
 0x3e0   :  { %v9752_v0 = vmul.f32 %v9737_v39, %v4405_v8  ;;  %3321 = vst.msk [vmem:[#allocation3 + $0x4e8] sm:$0xff] %vm1988_vm7, %v3182_v53  ;;  %1535 = vrot.lane.b32.xlu1 %v9162_v51, %s7156_s27  ;;  %v5088_v51 = vld [vmem:[%s11095_s9 + $0x80] sm:$0xff] }
 0x3e1   :  { %v9770_v8 = vmul.f32 %v9744_v59, %v4400_v14  ;;  %v6697_v53 = vpop.f32.mrb[84].mxu0  ;;  %2817 = vrot.lane.b32.xlu0 %v2627_v19, %s7156_s27  ;;  %v6944_v14 = vpack.c.bf16 %v5089_v54, %v5088_v51  ;;  %v5073_v19 = vld [vmem:[%s11095_s9 + $0x8] sm:$0xff]  ;;  %v3395_v59 = vld [vmem:[#allocation2 + $0x212] sm:$0xff]  ;;  %3460 = vst.msk [vmem:[#allocation3 + $0x5f8] sm:$0xff] %vm700_vm4, %v3396_v55  ;;  %v9814_v51 = vld [vmem:[%s11091_s5 + $0x80] sm:$0xff] }
 0x3e2   :  { %v4415_v35 = vadd.f32 %v6697_v53, %v4030_v60  ;;  %v4409_v62 = vpop.f32.mrb[85].mxu0  ;;  %v1133_v39 = vpop.permute.xlu1 %1132  ;;  %v6946_v34 = vpack.c.bf16 %v5073_v19, %v5072_v56  ;;  %3459 = vst.msk [vmem:[#allocation3 + $0x5e0] sm:$0xff] %vm700_vm4, %v3395_v59  ;;  %v4040_v60 = vadd.f32 %v9550_v25, %v9086_v47  ;;  %v9808_v47 = vld [vmem:[%s11091_s5 + $0x88] sm:$0xff]  ;;  %v4045_v19 = vadd.f32 %v9550_v25, %v9109_v11 }
 0x3e3   :  { %v6896_v41 = vpack.c.bf16 %v9752_v0, %v9770_v8  ;;  %v4410_v38 = vadd.f32 %v4409_v62, %v4025_v31  ;;  %1272 = vst.msk [vmem:[#allocation3 + $0x4f8] sm:$0xff] %vm1218_vm5, %v1133_v39  ;;  %v2416_v40 = vpop.permute.xlu0 %2415  ;;  %6945 = vmatprep.subr.bf16.mxu1 %v6944_v14  ;;  %v4035_v39 = vadd.f32 %v9550_v25, %v9035_v63 }
 0x3e4   :  { %v9793_v53 = vmul.f32 %v9760_v7, %v4415_v35  ;;  %2554 = vst.msk [vmem:[#allocation3 + $0x500] sm:$0xff] %vm1218_vm5, %v2416_v40  ;;  %1920 = vrot.lane.b32.xlu1 %v9571_v15, %s7154_s21  ;;  %v9798_v31 = vpop.f32.mrb[62].mxu1  ;;  %6947 = vmatpush3.bf16.msra.mxu1 %v6946_v34 }
 0x3e5   :  { %v9803_v59 = vmul.f32 %v9765_v9, %v4410_v38  ;;  %v6700_v55 = vpop.f32.mrb[86].mxu0  ;;  %v4126_v35 = vpop.f32.mrb[63].mxu1  ;;  %3201 = vrot.lane.b32.xlu0 %v3011_v2, %s7154_s21  ;;  %v4050_v2 = vadd.f32 %v9550_v25, %v9172_v42  ;;  %v9838_v42 = vld [vmem:[%s11091_s5 + $0x90] sm:$0xff] }
 0x3e6   :  { %v4425_v15 = vadd.f32 %v6700_v55, %v4040_v60  ;;  %v4419_v40 = vpop.f32.mrb[87].mxu0  ;;  %v1518_v63 = vpop.permute.xlu1 %1517  ;;  %v3617_v14 = vld [vmem:[#allocation3 + $0x4e0] sm:$0xff]  ;;  %v9831_v55 = vld [vmem:[%s11091_s5 + $0x98] sm:$0xff] }
 0x3e7   :  { %v6900_v38 = vpack.c.bf16 %v9793_v53, %v9803_v59  ;;  %v4420_v54 = vadd.f32 %v4419_v40, %v4035_v39  ;;  %1657 = vst.msk [vmem:[#allocation3 + $0x4f8] sm:$0xff] %vm1603_vm6, %v1518_v63  ;;  %v2800_v56 = vpop.permute.xlu0 %2799  ;;  %v3618_v62 = vld [vmem:[#allocation3 + $0x4e8] sm:$0xff] }
 0x3e8   :  { %v4707_v34 = vmul.f32 %v9808_v47, %v4425_v15  ;;  %2938 = vst.msk [vmem:[#allocation3 + $0x500] sm:$0xff] %vm1603_vm6, %v2800_v56  ;;  %1152 = vrot.lane.b32.xlu1 %v9543_v58, %s7155_s22  ;;  %4212 = vmatprep.mubr.f32.mxu1 %v3618_v62  ;;  %v2628_v15 = vld [vmem:[#allocation2 + $0x218] sm:$0xff]  ;;  %v3652_v63 = vld [vmem:[#allocation3 + $0x5f8] sm:$0xff] }
 0x3e9   :  { %v4706_v60 = vmul.f32 %v9814_v51, %v4420_v54  ;;  %v6703_v39 = vpop.f32.mrb[88].mxu0  ;;  %2435 = vrot.lane.b32.xlu0 %v9398_v12, %s7155_s22  ;;  %4213 = vmatmul.mubr.f32.gmra.mrb[98].mxu1 %v3617_v14  ;;  %v3649_v40 = vld [vmem:[#allocation3 + $0x5e0] sm:$0xff]  ;;  %v4060_v12 = vadd.f32 %v9550_v25, %v9232_v45 }
 0x3ea   :  { %v4435_v58 = vadd.f32 %v6703_v39, %v4050_v2  ;;  %v4429_v35 = vpop.f32.mrb[89].mxu0  ;;  %v1903_v11 = vpop.permute.xlu1 %1902  ;;  %6767 = vmatprep.mubr.msk.f32.mxu0 %vm700_vm4, %v3649_v40  ;;  %v4055_v2 = vadd.f32 %v9550_v25, %v9193_v21  ;;  %v11121_v21 = vpack.c.bf16 %v9576_v50, %v9581_v24  ;;  %v4065_v50 = vadd.f32 %v9550_v25, %v9254_v6 }
 0x3eb   :  { %v4430_v54 = vadd.f32 %v4429_v35, %v4045_v19  ;;  %2042 = vst.msk [vmem:[#allocation3 + $0x4f8] sm:$0xff] %vm1988_vm7, %v1903_v11  ;;  %v3184_v56 = vpop.permute.xlu0 %3183  ;;  %v6870_v62 = vpack.c.bf16 %v4707_v34, %v4706_v60  ;;  %6768 = vmatmul.mubr.msk.f32.gmra.mrb[132].mxu0 %vm700_vm4, %v3652_v63  ;;  %v9855_v60 = vld [vmem:[%s11091_s5 + $0xa8] sm:$0xff]  ;;  %v3012_v35 = vld [vmem:[#allocation2 + $0x219] sm:$0xff]  ;;  %v11122_v6 = vpack.c.bf16 %v9602_v32, %v9608_v4 }
 0x3ec   :  { %v4709_v14 = vmul.f32 %v9831_v55, %v4435_v58  ;;  %3322 = vst.msk [vmem:[#allocation3 + $0x500] sm:$0xff] %vm1988_vm7, %v3184_v56  ;;  %1537 = vrot.lane.b32.xlu1 %v9154_v49, %s7156_s27  ;;  %v9861_v49 = vld [vmem:[%s11091_s5 + $0xa0] sm:$0xff]  ;;  %v4075_v32 = vadd.f32 %v9550_v25, %v9312_v1  ;;  %v11123_v1 = vpack.c.bf16 %v9636_v57, %v9644_v29 }
 0x3ed   :  { %v4708_v19 = vmul.f32 %v9838_v42, %v4430_v54  ;;  %v6706_v34 = vpop.f32.mrb[90].mxu0  ;;  %6871 = vmatprep.subr.bf16.mxu0 %v6870_v62  ;;  %2819 = vrot.lane.b32.xlu0 %v2628_v15, %s7156_s27  ;;  %v4070_v15 = vadd.f32 %v9550_v25, %v9292_v13  ;;  %v4085_v57 = vadd.f32 %v9550_v25, %v9380_v44  ;;  %v9938_v44 = vld [vmem:[%s11091_s5 + $0xd0] sm:$0xff] }
 0x3ee   :  { %v4445_v45 = vadd.f32 %v6706_v34, %v4060_v12  ;;  %v4439_v39 = vpop.f32.mrb[91].mxu0  ;;  %6873 = vmatpush3.bf16.msra.mxu0 %v11121_v21  ;;  %v1135_v58 = vpop.permute.xlu1 %1134  ;;  %v9881_v12 = vld [vmem:[%s11091_s5 + $0xb8] sm:$0xff] }
 0x3ef   :  { %v4440_v11 = vadd.f32 %v4439_v39, %v4055_v2  ;;  %1273 = vst.msk [vmem:[#allocation3 + $0x510] sm:$0xff] %vm1218_vm5, %v1135_v58  ;;  %v2418_v40 = vpop.permute.xlu0 %2417  ;;  %v6874_v63 = vpack.c.bf16 %v4709_v14, %v4708_v19  ;;  %v4080_v58 = vadd.f32 %v9550_v25, %v9352_v16 }
 0x3f0   :  { %v4711_v54 = vmul.f32 %v9855_v60, %v4445_v45  ;;  %2555 = vst.msk [vmem:[#allocation3 + $0x518] sm:$0xff] %vm1218_vm5, %v2418_v40  ;;  %v9871_v56 = vpop.f32.mrb[64].mxu1  ;;  %1922 = vrot.lane.b32.xlu1 %v9658_v33, %s7154_s21  ;;  %v9887_v33 = vld [vmem:[%s11091_s5 + $0xb0] sm:$0xff] }
 0x3f1   :  { %v4710_v24 = vmul.f32 %v9861_v49, %v4440_v11  ;;  %v6709_v62 = vpop.f32.mrb[92].mxu0  ;;  %6875 = vmatprep.subr.bf16.mxu0 %v6874_v63  ;;  %v4131_v13 = vpop.f32.mrb[65].mxu1  ;;  %3203 = vrot.lane.b32.xlu0 %v3012_v35, %s7154_s21  ;;  %v9903_v63 = vld [vmem:[%s11091_s5 + $0xc8] sm:$0xff]  ;;  %s7132_s21 = scalar_lea.vmem %s6091_s26, 32 }
 0x3f2   :  { %v4455_v14 = vadd.f32 %v6709_v62, %v4070_v15  ;;  %v4449_v2 = vpop.f32.mrb[93].mxu0  ;;  %6877 = vmatpush3.bf16.msra.mxu0 %v11122_v6  ;;  %v1520_v19 = vpop.permute.xlu1 %1519  ;;  %v3620_v11 = vld [vmem:[#allocation3 + $0x4f8] sm:$0xff]  ;;  %v9921_v6 = vld [vmem:[%s11091_s5 + $0xd8] sm:$0xff]  ;;  %p7134_p2 = scmp.lt.s32.totalorder %s7132_s21, %s7128_s28 }
 0x3f3   :  { %v4450_v34 = vadd.f32 %v4449_v2, %v4065_v50  ;;  %1658 = vst.msk [vmem:[#allocation3 + $0x510] sm:$0xff] %vm1603_vm6, %v1520_v19  ;;  %v2802_v45 = vpop.permute.xlu0 %2801  ;;  %v3621_v39 = vld [vmem:[#allocation3 + $0x500] sm:$0xff]  ;;  %v6878_v21 = vpack.c.bf16 %v4711_v54, %v4710_v24  ;;  %v9908_v54 = vld [vmem:[%s11091_s5 + $0xc0] sm:$0xff] }
 0x3f4   :  { %v4713_v35 = vmul.f32 %v9881_v12, %v4455_v14  ;;  %2939 = vst.msk [vmem:[#allocation3 + $0x518] sm:$0xff] %vm1603_vm6, %v2802_v45  ;;  %4217 = vmatprep.mubr.f32.mxu1 %v3621_v39  ;;  %v4090_v14 = vadd.f32 %v9550_v25, %v9394_v22  ;;  %v5090_v22 = vld [vmem:[%s11095_s9 + $0x90] sm:$0xff]  ;;  %p7135_p3 = por %p7134_p2, %p7133_p1 }
 0x3f5   :  { %v4712_v4 = vmul.f32 %v9887_v33, %v4450_v34  ;;  %v6712_v40 = vpop.f32.mrb[94].mxu0  ;;  %6879 = vmatprep.subr.bf16.mxu0 %v6878_v21  ;;  %4218 = vmatmul.mubr.f32.gmra.mrb[100].mxu1 %v3620_v11  ;;  %v5091_v34 = vld [vmem:[%s11095_s9 + $0x98] sm:$0xff]  ;;  %v5074_v45 = vld [vmem:[%s11095_s9 + $0x10] sm:$0xff] }
 0x3f6   :  { %v4465_v16 = vadd.f32 %v6712_v40, %v4080_v58  ;;  %v4459_v15 = vpop.f32.mrb[95].mxu0  ;;  %6881 = vmatpush3.bf16.msra.mxu0 %v11123_v1  ;;  %v1905_v50 = vpop.permute.xlu1 %1904  ;;  %v11124_v58 = vpack.c.bf16 %v9666_v46, %v9674_v52  ;;  %v6948_v11 = vpack.c.bf16 %v5091_v34, %v5090_v22  ;;  %v4100_v1 = vadd.f32 %v9550_v25, %v9449_v26  ;;  %p7136_p4 = pnand %p7135_p3, %p7129_p0 }
 0x3f7   :  { %v4460_v24 = vadd.f32 %v4459_v15, %v4075_v32  ;;  %2043 = vst.msk [vmem:[#allocation3 + $0x510] sm:$0xff] %vm1988_vm7, %v1905_v50  ;;  %v3186_v62 = vpop.permute.xlu0 %3185  ;;  %v6882_v13 = vpack.c.bf16 %v4713_v35, %v4712_v4  ;;  %v5075_v32 = vld [vmem:[%s11095_s9 + $0x18] sm:$0xff]  ;;  %v4095_v46 = vadd.f32 %v9550_v25, %v9417_v43  ;;  %v11125_v43 = vpack.c.bf16 %v9694_v48, %v9704_v3 }
 0x3f8   :  { %v4715_v2 = vmul.f32 %v9903_v63, %v4465_v16  ;;  %3323 = vst.msk [vmem:[#allocation3 + $0x518] sm:$0xff] %vm1988_vm7, %v3186_v62  ;;  %v6950_v15 = vpack.c.bf16 %v5075_v32, %v5074_v45  ;;  %6949 = vmatprep.subr.bf16.mxu1 %v6948_v11  ;;  %v4105_v48 = vadd.f32 %v9550_v25, %v9489_v23  ;;  %v9980_v11 = vld [vmem:[%s11091_s5 + $0xf8] sm:$0xff] }
 0x3f9   :  { %v4714_v29 = vmul.f32 %v9908_v54, %v4460_v24  ;;  %v6715_v19 = vpop.f32.mrb[96].mxu0  ;;  %6883 = vmatprep.subr.bf16.mxu0 %v6882_v13  ;;  %v9959_v13 = vld [vmem:[%s11091_s5 + $0xe8] sm:$0xff]  ;;  %v11126_v23 = vpack.c.bf16 %v9724_v18, %v9732_v10 }
 0x3fa   :  { %v4475_v39 = vadd.f32 %v6715_v19, %v4090_v14  ;;  %v4469_v21 = vpop.f32.mrb[97].mxu0  ;;  %6885 = vmatpush3.bf16.msra.mxu0 %v11124_v58  ;;  %v1137_v35 = vpop.permute.xlu1 %1136  ;;  %6951 = vmatpush3.bf16.msra.mxu1 %v6950_v15 }
 0x3fb   :  { %v4470_v4 = vadd.f32 %v4469_v21, %v4085_v57  ;;  %1274 = vst.msk [vmem:[#allocation3 + $0x528] sm:$0xff] %vm1218_vm5, %v1137_v35  ;;  %v2420_v40 = vpop.permute.xlu0 %2419  ;;  %v6886_v16 = vpack.c.bf16 %v4715_v2, %v4714_v29  ;;  %v9964_v57 = vld [vmem:[%s11091_s5 + $0xe0] sm:$0xff] }
 0x3fc   :  { %v4717_v50 = vmul.f32 %v9921_v6, %v4475_v39  ;;  %2556 = vst.msk [vmem:[#allocation3 + $0x530] sm:$0xff] %vm1218_vm5, %v2420_v40  ;;  %v9951_v52 = vpop.f32.mrb[66].mxu1  ;;  %v4110_v39 = vadd.f32 %v9550_v25, %v9530_v28 }
 0x3fd   :  { %v4716_v24 = vmul.f32 %v9938_v44, %v4470_v4  ;;  %v6718_v62 = vpop.f32.mrb[98].mxu0  ;;  %6887 = vmatprep.subr.bf16.mxu0 %v6886_v16  ;;  %v4136_v26 = vpop.f32.mrb[67].mxu1  ;;  %v9985_v4 = vld [vmem:[%s11091_s5 + $0xf0] sm:$0xff]  ;;  %v4135_v53 = vadd.f32 %v9550_v25, %v9951_v52 }
 0x3fe   :  { %v4485_v14 = vadd.f32 %v6718_v62, %v4100_v1  ;;  %v4479_v2 = vpop.f32.mrb[99].mxu0  ;;  %6889 = vmatpush3.bf16.msra.mxu0 %v11125_v43  ;;  %v1522_v29 = vpop.permute.xlu1 %1521  ;;  %v3623_v58 = vld [vmem:[#allocation3 + $0x510] sm:$0xff] }
 0x3ff   :  { %v4480_v19 = vadd.f32 %v4479_v2, %v4095_v46  ;;  %1659 = vst.msk [vmem:[#allocation3 + $0x528] sm:$0xff] %vm1603_vm6, %v1522_v29  ;;  %v2804_v22 = vpop.permute.xlu0 %2803  ;;  %v3624_v34 = vld [vmem:[#allocation3 + $0x518] sm:$0xff]  ;;  %v6890_v45 = vpack.c.bf16 %v4717_v50, %v4716_v24  ;;  %v4120_v50 = vadd.f32 %v9550_v25, %v9699_v36  ;;  %v4115_v24 = vadd.f32 %v9550_v25, %v9613_v17 }
 0x400   :  { %v4719_v21 = vmul.f32 %v9959_v13, %v4485_v14  ;;  %2940 = vst.msk [vmem:[#allocation3 + $0x530] sm:$0xff] %vm1603_vm6, %v2804_v22  ;;  %4222 = vmatprep.mubr.f32.mxu1 %v3624_v34  ;;  %v4130_v29 = vadd.f32 %v9550_v25, %v9871_v56  ;;  %v4125_v22 = vadd.f32 %v9550_v25, %v9798_v31 }
 0x401   :  { %v4718_v3 = vmul.f32 %v9964_v57, %v4480_v19  ;;  %v6721_v35 = vpop.f32.mrb[100].mxu0  ;;  %6891 = vmatprep.subr.bf16.mxu0 %v6890_v45  ;;  %4223 = vmatmul.mubr.f32.gmra.mrb[102].mxu1 %v3623_v58 }
 0x402   :  { %v4495_v28 = vadd.f32 %v6721_v35, %v4110_v39  ;;  %v4489_v32 = vpop.f32.mrb[101].mxu0  ;;  %6893 = vmatpush3.bf16.msra.mxu0 %v11126_v23  ;;  %v1907_v40 = vpop.permute.xlu1 %1906 }
 0x403   :  { %v4490_v16 = vadd.f32 %v4489_v32, %v4105_v48  ;;  %2044 = vst.msk [vmem:[#allocation3 + $0x528] sm:$0xff] %vm1988_vm7, %v1907_v40  ;;  %v3188_v15 = vpop.permute.xlu0 %3187  ;;  %v6894_v1 = vpack.c.bf16 %v4719_v21, %v4718_v3 }
 0x404   :  { %v4721_v46 = vmul.f32 %v9980_v11, %v4495_v28  ;;  %3324 = vst.msk [vmem:[#allocation3 + $0x530] sm:$0xff] %vm1988_vm7, %v3188_v15 }
 0x405   :  { %v4720_v62 = vmul.f32 %v9985_v4, %v4490_v16  ;;  %v6724_v18 = vpop.f32.mrb[102].mxu0  ;;  %6895 = vmatprep.subr.bf16.mxu0 %v6894_v1 }
 0x406   :  { %v4505_v10 = vadd.f32 %v6724_v18, %v4120_v50  ;;  %v4499_v26 = vpop.f32.mrb[103].mxu0  ;;  %6897 = vmatpush3.bf16.msra.mxu0 %v6896_v41  ;;  %v1139_v14 = vpop.permute.xlu1 %1138 }
 0x407   :  { %v4500_v2 = vadd.f32 %v4499_v26, %v4115_v24  ;;  %1275 = vst.msk [vmem:[#allocation3 + $0x540] sm:$0xff] %vm1218_vm5, %v1139_v14  ;;  %v2422_v36 = vpop.permute.xlu0 %2421  ;;  %v6898_v43 = vpack.c.bf16 %v4721_v46, %v4720_v62 }
 0x408   :  { %v10005_v17 = vmul.f32 %v9562_v5, %v4505_v10  ;;  %2557 = vst.msk [vmem:[#allocation3 + $0x548] sm:$0xff] %vm1218_vm5, %v2422_v36  ;;  %v4139_v19 = vpop.f32.mrb[68].mxu1 }
 0x409   :  { %v10011_v41 = vmul.f32 %v9569_v30, %v4500_v2  ;;  %v6727_v0 = vpop.f32.mrb[104].mxu0  ;;  %6899 = vmatprep.subr.bf16.mxu0 %v6898_v43  ;;  %v4141_v8 = vpop.f32.mrb[69].mxu1  ;;  %v4140_v30 = vadd.f32 %v9550_v25, %v4139_v19 }
 0x40a   :  { %v4515_v34 = vadd.f32 %v6727_v0, %v4130_v29  ;;  %v4509_v45 = vpop.f32.mrb[105].mxu0  ;;  %6901 = vmatpush3.bf16.msra.mxu0 %v6900_v38  ;;  %v1524_v5 = vpop.permute.xlu1 %1523  ;;  %v3626_v48 = vld [vmem:[#allocation3 + $0x528] sm:$0xff]  ;;  %v5092_v0 = vld [vmem:[%s11095_s9 + $0xa0] sm:$0xff]  ;;  %v5093_v8 = vld [vmem:[%s11095_s9 + $0xa8] sm:$0xff] }
 0x40b   :  { %v6904_v56 = vpack.c.bf16 %v10005_v17, %v10011_v41  ;;  %v4510_v39 = vadd.f32 %v4509_v45, %v4125_v22  ;;  %1660 = vst.msk [vmem:[#allocation3 + $0x540] sm:$0xff] %vm1603_vm6, %v1524_v5  ;;  %v2806_v31 = vpop.permute.xlu0 %2805  ;;  %v3627_v21 = vld [vmem:[#allocation3 + $0x530] sm:$0xff]  ;;  %v5102_v17 = vld [vmem:[%s11095_s9 + $0xf0] sm:$0xff] }
 0x40c   :  { %v10021_v58 = vmul.f32 %v9589_v61, %v4515_v34  ;;  %2941 = vst.msk [vmem:[#allocation3 + $0x548] sm:$0xff] %vm1603_vm6, %v2806_v31  ;;  %4227 = vmatprep.mubr.f32.mxu1 %v3627_v21  ;;  %v5076_v34 = vld [vmem:[%s11095_s9 + $0x20] sm:$0xff]  ;;  %v5077_v31 = vld [vmem:[%s11095_s9 + $0x28] sm:$0xff]  ;;  %v11109_v21 = vmov 1.0   ;;  %v5103_v41 = vld [vmem:[%s11095_s9 + $0xf8] sm:$0xff] }
 0x40d   :  { %v10027_v59 = vmul.f32 %v9596_v27, %v4510_v39  ;;  %v6730_v38 = vpop.f32.mrb[106].mxu0  ;;  %4228 = vmatmul.mubr.f32.gmra.mrb[104].mxu1 %v3626_v48  ;;  %v6952_v39 = vpack.c.bf16 %v5093_v8, %v5092_v0  ;;  %4786 = vmatprep.mubr.f32.mxu0 %v11109_v21  ;;  %v6954_v48 = vpack.c.bf16 %v5077_v31, %v5076_v34 }
 0x40e   :  { %v4525_v3 = vadd.f32 %v6730_v38, %v4140_v30  ;;  %v4519_v35 = vpop.f32.mrb[107].mxu0  ;;  %v1909_v28 = vpop.permute.xlu1 %1908  ;;  %4787 = vmatmul.mubr.f32.vlgmr.msra.gmra.mrb[134].mxu0 %v11109_v21 }
 0x40f   :  { %v6908_v32 = vpack.c.bf16 %v10021_v58, %v10027_v59  ;;  %v4520_v61 = vadd.f32 %v4519_v35, %v4135_v53  ;;  %2045 = vst.msk [vmem:[#allocation3 + $0x540] sm:$0xff] %vm1988_vm7, %v1909_v28  ;;  %v3190_v23 = vpop.permute.xlu0 %3189  ;;  %6953 = vmatprep.subr.bf16.mxu1 %v6952_v39  ;;  %4928 = vmatprep.mubr.f32.mxu0 %v11109_v21  ;;  %v5049_v58 = vld [vmem:[%s11096_s10 + $0x8] sm:$0xff] }
 0x410   :  { %v10033_v40 = vmul.f32 %v9621_v37, %v4525_v3  ;;  %3325 = vst.msk [vmem:[#allocation3 + $0x548] sm:$0xff] %vm1988_vm7, %v3190_v23  ;;  %6955 = vmatpush3.bf16.msra.mxu1 %v6954_v48 }
 0x411   :  { %v10037_v27 = vmul.f32 %v9630_v20, %v4520_v61  ;;  %v6733_v52 = vpop.f32.mrb[108].mxu0 }
 0x412   :  { %v4529_v16 = vpop.f32.mrb[109].mxu0  ;;  %v1141_v15 = vpop.permute.xlu1 %1140 }
 0x413   :  { %v6912_v1 = vpack.c.bf16 %v10033_v40, %v10037_v27  ;;  %1276 = vst.msk [vmem:[#allocation3 + $0x558] sm:$0xff] %vm1218_vm5, %v1141_v15  ;;  %v2424_v50 = vpop.permute.xlu0 %2423  ;;  %v5058_v40 = vld [vmem:[%s11096_s10 + $0x50] sm:$0xff] }
 0x414   :  { %2558 = vst.msk [vmem:[#allocation3 + $0x560] sm:$0xff] %vm1218_vm5, %v2424_v50  ;;  %v4144_v46 = vpop.f32.mrb[70].mxu1 }
 0x415   :  { %v4145_v37 = vadd.f32 %v9550_v25, %v4144_v46  ;;  %v10044_v24 = vpop.f32.mrb[110].mxu0  ;;  %v4146_v62 = vpop.f32.mrb[71].mxu1  ;;  %v11127_v46 = vld [vmem:[#allocation10_spill] sm:$0xff] }
 0x416   :  { %v10046_v18 = vpop.f32.mrb[111].mxu0  ;;  %v1526_v20 = vpop.permute.xlu1 %1525  ;;  %v3629_v2 = vld [vmem:[#allocation3 + $0x540] sm:$0xff]  ;;  %v11128_v62 = vld [vmem:[#allocation9_spill] sm:$0xff] }
 0x417   :  { %v4530_v10 = vadd.f32 %v4529_v16, %v4145_v37  ;;  %1661 = vst.msk [vmem:[#allocation3 + $0x558] sm:$0xff] %vm1603_vm6, %v1526_v20  ;;  %v2808_v26 = vpop.permute.xlu0 %2807  ;;  %v3630_v14 = vld [vmem:[#allocation3 + $0x548] sm:$0xff] }
 0x418   :  { %2942 = vst.msk [vmem:[#allocation3 + $0x560] sm:$0xff] %vm1603_vm6, %v2808_v26  ;;  %4232 = vmatprep.mubr.f32.mxu1 %v3630_v14 }
 0x419   :  { %v10050_v36 = vpop.f32.mrb[112].mxu0  ;;  %4233 = vmatmul.mubr.f32.gmra.mrb[106].mxu1 %v3629_v2  ;;  %v10085_v37 = vmul.f32 %v11127_v46, %v4530_v10 }
 0x41a   :  { %v10052_v43 = vpop.f32.mrb[113].mxu0  ;;  %v1911_v29 = vpop.permute.xlu1 %1910 }
 0x41b   :  { %2046 = vst.msk [vmem:[#allocation3 + $0x558] sm:$0xff] %vm1988_vm7, %v1911_v29  ;;  %v3192_v19 = vpop.permute.xlu0 %3191 }
 0x41c   :  { %3326 = vst.msk [vmem:[#allocation3 + $0x560] sm:$0xff] %vm1988_vm7, %v3192_v19 }
 0x41d   :  { %v10056_v22 = vpop.f32.mrb[114].mxu0 }
 0x41e   :  { %v10067_v45 = vpop.f32.mrb[115].mxu0  ;;  %v1143_v5 = vpop.permute.xlu1 %1142 }
 0x41f   :  { %1277 = vst.msk [vmem:[#allocation3 + $0x570] sm:$0xff] %vm1218_vm5, %v1143_v5  ;;  %v2426_v30 = vpop.permute.xlu0 %2425 }
 0x420   :  { %2559 = vst.msk [vmem:[#allocation3 + $0x578] sm:$0xff] %vm1218_vm5, %v2426_v30  ;;  %v4149_v53 = vpop.f32.mrb[72].mxu1 }
 0x421   :  { %v4150_v38 = vadd.f32 %v9550_v25, %v4149_v53  ;;  %v10078_v3 = vpop.f32.mrb[116].mxu0  ;;  %v4151_v35 = vpop.f32.mrb[73].mxu1 }
 0x422   :  { %v10080_v28 = vpop.f32.mrb[117].mxu0  ;;  %v1528_v61 = vpop.permute.xlu1 %1527  ;;  %v3632_v50 = vld [vmem:[#allocation3 + $0x558] sm:$0xff] }
 0x423   :  { %v4535_v23 = vadd.f32 %v6733_v52, %v4150_v38  ;;  %1662 = vst.msk [vmem:[#allocation3 + $0x570] sm:$0xff] %vm1603_vm6, %v1528_v61  ;;  %v2810_v16 = vpop.permute.xlu0 %2809  ;;  %v3633_v15 = vld [vmem:[#allocation3 + $0x560] sm:$0xff] }
 0x424   :  { %2943 = vst.msk [vmem:[#allocation3 + $0x578] sm:$0xff] %vm1603_vm6, %v2810_v16  ;;  %4237 = vmatprep.mubr.f32.mxu1 %v3633_v15 }
 0x425   :  { %v10088_v20 = vmul.f32 %v11128_v62, %v4535_v23  ;;  %v10090_v26 = vpop.f32.mrb[118].mxu0  ;;  %4238 = vmatmul.mubr.f32.gmra.mrb[108].mxu1 %v3632_v50 }
 0x426   :  { %v10092_v14 = vpop.f32.mrb[119].mxu0  ;;  %v1913_v52 = vpop.permute.xlu1 %1912 }
 0x427   :  { %2047 = vst.msk [vmem:[#allocation3 + $0x570] sm:$0xff] %vm1988_vm7, %v1913_v52  ;;  %v3194_v29 = vpop.permute.xlu0 %3193 }
 0x428   :  { %3327 = vst.msk [vmem:[#allocation3 + $0x578] sm:$0xff] %vm1988_vm7, %v3194_v29 }
 0x429   :  { %v10098_v19 = vpop.f32.mrb[120].mxu0 }
 0x42a   :  { %v10100_v10 = vpop.f32.mrb[121].mxu0  ;;  %v1145_v0 = vpop.permute.xlu1 %1144 }
 0x42b   :  { %1278 = vst.msk [vmem:[#allocation3 + $0x588] sm:$0xff] %vm1218_vm5, %v1145_v0  ;;  %v2428_v8 = vpop.permute.xlu0 %2427 }
 0x42c   :  { %2560 = vst.msk [vmem:[#allocation3 + $0x590] sm:$0xff] %vm1218_vm5, %v2428_v8  ;;  %v4154_v34 = vpop.f32.mrb[74].mxu1 }
 0x42d   :  { %v4155_v5 = vadd.f32 %v9550_v25, %v4154_v34  ;;  %v4156_v39 = vpop.f32.mrb[75].mxu1  ;;  %v10105_v31 = vpop.f32.mrb[122].mxu0 }
 0x42e   :  { %v1530_v30 = vpop.permute.xlu1 %1529  ;;  %v10107_v48 = vpop.f32.mrb[123].mxu0  ;;  %v3635_v61 = vld [vmem:[#allocation3 + $0x570] sm:$0xff] }
 0x42f   :  { %v4540_v53 = vadd.f32 %v10046_v18, %v4155_v5  ;;  %1663 = vst.msk [vmem:[#allocation3 + $0x588] sm:$0xff] %vm1603_vm6, %v1530_v30  ;;  %v2812_v38 = vpop.permute.xlu0 %2811  ;;  %v3636_v35 = vld [vmem:[#allocation3 + $0x578] sm:$0xff]  ;;  %v5094_v30 = vld [vmem:[%s11095_s9 + $0xb0] sm:$0xff] }
 0x430   :  { %2944 = vst.msk [vmem:[#allocation3 + $0x590] sm:$0xff] %vm1603_vm6, %v2812_v38  ;;  %4242 = vmatprep.mubr.f32.mxu1 %v3636_v35  ;;  %v5095_v38 = vld [vmem:[%s11095_s9 + $0xb8] sm:$0xff] }
 0x431   :  { %4243 = vmatmul.mubr.f32.gmra.mrb[110].mxu1 %v3635_v61  ;;  %v10112_v23 = vpop.f32.mrb[124].mxu0 }
 0x432   :  { %v1915_v16 = vpop.permute.xlu1 %1914  ;;  %v10114_v15 = vpop.f32.mrb[125].mxu0 }
 0x433   :  { %2048 = vst.msk [vmem:[#allocation3 + $0x588] sm:$0xff] %vm1988_vm7, %v1915_v16  ;;  %v3196_v50 = vpop.permute.xlu0 %3195  ;;  %v6956_v16 = vpack.c.bf16 %v5095_v38, %v5094_v30 }
 0x434   :  { %3328 = vst.msk [vmem:[#allocation3 + $0x590] sm:$0xff] %vm1988_vm7, %v3196_v50 }
 0x435   :  { %v10118_v18 = vpop.f32.mrb[126].mxu0  ;;  %6957 = vmatprep.subr.bf16.mxu1 %v6956_v16 }
 0x436   :  { %v1147_v46 = vpop.permute.xlu1 %1146  ;;  %v10120_v62 = vpop.f32.mrb[127].mxu0 }
 0x437   :  { %1279 = vst.msk [vmem:[#allocation3 + $0x5a0] sm:$0xff] %vm1218_vm5, %v1147_v46  ;;  %v2430_v52 = vpop.permute.xlu0 %2429  ;;  %v11129_v46 = vld [vmem:[#allocation12_spill] sm:$0xff] }
 0x438   :  { %2561 = vst.msk [vmem:[#allocation3 + $0x5a8] sm:$0xff] %vm1218_vm5, %v2430_v52  ;;  %v4159_v29 = vpop.f32.mrb[76].mxu1  ;;  %v10139_v52 = vmul.f32 %v11129_v46, %v4540_v53  ;;  %v5079_v53 = vld [vmem:[%s11095_s9 + $0x38] sm:$0xff] }
 0x439   :  { %v4160_v0 = vadd.f32 %v9550_v25, %v4159_v29  ;;  %v4161_v8 = vpop.f32.mrb[77].mxu1  ;;  %v10125_v34 = vpop.f32.mrb[128].mxu0  ;;  %v11130_v29 = vld [vmem:[#allocation11_spill] sm:$0xff] }
 0x43a   :  { %v1532_v5 = vpop.permute.xlu1 %1531  ;;  %v10127_v39 = vpop.f32.mrb[129].mxu0  ;;  %v3638_v50 = vld [vmem:[#allocation3 + $0x588] sm:$0xff] }
 0x43b   :  { %v4545_v35 = vadd.f32 %v10044_v24, %v4160_v0  ;;  %1664 = vst.msk [vmem:[#allocation3 + $0x5a0] sm:$0xff] %vm1603_vm6, %v1532_v5  ;;  %v2814_v61 = vpop.permute.xlu0 %2813  ;;  %v3639_v25 = vld [vmem:[#allocation3 + $0x590] sm:$0xff]  ;;  %v5078_v5 = vld [vmem:[%s11095_s9 + $0x30] sm:$0xff] }
 0x43c   :  { %2945 = vst.msk [vmem:[#allocation3 + $0x5a8] sm:$0xff] %vm1603_vm6, %v2814_v61  ;;  %4247 = vmatprep.mubr.f32.mxu1 %v3639_v25  ;;  %v6958_v38 = vpack.c.bf16 %v5079_v53, %v5078_v5 }
 0x43d   :  { %v10142_v8 = vmul.f32 %v11130_v29, %v4545_v35  ;;  %4248 = vmatmul.mubr.f32.gmra.mrb[112].mxu1 %v3638_v50 }
 0x43e   :  { %v1917_v21 = vpop.permute.xlu1 %1916  ;;  %6959 = vmatpush3.bf16.msra.mxu1 %v6958_v38 }
 0x43f   :  { %2049 = vst.msk [vmem:[#allocation3 + $0x5a0] sm:$0xff] %vm1988_vm7, %v1917_v21  ;;  %v3198_v0 = vpop.permute.xlu0 %3197  ;;  %v10159_v21 = vld [vmem:[%s11090_s4] ss:$0 sm:$0xff] }
 0x440   :  { %3329 = vst.msk [vmem:[#allocation3 + $0x5a8] sm:$0xff] %vm1988_vm7, %v3198_v0 }
 0x442   :  { %v1149_v30 = vpop.permute.xlu1 %1148 }
 0x443   :  { %1280 = vst.msk [vmem:[#allocation3 + $0x5b8] sm:$0xff] %vm1218_vm5, %v1149_v30  ;;  %v2432_v35 = vpop.permute.xlu0 %2431 }
 0x444   :  { %2562 = vst.msk [vmem:[#allocation3 + $0x5c0] sm:$0xff] %vm1218_vm5, %v2432_v35  ;;  %v4164_v61 = vpop.f32.mrb[78].mxu1 }
 0x445   :  { %v4165_v25 = vadd.f32 %v10159_v21, %v4164_v61  ;;  %v4166_v16 = vpop.f32.mrb[79].mxu1 }
 0x446   :  { %v1534_v50 = vpop.permute.xlu1 %1533  ;;  %v3641_v5 = vld [vmem:[#allocation3 + $0x5a0] sm:$0xff] }
 0x447   :  { %v4550_v46 = vadd.f32 %v10052_v43, %v4165_v25  ;;  %1665 = vst.msk [vmem:[#allocation3 + $0x5b8] sm:$0xff] %vm1603_vm6, %v1534_v50  ;;  %v2816_v29 = vpop.permute.xlu0 %2815  ;;  %v3642_v0 = vld [vmem:[#allocation3 + $0x5a8] sm:$0xff] }
 0x448   :  { %2946 = vst.msk [vmem:[#allocation3 + $0x5c0] sm:$0xff] %vm1603_vm6, %v2816_v29  ;;  %4252 = vmatprep.mubr.f32.mxu1 %v3642_v0 }
 0x449   :  { %4253 = vmatmul.mubr.f32.gmra.mrb[114].mxu1 %v3641_v5 }
 0x44a   :  { %v1919_v53 = vpop.permute.xlu1 %1918 }
 0x44b   :  { %2050 = vst.msk [vmem:[#allocation3 + $0x5b8] sm:$0xff] %vm1988_vm7, %v1919_v53  ;;  %v3200_v30 = vpop.permute.xlu0 %3199  ;;  %v11131_v53 = vld [vmem:[#allocation14_spill] sm:$0xff] }
 0x44c   :  { %3330 = vst.msk [vmem:[#allocation3 + $0x5c0] sm:$0xff] %vm1988_vm7, %v3200_v30  ;;  %v10174_v30 = vmul.f32 %v11131_v53, %v4550_v46  ;;  %v5097_v46 = vld [vmem:[%s11095_s9 + $0xc8] sm:$0xff] }
 0x44e   :  { %v1151_v38 = vpop.permute.xlu1 %1150 }
 0x44f   :  { %1281 = vst.msk [vmem:[#allocation3 + $0x5d0] sm:$0xff] %vm1218_vm5, %v1151_v38  ;;  %v2434_v35 = vpop.permute.xlu0 %2433  ;;  %v11132_v38 = vld [vmem:[#allocation13_spill] sm:$0xff] }
 0x450   :  { %2563 = vst.msk [vmem:[#allocation3 + $0x5d8] sm:$0xff] %vm1218_vm5, %v2434_v35  ;;  %v4169_v43 = vpop.f32.mrb[80].mxu1 }
 0x451   :  { %v4170_v61 = vadd.f32 %v10159_v21, %v4169_v43  ;;  %v4171_v25 = vpop.f32.mrb[81].mxu1 }
 0x452   :  { %v1536_v16 = vpop.permute.xlu1 %1535  ;;  %v3644_v5 = vld [vmem:[#allocation3 + $0x5b8] sm:$0xff] }
 0x453   :  { %v4555_v50 = vadd.f32 %v10050_v36, %v4170_v61  ;;  %1666 = vst.msk [vmem:[#allocation3 + $0x5d0] sm:$0xff] %vm1603_vm6, %v1536_v16  ;;  %v2818_v29 = vpop.permute.xlu0 %2817  ;;  %v3645_v0 = vld [vmem:[#allocation3 + $0x5c0] sm:$0xff]  ;;  %v5096_v61 = vld [vmem:[%s11095_s9 + $0xc0] sm:$0xff] }
 0x454   :  { %2947 = vst.msk [vmem:[#allocation3 + $0x5d8] sm:$0xff] %vm1603_vm6, %v2818_v29  ;;  %4257 = vmatprep.mubr.f32.mxu1 %v3645_v0  ;;  %v5080_v16 = vld [vmem:[%s11095_s9 + $0x40] sm:$0xff]  ;;  %v6960_v29 = vpack.c.bf16 %v5097_v46, %v5096_v61  ;;  %v5081_v0 = vld [vmem:[%s11095_s9 + $0x48] sm:$0xff] }
 0x455   :  { %v10177_v35 = vmul.f32 %v11132_v38, %v4555_v50  ;;  %4258 = vmatmul.mubr.f32.gmra.mrb[116].mxu1 %v3644_v5  ;;  %v6962_v53 = vpack.c.bf16 %v5081_v0, %v5080_v16 }
 0x456   :  { %v1921_v43 = vpop.permute.xlu1 %1920  ;;  %6961 = vmatprep.subr.bf16.mxu1 %v6960_v29 }
 0x457   :  { %2051 = vst.msk [vmem:[#allocation3 + $0x5d0] sm:$0xff] %vm1988_vm7, %v1921_v43  ;;  %v3202_v36 = vpop.permute.xlu0 %3201  ;;  %6963 = vmatpush3.bf16.msra.mxu1 %v6962_v53 }
 0x458   :  { %3331 = vst.msk [vmem:[#allocation3 + $0x5d8] sm:$0xff] %vm1988_vm7, %v3202_v36 }
 0x45a   :  { %v1153_v50 = vpop.permute.xlu1 %1152 }
 0x45b   :  { %1282 = vst.msk [vmem:[#allocation3 + $0x5e8] sm:$0xff] %vm1218_vm5, %v1153_v50  ;;  %v2436_v5 = vpop.permute.xlu0 %2435 }
 0x45c   :  { %2564 = vst.msk [vmem:[#allocation3 + $0x5f0] sm:$0xff] %vm1218_vm5, %v2436_v5  ;;  %v4174_v38 = vpop.f32.mrb[82].mxu1 }
 0x45d   :  { %v4175_v43 = vadd.f32 %v10159_v21, %v4174_v38  ;;  %v4176_v36 = vpop.f32.mrb[83].mxu1  ;;  %v11133_v38 = vld [vmem:[#allocation16_spill] sm:$0xff] }
 0x45e   :  { %v1538_v25 = vpop.permute.xlu1 %1537  ;;  %v3647_v24 = vld [vmem:[#allocation3 + $0x5d0] sm:$0xff] }
 0x45f   :  { %v4560_v61 = vadd.f32 %v10067_v45, %v4175_v43  ;;  %1667 = vst.msk [vmem:[#allocation3 + $0x5e8] sm:$0xff] %vm1603_vm6, %v1538_v25  ;;  %v2820_v46 = vpop.permute.xlu0 %2819  ;;  %v3648_v2 = vld [vmem:[#allocation3 + $0x5d8] sm:$0xff] }
 0x460   :  { %2948 = vst.msk [vmem:[#allocation3 + $0x5f0] sm:$0xff] %vm1603_vm6, %v2820_v46  ;;  %4262 = vmatprep.mubr.f32.mxu1 %v3648_v2  ;;  %v11134_v2 = vld [vmem:[#allocation15_spill] sm:$0xff] }
 0x461   :  { %4263 = vmatmul.mubr.f32.gmra.mrb[118].mxu1 %v3647_v24  ;;  %v10206_v43 = vmul.f32 %v11133_v38, %v4560_v61  ;;  %v5099_v61 = vld [vmem:[%s11095_s9 + $0xd8] sm:$0xff] }
 0x462   :  { %v1923_v16 = vpop.permute.xlu1 %1922 }
 0x463   :  { %v3204_v50 = vpop.permute.xlu0 %3203  ;;  %2052 = vst.msk [vmem:[#allocation3 + $0x5e8] sm:$0xff] %vm1988_vm7, %v1923_v16 }
 0x464   :  { %3332 = vst.msk [vmem:[#allocation3 + $0x5f0] sm:$0xff] %vm1988_vm7, %v3204_v50 }
 0x468   :  { %v4179_v29 = vpop.f32.mrb[84].mxu1 }
 0x469   :  { %v4180_v0 = vadd.f32 %v10159_v21, %v4179_v29  ;;  %v4181_v5 = vpop.f32.mrb[85].mxu1 }
 0x46a   :  { %v3650_v53 = vld [vmem:[#allocation3 + $0x5e8] sm:$0xff] }
 0x46b   :  { %v4565_v45 = vadd.f32 %v10056_v22, %v4180_v0  ;;  %v3651_v25 = vld [vmem:[#allocation3 + $0x5f0] sm:$0xff]  ;;  %v5098_v22 = vld [vmem:[%s11095_s9 + $0xd0] sm:$0xff] }
 0x46c   :  { %4267 = vmatprep.mubr.f32.mxu1 %v3651_v25  ;;  %v5082_v0 = vld [vmem:[%s11095_s9 + $0x50] sm:$0xff]  ;;  %v6964_v5 = vpack.c.bf16 %v5099_v61, %v5098_v22 }
 0x46d   :  { %v10209_v24 = vmul.f32 %v11134_v2, %v4565_v45  ;;  %4268 = vmatmul.mubr.f32.gmra.mrb[120].mxu1 %v3650_v53  ;;  %v5083_v53 = vld [vmem:[%s11095_s9 + $0x58] sm:$0xff] }
 0x46e   :  { %v6966_v45 = vpack.c.bf16 %v5083_v53, %v5082_v0  ;;  %6965 = vmatprep.subr.bf16.mxu1 %v6964_v5  ;;  %v5100_v53 = vld [vmem:[%s11095_s9 + $0xe0] sm:$0xff]  ;;  %5196 = vmatprep.mubr.f32.mxu1 %v5049_v58 }
 0x46f   :  { %v6928_v36 = vpack.c.bf16 %v10209_v24, %v10206_v43  ;;  %v4945_v43 = vld [vmem:[%s11093_s7 + $0x8] sm:$0xff] }
 0x470   :  { %6967 = vmatpush3.bf16.msra.mxu1 %v6966_v45 }
 0x474   :  { %v4184_v46 = vpop.f32.mrb[86].mxu1 }
 0x475   :  { %v4185_v16 = vadd.f32 %v10159_v21, %v4184_v46  ;;  %v4186_v50 = vpop.f32.mrb[87].mxu1 }
 0x477   :  { %v4570_v29 = vadd.f32 %v10080_v28, %v4185_v16 }
 0x479   :  { %v10230_v46 = vmul.f32 %v9765_v9, %v4570_v29  ;;  %v5101_v9 = vld [vmem:[%s11095_s9 + $0xe8] sm:$0xff] }
 0x47a   :  { %v5085_v29 = vld [vmem:[%s11095_s9 + $0x68] sm:$0xff] }
 0x480   :  { %v4189_v25 = vpop.f32.mrb[88].mxu1 }
 0x481   :  { %v4190_v28 = vadd.f32 %v10159_v21, %v4189_v25  ;;  %v4191_v38 = vpop.f32.mrb[89].mxu1 }
 0x483   :  { %v4575_v2 = vadd.f32 %v10078_v3, %v4190_v28  ;;  %v6968_v3 = vpack.c.bf16 %v5101_v9, %v5100_v53 }
 0x485   :  { %v10233_v16 = vmul.f32 %v9760_v7, %v4575_v2  ;;  %v5084_v7 = vld [vmem:[%s11095_s9 + $0x60] sm:$0xff]  ;;  %6969 = vmatprep.subr.bf16.mxu1 %v6968_v3 }
 0x486   :  { %v6970_v45 = vpack.c.bf16 %v5085_v29, %v5084_v7 }
 0x487   :  { %v6932_v50 = vpack.c.bf16 %v10233_v16, %v10230_v46 }
 0x488   :  { %6971 = vmatpush3.bf16.msra.mxu1 %v6970_v45 }
 0x48c   :  { %v4194_v22 = vpop.f32.mrb[90].mxu1 }
 0x48d   :  { %v4195_v61 = vadd.f32 %v10159_v21, %v4194_v22  ;;  %v4196_v0 = vpop.f32.mrb[91].mxu1 }
 0x48f   :  { %v4580_v5 = vadd.f32 %v10092_v14, %v4195_v61 }
 0x491   :  { %v4848_v2 = vmul.f32 %v9814_v51, %v4580_v5 }
 0x498   :  { %v4199_v25 = vpop.f32.mrb[92].mxu1 }
 0x499   :  { %v4200_v14 = vadd.f32 %v10159_v21, %v4199_v25  ;;  %v4201_v28 = vpop.f32.mrb[93].mxu1 }
 0x49a   :  { %v10255_v0 = vpop.f32.mrb[130].mxu0 }
 0x49b   :  { %v4585_v38 = vadd.f32 %v10090_v26, %v4200_v14  ;;  %v10257_v53 = vpop.f32.mrb[131].mxu0 }
 0x49d   :  { %v4849_v22 = vmul.f32 %v9808_v47, %v4585_v38 }
 0x49f   :  { %v6902_v61 = vpack.c.bf16 %v4849_v22, %v4848_v2 }
 0x4a1   :  { %6903 = vmatprep.subr.bf16.mxu0 %v6902_v61 }
 0x4a2   :  { %6905 = vmatpush3.bf16.msra.mxu0 %v6904_v56  ;;  %v6972_v56 = vpack.c.bf16 %v5103_v41, %v5102_v17  ;;  %v5060_v17 = vld [vmem:[%s11096_s10 + $0x60] sm:$0xff] }
 0x4a3   :  { %v5064_v41 = vld [vmem:[%s11096_s10 + $0x80] sm:$0xff] }
 0x4a4   :  { %v4204_v9 = vpop.f32.mrb[94].mxu1  ;;  %6973 = vmatprep.subr.bf16.mxu1 %v6972_v56 }
 0x4a5   :  { %v4205_v7 = vadd.f32 %v10159_v21, %v4204_v9  ;;  %v4206_v3 = vpop.f32.mrb[95].mxu1 }
 0x4a7   :  { %v4590_v26 = vadd.f32 %v10100_v10, %v4205_v7 }
 0x4a9   :  { %v4850_v45 = vmul.f32 %v9838_v42, %v4590_v26 }
 0x4b0   :  { %v4209_v29 = vpop.f32.mrb[96].mxu1 }
 0x4b1   :  { %v4210_v51 = vadd.f32 %v10159_v21, %v4209_v29  ;;  %v4211_v47 = vpop.f32.mrb[97].mxu1  ;;  %v5052_v29 = vld [vmem:[%s11096_s10 + $0x20] sm:$0xff] }
 0x4b3   :  { %v4595_v5 = vadd.f32 %v10098_v19, %v4210_v51  ;;  %v5086_v19 = vld [vmem:[%s11095_s9 + $0x70] sm:$0xff] }
 0x4b5   :  { %v4851_v25 = vmul.f32 %v9831_v55, %v4595_v5  ;;  %v5087_v55 = vld [vmem:[%s11095_s9 + $0x78] sm:$0xff] }
 0x4b6   :  { %v6974_v42 = vpack.c.bf16 %v5087_v55, %v5086_v19  ;;  %v5067_v55 = vld [vmem:[%s11096_s10 + $0x98] sm:$0xff] }
 0x4b7   :  { %v6906_v10 = vpack.c.bf16 %v4851_v25, %v4850_v45  ;;  %v5054_v45 = vld [vmem:[%s11096_s10 + $0x30] sm:$0xff]  ;;  %v5061_v25 = vld [vmem:[%s11096_s10 + $0x68] sm:$0xff] }
 0x4b8   :  { %6975 = vmatpush3.bf16.msra.mxu1 %v6974_v42 }
 0x4b9   :  { %6907 = vmatprep.subr.bf16.mxu0 %v6906_v10 }
 0x4ba   :  { %6909 = vmatpush3.bf16.msra.mxu0 %v6908_v32 }
 0x4bc   :  { %v4214_v14 = vpop.f32.mrb[98].mxu1 }
 0x4bd   :  { %v4215_v28 = vadd.f32 %v10159_v21, %v4214_v14  ;;  %v4216_v38 = vpop.f32.mrb[99].mxu1  ;;  %v5066_v14 = vld [vmem:[%s11096_s10 + $0x90] sm:$0xff] }
 0x4be   :  { %v10285_v22 = vpop.f32.mrb[132].mxu0 }
 0x4bf   :  { %v4600_v2 = vadd.f32 %v10107_v48, %v4215_v28  ;;  %v10287_v61 = vpop.f32.mrb[133].mxu0  ;;  %v5048_v48 = vld [vmem:[%s11096_s10] sm:$0xff] }
 0x4c0   :  { %5197 = vmatmul.mubr.f32.vlgmr.msra.gmra.mrb[122].mxu1 %v5048_v48 }
 0x4c1   :  { %v4852_v32 = vmul.f32 %v9861_v49, %v4600_v2  ;;  %5201 = vmatprep.mubr.f32.mxu1 %v5052_v29  ;;  %v5070_v2 = vld [vmem:[%s11096_s10 + $0xb0] sm:$0xff] }
 0x4c8   :  { %v4219_v9 = vpop.f32.mrb[100].mxu1 }
 0x4c9   :  { %v4220_v7 = vadd.f32 %v10159_v21, %v4219_v9  ;;  %v4221_v3 = vpop.f32.mrb[101].mxu1 }
 0x4cb   :  { %v4605_v59 = vadd.f32 %v10105_v31, %v4220_v7  ;;  %v5051_v31 = vld [vmem:[%s11096_s10 + $0x18] sm:$0xff]  ;;  %v11135_v7 = vpack.c.bf16 %v10088_v20, %v10085_v37 }
 0x4cc   :  { %5202 = vmatmul.mubr.f32.gmra.mrb[124].mxu1 %v5051_v31 }
 0x4cd   :  { %v4853_v26 = vmul.f32 %v9855_v60, %v4605_v59  ;;  %v5055_v60 = vld [vmem:[%s11096_s10 + $0x38] sm:$0xff] }
 0x4ce   :  { %5206 = vmatprep.mubr.f32.mxu1 %v5055_v60 }
 0x4cf   :  { %v6910_v51 = vpack.c.bf16 %v4853_v26, %v4852_v32 }
 0x4d0   :  { %5207 = vmatmul.mubr.f32.gmra.mrb[126].mxu1 %v5054_v45 }
 0x4d1   :  { %6911 = vmatprep.subr.bf16.mxu0 %v6910_v51  ;;  %5211 = vmatprep.mubr.f32.mxu1 %v5058_v40 }
 0x4d2   :  { %6913 = vmatpush3.bf16.msra.mxu0 %v6912_v1  ;;  %v5057_v1 = vld [vmem:[%s11096_s10 + $0x48] sm:$0xff] }
 0x4d4   :  { %v4224_v49 = vpop.f32.mrb[102].mxu1  ;;  %5212 = vmatmul.mubr.f32.gmra.mrb[128].mxu1 %v5057_v1 }
 0x4d5   :  { %v4225_v47 = vadd.f32 %v10159_v21, %v4224_v49  ;;  %v4226_v5 = vpop.f32.mrb[103].mxu1  ;;  %5216 = vmatprep.mubr.f32.mxu1 %v5061_v25  ;;  %v11136_v49 = vpack.c.bf16 %v10142_v8, %v10139_v52  ;;  %v11137_v52 = vpack.c.bf16 %v10177_v35, %v10174_v30 }
 0x4d7   :  { %v4610_v27 = vadd.f32 %v10114_v15, %v4225_v47  ;;  %v5063_v15 = vld [vmem:[%s11096_s10 + $0x78] sm:$0xff] }
 0x4d8   :  { %5217 = vmatmul.mubr.f32.gmra.mrb[130].mxu1 %v5060_v17 }
 0x4d9   :  { %5221 = vmatprep.mubr.f32.mxu1 %v5064_v41  ;;  %v4854_v28 = vmul.f32 %v9887_v33, %v4610_v27 }
 0x4dc   :  { %5222 = vmatmul.mubr.f32.gmra.mrb[132].mxu1 %v5063_v15 }
 0x4dd   :  { %5226 = vmatprep.mubr.f32.mxu1 %v5067_v55 }
 0x4e0   :  { %v4229_v56 = vpop.f32.mrb[104].mxu1  ;;  %5227 = vmatmul.mubr.f32.gmra.mrb[134].mxu1 %v5066_v14 }
 0x4e1   :  { %v4230_v10 = vadd.f32 %v10159_v21, %v4229_v56  ;;  %v4231_v19 = vpop.f32.mrb[105].mxu1  ;;  %5231 = vmatprep.mubr.f32.mxu1 %v5070_v2  ;;  %v6448_v59 = vpop.f32.mrb[134].mxu0  ;;  %v5105_v2 = vld [vmem:[%s11095_s9 + $0x108] sm:$0xff] }
 0x4e2   :  { %v6449_v32 = vpop.f32.mrb[135].mxu0 }
 0x4e3   :  { %v4615_v42 = vadd.f32 %v10112_v23, %v4230_v10  ;;  %v5069_v23 = vld [vmem:[%s11096_s10 + $0xa8] sm:$0xff]  ;;  %v10355_v26 = vadd.f32 %v6449_v32, %v6448_v59  ;;  %v5056_v32 = vld [vmem:[%s11096_s10 + $0x40] sm:$0xff] }
 0x4e4   :  { %5232 = vmatmul.mubr.f32.gmra.mrb[136].mxu1 %v5069_v23  ;;  %v5107_v23 = vld [vmem:[%s11095_s9 + $0x118] sm:$0xff]  ;;  %v5053_v59 = vld [vmem:[%s11096_s10 + $0x28] sm:$0xff] }
 0x4e5   :  { %v4855_v38 = vmul.f32 %v9881_v12, %v4615_v42 }
 0x4e7   :  { %v6914_v9 = vpack.c.bf16 %v4855_v38, %v4854_v28 }
 0x4e9   :  { %6915 = vmatprep.subr.bf16.mxu0 %v6914_v9  ;;  %v11138_v9 = vmov 1.0  }
 0x4ea   :  { %6917 = vmatpush3.bf16.msra.mxu0 %v11135_v7  ;;  %v4941_v7 = vld [vmem:[%s11094_s8 + $0x8] sm:$0xff] }
 0x4ec   :  { %v4234_v33 = vpop.f32.mrb[106].mxu1 }
 0x4ed   :  { %v4235_v12 = vadd.f32 %v10159_v21, %v4234_v33  ;;  %v4236_v3 = vpop.f32.mrb[107].mxu1  ;;  %v4942_v33 = vld [vmem:[%s11094_s8 + $0x10] sm:$0xff] }
 0x4ee   :  { %v4943_v3 = vld [vmem:[%s11094_s8 + $0x18] sm:$0xff] }
 0x4ef   :  { %v4620_v58 = vadd.f32 %v10120_v62, %v4235_v12 }
 0x4f1   :  { %v4856_v37 = vmul.f32 %v9908_v54, %v4620_v58  ;;  %v5050_v58 = vld [vmem:[%s11096_s10 + $0x10] sm:$0xff] }
 0x4f8   :  { %v4239_v48 = vpop.f32.mrb[108].mxu1 }
 0x4f9   :  { %v4240_v29 = vadd.f32 %v10159_v21, %v4239_v48  ;;  %v4241_v51 = vpop.f32.mrb[109].mxu1  ;;  %v5059_v48 = vld [vmem:[%s11096_s10 + $0x58] sm:$0xff] }
 0x4fa   :  { %v5065_v51 = vld [vmem:[%s11096_s10 + $0x88] sm:$0xff] }
 0x4fb   :  { %v4625_v31 = vadd.f32 %v10118_v18, %v4240_v29  ;;  %v5062_v29 = vld [vmem:[%s11096_s10 + $0x70] sm:$0xff] }
 0x4fd   :  { %v4857_v20 = vmul.f32 %v9903_v63, %v4625_v31  ;;  %v5068_v31 = vld [vmem:[%s11096_s10 + $0xa0] sm:$0xff] }
 0x4ff   :  { %v6918_v60 = vpack.c.bf16 %v4857_v20, %v4856_v37  ;;  %v5071_v37 = vld [vmem:[%s11096_s10 + $0xb8] sm:$0xff] }
 0x501   :  { %6919 = vmatprep.subr.bf16.mxu0 %v6918_v60 }
 0x502   :  { %6921 = vmatpush3.bf16.msra.mxu0 %v11136_v49 }
 0x504   :  { %v4244_v62 = vpop.f32.mrb[110].mxu1 }
 0x505   :  { %v4245_v47 = vadd.f32 %v10159_v21, %v4244_v62  ;;  %v4246_v5 = vpop.f32.mrb[111].mxu1 }
 0x507   :  { %v4630_v45 = vadd.f32 %v10127_v39, %v4245_v47 }
 0x509   :  { %v4858_v63 = vmul.f32 %v9938_v44, %v4630_v45 }
 0x510   :  { %v4249_v40 = vpop.f32.mrb[112].mxu1 }
 0x511   :  { %v4250_v27 = vadd.f32 %v10159_v21, %v4249_v40  ;;  %v4251_v18 = vpop.f32.mrb[113].mxu1 }
 0x513   :  { %v4635_v54 = vadd.f32 %v10125_v34, %v4250_v27 }
 0x515   :  { %v4859_v1 = vmul.f32 %v9921_v6, %v4635_v54 }
 0x517   :  { %v6922_v25 = vpack.c.bf16 %v4859_v1, %v4858_v63 }
 0x519   :  { %6923 = vmatprep.subr.bf16.mxu0 %v6922_v25 }
 0x51a   :  { %6925 = vmatpush3.bf16.msra.mxu0 %v11137_v52 }
 0x51c   :  { %v4254_v8 = vpop.f32.mrb[114].mxu1 }
 0x51d   :  { %v4255_v17 = vadd.f32 %v10159_v21, %v4254_v8  ;;  %v4256_v39 = vpop.f32.mrb[115].mxu1 }
 0x51f   :  { %v4640_v41 = vadd.f32 %v10257_v53, %v4255_v17 }
 0x521   :  { %v4860_v6 = vmul.f32 %v9964_v57, %v4640_v41 }
 0x528   :  { %v4259_v15 = vpop.f32.mrb[116].mxu1 }
 0x529   :  { %v4260_v56 = vadd.f32 %v10159_v21, %v4259_v15  ;;  %v4261_v34 = vpop.f32.mrb[117].mxu1 }
 0x52b   :  { %v4645_v44 = vadd.f32 %v10255_v0, %v4260_v56 }
 0x52d   :  { %v4861_v10 = vmul.f32 %v9959_v13, %v4645_v44  ;;  %v4944_v13 = vld [vmem:[%s11093_s7] sm:$0xff] }
 0x52f   :  { %v6926_v19 = vpack.c.bf16 %v4861_v10, %v4860_v6  ;;  %v5342_v10 = vlaneseq }
 0x531   :  { %6927 = vmatprep.subr.bf16.mxu0 %v6926_v19  ;;  %v10474_v19 = vshrl.u32 %v5342_v10, 7 }
 0x532   :  { %6929 = vmatpush3.bf16.msra.mxu0 %v6928_v36 }
 0x534   :  { %v4264_v30 = vpop.f32.mrb[118].mxu1 }
 0x535   :  { %v4265_v35 = vadd.f32 %v10159_v21, %v4264_v30  ;;  %v4266_v53 = vpop.f32.mrb[119].mxu1 }
 0x537   :  { %v4650_v55 = vadd.f32 %v10287_v61, %v4265_v35  ;;  %v6934_v61 = vpack.c.bf16 %v4945_v43, %v4944_v13 }
 0x539   :  { %v4862_v24 = vmul.f32 %v9985_v4, %v4650_v55  ;;  %v5104_v4 = vld [vmem:[%s11095_s9 + $0x100] sm:$0xff]  ;;  %v10479_v55 = vadd.s32 8, %v10474_v19 }
 0x53a   :  { %v6976_v16 = vpack.c.bf16 %v5105_v2, %v5104_v4 }
 0x540   :  { %v4269_v42 = vpop.f32.mrb[120].mxu1 }
 0x541   :  { %v4270_v14 = vadd.f32 %v10159_v21, %v4269_v42  ;;  %v4271_v0 = vpop.f32.mrb[121].mxu1  ;;  %v4946_v21 = vld [vmem:[%s11093_s7 + $0x10] sm:$0xff]  ;;  %v10481_v42 = vand.u32 127, %v5342_v10 }
 0x542   :  { %v10491_v0 = vadd.s32 16, %v10474_v19 }
 0x543   :  { %v4655_v57 = vadd.f32 %v10285_v22, %v4270_v14  ;;  %v4947_v22 = vld [vmem:[%s11093_s7 + $0x18] sm:$0x7]  ;;  %vm5350_vm8 = vcmp.eq.s32.totalorder %v10479_v55, %v10481_v42  ;;  %vm5349_vm9 = vcmp.eq.s32.totalorder %v10474_v19, %v10481_v42  ;;  %v10488_v14 = vadd.s32 24, %v10474_v19 }
 0x544   :  { %v6938_v38 = vpack.c.bf16 %v4947_v22, %v4946_v21  ;;  %vm5351_vm11 = vcmp.eq.s32.totalorder %v10491_v0, %v10481_v42 }
 0x545   :  { %v4863_v36 = vmul.f32 %v9980_v11, %v4655_v57  ;;  %v4940_v11 = vld [vmem:[%s11094_s8] sm:$0xff]  ;;  %vm5352_vm10 = vcmp.eq.s32.totalorder %v10488_v14, %v10481_v42 }
 0x547   :  { %v6930_v28 = vpack.c.bf16 %v4863_v36, %v4862_v24 }
 0x549   :  { %6931 = vmatprep.subr.bf16.mxu0 %v6930_v28 }
 0x54a   :  { %6933 = vmatpush3.bf16.msra.mxu0 %v6932_v50  ;;  %v5106_v50 = vld [vmem:[%s11095_s9 + $0x110] sm:$0xff] }
 0x54b   :  { %6935 = vmatprep.subr.bf16.mxu0 %v6934_v61  ;;  %v6980_v12 = vpack.c.bf16 %v5107_v23, %v5106_v50 }
 0x54d   :  { %4929 = vmatmul.mubr.f32.vlgmr.msra.gmra.mrb[136].mxu0 %v11138_v9 }
 0x54e   :  { %6937 = vmatpush3.bf16.msra.mxu0 %v6934_v61  ;;  %6778 = vmatprep.mubr.msk.f32.mxu0 %vm118_vm1, %v4940_v11 }
 0x54f   :  { %6940 = vmatprep.subr.msk.bf16.mxu0 %vm7243_vm3, %v6938_v38 }
 0x552   :  { %6943 = vmatpush3.bf16.msk.msra.mxu0 %vm7243_vm3, %v6938_v38 }
 0x553   :  { %6977 = vmatprep.subr.bf16.mxu0 %v6976_v16 }
 0x555   :  { %6779 = vmatmul.mubr.msk.f32.vlgmr.msra.gmra.mrb[138].mxu0 %vm118_vm1, %v4941_v7 }
 0x556   :  { %6979 = vmatpush3.bf16.msra.mxu0 %v6976_v16  ;;  %6781 = vmatprep.mubr.msk.f32.mxu0 %vm118_vm1, %v4942_v33 }
 0x557   :  { %6981 = vmatprep.subr.bf16.mxu0 %v6980_v12 }
 0x559   :  { %6782 = vmatmul.mubr.msk.f32.gmra.mrb[140].mxu0 %vm118_vm1, %v4943_v3 }
 0x55a   :  { %6983 = vmatpush3.bf16.msra.mxu0 %v6980_v12  ;;  %6792 = vmatprep.mubr.msk.f32.mxu0 %vm700_vm4, %v5050_v58 }
 0x55d   :  { %6793 = vmatmul.mubr.msk.f32.vlgmr.msra.gmra.mrb[142].mxu0 %vm700_vm4, %v5053_v59  ;;  %v10539_v59 = vadd.s32 40, %v10474_v19 }
 0x55e   :  { %6795 = vmatprep.mubr.msk.f32.mxu0 %vm700_vm4, %v5056_v32 }
 0x55f   :  { %vm5606_vm13 = vcmp.eq.s32.totalorder %v10539_v59, %v10481_v42 }
 0x561   :  { %6796 = vmatmul.mubr.msk.f32.gmra.mrb[144].mxu0 %vm700_vm4, %v5059_v48 }
 0x562   :  { %6798 = vmatprep.mubr.msk.f32.mxu0 %vm700_vm4, %v5062_v29 }
 0x565   :  { %6799 = vmatmul.mubr.msk.f32.gmra.mrb[146].mxu0 %vm700_vm4, %v5065_v51  ;;  %v10545_v51 = vadd.s32 32, %v10474_v19 }
 0x566   :  { %6801 = vmatprep.mubr.msk.f32.mxu0 %vm700_vm4, %v5068_v31 }
 0x567   :  { %vm5605_vm14 = vcmp.eq.s32.totalorder %v10545_v51, %v10481_v42 }
 0x569   :  { %6802 = vmatmul.mubr.msk.f32.gmra.mrb[148].mxu0 %vm700_vm4, %v5071_v37 }
 0x593   :  { %v6526_v20 = vpop.f32.mrb[122].mxu1 }
 0x594   :  { %v6527_v60 = vpop.f32.mrb[123].mxu1 }
 0x595   :  { %v6528_v49 = vadd.f32 %v6527_v60, %v6526_v20 }
 0x59f   :  { %v6529_v62 = vpop.f32.mrb[124].mxu1 }
 0x5a0   :  { %v6530_v47 = vpop.f32.mrb[125].mxu1 }
 0x5a1   :  { %v6531_v5 = vadd.f32 %v6530_v47, %v6529_v62  ;;  %v10561_v47 = vadd.s32 56, %v10474_v19 }
 0x5a3   :  { %v6532_v45 = vpop.f32.mrb[126].mxu1  ;;  %vm5608_vm15 = vcmp.eq.s32.totalorder %v10561_v47, %v10481_v42 }
 0x5a4   :  { %v6533_v40 = vpop.f32.mrb[127].mxu1 }
 0x5a5   :  { %v6534_v27 = vadd.f32 %v6533_v40, %v6532_v45  ;;  %v10568_v40 = vadd.s32 48, %v10474_v19 }
 0x5a7   :  { %v6535_v18 = vpop.f32.mrb[128].mxu1  ;;  %vm5607_vm0 = vcmp.eq.s32.totalorder %v10568_v40, %v10481_v42 }
 0x5a8   :  { %v6536_v54 = vpop.f32.mrb[129].mxu1 }
 0x5a9   :  { %v6537_v63 = vadd.f32 %v6536_v54, %v6535_v18 }
 0x5ab   :  { %v6538_v1 = vpop.f32.mrb[130].mxu1 }
 0x5ac   :  { %v6539_v25 = vpop.f32.mrb[131].mxu1 }
 0x5ad   :  { %v10468_v52 = vadd.f32 %v6539_v25, %v6538_v1 }
 0x5af   :  { %v6541_v8 = vpop.f32.mrb[132].mxu1 }
 0x5b0   :  { %v6542_v17 = vpop.f32.mrb[133].mxu1 }
 0x5b1   :  { %v6543_v39 = vadd.f32 %v6542_v17, %v6541_v8 }
 0x5b3   :  { %v6544_v41 = vpop.f32.mrb[134].mxu1 }
 0x5b4   :  { %v6545_v15 = vpop.f32.mrb[135].mxu1 }
 0x5b5   :  { %v10470_v56 = vadd.f32 %v6545_v15, %v6544_v41 }
 0x5b7   :  { %v6547_v34 = vpop.f32.mrb[136].mxu1 }
 0x5b8   :  { %v6548_v44 = vpop.f32.mrb[137].mxu1 }
 0x5b9   :  { %v10472_v6 = vadd.f32 %v6548_v44, %v6547_v34 }
 0x620   :  { %v6483_v30 = vpop.f32.mrb[136].mxu0 }
 0x621   :  { %v6484_v35 = vpop.f32.mrb[137].mxu0 }
 0x622   :  { %v10476_v53 = vadd.f32 %v6484_v35, %v6483_v30 }
 0x628   :  { %v10493_v57 = vpop.f32.mrb[138].mxu0 }
 0x629   :  { %v5354_v13 = vsel %vm5350_vm8, %v10493_v57, 0.0  ;;  %v10499_v43 = vpop.f32.mrb[139].mxu0 }
 0x62a   :  { %v5353_v24 = vsel %vm5349_vm9, %v10499_v43, 0.0  ;;  %v5360_v36 = vsel %vm700_vm4, %v5354_v13, 0.0 }
 0x62b   :  { %5361 = vadd.xlane.f32.xlu1 %v5360_v36  ;;  %v5357_v28 = vsel %vm700_vm4, %v5353_v24, 0.0 }
 0x62c   :  { %5358 = vadd.xlane.f32.xlu0 %v5357_v28  ;;  %v5401_v61 = vadd.f32 %v5360_v36, %v5357_v28  ;;  %v10511_v21 = vpop.f32.mrb[140].mxu0 }
 0x62d   :  { %v10513_v22 = vpop.f32.mrb[141].mxu0  ;;  %v5356_v38 = vsel %vm5352_vm10, %v10511_v21, 0.0 }
 0x62e   :  { %v5355_v11 = vsel %vm5351_vm11, %v10513_v22, 0.0  ;;  %v5366_v50 = vsel %vm700_vm4, %v5356_v38, 0.0 }
 0x62f   :  { %v5363_v4 = vsel %vm700_vm4, %v5355_v11, 0.0 }
 0x630   :  { %v6794_v2 = vpop.f32.mrb[142].mxu0  ;;  %v5402_v9 = vadd.f32 %v5401_v61, %v5363_v4 }
 0x631   :  { %v10524_v46 = vadd.f32 %v6794_v2, %v6531_v5  ;;  %v5303_v16 = vpop.f32.mrb[143].mxu0 }
 0x632   :  { %v10527_v23 = vadd.f32 %v6528_v49, %v5303_v16  ;;  %v5403_v7 = vadd.f32 %v5402_v9, %v5366_v50 }
 0x633   :  { %v5610_v33 = vsel %vm5350_vm8, %v10524_v46, 0.0 }
 0x634   :  { %v5609_v12 = vsel %vm5349_vm9, %v10527_v23, 0.0  ;;  %v6797_v3 = vpop.f32.mrb[144].mxu0  ;;  %v5621_v58 = vsel %vm5617_vm12, %v5610_v33, 0.0 }
 0x635   :  { %v10541_v32 = vadd.f32 %v6797_v3, %v6537_v63  ;;  %5622 = vadd.xlane.f32.xlu1 %v5621_v58  ;;  %v5313_v48 = vpop.f32.mrb[145].mxu0  ;;  %v5618_v29 = vsel %vm5617_vm12, %v5609_v12, 0.0 }
 0x636   :  { %v10547_v31 = vadd.f32 %v6534_v27, %v5313_v48  ;;  %5619 = vadd.xlane.f32.xlu0 %v5618_v29  ;;  %v5706_v37 = vadd.f32 %v5621_v58, %v5618_v29 }
 0x637   :  { %v5612_v20 = vsel %vm5352_vm10, %v10541_v32, 0.0 }
 0x638   :  { %v5611_v60 = vsel %vm5351_vm11, %v10547_v31, 0.0  ;;  %v6800_v49 = vpop.f32.mrb[146].mxu0  ;;  %v5627_v62 = vsel %vm5617_vm12, %v5612_v20, 0.0 }
 0x639   :  { %v10563_v5 = vadd.f32 %v6800_v49, %v6543_v39  ;;  %v5323_v45 = vpop.f32.mrb[147].mxu0  ;;  %v5624_v27 = vsel %vm5617_vm12, %v5611_v60, 0.0 }
 0x63a   :  { %v10572_v18 = vadd.f32 %v10468_v52, %v5323_v45  ;;  %5628 = vadd.xlane.f32.xlu0 %v5627_v62  ;;  %v5707_v54 = vadd.f32 %v5706_v37, %v5624_v27 }
 0x63b   :  { %v5614_v63 = vsel %vm5606_vm13, %v10563_v5, 0.0 }
 0x63c   :  { %v5613_v1 = vsel %vm5605_vm14, %v10572_v18, 0.0  ;;  %v6803_v25 = vpop.f32.mrb[148].mxu0  ;;  %v5708_v8 = vadd.f32 %v5707_v54, %v5627_v62  ;;  %v5633_v41 = vsel %vm5617_vm12, %v5614_v63, 0.0 }
 0x63d   :  { %v10579_v17 = vadd.f32 %v6803_v25, %v10472_v6  ;;  %v5333_v39 = vpop.f32.mrb[149].mxu0  ;;  %v5630_v52 = vsel %vm5617_vm12, %v5613_v1, 0.0 }
 0x63e   :  { %v10586_v15 = vadd.f32 %v10470_v56, %v5333_v39  ;;  %5631 = vadd.xlane.f32.xlu1 %v5630_v52  ;;  %5625 = vadd.xlane.f32.xlu0 %v5624_v27  ;;  %v5709_v34 = vadd.f32 %v5708_v8, %v5630_v52  ;;  %v5404_v56 = vrot.slane %v5403_v7, 4 }
 0x63f   :  { %v5616_v44 = vsel %vm5608_vm15, %v10579_v17, 0.0 }
 0x640   :  { %v5615_v10 = vsel %vm5607_vm0, %v10586_v15, 0.0  ;;  %v5710_v6 = vadd.f32 %v5709_v34, %v5633_v41  ;;  %v5639_v35 = vsel %vm5617_vm12, %v5616_v44, 0.0  ;;  %v5405_v36 = vadd.f32 %v5404_v56, %v5403_v7 }
 0x641   :  { %v5636_v30 = vsel %vm5617_vm12, %v5615_v10, 0.0 }
 0x642   :  { %5364 = vadd.xlane.f32.xlu1 %v5363_v4  ;;  %5634 = vadd.xlane.f32.xlu0 %v5633_v41  ;;  %v5711_v13 = vadd.f32 %v5710_v6, %v5636_v30  ;;  %v5406_v61 = vrot.slane %v5405_v36, 2 }
 0x644   :  { %v5712_v24 = vadd.f32 %v5711_v13, %v5639_v35  ;;  %v5407_v11 = vadd.f32 %v5406_v61, %v5405_v36 }
 0x646   :  { %5367 = vadd.xlane.f32.xlu1 %v5366_v50  ;;  %5637 = vadd.xlane.f32.xlu0 %v5636_v30  ;;  %v5713_v28 = vrot.slane %v5712_v24, 4  ;;  %v5408_v9 = vrot.slane %v5407_v11, 1 }
 0x648   :  { %v5714_v38 = vadd.f32 %v5713_v28, %v5712_v24  ;;  %v5409_v33 = vadd.f32 %v5408_v9, %v5407_v11 }
 0x64a   :  { %5640 = vadd.xlane.f32.xlu0 %v5639_v35  ;;  %v5715_v2 = vrot.slane %v5714_v38, 2  ;;  %7024 = vrsqrt.f32 %v5409_v33  ;;  %vm5412_vm1 = vcmp.eq.f32.partialorder %v5409_v33, inf  ;;  %v5415_v60 = vand.u32 2147483648, %v5409_v33 }
 0x64b   :  { %vm5414_vm2 = vcmp.eq.f32.partialorder %v5409_v33, 0.0 }
 0x64c   :  { %v5716_v16 = vadd.f32 %v5715_v2, %v5714_v38 }
 0x64e   :  { %v5717_v12 = vrot.slane %v5716_v16, 1 }
 0x650   :  { %v5718_v3 = vadd.f32 %v5717_v12, %v5716_v16 }
 0x652   :  { %7026 = vrsqrt.f32 %v5718_v3  ;;  %vm5721_vm8 = vcmp.eq.f32.partialorder %v5718_v3, inf  ;;  %v5724_v36 = vand.u32 2147483648, %v5718_v3  ;;  %vm5723_vm9 = vcmp.eq.f32.partialorder %v5718_v3, 0.0 }
 0x654   :  { %v7025_v50 = vpop.eup %7024 }
 0x655   :  { %v5411_v48 = vmul.f32 %v7025_v50, %v5409_v33 }
 0x657   :  { %v5413_v29 = vsel %vm5412_vm1, %v5409_v33, %v5411_v48 }
 0x658   :  { %v5416_v54 = vsel %vm5414_vm2, %v5415_v60, %v5413_v29 }
 0x659   :  { %v10592_v44 = vadd.f32 0.0001, %v5416_v54 }
 0x65c   :  { %v7027_v7 = vpop.eup %7026 }
 0x65d   :  { %v5720_v8 = vmul.f32 %v7027_v7, %v5718_v3 }
 0x65f   :  { %v5722_v35 = vsel %vm5721_vm8, %v5718_v3, %v5720_v8 }
 0x660   :  { %v5725_v2 = vsel %vm5723_vm9, %v5724_v36, %v5722_v35 }
 0x661   :  { %v10608_v29 = vadd.f32 0.0001, %v5725_v2 }
 0x6b8   :  { %v5362_v4 = vpop.xlane.xlu1 %5361 }
 0x6b9   :  { %7028 = vrsqrt.f32 %v5362_v4  ;;  %v5359_v58 = vpop.xlane.xlu0 %5358  ;;  %vm5378_vm3 = vcmp.eq.f32.partialorder %v5362_v4, inf  ;;  %v5381_v27 = vand.u32 2147483648, %v5362_v4  ;;  %vm5380_vm5 = vcmp.eq.f32.partialorder %v5362_v4, 0.0 }
 0x6ba   :  { %7030 = vrsqrt.f32 %v5359_v58  ;;  %vm5371_vm6 = vcmp.eq.f32.partialorder %v5359_v58, inf  ;;  %v5374_v25 = vand.u32 2147483648, %v5359_v58  ;;  %vm5373_vm7 = vcmp.eq.f32.partialorder %v5359_v58, 0.0 }
 0x6c2   :  { %v5623_v37 = vpop.xlane.xlu1 %5622 }
 0x6c3   :  { %v7029_v20 = vpop.eup %7028  ;;  %7032 = vrsqrt.f32 %v5623_v37  ;;  %v5620_v49 = vpop.xlane.xlu0 %5619  ;;  %vm5651_vm10 = vcmp.eq.f32.partialorder %v5623_v37, inf  ;;  %vm5653_vm11 = vcmp.eq.f32.partialorder %v5623_v37, 0.0  ;;  %v5654_v16 = vand.u32 2147483648, %v5623_v37 }
 0x6c4   :  { %v7031_v62 = vpop.eup %7030  ;;  %v5377_v45 = vmul.f32 %v7029_v20, %v5362_v4  ;;  %7034 = vrsqrt.f32 %v5620_v49  ;;  %vm5644_vm13 = vcmp.eq.f32.partialorder %v5620_v49, inf  ;;  %v5647_v50 = vand.u32 2147483648, %v5620_v49 }
 0x6c5   :  { %v5370_v63 = vmul.f32 %v7031_v62, %v5359_v58  ;;  %vm5646_vm14 = vcmp.eq.f32.partialorder %v5620_v49, 0.0 }
 0x6c6   :  { %v5379_v1 = vsel %vm5378_vm3, %v5362_v4, %v5377_v45 }
 0x6c7   :  { %v5382_v39 = vsel %vm5380_vm5, %v5381_v27, %v5379_v1  ;;  %v5372_v52 = vsel %vm5371_vm6, %v5359_v58, %v5370_v63  ;;  %v5629_v41 = vpop.xlane.xlu0 %5628 }
 0x6c8   :  { %v5398_v34 = vadd.f32 0.0001, %v5382_v39  ;;  %v5375_v10 = vsel %vm5373_vm7, %v5374_v25, %v5372_v52  ;;  %7036 = vrsqrt.f32 %v5629_v41  ;;  %vm5665_vm15 = vcmp.eq.f32.partialorder %v5629_v41, inf }
 0x6c9   :  { %v5397_v6 = vadd.f32 0.0001, %v5375_v10  ;;  %v5668_v63 = vand.u32 2147483648, %v5629_v41  ;;  %vm5667_vm0 = vcmp.eq.f32.partialorder %v5629_v41, 0.0 }
 0x6ca   :  { %v5419_v30 = vmul.f32 %v10592_v44, %v5398_v34 }
 0x6cb   :  { %v5418_v13 = vmul.f32 %v10592_v44, %v5397_v6  ;;  %v10596_v24 = vpop.xlane.xlu1 %5631  ;;  %v10598_v56 = vpop.xlane.xlu0 %5625 }
 0x6cc   :  { %v5423_v28 = vadd.f32 1e-06, %v5419_v30  ;;  %7038 = vrsqrt.f32 %v10596_v24  ;;  %vm5672_vm1 = vcmp.eq.f32.partialorder %v10596_v24, inf  ;;  %vm5674_vm2 = vcmp.eq.f32.partialorder %v10596_v24, 0.0 }
 0x6cd   :  { %v7033_v61 = vpop.eup %7032  ;;  %v5422_v38 = vadd.f32 1e-06, %v5418_v13  ;;  %7040 = vrsqrt.f32 %v10598_v56  ;;  %vm5658_vm3 = vcmp.eq.f32.partialorder %v10598_v56, inf  ;;  %v5661_v13 = vand.u32 2147483648, %v10598_v56 }
 0x6ce   :  { %v7035_v11 = vpop.eup %7034  ;;  %7042 = vrcp.f32 %v5423_v28  ;;  %v5650_v9 = vmul.f32 %v7033_v61, %v5623_v37  ;;  %vm5660_vm5 = vcmp.eq.f32.partialorder %v10598_v56, 0.0 }
 0x6cf   :  { %7044 = vrcp.f32 %v5422_v38  ;;  %v5643_v33 = vmul.f32 %v7035_v11, %v5620_v49  ;;  %v10602_v12 = vpop.xlane.xlu1 %5364  ;;  %v10604_v4 = vpop.xlane.xlu0 %5634 }
 0x6d0   :  { %v5652_v58 = vsel %vm5651_vm10, %v5623_v37, %v5650_v9  ;;  %7046 = vrsqrt.f32 %v10602_v12  ;;  %vm5385_vm6 = vcmp.eq.f32.partialorder %v10602_v12, inf  ;;  %vm5679_vm7 = vcmp.eq.f32.partialorder %v10604_v4, inf }
 0x6d1   :  { %v5655_v3 = vsel %vm5653_vm11, %v5654_v16, %v5652_v58  ;;  %v5645_v48 = vsel %vm5644_vm13, %v5620_v49, %v5643_v33  ;;  %7048 = vrsqrt.f32 %v10604_v4  ;;  %vm5681_vm8 = vcmp.eq.f32.partialorder %v10604_v4, 0.0 }
 0x6d2   :  { %v7037_v7 = vpop.eup %7036  ;;  %v5699_v20 = vadd.f32 0.0001, %v5655_v3  ;;  %v5648_v60 = vsel %vm5646_vm14, %v5647_v50, %v5645_v48  ;;  %vm5387_vm9 = vcmp.eq.f32.partialorder %v10602_v12, 0.0 }
 0x6d3   :  { %v5698_v62 = vadd.f32 0.0001, %v5648_v60  ;;  %v5664_v45 = vmul.f32 %v7037_v7, %v5629_v41  ;;  %v10610_v27 = vpop.xlane.xlu1 %5367  ;;  %v10612_v54 = vpop.xlane.xlu0 %5637 }
 0x6d4   :  { %v5728_v37 = vmul.f32 %v10608_v29, %v5699_v20  ;;  %7050 = vrsqrt.f32 %v10612_v54  ;;  %vm5392_vm10 = vcmp.eq.f32.partialorder %v10610_v27, inf  ;;  %vm5394_vm11 = vcmp.eq.f32.partialorder %v10610_v27, 0.0 }
 0x6d5   :  { %v5727_v1 = vmul.f32 %v10608_v29, %v5698_v62  ;;  %v5666_v49 = vsel %vm5665_vm15, %v5629_v41, %v5664_v45  ;;  %7052 = vrsqrt.f32 %v10610_v27  ;;  %v5675_v41 = vand.u32 2147483648, %v10596_v24 }
 0x6d6   :  { %v7039_v25 = vpop.eup %7038  ;;  %v5736_v8 = vadd.f32 1e-06, %v5728_v37  ;;  %v5669_v39 = vsel %vm5667_vm0, %v5668_v63, %v5666_v49  ;;  %v5682_v37 = vand.u32 2147483648, %v10604_v4  ;;  %v5555_v63 = vsub.s32 %v10479_v55, %v10481_v42 }
 0x6d7   :  { %v7041_v52 = vpop.eup %7040  ;;  %v5701_v34 = vadd.f32 0.0001, %v5669_v39  ;;  %v5671_v10 = vmul.f32 %v7039_v25, %v10596_v24  ;;  %v10621_v6 = vpop.xlane.xlu0 %5640  ;;  %v5735_v28 = vadd.f32 1e-06, %v5727_v1  ;;  %v5388_v49 = vand.u32 2147483648, %v10602_v12 }
 0x6d8   :  { %v7043_v30 = vpop.eup %7042  ;;  %v5657_v35 = vmul.f32 %v7041_v52, %v10598_v56  ;;  %7054 = vrcp.f32 %v5736_v8  ;;  %v5395_v39 = vand.u32 2147483648, %v10610_v27  ;;  %vm5686_vm13 = vcmp.eq.f32.partialorder %v10612_v54, inf }
 0x6d9   :  { %v7045_v36 = vpop.eup %7044  ;;  %v5730_v61 = vmul.f32 %v10608_v29, %v5701_v34  ;;  %v5673_v38 = vsel %vm5672_vm1, %v10596_v24, %v5671_v10  ;;  %7056 = vrsqrt.f32 %v10621_v6  ;;  %v10633_v9 = vmul.f32 %v7043_v30, %v10493_v57 }
 0x6da   :  { %v7047_v11 = vpop.eup %7046  ;;  %v5659_v2 = vsel %vm5658_vm3, %v10598_v56, %v5657_v35  ;;  %v5676_v58 = vsel %vm5674_vm2, %v5675_v41, %v5673_v38  ;;  %7058 = vrcp.f32 %v5735_v28  ;;  %v10643_v57 = vmul.f32 %v7045_v36, %v10499_v43 }
 0x6db   :  { %v7049_v16 = vpop.eup %7048  ;;  %v5738_v33 = vadd.f32 1e-06, %v5730_v61  ;;  %v5662_v50 = vsel %vm5660_vm5, %v5661_v13, %v5659_v2  ;;  %v5384_v3 = vmul.f32 %v7047_v11, %v10602_v12  ;;  %v5435_v7 = vand.u32 2147483647, %v10633_v9 }
 0x6dc   :  { %v5678_v48 = vmul.f32 %v7049_v16, %v10604_v4  ;;  %v5702_v56 = vadd.f32 0.0001, %v5676_v58  ;;  %v5700_v20 = vadd.f32 0.0001, %v5662_v50  ;;  %vm5688_vm14 = vcmp.eq.f32.partialorder %v10612_v54, 0.0 }
 0x6dd   :  { %v10646_v60 = vmin.f32 %v5435_v7, 1.0  ;;  %7060 = vrcp.f32 %v5738_v33  ;;  %v5386_v45 = vsel %vm5385_vm6, %v10602_v12, %v5384_v3  ;;  %v5689_v36 = vand.u32 2147483648, %v10612_v54 }
 0x6de   :  { %v5680_v24 = vsel %vm5679_vm7, %v10604_v4, %v5678_v48  ;;  %v7051_v62 = vpop.eup %7050  ;;  %v5731_v52 = vmul.f32 %v10608_v29, %v5702_v56  ;;  %v5729_v34 = vmul.f32 %v10608_v29, %v5700_v20  ;;  %v5389_v10 = vsel %vm5387_vm9, %v5388_v49, %v5386_v45 }
 0x6df   :  { %v7053_v1 = vpop.eup %7052  ;;  %v5685_v43 = vmul.f32 %v7051_v62, %v10612_v54  ;;  %v5443_v25 = vmul.f32 -0.0012624911, %v10646_v60  ;;  %v5683_v8 = vsel %vm5681_vm8, %v5682_v37, %v5680_v24  ;;  %vm5693_vm15 = vcmp.eq.f32.partialorder %v10621_v6, inf }
 0x6e0   :  { %v5391_v30 = vmul.f32 %v7053_v1, %v10610_v27  ;;  %v5703_v13 = vadd.f32 0.0001, %v5683_v8  ;;  %v10669_v28 = vsub.f32 1.0, %v10646_v60  ;;  %v5399_v61 = vadd.f32 0.0001, %v5389_v10 }
 0x6e1   :  { %v5687_v41 = vsel %vm5686_vm13, %v10612_v54, %v5685_v43  ;;  %v5447_v12 = vadd.f32 0.00667009, %v5443_v25  ;;  %vm5695_vm0 = vcmp.eq.f32.partialorder %v10621_v6, 0.0  ;;  %v5739_v2 = vadd.f32 1e-06, %v5731_v52 }
 0x6e2   :  { %v7055_v4 = vpop.eup %7054  ;;  %v5737_v16 = vadd.f32 1e-06, %v5729_v34  ;;  %v5690_v33 = vsel %vm5688_vm14, %v5689_v36, %v5687_v41  ;;  %v5696_v58 = vand.u32 2147483648, %v10621_v6  ;;  %v5393_v54 = vsel %vm5392_vm10, %v10610_v27, %v5391_v30 }
 0x6e3   :  { %v7057_v35 = vpop.eup %7056  ;;  %v5451_v11 = vmul.f32 %v5447_v12, %v10646_v60  ;;  %v5434_v7 = vand.u32 2147483647, %v10643_v57  ;;  %v5732_v56 = vmul.f32 %v10608_v29, %v5703_v13  ;;  %7062 = vrsqrt.f32 %v10669_v28 }
 0x6e4   :  { %v5692_v38 = vmul.f32 %v7057_v35, %v10621_v6  ;;  %v7059_v50 = vpop.eup %7058  ;;  %v10683_v24 = vmul.f32 %v7055_v4, %v10524_v46  ;;  %v5420_v45 = vmul.f32 %v10592_v44, %v5399_v61  ;;  %v5704_v37 = vadd.f32 0.0001, %v5690_v33 }
 0x6e5   :  { %v6245_v48 = vadd.f32 -0.017088126, %v5451_v11  ;;  %v10687_v49 = vmin.f32 %v5434_v7, 1.0  ;;  %7064 = vrcp.f32 %v5737_v16  ;;  %v10691_v25 = vmul.f32 %v7059_v50, %v10527_v23 }
 0x6e6   :  { %v5694_v3 = vsel %vm5693_vm15, %v10621_v6, %v5692_v38  ;;  %v5760_v43 = vand.u32 2147483647, %v10683_v24  ;;  %v5396_v8 = vsel %vm5394_vm11, %v5395_v39, %v5393_v54  ;;  %v5740_v10 = vadd.f32 1e-06, %v5732_v56 }
 0x6e7   :  { %v5697_v20 = vsel %vm5695_vm0, %v5696_v58, %v5694_v3  ;;  %v7061_v62 = vpop.eup %7060  ;;  %v5459_v1 = vmul.f32 %v6245_v48, %v10646_v60  ;;  %v5442_v52 = vmul.f32 -0.0012624911, %v10687_v49  ;;  %v10697_v34 = vsub.f32 1.0, %v10687_v49 }
 0x6e8   :  { %v5705_v6 = vadd.f32 0.0001, %v5697_v20  ;;  %v10699_v4 = vmin.f32 %v5760_v43, 1.0  ;;  %v5759_v30 = vand.u32 2147483647, %v10691_v25  ;;  %v10703_v41 = vmul.f32 %v7061_v62, %v10541_v32 }
 0x6e9   :  { %v5463_v46 = vadd.f32 0.03089188, %v5459_v1  ;;  %v5733_v23 = vmul.f32 %v10608_v29, %v5704_v37  ;;  %v5446_v27 = vadd.f32 0.00667009, %v5442_v52  ;;  %7066 = vrsqrt.f32 %v10697_v34 }
 0x6ea   :  { %7068 = vrcp.f32 %v5739_v2  ;;  %v5424_v39 = vadd.f32 1e-06, %v5420_v45  ;;  %v5554_v35 = vsub.s32 %v10474_v19, %v10481_v42  ;;  %v5776_v13 = vmul.f32 -0.0012624911, %v10699_v4 }
 0x6eb   :  { %v5467_v12 = vmul.f32 %v5463_v46, %v10646_v60  ;;  %v10711_v36 = vadd.f32 0.0001, %v5396_v8  ;;  %v5734_v61 = vmul.f32 %v10608_v29, %v5705_v6  ;;  %v5450_v38 = vmul.f32 %v5446_v27, %v10687_v49 }
 0x6ec   :  { %v5784_v11 = vadd.f32 0.00667009, %v5776_v13  ;;  %v10716_v16 = vsub.f32 1.0, %v10699_v4  ;;  %v10718_v33 = vmin.f32 %v5759_v30, 1.0  ;;  %v5762_v2 = vand.u32 2147483647, %v10703_v41 }
 0x6ed   :  { %v6249_v32 = vadd.f32 -0.050174303, %v5467_v12  ;;  %7070 = vrcp.f32 %v5740_v10  ;;  %v5741_v58 = vadd.f32 1e-06, %v5733_v23  ;;  %v6244_v54 = vadd.f32 -0.017088126, %v5450_v38  ;;  %v7063_v3 = vpop.eup %7062 }
 0x6ee   :  { %7072 = vrcp.f32 %v5424_v39  ;;  %vm5511_vm1 = vcmp.eq.f32.partialorder %v10669_v28, inf  ;;  %v5514_v29 = vand.u32 2147483648, %v10669_v28  ;;  %v5792_v48 = vmul.f32 %v5784_v11, %v10699_v4 }
 0x6ef   :  { %v5475_v50 = vmul.f32 %v6249_v32, %v10646_v60  ;;  %v5742_v7 = vadd.f32 1e-06, %v5734_v61  ;;  %vm5513_vm2 = vcmp.eq.f32.partialorder %v10669_v28, 0.0  ;;  %v5458_v20 = vmul.f32 %v6244_v54, %v10687_v49  ;;  %v7065_v62 = vpop.eup %7064 }
 0x6f0   :  { %7074 = vrsqrt.f32 %v10716_v16  ;;  %v6257_v45 = vadd.f32 -0.017088126, %v5792_v48  ;;  %v5775_v37 = vmul.f32 -0.0012624911, %v10718_v33  ;;  %v10730_v1 = vsub.f32 1.0, %v10718_v33 }
 0x6f1   :  { %v5479_v56 = vadd.f32 0.08897899, %v5475_v50  ;;  %v10732_v6 = vmin.f32 %v5762_v2, 1.0  ;;  %7076 = vrcp.f32 %v5741_v58  ;;  %v5510_v8 = vmul.f32 %v7063_v3, %v10669_v28 }
 0x6f2   :  { %v5462_v46 = vadd.f32 0.03089188, %v5458_v20  ;;  %vm5504_vm3 = vcmp.eq.f32.partialorder %v10697_v34, inf  ;;  %v5507_v52 = vand.u32 2147483648, %v10697_v34  ;;  %v5808_v10 = vmul.f32 %v6257_v45, %v10699_v4 }
 0x6f3   :  { %v5483_v43 = vmul.f32 %v5479_v56, %v10646_v60  ;;  %v5783_v30 = vadd.f32 0.00667009, %v5775_v37  ;;  %v7067_v23 = vpop.eup %7066  ;;  %7078 = vrcp.f32 %v5742_v7  ;;  %v10741_v39 = vmul.f32 %v7065_v62, %v10547_v31 }
 0x6f4   :  { %v5466_v27 = vmul.f32 %v5462_v46, %v10687_v49  ;;  %v10743_v13 = vpop.eup %7068  ;;  %vm5535_vm5 = vcmp.lt.f32.partialorder %v10633_v9, 0.0  ;;  %v5816_v61 = vadd.f32 0.03089188, %v5808_v10  ;;  %7080 = vrsqrt.f32 %v10730_v1 }
 0x6f5   :  { %v6253_v12 = vadd.f32 -0.2145988, %v5483_v43  ;;  %v5791_v32 = vmul.f32 %v5783_v30, %v10718_v33  ;;  %v5778_v38 = vmul.f32 -0.0012624911, %v10732_v6  ;;  %v5512_v2 = vsel %vm5511_vm1, %v10669_v28, %v5510_v8 }
 0x6f6   :  { %v6248_v58 = vadd.f32 -0.050174303, %v5466_v27  ;;  %v10754_v31 = vsub.f32 1.0, %v10732_v6  ;;  %v5503_v50 = vmul.f32 %v7067_v23, %v10697_v34  ;;  %vm5506_vm6 = vcmp.eq.f32.partialorder %v10697_v34, 0.0 }
 0x6f7   :  { %v5491_v11 = vmul.f32 %v6253_v12, %v10646_v60  ;;  %v5824_v54 = vmul.f32 %v5816_v61, %v10699_v4  ;;  %v6256_v3 = vadd.f32 -0.017088126, %v5791_v32  ;;  %v5786_v48 = vadd.f32 0.00667009, %v5778_v38  ;;  %v7071_v7 = vpop.eup %7070 }
 0x6f8   :  { %v5474_v60 = vmul.f32 %v6248_v58, %v10687_v49  ;;  %7082 = vrsqrt.f32 %v10754_v31  ;;  %v5761_v20 = vand.u32 2147483647, %v10741_v39  ;;  %v10762_v62 = vpop.eup %7072  ;;  %v5515_v45 = vsel %vm5513_vm2, %v5514_v29, %v5512_v2 }
 0x6f9   :  { %v5495_v56 = vadd.f32 1.5707963, %v5491_v11  ;;  %v6265_v37 = vadd.f32 -0.050174303, %v5824_v54  ;;  %v5807_v43 = vmul.f32 %v6256_v3, %v10718_v33  ;;  %v5794_v8 = vmul.f32 %v5786_v48, %v10732_v6 }
 0x6fa   :  { %v7075_v46 = vpop.eup %7074  ;;  %v5478_v30 = vadd.f32 0.08897899, %v5474_v60  ;;  %vm5904_vm7 = vcmp.eq.f32.partialorder %v10716_v16, inf  ;;  %v5907_v23 = vand.u32 2147483648, %v10716_v16  ;;  %v10772_v32 = vmul.f32 %v7071_v7, %v10563_v5 }
 0x6fb   :  { %v5531_v10 = vmul.f32 %v5515_v45, %v5495_v56  ;;  %v5840_v12 = vmul.f32 %v6265_v37, %v10699_v4  ;;  %v5815_v27 = vadd.f32 0.03089188, %v5807_v43  ;;  %v6259_v61 = vadd.f32 -0.017088126, %v5794_v8  ;;  %v10774_v28 = vpop.eup %7076 }
 0x6fc   :  { %v5482_v38 = vmul.f32 %v5478_v30, %v10687_v49  ;;  %v5505_v11 = vsel %vm5504_vm3, %v10697_v34, %v5503_v50  ;;  %v10780_v2 = vmin.f32 %v5761_v20, 1.0  ;;  %v5903_v54 = vmul.f32 %v7075_v46, %v10716_v16 }
 0x6fd   :  { %v5539_v29 = vsub.f32 3.1415927, %v5531_v10  ;;  %v5848_v58 = vadd.f32 0.08897899, %v5840_v12  ;;  %vm5906_vm8 = vcmp.eq.f32.partialorder %v10716_v16, 0.0  ;;  %v5823_v3 = vmul.f32 %v5815_v27, %v10718_v33  ;;  %v10786_v48 = vpop.eup %7078 }
 0x6fe   :  { %v5810_v5 = vmul.f32 %v6259_v61, %v10732_v6  ;;  %v6252_v56 = vadd.f32 -0.2145988, %v5482_v38  ;;  %vm5897_vm9 = vcmp.eq.f32.partialorder %v10730_v1, inf  ;;  %v5900_v50 = vand.u32 2147483648, %v10730_v1  ;;  %v7081_v20 = vpop.eup %7080 }
 0x6ff   :  { %v5543_v7 = vsel %vm5535_vm5, %v5539_v29, %v5531_v10  ;;  %v5777_v60 = vmul.f32 -0.0012624911, %v10780_v2  ;;  %vm5534_vm10 = vcmp.lt.f32.partialorder %v10643_v57, 0.0  ;;  %v5856_v37 = vmul.f32 %v5848_v58, %v10699_v4 }
 0x700   :  { %v5547_v45 = vmul.f32 0.31830987, %v5543_v7  ;;  %v6264_v43 = vadd.f32 -0.050174303, %v5823_v3  ;;  %v5818_v8 = vadd.f32 0.03089188, %v5810_v5  ;;  %v5490_v46 = vmul.f32 %v6252_v56, %v10687_v49 }
 0x701   :  { %v5508_v9 = vsel %vm5506_vm6, %v5507_v52, %v5505_v11  ;;  %v5785_v10 = vadd.f32 0.00667009, %v5777_v60  ;;  %v10801_v30 = vsub.f32 1.0, %v10780_v2  ;;  %v6273_v27 = vadd.f32 -0.2145988, %v5856_v37 }
 0x702   :  { %v5551_v12 = vadd.f32 0.0001, %v5547_v45  ;;  %v5905_v61 = vsel %vm5904_vm7, %v10716_v16, %v5903_v54  ;;  %v5839_v29 = vmul.f32 %v6264_v43, %v10718_v33  ;;  %vm5899_vm11 = vcmp.eq.f32.partialorder %v10730_v1, 0.0  ;;  %v7083_v49 = vpop.eup %7082 }
 0x703   :  { %v5494_v38 = vadd.f32 1.5707963, %v5490_v46  ;;  %vm5960_vm13 = vcmp.lt.f32.partialorder %v10683_v24, 0.0  ;;  %v5896_v34 = vmul.f32 %v7081_v20, %v10730_v1  ;;  %v5826_v52 = vmul.f32 %v5818_v8, %v10732_v6 }
 0x704   :  { %v5793_v11 = vmul.f32 %v5785_v10, %v10780_v2  ;;  %v5563_v58 = vmul.f32 %v5551_v12, %v5551_v12  ;;  %v5872_v3 = vmul.f32 %v6273_v27, %v10699_v4  ;;  %v5847_v5 = vadd.f32 0.08897899, %v5839_v29 }
 0x705   :  { %7084 = vrsqrt.f32 %v10801_v30  ;;  %v5530_v54 = vmul.f32 %v5508_v9, %v5494_v38  ;;  %v6267_v7 = vadd.f32 -0.050174303, %v5826_v52  ;;  %v5917_v56 = vmul.f32 %v7083_v49, %v10754_v31 }
 0x706   :  { %v6258_v60 = vadd.f32 -0.017088126, %v5793_v11  ;;  %vm10818_vm14 = vcmp.ge.s32.totalorder %v5555_v63, 2  ;;  %7086 = vrcp.f32 %v5563_v58  ;;  %v5880_v45 = vadd.f32 1.5707963, %v5872_v3 }
 0x707   :  { %v5855_v37 = vmul.f32 %v5847_v5, %v10718_v33  ;;  %vm5918_vm15 = vcmp.eq.f32.partialorder %v10754_v31, inf  ;;  %v5538_v4 = vsub.f32 3.1415927, %v5530_v54  ;;  %v5908_v43 = vsel %vm5906_vm8, %v5907_v23, %v5905_v61 }
 0x708   :  { %v5842_v8 = vmul.f32 %v6267_v7, %v10732_v6  ;;  %v5809_v46 = vmul.f32 %v6258_v60, %v10780_v2  ;;  %v5952_v9 = vmul.f32 %v5908_v43, %v5880_v45  ;;  %v5898_v63 = vsel %vm5897_vm9, %v10730_v1, %v5896_v34 }
 0x709   :  { %v6272_v55 = vadd.f32 -0.2145988, %v5855_v37  ;;  %vm5920_vm0 = vcmp.eq.f32.partialorder %v10754_v31, 0.0  ;;  %v5542_v10 = vsel %vm5534_vm10, %v5538_v4, %v5530_v54  ;;  %vm5959_vm1 = vcmp.lt.f32.partialorder %v10691_v25, 0.0 }
 0x70a   :  { %v5850_v12 = vadd.f32 0.08897899, %v5842_v8  ;;  %v5919_v16 = vsel %vm5918_vm15, %v10754_v31, %v5917_v56  ;;  %v5817_v23 = vadd.f32 0.03089188, %v5809_v46  ;;  %v5546_v27 = vmul.f32 0.31830987, %v5542_v10 }
 0x70b   :  { %v5968_v61 = vsub.f32 3.1415927, %v5952_v9  ;;  %v5871_v29 = vmul.f32 %v6272_v55, %v10718_v33  ;;  %v5764_v49 = vand.u32 2147483647, %v10772_v32  ;;  %v5901_v38 = vsel %vm5899_vm11, %v5900_v50, %v5898_v63 }
 0x70c   :  { %v5858_v34 = vmul.f32 %v5850_v12, %v10732_v6  ;;  %v5921_v57 = vand.u32 2147483648, %v10754_v31  ;;  %v5825_v52 = vmul.f32 %v5817_v23, %v10780_v2  ;;  %v5550_v11 = vadd.f32 0.0001, %v5546_v27 }
 0x70d   :  { %v5976_v58 = vsel %vm5960_vm13, %v5968_v61, %v5952_v9  ;;  %v5879_v3 = vadd.f32 1.5707963, %v5871_v29  ;;  %v10845_v5 = vmin.f32 %v5764_v49, 1.0  ;;  %v10852_v37 = vmul.f32 %v10743_v13, %v10572_v18 }
 0x70e   :  { %v5984_v54 = vmul.f32 0.31830987, %v5976_v58  ;;  %v6275_v33 = vadd.f32 -0.2145988, %v5858_v34  ;;  %v5922_v7 = vsel %vm5920_vm0, %v5921_v57, %v5919_v16  ;;  %v6266_v1 = vadd.f32 -0.050174303, %v5825_v52 }
 0x70f   :  { %v7085_v50 = vpop.eup %7084  ;;  %v5562_v56 = vmul.f32 %v5550_v11, %v5550_v11  ;;  %v5951_v60 = vmul.f32 %v5901_v38, %v5879_v3  ;;  %v5780_v45 = vmul.f32 -0.0012624911, %v10845_v5  ;;  %v10858_v8 = vmul.f32 %v10774_v28, %v10586_v15 }
 0x710   :  { %v5992_v24 = vadd.f32 0.0001, %v5984_v54  ;;  %v5874_v4 = vmul.f32 %v6275_v33, %v10732_v6  ;;  %v5841_v43 = vmul.f32 %v6266_v1, %v10780_v2  ;;  %v7087_v31 = vpop.eup %7086  ;;  %vm10863_vm2 = vcmp.ge.s32.totalorder %v5554_v35, 2 }
 0x711   :  { %7088 = vrcp.f32 %v5562_v56  ;;  %v5967_v18 = vsub.f32 3.1415927, %v5951_v60  ;;  %v5788_v13 = vadd.f32 0.00667009, %v5780_v45  ;;  %v10868_v9 = vsub.f32 1.0, %v10845_v5 }
 0x712   :  { %v5575_v6 = vsel %vm10818_vm14, %v7087_v31, 0.0  ;;  %v6008_v55 = vmul.f32 %v5992_v24, %v5992_v24  ;;  %v5882_v15 = vadd.f32 1.5707963, %v5874_v4  ;;  %v5849_v28 = vadd.f32 0.08897899, %v5841_v43 }
 0x713   :  { %v5581_v63 = vsel %vm700_vm4, %v5575_v6, 0.0  ;;  %v5975_v19 = vsel %vm5959_vm1, %v5967_v18, %v5951_v60  ;;  %v5910_v35 = vmul.f32 %v7085_v50, %v10801_v30  ;;  %v5796_v10 = vmul.f32 %v5788_v13, %v10845_v5 }
 0x714   :  { %5582 = vadd.xlane.f32.xlu1 %v5581_v63  ;;  %7090 = vrcp.f32 %v6008_v55  ;;  %v5983_v12 = vmul.f32 0.31830987, %v5975_v19  ;;  %v5954_v16 = vmul.f32 %v5922_v7, %v5882_v15  ;;  %v5857_v23 = vmul.f32 %v5849_v28, %v10780_v2 }
 0x715   :  { %v5421_v27 = vmul.f32 %v10592_v44, %v10711_v36  ;;  %vm5911_vm3 = vcmp.eq.f32.partialorder %v10801_v30, inf  ;;  %v6261_v61 = vadd.f32 -0.017088126, %v5796_v10  ;;  %7092 = vrsqrt.f32 %v10868_v9 }
 0x716   :  { %v5991_v25 = vadd.f32 0.0001, %v5983_v12  ;;  %v5970_v29 = vsub.f32 3.1415927, %v5954_v16  ;;  %v6274_v49 = vadd.f32 -0.2145988, %v5857_v23  ;;  %v10884_v38 = vmul.f32 %v10762_v62, %v10513_v22 }
 0x717   :  { %vm5962_vm5 = vcmp.lt.f32.partialorder %v10703_v41, 0.0  ;;  %v5912_v34 = vsel %vm5911_vm3, %v10801_v30, %v5910_v35  ;;  %v5812_v57 = vmul.f32 %v6261_v61, %v10845_v5  ;;  %v5763_v44 = vand.u32 2147483647, %v10852_v37 }
 0x718   :  { %v6007_v36 = vmul.f32 %v5991_v25, %v5991_v25  ;;  %v5978_v52 = vsel %vm5962_vm5, %v5970_v29, %v5954_v16  ;;  %v5873_v11 = vmul.f32 %v6274_v49, %v10780_v2  ;;  %v5765_v58 = vand.u32 2147483647, %v10858_v8 }
 0x719   :  { %v5986_v3 = vmul.f32 0.31830987, %v5978_v52  ;;  %v5914_v54 = vand.u32 2147483648, %v10801_v30  ;;  %v5820_v33 = vadd.f32 0.03089188, %v5812_v57  ;;  %v10893_v22 = vmin.f32 %v5763_v44, 1.0 }
 0x71a   :  { %7094 = vrcp.f32 %v6007_v36  ;;  %v5881_v41 = vadd.f32 1.5707963, %v5873_v11  ;;  %vm5913_vm6 = vcmp.eq.f32.partialorder %v10801_v30, 0.0  ;;  %v10896_v62 = vmin.f32 %v5765_v58, 1.0 }
 0x71b   :  { %v7089_v7 = vpop.eup %7088  ;;  %v5994_v1 = vadd.f32 0.0001, %v5986_v3  ;;  %v5915_v50 = vsel %vm5913_vm6, %v5914_v54, %v5912_v34  ;;  %v5828_v56 = vmul.f32 %v5820_v33, %v10845_v5  ;;  %v5779_v2 = vmul.f32 -0.0012624911, %v10893_v22 }
 0x71c   :  { %v5425_v60 = vadd.f32 1e-06, %v5421_v27  ;;  %v5574_v45 = vsel %vm10863_vm2, %v7089_v7, 0.0  ;;  %v5953_v24 = vmul.f32 %v5915_v50, %v5881_v41  ;;  %v10903_v4 = vsub.f32 1.0, %v10893_v22 }
 0x71d   :  { %v5578_v43 = vsel %vm700_vm4, %v5574_v45, 0.0  ;;  %v6010_v30 = vmul.f32 %v5994_v1, %v5994_v1  ;;  %v6269_v31 = vadd.f32 -0.050174303, %v5828_v56  ;;  %v5787_v18 = vadd.f32 0.00667009, %v5779_v2 }
 0x71e   :  { %v7091_v13 = vpop.eup %7090  ;;  %5579 = vadd.xlane.f32.xlu0 %v5578_v43  ;;  %v5557_v6 = vsub.s32 %v10488_v14, %v10481_v42  ;;  %vm5961_vm7 = vcmp.lt.f32.partialorder %v10741_v39, 0.0  ;;  %v5969_v55 = vsub.f32 3.1415927, %v5953_v24  ;;  %v5781_v15 = vmul.f32 -0.0012624911, %v10896_v62 }
 0x71f   :  { %v7093_v28 = vpop.eup %7092  ;;  %v6032_v63 = vsel %vm10818_vm14, %v7091_v13, 0.0  ;;  %7096 = vrcp.f32 %v6010_v30  ;;  %v5844_v19 = vmul.f32 %v6269_v31, %v10845_v5  ;;  %v5795_v35 = vmul.f32 %v5787_v18, %v10893_v22 }
 0x720   :  { %v6042_v10 = vsel %vm5617_vm12, %v6032_v63, 0.0  ;;  %v5977_v12 = vsel %vm5961_vm7, %v5969_v55, %v5953_v24  ;;  %v10916_v16 = vsub.f32 1.0, %v10896_v62  ;;  %7098 = vrsqrt.f32 %v10903_v4 }
 0x721   :  { %v5985_v14 = vmul.f32 0.31830987, %v5977_v12  ;;  %v5852_v39 = vadd.f32 0.08897899, %v5844_v19  ;;  %v6260_v23 = vadd.f32 -0.017088126, %v5795_v35  ;;  %7100 = vrcp.f32 %v5425_v60 }
 0x722   :  { %6043 = vadd.xlane.f32.xlu0 %v6042_v10  ;;  %vm10919_vm8 = vcmp.ge.s32.totalorder %v5557_v6, 2  ;;  %v5931_v27 = vmul.f32 %v7093_v28, %v10868_v9  ;;  %v5789_v61 = vadd.f32 0.00667009, %v5781_v15  ;;  %vm5932_vm9 = vcmp.eq.f32.partialorder %v10868_v9, inf }
 0x723   :  { %v5993_v25 = vadd.f32 0.0001, %v5985_v14  ;;  %v5860_v29 = vmul.f32 %v5852_v39, %v10845_v5  ;;  %v5811_v49 = vmul.f32 %v6260_v23, %v10893_v22  ;;  %v5935_v57 = vand.u32 2147483648, %v10868_v9 }
 0x724   :  { %v7095_v34 = vpop.eup %7094  ;;  %v5797_v44 = vmul.f32 %v5789_v61, %v10896_v62  ;;  %7102 = vrsqrt.f32 %v10916_v16  ;;  %v5436_v36 = vand.u32 2147483647, %v10884_v38  ;;  %v5933_v33 = vsel %vm5932_vm9, %v10868_v9, %v5931_v27 }
 0x725   :  { %v6031_v52 = vsel %vm10863_vm2, %v7095_v34, 0.0  ;;  %v6009_v11 = vmul.f32 %v5993_v25, %v5993_v25  ;;  %v6277_v58 = vadd.f32 -0.2145988, %v5860_v29  ;;  %v5819_v3 = vadd.f32 0.03089188, %v5811_v49 }
 0x726   :  { %v6039_v54 = vsel %vm5617_vm12, %v6031_v52, 0.0  ;;  %v6262_v41 = vadd.f32 -0.017088126, %v5797_v44  ;;  %v10935_v7 = vmin.f32 %v5436_v36, 1.0  ;;  %v10941_v46 = vmul.f32 %v10786_v48, %v10579_v17 }
 0x727   :  { %6040 = vadd.xlane.f32.xlu1 %v6039_v54  ;;  %7104 = vrcp.f32 %v6009_v11  ;;  %v5876_v1 = vmul.f32 %v6277_v58, %v10845_v5  ;;  %v5827_v50 = vmul.f32 %v5819_v3, %v10893_v22  ;;  %vm5934_vm10 = vcmp.eq.f32.partialorder %v10868_v9, 0.0 }
 0x728   :  { %v5813_v56 = vmul.f32 %v6262_v41, %v10896_v62  ;;  %v5444_v2 = vmul.f32 -0.0012624911, %v10935_v7  ;;  %v5556_v45 = vsub.s32 %v10491_v0, %v10481_v42  ;;  %v5936_v43 = vsel %vm5934_vm10, %v5935_v57, %v5933_v33 }
 0x729   :  { %v7097_v60 = vpop.eup %7096  ;;  %v5884_v24 = vadd.f32 1.5707963, %v5876_v1  ;;  %v6268_v30 = vadd.f32 -0.050174303, %v5827_v50  ;;  %v10951_v17 = vsub.f32 1.0, %v10935_v7  ;;  %v6000_v35 = vsub.s32 %v10539_v59, %v10481_v42 }
 0x72a   :  { %v6034_v5 = vsel %vm10919_vm8, %v7097_v60, 0.0  ;;  %v5821_v31 = vadd.f32 0.03089188, %v5813_v56  ;;  %v5448_v18 = vadd.f32 0.00667009, %v5444_v2  ;;  %v7099_v48 = vpop.eup %7098  ;;  %vm10958_vm11 = vcmp.ge.s32.totalorder %v5556_v45, 2 }
 0x72b   :  { %v6048_v9 = vsel %vm5617_vm12, %v6034_v5, 0.0  ;;  %v5956_v13 = vmul.f32 %v5936_v43, %v5884_v24  ;;  %v5843_v6 = vmul.f32 %v6268_v30, %v10893_v22  ;;  %v5766_v55 = vand.u32 2147483647, %v10941_v46  ;;  %v7101_v0 = vpop.eup %7100 }
 0x72c   :  { %6049 = vadd.xlane.f32.xlu0 %v6048_v9  ;;  %v5829_v15 = vmul.f32 %v5821_v31, %v10896_v62  ;;  %v5452_v28 = vmul.f32 %v5448_v18, %v10935_v7  ;;  %vm5964_vm13 = vcmp.lt.f32.partialorder %v10772_v32, 0.0  ;;  %v5924_v14 = vmul.f32 %v7099_v48, %v10903_v4 }
 0x72d   :  { %v5972_v19 = vsub.f32 3.1415927, %v5956_v13  ;;  %v5851_v10 = vadd.f32 0.08897899, %v5843_v6  ;;  %7106 = vrsqrt.f32 %v10951_v17  ;;  %v10968_v25 = vmin.f32 %v5766_v55, 1.0 }
 0x72e   :  { %v7103_v12 = vpop.eup %7102  ;;  %v6270_v39 = vadd.f32 -0.050174303, %v5829_v15  ;;  %v6246_v23 = vadd.f32 -0.017088126, %v5452_v28  ;;  %vm5925_vm14 = vcmp.eq.f32.partialorder %v10903_v4, inf  ;;  %v5928_v57 = vand.u32 2147483648, %v10903_v4 }
 0x72f   :  { %v5980_v27 = vsel %vm5964_vm13, %v5972_v19, %v5956_v13  ;;  %v5859_v61 = vmul.f32 %v5851_v10, %v10893_v22  ;;  %v5782_v44 = vmul.f32 -0.0012624911, %v10968_v25  ;;  %v10976_v36 = vmul.f32 %v7101_v0, %v10511_v21 }
 0x730   :  { %v5988_v29 = vmul.f32 0.31830987, %v5980_v27  ;;  %v5845_v59 = vmul.f32 %v6270_v39, %v10896_v62  ;;  %v5460_v49 = vmul.f32 %v6246_v23, %v10935_v7  ;;  %v5926_v58 = vsel %vm5925_vm14, %v10903_v4, %v5924_v14 }
 0x731   :  { %v7105_v34 = vpop.eup %7104  ;;  %v6276_v32 = vadd.f32 -0.2145988, %v5859_v61  ;;  %v5790_v1 = vadd.f32 0.00667009, %v5782_v44  ;;  %v5938_v21 = vmul.f32 %v7103_v12, %v10916_v16  ;;  %v10986_v2 = vsub.f32 1.0, %v10968_v25 }
 0x732   :  { %v6033_v52 = vsel %vm10958_vm11, %v7105_v34, 0.0  ;;  %v5996_v11 = vadd.f32 0.0001, %v5988_v29  ;;  %v5853_v3 = vadd.f32 0.08897899, %v5845_v59  ;;  %vm5927_vm15 = vcmp.eq.f32.partialorder %v10903_v4, 0.0 }
 0x733   :  { %v6045_v54 = vsel %vm5617_vm12, %v6033_v52, 0.0  ;;  %v5875_v33 = vmul.f32 %v6276_v32, %v10893_v22  ;;  %v5464_v41 = vadd.f32 0.03089188, %v5460_v49  ;;  %v5798_v24 = vmul.f32 %v5790_v1, %v10968_v25 }
 0x734   :  { %6046 = vadd.xlane.f32.xlu1 %v6045_v54  ;;  %v6012_v50 = vmul.f32 %v5996_v11, %v5996_v11  ;;  %v5861_v56 = vmul.f32 %v5853_v3, %v10896_v62  ;;  %vm10991_vm0 = vcmp.ge.s32.totalorder %v6000_v35, 2  ;;  %v5929_v43 = vsel %vm5927_vm15, %v5928_v57, %v5926_v58 }
 0x735   :  { %v5883_v60 = vadd.f32 1.5707963, %v5875_v33  ;;  %v5468_v45 = vmul.f32 %v5464_v41, %v10935_v7  ;;  %vm5939_vm1 = vcmp.eq.f32.partialorder %v10916_v16, inf  ;;  %v6263_v18 = vadd.f32 -0.017088126, %v5798_v24 }
 0x736   :  { %7108 = vrcp.f32 %v6012_v50  ;;  %v6278_v30 = vadd.f32 -0.2145988, %v5861_v56  ;;  %v5940_v4 = vsel %vm5939_vm1, %v10916_v16, %v5938_v21  ;;  %v5437_v9 = vand.u32 2147483647, %v10976_v36 }
 0x737   :  { %v5955_v5 = vmul.f32 %v5929_v43, %v5883_v60  ;;  %v6250_v31 = vadd.f32 -0.050174303, %v5468_v45  ;;  %7110 = vrsqrt.f32 %v10986_v2  ;;  %v7107_v13 = vpop.eup %7106  ;;  %v5942_v55 = vand.u32 2147483648, %v10916_v16 }
 0x738   :  { %v5877_v48 = vmul.f32 %v6278_v30, %v10896_v62  ;;  %v5814_v15 = vmul.f32 %v6263_v18, %v10968_v25  ;;  %vm5963_vm2 = vcmp.lt.f32.partialorder %v10852_v37, 0.0  ;;  %vm5941_vm3 = vcmp.eq.f32.partialorder %v10916_v16, 0.0 }
 0x739   :  { %v5971_v6 = vsub.f32 3.1415927, %v5955_v5  ;;  %v5476_v0 = vmul.f32 %v6250_v31, %v10935_v7  ;;  %v11005_v62 = vmin.f32 %v5437_v9, 1.0  ;;  %v5943_v35 = vsel %vm5941_vm3, %v5942_v55, %v5940_v4 }
 0x73a   :  { %v5885_v28 = vadd.f32 1.5707963, %v5877_v48  ;;  %v5822_v12 = vadd.f32 0.03089188, %v5814_v15  ;;  %v5517_v23 = vmul.f32 %v7107_v13, %v10951_v17  ;;  %vm5965_vm5 = vcmp.lt.f32.partialorder %v10858_v8, 0.0 }
 0x73b   :  { %v5979_v19 = vsel %vm5963_vm2, %v5971_v6, %v5955_v5  ;;  %v5480_v10 = vadd.f32 0.08897899, %v5476_v0  ;;  %v5445_v27 = vmul.f32 -0.0012624911, %v11005_v62  ;;  %vm5518_vm6 = vcmp.eq.f32.partialorder %v10951_v17, inf }
 0x73c   :  { %v5987_v14 = vmul.f32 0.31830987, %v5979_v19  ;;  %v5957_v39 = vmul.f32 %v5943_v35, %v5885_v28  ;;  %v5830_v37 = vmul.f32 %v5822_v12, %v10968_v25  ;;  %vm5520_vm7 = vcmp.eq.f32.partialorder %v10951_v17, 0.0 }
 0x73d   :  { %v5484_v61 = vmul.f32 %v5480_v10, %v10935_v7  ;;  %v5449_v59 = vadd.f32 0.00667009, %v5445_v27  ;;  %v11015_v32 = vsub.f32 1.0, %v11005_v62  ;;  %v5519_v8 = vsel %vm5518_vm6, %v10951_v17, %v5517_v23 }
 0x73e   :  { %v5995_v16 = vadd.f32 0.0001, %v5987_v14  ;;  %v5973_v29 = vsub.f32 3.1415927, %v5957_v39  ;;  %v6271_v34 = vadd.f32 -0.050174303, %v5830_v37  ;;  %v5999_v31 = vsub.s32 %v10545_v51, %v10481_v42 }
 0x73f   :  { %v6254_v49 = vadd.f32 -0.2145988, %v5484_v61  ;;  %v5453_v11 = vmul.f32 %v5449_v59, %v11005_v62  ;;  %v5521_v50 = vand.u32 2147483648, %v10951_v17  ;;  %vm5536_vm9 = vcmp.lt.f32.partialorder %v10884_v38, 0.0 }
 0x740   :  { %v7109_v57 = vpop.eup %7108  ;;  %v6011_v44 = vmul.f32 %v5995_v16, %v5995_v16  ;;  %v5981_v52 = vsel %vm5965_vm5, %v5973_v29, %v5957_v39  ;;  %v5846_v33 = vmul.f32 %v6271_v34, %v10968_v25  ;;  %vm5946_vm10 = vcmp.eq.f32.partialorder %v10986_v2, inf }
 0x741   :  { %v6036_v58 = vsel %vm10991_vm0, %v7109_v57, 0.0  ;;  %v5989_v3 = vmul.f32 0.31830987, %v5981_v52  ;;  %v5492_v54 = vmul.f32 %v6254_v49, %v10935_v7  ;;  %v7111_v41 = vpop.eup %7110  ;;  %v6247_v56 = vadd.f32 -0.017088126, %v5453_v11 }
 0x742   :  { %v6054_v1 = vsel %vm5617_vm12, %v6036_v58, 0.0  ;;  %7112 = vrcp.f32 %v6011_v44  ;;  %v5854_v45 = vadd.f32 0.08897899, %v5846_v33  ;;  %v5522_v24 = vsel %vm5520_vm7, %v5521_v50, %v5519_v8 }
 0x743   :  { %6055 = vadd.xlane.f32.xlu0 %v6054_v1  ;;  %v5997_v21 = vadd.f32 0.0001, %v5989_v3  ;;  %v5496_v60 = vadd.f32 1.5707963, %v5492_v54  ;;  %7114 = vrsqrt.f32 %v11015_v32  ;;  %v5461_v7 = vmul.f32 %v6247_v56, %v11005_v62 }
 0x744   :  { %v5862_v30 = vmul.f32 %v5854_v45, %v10968_v25  ;;  %v5945_v5 = vmul.f32 %v7111_v41, %v10986_v2  ;;  %vm6003_vm13 = vcmp.ge.s32.totalorder %v5999_v31, 2  ;;  %v5949_v0 = vand.u32 2147483648, %v10986_v2 }
 0x745   :  { %v6013_v22 = vmul.f32 %v5997_v21, %v5997_v21  ;;  %v5532_v43 = vmul.f32 %v5522_v24, %v5496_v60  ;;  %v5465_v18 = vadd.f32 0.03089188, %v5461_v7  ;;  %v6001_v15 = vsub.s32 %v10568_v40, %v10481_v42 }
 0x746   :  { %v6279_v4 = vadd.f32 -0.2145988, %v5862_v30  ;;  %v5947_v6 = vsel %vm5946_vm10, %v10986_v2, %v5945_v5  ;;  %vm5948_vm14 = vcmp.eq.f32.partialorder %v10986_v2, 0.0  ;;  %vm5966_vm0 = vcmp.lt.f32.partialorder %v10941_v46, 0.0 }
 0x747   :  { %7116 = vrcp.f32 %v6013_v22  ;;  %v5540_v48 = vsub.f32 3.1415927, %v5532_v43  ;;  %v5469_v17 = vmul.f32 %v5465_v18, %v11005_v62  ;;  %v5950_v35 = vsel %vm5948_vm14, %v5949_v0, %v5947_v6 }
 0x748   :  { %v5878_v13 = vmul.f32 %v6279_v4, %v10968_v25  ;;  %vm6005_vm15 = vcmp.ge.s32.totalorder %v6001_v15, 2  ;;  %vm5525_vm1 = vcmp.eq.f32.partialorder %v11015_v32, inf  ;;  %v5528_v46 = vand.u32 2147483648, %v11015_v32  ;;  %v4937_v15 = vld [vmem:[#allocation4] sm:$0x1] }
 0x749   :  { %v5544_v9 = vsel %vm5536_vm9, %v5540_v48, %v5532_v43  ;;  %v6251_v51 = vadd.f32 -0.050174303, %v5469_v17  ;;  %vm5527_vm2 = vcmp.eq.f32.partialorder %v11015_v32, 0.0  ;;  %vm5537_vm3 = vcmp.lt.f32.partialorder %v10976_v36, 0.0 }
 0x74a   :  { %v5548_v55 = vmul.f32 0.31830987, %v5544_v9  ;;  %v5886_v28 = vadd.f32 1.5707963, %v5878_v13  ;;  %v6002_v1 = vsub.s32 %v10561_v47, %v10481_v42 }
 0x74b   :  { %v5477_v10 = vmul.f32 %v6251_v51, %v11005_v62 }
 0x74c   :  { %v7113_v38 = vpop.eup %7112  ;;  %v5552_v19 = vadd.f32 0.0001, %v5548_v55  ;;  %v5958_v14 = vmul.f32 %v5950_v35, %v5886_v28  ;;  %vm6006_vm5 = vcmp.ge.s32.totalorder %v6002_v1, 2 }
 0x74d   :  { %v7115_v12 = vpop.eup %7114  ;;  %v6035_v25 = vsel %vm6003_vm13, %v7113_v38, 0.0  ;;  %v5481_v27 = vadd.f32 0.08897899, %v5477_v10 }
 0x74e   :  { %v6051_v39 = vsel %vm5617_vm12, %v6035_v25, 0.0  ;;  %v5564_v23 = vmul.f32 %v5552_v19, %v5552_v19  ;;  %v5974_v61 = vsub.f32 3.1415927, %v5958_v14  ;;  %v5524_v2 = vmul.f32 %v7115_v12, %v11015_v32 }
 0x74f   :  { %6052 = vadd.xlane.f32.xlu1 %v6051_v39  ;;  %v5485_v40 = vmul.f32 %v5481_v27, %v11005_v62  ;;  %v4796_v27 = vld [vmem:[#allocation4] sm:$0x1] }
 0x750   :  { %7118 = vrcp.f32 %v5564_v23  ;;  %v5982_v16 = vsel %vm5966_vm0, %v5974_v61, %v5958_v14  ;;  %v5526_v52 = vsel %vm5525_vm1, %v11015_v32, %v5524_v2 }
 0x751   :  { %v7117_v37 = vpop.eup %7116  ;;  %v5990_v59 = vmul.f32 0.31830987, %v5982_v16  ;;  %v6255_v49 = vadd.f32 -0.2145988, %v5485_v40  ;;  %v5529_v58 = vsel %vm5527_vm2, %v5528_v46, %v5526_v52 }
 0x752   :  { %v6037_v29 = vsel %vm6005_vm15, %v7117_v37, 0.0 }
 0x753   :  { %v6057_v34 = vsel %vm5617_vm12, %v6037_v29, 0.0  ;;  %v5998_v57 = vadd.f32 0.0001, %v5990_v59  ;;  %v5493_v44 = vmul.f32 %v6255_v49, %v11005_v62 }
 0x754   :  { %6058 = vadd.xlane.f32.xlu0 %v6057_v34 }
 0x755   :  { %v6014_v8 = vmul.f32 %v5998_v57, %v5998_v57  ;;  %v5497_v11 = vadd.f32 1.5707963, %v5493_v44 }
 0x757   :  { %7120 = vrcp.f32 %v6014_v8  ;;  %v5533_v3 = vmul.f32 %v5529_v58, %v5497_v11 }
 0x759   :  { %v5541_v33 = vsub.f32 3.1415927, %v5533_v3 }
 0x75a   :  { %v7119_v54 = vpop.eup %7118 }
 0x75b   :  { %v5576_v41 = vsel %vm10958_vm11, %v7119_v54, 0.0  ;;  %v5545_v50 = vsel %vm5537_vm3, %v5541_v33, %v5533_v3  ;;  %vm4792_vm11 = vcmask 516096  }
 0x75c   :  { %v5584_v62 = vsel %vm700_vm4, %v5576_v41, 0.0  ;;  %v5549_v56 = vmul.f32 0.31830987, %v5545_v50  ;;  %v4934_v63 = vsel %vm4792_vm11, %v10476_v53, 0.0  ;;  %v4793_v7 = vsel %vm4792_vm11, %v10355_v26, 0.0 }
 0x75d   :  { %5585 = vadd.xlane.f32.xlu1 %v5584_v62 }
 0x75e   :  { %v5553_v21 = vadd.f32 0.0001, %v5549_v56 }
 0x760   :  { %v5565_v32 = vmul.f32 %v5553_v21, %v5553_v21 }
 0x761   :  { %v7121_v60 = vpop.eup %7120 }
 0x762   :  { %v6038_v45 = vsel %vm6006_vm5, %v7121_v60, 0.0  ;;  %7122 = vrcp.f32 %v5565_v32 }
 0x763   :  { %v6060_v24 = vsel %vm5617_vm12, %v6038_v45, 0.0 }
 0x764   :  { %6061 = vadd.xlane.f32.xlu0 %v6060_v24 }
 0x768   :  { %4935 = vadd.xlane.f32.xlu0 %v4934_v63 }
 0x76c   :  { %v7123_v36 = vpop.eup %7122 }
 0x76d   :  { %v5577_v42 = vsel %vm10919_vm8, %v7123_v36, 0.0 }
 0x76e   :  { %v5587_v47 = vsel %vm700_vm4, %v5577_v42, 0.0  ;;  %vm4798_vm4 = vcmask 0  }
 0x76f   :  { %5588 = vadd.xlane.f32.xlu1 %v5587_v47 }
 0x773   :  { %4794 = vadd.xlane.f32.xlu1 %v4793_v7 }
 0x7a1   :  { %v5583_v22 = vpop.xlane.xlu1 %5582 }
 0x7ab   :  { %v5580_v43 = vpop.xlane.xlu0 %5579 }
 0x7ac   :  { %v5590_v10 = vadd.f32 %v5583_v22, %v5580_v43 }
 0x7af   :  { %v6044_v5 = vpop.xlane.xlu0 %6043 }
 0x7b4   :  { %v6041_v30 = vpop.xlane.xlu1 %6040 }
 0x7b5   :  { %v6063_v18 = vadd.f32 %v6044_v5, %v6041_v30 }
 0x7b9   :  { %v6050_v4 = vpop.xlane.xlu0 %6049 }
 0x7c1   :  { %v6047_v31 = vpop.xlane.xlu1 %6046 }
 0x7c2   :  { %v6064_v48 = vadd.f32 %v6063_v18, %v6047_v31 }
 0x7c4   :  { %v6065_v53 = vadd.f32 %v6064_v48, %v6050_v4 }
 0x7d0   :  { %v6056_v17 = vpop.xlane.xlu0 %6055 }
 0x7dc   :  { %v6053_v9 = vpop.xlane.xlu1 %6052 }
 0x7dd   :  { %v6066_v13 = vadd.f32 %v6065_v53, %v6053_v9 }
 0x7df   :  { %v6067_v6 = vadd.f32 %v6066_v13, %v6056_v17 }
 0x7e1   :  { %v6059_v20 = vpop.xlane.xlu0 %6058 }
 0x7e2   :  { %v6068_v55 = vadd.f32 %v6067_v6, %v6059_v20 }
 0x7ea   :  { %v5586_v38 = vpop.xlane.xlu1 %5585 }
 0x7eb   :  { %v5591_v25 = vadd.f32 %v5590_v10, %v5586_v38 }
 0x7f1   :  { %v6062_v0 = vpop.xlane.xlu0 %6061 }
 0x7f2   :  { %v6069_v51 = vadd.f32 %v6068_v55, %v6062_v0 }
 0x7f4   :  { %v6070_v26 = vrot.slane %v6069_v51, 4 }
 0x7f5   :  { %v4936_v28 = vpop.xlane.xlu0 %4935 }
 0x7f6   :  { %v6071_v19 = vadd.f32 %v6070_v26, %v6069_v51  ;;  %v4938_v35 = vadd.f32 %v4937_v15, %v4936_v28 }
 0x7f8   :  { %4939 = vst.msk [vmem:[%s11097_s11 + $0x1] sm:$0x1] %vm4798_vm4, %v4938_v35  ;;  %v6072_v12 = vrot.slane %v6071_v19, 2 }
 0x7fa   :  { %v6073_v39 = vadd.f32 %v6072_v12, %v6071_v19 }
 0x7fc   :  { %v5589_v14 = vpop.xlane.xlu1 %5588  ;;  %v6074_v2 = vrot.slane %v6073_v39, 1 }
 0x7fd   :  { %v5592_v23 = vadd.f32 %v5591_v25, %v5589_v14 }
 0x7fe   :  { %v6075_v59 = vadd.f32 %v6074_v2, %v6073_v39 }
 0x7ff   :  { %v5593_v61 = vrot.slane %v5592_v23, 4 }
 0x800   :  { %v4795_v40 = vpop.xlane.xlu1 %4794  ;;  %v6077_v44 = vmul.f32 0.0004960318, %v6075_v59 }
 0x801   :  { %v5594_v37 = vadd.f32 %v5593_v61, %v5592_v23  ;;  %v4797_v16 = vadd.f32 %v4796_v27, %v4795_v40 }
 0x803   :  { %v5595_v29 = vrot.slane %v5594_v37, 2  ;;  %4799 = vst.msk [vmem:[%s11097_s11] sm:$0x1] %vm4798_vm4, %v4797_v16 }
 0x805   :  { %v5596_v49 = vadd.f32 %v5595_v29, %v5594_v37 }
 0x807   :  { %v5597_v34 = vrot.slane %v5596_v49, 1 }
 0x809   :  { %v5598_v57 = vadd.f32 %v5597_v34, %v5596_v49 }
 0x80b   :  { %v5600_v52 = vmul.f32 0.002016129, %v5598_v57 }
 0x80d   :  { %v6078_v46 = vadd.f32 %v6077_v44, %v5600_v52 }
 0x80f   :  { %v6080_v8 = vmul.f32 0.33333334, %v6078_v46 }
 0x811   :  { %6081 = vst.msk [vmem:[#allocation5] sm:$0x1] %vm4798_vm4, %v6080_v8 }
 0x812   :  { %7139 = shalt.err (!%p7136_p4)
}
 0x813   :  { %s7140_s29 = scalar_lea.hbm %s11098_s12, 16 }
 0x814   :  { %p7141_p5 = scmp.ne.s32.totalorder %s11098_s12, %s7140_s29  ;;  %p7144_p6 = scmp.lt.u32.totalorder %s7140_s29, %s11098_s12 }
 0x816   :  { %p7146_p7 = pnand %p7144_p6, %p7141_p5 }
 0x818   :  { %7149 = shalt.err (!%p7146_p7)
}
 0x819   :  { %6093 = dma.vmem_to_hbm [thread:$0]  %s6091_s26, 16, %s11098_s12, [#allocation6]  }
 0x81a   :  { %7150 = dma.done.wait [#allocation6], 16  }
 0x81b   :  { %7151 = vsyncadd [#allocation6], 4294967280 }
 0x81c   :  { %6099 = vsyncpa [#allocation6], 1 }

</bundles_post_ra>
